<compile_context>
chip_gen: v7x
topology: tpu7x:2x2x1
jax: 0.10.0
libtpu: 0.0.40
codegen_flags: <defaults>
</compile_context>

<pallas_src>
import functools

import numpy as np
import jax
import jax.numpy as jnp
from jax.experimental import pallas as pl
from jax.experimental.pallas import tpu as pltpu


# ---------------------------------------------------------------------------
# Trace-time helpers (everything below runs INSIDE the single Pallas kernel)
# ---------------------------------------------------------------------------
def _gelu(x):
    # TODO(synk): PyTorch nn.GELU defaults to the exact erf GELU; the tanh
    # approximation is used for robust Mosaic lowering (diff ~1e-3).
    return jax.nn.gelu(x, approximate=True)


class _ShiftCache:
    """Zero-filled time shifts via XLU roll + memoised lane masks."""

    def __init__(self):
        self._masks = {}

    def __call__(self, v, off):
        if off == 0:
            return v
        c, t = v.shape
        key = (c, t, off)
        mask = self._masks.get(key)
        if mask is None:
            lane = jax.lax.broadcasted_iota(jnp.int32, (c, t), 1)
            mask = (lane < (t - off)) if off > 0 else (lane >= (-off))
            self._masks[key] = mask
        rolled = pltpu.roll(v, (-off) % t, 1)          # rolled[:, t] = v[:, t+off] mod T
        return jnp.where(mask, rolled, 0.0)


def _conv_same(shift, v, p, ksize, dilation=1):
    """PyTorch Conv1d(padding='same') as a single im2col matmul.

    v: (C_in, T);  p["w"]: (C_out, ksize*C_in) with the tap index major
    (i.e. torch weight.permute(0, 2, 1).reshape(C_out, -1) layout);
    p["b"]: (C_out, 1).
    """
    w = p["w"][...]
    b = p["b"][...]
    if ksize == 1:
        return jnp.dot(w, v, preferred_element_type=jnp.float32) + b
    pad_l = (dilation * (ksize - 1)) // 2
    cols = [shift(v, kk * dilation - pad_l) for kk in range(ksize)]
    stacked = jnp.concatenate(cols, axis=0)            # (ksize*C_in, T), sublane concat
    return jnp.dot(w, stacked, preferred_element_type=jnp.float32) + b


def _res_block(shift, v, p, ksize):
    """SimpleResBlock: conv -> GELU -> conv -> + input."""
    h = _gelu(_conv_same(shift, v, p["c1"], ksize))
    return _conv_same(shift, h, p["c2"], ksize) + v


def _adv_block(shift, v, p, ksize, dilation):
    """AdvancedConvBlock: dilated conv -> gated convs -> 1x1 conv -> + input."""
    x = _conv_same(shift, v, p["dil"], ksize, dilation)
    flow = jnp.tanh(_conv_same(shift, x, p["c1"], ksize))
    gate = jax.nn.sigmoid(_conv_same(shift, x, p["c2"], ksize))
    res = _conv_same(shift, flow * gate, p["fin"], 1)
    return res + v


def _hvat_kernel(treedef, ksize, dilation, n_layers, x_ref, *refs):
    o_ref = refs[-1]
    bundle = jax.tree_util.tree_unflatten(treedef, refs[:-1])
    P, C = bundle["params"], bundle["consts"]
    shift = _ShiftCache()

    v = x_ref[0]                                       # (n_electrodes, T)
    v = _conv_same(shift, v, P["spatial_reduce"], 1)   # 1x1 spatial reduce
    for p in P["denoiser"]:                            # SimpleResBlocks
        v = _res_block(shift, v, p, ksize)

    skips = []                                         # ---- encoder ----
    for li in range(n_layers):
        for bp in P["encoder"]["layers"][li]:
            v = _adv_block(shift, v, bp, ksize, dilation)
        skips.append(v)
        # Conv1d(k=1, stride=s) == column-selection matmul + pointwise conv
        v = jnp.dot(v, C["down_sel"][li][...], preferred_element_type=jnp.float32)
        v = _conv_same(shift, v, P["encoder"]["down"][li], 1)

    v = _gelu(_conv_same(shift, v, P["mapper"], ksize))  # ---- mapper ----

    dec_outs = []                                      # ---- decoder ----
    for li in range(n_layers):
        # Upsample(mode='linear', align_corners=False) as a matmul
        v = jnp.dot(v, C["up_mat"][li][...], preferred_element_type=jnp.float32)
        vc = jnp.concatenate([v, skips[n_layers - 1 - li]], axis=0)   # channel concat
        dp = P["decoder"][li]
        v = _conv_same(shift, vc, dp["reduce"], ksize)
        for bp in dp["blocks"]:
            v = _adv_block(shift, v, bp, ksize, dilation)
        dec_outs.append(v)

    # multi-scale aggregation (linear interp to the finest time) + main head
    feats = [jnp.dot(f, C["agg_mat"][j][...], preferred_element_type=jnp.float32)
             for j, f in enumerate(dec_outs[:-1])]
    feats.append(dec_outs[-1])
    feat = jnp.concatenate(feats, axis=0)              # (n_layers*nf, T)
    pred = _conv_same(shift, feat, P["head"], ksize)   # (C_out, T)

    # eval-mode _convert2quats: F.normalize(p=2, dim=2, eps=1e-12) per quat group
    nsq = jnp.dot(C["quat_group"][...], pred * pred, preferred_element_type=jnp.float32)
    o_ref[0] = pred * jax.lax.rsqrt(jnp.maximum(nsq, 1e-24))
    # TODO(synk): training-mode forward also returns shallow_pred_head outputs;
    # eval-mode forward (implemented here) returns only the main prediction.


# ---------------------------------------------------------------------------
# Constant matrices (trace-time numpy)
# ---------------------------------------------------------------------------
def _interp_matrix(l_in, l_out):
    """F.interpolate(mode='linear', align_corners=False) as an (l_in, l_out) matmul."""
    m = np.zeros((l_in, l_out), np.float32)
    scale = l_in / l_out
    for j in range(l_out):
        src = max((j + 0.5) * scale - 0.5, 0.0)
        i0 = int(np.floor(src))
        lam = src - i0
        i1 = min(i0 + 1, l_in - 1)
        m[i0, j] += 1.0 - lam
        m[i1, j] += lam
    return jnp.asarray(m)


def _subsample_matrix(l_in, stride):
    """Column-selection matrix so x @ D == x[:, ::stride] (Conv1d k=1, stride)."""
    l_out = (l_in - 1) // stride + 1
    m = np.zeros((l_in, l_out), np.float32)
    m[np.arange(l_out) * stride, np.arange(l_out)] = 1.0
    return jnp.asarray(m)


# ---------------------------------------------------------------------------
# Forward wrapper: ONE pallas_call for the whole network
# ---------------------------------------------------------------------------
def hvatnet_forward(x, params, *, kernel_size, dilation, strides):
    B, _, T = x.shape
    n_layers = len(strides)
    assert T % int(np.prod(strides)) == 0
    c_out = params["head"]["b"].shape[0]

    lens = [T]
    down_sel = []
    for s in strides:
        down_sel.append(_subsample_matrix(lens[-1], s))
        lens.append((lens[-1] - 1) // s + 1)
    up_mat = []
    cur = lens[-1]
    for s in strides[::-1]:
        up_mat.append(_interp_matrix(cur, cur * s))
        cur = cur * s
    dec_lens = [lens[n_layers - 1 - i] for i in range(n_layers)]
    agg_mat = [_interp_matrix(dec_lens[j], dec_lens[-1]) for j in range(n_layers - 1)]
    quat_group = jnp.asarray(np.kron(np.eye(c_out // 4, dtype=np.float32),
                                     np.ones((4, 4), np.float32)))

    bundle = {"params": params,
              "consts": {"down_sel": down_sel, "up_mat": up_mat,
                         "agg_mat": agg_mat, "quat_group": quat_group}}
    leaves, treedef = jax.tree_util.tree_flatten(bundle)

    def _const_index_map(nd):
        def im(i):
            return (0,) * nd
        return im

    in_specs = [pl.BlockSpec((1, x.shape[1], T), lambda i: (i, 0, 0))]
    in_specs += [pl.BlockSpec(l.shape, _const_index_map(l.ndim)) for l in leaves]

    kernel = functools.partial(_hvat_kernel, treedef, kernel_size, dilation, n_layers)
    out = pl.pallas_call(
        kernel,
        grid=(B,),
        in_specs=in_specs,
        out_specs=pl.BlockSpec((1, c_out, T), lambda i: (i, 0, 0)),
        out_shape=jax.ShapeDtypeStruct((B, c_out, T), jnp.float32),
        compiler_params=pltpu.CompilerParams(dimension_semantics=("parallel",)),
    )(x, *leaves)
    return out.reshape(B, c_out // 4, 4, T)


# ---------------------------------------------------------------------------
# Parameters (deterministic synthetic init, PyTorch Conv1d-like uniform bounds)
# Weights are stored pre-flattened for im2col: (C_out, K*C_in), tap-major.
# ---------------------------------------------------------------------------
def _conv_params(key, c_in, c_out, k):
    kw, kb = jax.random.split(key)
    bound = 1.0 / np.sqrt(c_in * k)
    w = jax.random.uniform(kw, (c_out, k * c_in), jnp.float32, -bound, bound)
    b = jax.random.uniform(kb, (c_out, 1), jnp.float32, -bound, bound)
    return {"w": w, "b": b}


def init_params(key, *, n_electrodes, n_channels_out, n_res_blocks,
                n_blocks_per_layer, n_filters, kernel_size, strides):
    n_layers = len(strides)
    keys = iter(jax.random.split(key, 1024))
    nxt = lambda: next(keys)

    def blk():
        return {"dil": _conv_params(nxt(), n_filters, n_filters, kernel_size),
                "c1": _conv_params(nxt(), n_filters, n_filters, kernel_size),
                "c2": _conv_params(nxt(), n_filters, n_filters, kernel_size),
                "fin": _conv_params(nxt(), n_filters, n_filters, 1)}

    return {
        "spatial_reduce": _conv_params(nxt(), n_electrodes, n_filters, 1),
        "denoiser": [{"c1": _conv_params(nxt(), n_filters, n_filters, kernel_size),
                      "c2": _conv_params(nxt(), n_filters, n_filters, kernel_size)}
                     for _ in range(n_res_blocks)],
        "encoder": {
            "layers": [[blk() for _ in range(n_blocks_per_layer)]
                       for _ in range(n_layers)],
            "down": [_conv_params(nxt(), n_filters, n_filters, 1)
                     for _ in range(n_layers)],
        },
        "mapper": _conv_params(nxt(), n_filters, n_filters, kernel_size),
        "decoder": [{"reduce": _conv_params(nxt(), 2 * n_filters, n_filters, kernel_size),
                     "blocks": [blk() for _ in range(n_blocks_per_layer)]}
                    for _ in range(n_layers)],
        "head": _conv_params(nxt(), n_filters * n_layers, n_channels_out, kernel_size),
    }


if __name__ == "__main__":
    cfg = dict(n_electrodes=8, n_channels_out=8, n_res_blocks=2,
               n_blocks_per_layer=1, n_filters=16, kernel_size=3,
               strides=(2, 2, 2))
    DILATION = 1

    key = jax.random.PRNGKey(0)
    pkey, xkey = jax.random.split(key)
    params = init_params(pkey, **cfg)

    B, T = 2, 256          # lane-dense time axis (multiple of 128), T % prod(strides) == 0
    x = jax.random.normal(xkey, (B, cfg["n_electrodes"], T), jnp.float32)

    fwd = jax.jit(functools.partial(hvatnet_forward,
                                    kernel_size=cfg["kernel_size"],
                                    dilation=DILATION,
                                    strides=cfg["strides"]))
    out = fwd(x, params)
    jax.block_until_ready(out)
    assert out.shape == (B, cfg["n_channels_out"] // 4, 4, T)
    assert bool(jnp.all(jnp.isfinite(out)))
    print("KERNEL_OK")
</pallas_src>

<mosaic_0001>
module attributes {stable_mosaic.version = 11 : i64} {
  func.func @_hvat_kernel(%arg0: i32, %arg1: memref<1x8x256xf32, #tpu.memory_space<vmem>>, %arg2: memref<64x256xf32, #tpu.memory_space<vmem>>, %arg3: memref<128x256xf32, #tpu.memory_space<vmem>>, %arg4: memref<256x128xf32, #tpu.memory_space<vmem>>, %arg5: memref<128x64xf32, #tpu.memory_space<vmem>>, %arg6: memref<64x32xf32, #tpu.memory_space<vmem>>, %arg7: memref<8x8xf32, #tpu.memory_space<vmem>>, %arg8: memref<32x64xf32, #tpu.memory_space<vmem>>, %arg9: memref<64x128xf32, #tpu.memory_space<vmem>>, %arg10: memref<128x256xf32, #tpu.memory_space<vmem>>, %arg11: memref<16x1xf32, #tpu.memory_space<vmem>>, %arg12: memref<16x48xf32, #tpu.memory_space<vmem>>, %arg13: memref<16x1xf32, #tpu.memory_space<vmem>>, %arg14: memref<16x48xf32, #tpu.memory_space<vmem>>, %arg15: memref<16x1xf32, #tpu.memory_space<vmem>>, %arg16: memref<16x48xf32, #tpu.memory_space<vmem>>, %arg17: memref<16x1xf32, #tpu.memory_space<vmem>>, %arg18: memref<16x16xf32, #tpu.memory_space<vmem>>, %arg19: memref<16x1xf32, #tpu.memory_space<vmem>>, %arg20: memref<16x96xf32, #tpu.memory_space<vmem>>, %arg21: memref<16x1xf32, #tpu.memory_space<vmem>>, %arg22: memref<16x48xf32, #tpu.memory_space<vmem>>, %arg23: memref<16x1xf32, #tpu.memory_space<vmem>>, %arg24: memref<16x48xf32, #tpu.memory_space<vmem>>, %arg25: memref<16x1xf32, #tpu.memory_space<vmem>>, %arg26: memref<16x48xf32, #tpu.memory_space<vmem>>, %arg27: memref<16x1xf32, #tpu.memory_space<vmem>>, %arg28: memref<16x16xf32, #tpu.memory_space<vmem>>, %arg29: memref<16x1xf32, #tpu.memory_space<vmem>>, %arg30: memref<16x96xf32, #tpu.memory_space<vmem>>, %arg31: memref<16x1xf32, #tpu.memory_space<vmem>>, %arg32: memref<16x48xf32, #tpu.memory_space<vmem>>, %arg33: memref<16x1xf32, #tpu.memory_space<vmem>>, %arg34: memref<16x48xf32, #tpu.memory_space<vmem>>, %arg35: memref<16x1xf32, #tpu.memory_space<vmem>>, %arg36: memref<16x48xf32, #tpu.memory_space<vmem>>, %arg37: memref<16x1xf32, #tpu.memory_space<vmem>>, %arg38: memref<16x16xf32, #tpu.memory_space<vmem>>, %arg39: memref<16x1xf32, #tpu.memory_space<vmem>>, %arg40: memref<16x96xf32, #tpu.memory_space<vmem>>, %arg41: memref<16x1xf32, #tpu.memory_space<vmem>>, %arg42: memref<16x48xf32, #tpu.memory_space<vmem>>, %arg43: memref<16x1xf32, #tpu.memory_space<vmem>>, %arg44: memref<16x48xf32, #tpu.memory_space<vmem>>, %arg45: memref<16x1xf32, #tpu.memory_space<vmem>>, %arg46: memref<16x48xf32, #tpu.memory_space<vmem>>, %arg47: memref<16x1xf32, #tpu.memory_space<vmem>>, %arg48: memref<16x48xf32, #tpu.memory_space<vmem>>, %arg49: memref<16x1xf32, #tpu.memory_space<vmem>>, %arg50: memref<16x16xf32, #tpu.memory_space<vmem>>, %arg51: memref<16x1xf32, #tpu.memory_space<vmem>>, %arg52: memref<16x16xf32, #tpu.memory_space<vmem>>, %arg53: memref<16x1xf32, #tpu.memory_space<vmem>>, %arg54: memref<16x16xf32, #tpu.memory_space<vmem>>, %arg55: memref<16x1xf32, #tpu.memory_space<vmem>>, %arg56: memref<16x48xf32, #tpu.memory_space<vmem>>, %arg57: memref<16x1xf32, #tpu.memory_space<vmem>>, %arg58: memref<16x48xf32, #tpu.memory_space<vmem>>, %arg59: memref<16x1xf32, #tpu.memory_space<vmem>>, %arg60: memref<16x48xf32, #tpu.memory_space<vmem>>, %arg61: memref<16x1xf32, #tpu.memory_space<vmem>>, %arg62: memref<16x16xf32, #tpu.memory_space<vmem>>, %arg63: memref<16x1xf32, #tpu.memory_space<vmem>>, %arg64: memref<16x48xf32, #tpu.memory_space<vmem>>, %arg65: memref<16x1xf32, #tpu.memory_space<vmem>>, %arg66: memref<16x48xf32, #tpu.memory_space<vmem>>, %arg67: memref<16x1xf32, #tpu.memory_space<vmem>>, %arg68: memref<16x48xf32, #tpu.memory_space<vmem>>, %arg69: memref<16x1xf32, #tpu.memory_space<vmem>>, %arg70: memref<16x16xf32, #tpu.memory_space<vmem>>, %arg71: memref<16x1xf32, #tpu.memory_space<vmem>>, %arg72: memref<16x48xf32, #tpu.memory_space<vmem>>, %arg73: memref<16x1xf32, #tpu.memory_space<vmem>>, %arg74: memref<16x48xf32, #tpu.memory_space<vmem>>, %arg75: memref<16x1xf32, #tpu.memory_space<vmem>>, %arg76: memref<16x48xf32, #tpu.memory_space<vmem>>, %arg77: memref<16x1xf32, #tpu.memory_space<vmem>>, %arg78: memref<16x16xf32, #tpu.memory_space<vmem>>, %arg79: memref<8x1xf32, #tpu.memory_space<vmem>>, %arg80: memref<8x144xf32, #tpu.memory_space<vmem>>, %arg81: memref<16x1xf32, #tpu.memory_space<vmem>>, %arg82: memref<16x48xf32, #tpu.memory_space<vmem>>, %arg83: memref<16x1xf32, #tpu.memory_space<vmem>>, %arg84: memref<16x8xf32, #tpu.memory_space<vmem>>, %arg85: memref<1x8x256xf32, #tpu.memory_space<vmem>>) attributes {dimension_semantics = [#tpu.dimension_semantics<parallel>], iteration_bounds = array<i64: 2>, scalar_prefetch = 0 : i64, scratch_operands = 0 : i64, tpu.core_type = #tpu.core_type<tc>, window_params = [{transform_indices = @transform_0, window_bounds = array<i64: 1, 8, 256>}, {pipeline_mode = #tpu.pipeline_mode<synchronous>, transform_indices = @transform_1, window_bounds = array<i64: 64, 256>}, {pipeline_mode = #tpu.pipeline_mode<synchronous>, transform_indices = @transform_2, window_bounds = array<i64: 128, 256>}, {pipeline_mode = #tpu.pipeline_mode<synchronous>, transform_indices = @transform_3, window_bounds = array<i64: 256, 128>}, {pipeline_mode = #tpu.pipeline_mode<synchronous>, transform_indices = @transform_4, window_bounds = array<i64: 128, 64>}, {pipeline_mode = #tpu.pipeline_mode<synchronous>, transform_indices = @transform_5, window_bounds = array<i64: 64, 32>}, {pipeline_mode = #tpu.pipeline_mode<synchronous>, transform_indices = @transform_6, window_bounds = array<i64: 8, 8>}, {pipeline_mode = #tpu.pipeline_mode<synchronous>, transform_indices = @transform_7, window_bounds = array<i64: 32, 64>}, {pipeline_mode = #tpu.pipeline_mode<synchronous>, transform_indices = @transform_8, window_bounds = array<i64: 64, 128>}, {pipeline_mode = #tpu.pipeline_mode<synchronous>, transform_indices = @transform_9, window_bounds = array<i64: 128, 256>}, {pipeline_mode = #tpu.pipeline_mode<synchronous>, transform_indices = @transform_10, window_bounds = array<i64: 16, 1>}, {pipeline_mode = #tpu.pipeline_mode<synchronous>, transform_indices = @transform_11, window_bounds = array<i64: 16, 48>}, {pipeline_mode = #tpu.pipeline_mode<synchronous>, transform_indices = @transform_12, window_bounds = array<i64: 16, 1>}, {pipeline_mode = #tpu.pipeline_mode<synchronous>, transform_indices = @transform_13, window_bounds = array<i64: 16, 48>}, {pipeline_mode = #tpu.pipeline_mode<synchronous>, transform_indices = @transform_14, window_bounds = array<i64: 16, 1>}, {pipeline_mode = #tpu.pipeline_mode<synchronous>, transform_indices = @transform_15, window_bounds = array<i64: 16, 48>}, {pipeline_mode = #tpu.pipeline_mode<synchronous>, transform_indices = @transform_16, window_bounds = array<i64: 16, 1>}, {pipeline_mode = #tpu.pipeline_mode<synchronous>, transform_indices = @transform_17, window_bounds = array<i64: 16, 16>}, {pipeline_mode = #tpu.pipeline_mode<synchronous>, transform_indices = @transform_18, window_bounds = array<i64: 16, 1>}, {pipeline_mode = #tpu.pipeline_mode<synchronous>, transform_indices = @transform_19, window_bounds = array<i64: 16, 96>}, {pipeline_mode = #tpu.pipeline_mode<synchronous>, transform_indices = @transform_20, window_bounds = array<i64: 16, 1>}, {pipeline_mode = #tpu.pipeline_mode<synchronous>, transform_indices = @transform_21, window_bounds = array<i64: 16, 48>}, {pipeline_mode = #tpu.pipeline_mode<synchronous>, transform_indices = @transform_22, window_bounds = array<i64: 16, 1>}, {pipeline_mode = #tpu.pipeline_mode<synchronous>, transform_indices = @transform_23, window_bounds = array<i64: 16, 48>}, {pipeline_mode = #tpu.pipeline_mode<synchronous>, transform_indices = @transform_24, window_bounds = array<i64: 16, 1>}, {pipeline_mode = #tpu.pipeline_mode<synchronous>, transform_indices = @transform_25, window_bounds = array<i64: 16, 48>}, {pipeline_mode = #tpu.pipeline_mode<synchronous>, transform_indices = @transform_26, window_bounds = array<i64: 16, 1>}, {pipeline_mode = #tpu.pipeline_mode<synchronous>, transform_indices = @transform_27, window_bounds = array<i64: 16, 16>}, {pipeline_mode = #tpu.pipeline_mode<synchronous>, transform_indices = @transform_28, window_bounds = array<i64: 16, 1>}, {pipeline_mode = #tpu.pipeline_mode<synchronous>, transform_indices = @transform_29, window_bounds = array<i64: 16, 96>}, {pipeline_mode = #tpu.pipeline_mode<synchronous>, transform_indices = @transform_30, window_bounds = array<i64: 16, 1>}, {pipeline_mode = #tpu.pipeline_mode<synchronous>, transform_indices = @transform_31, window_bounds = array<i64: 16, 48>}, {pipeline_mode = #tpu.pipeline_mode<synchronous>, transform_indices = @transform_32, window_bounds = array<i64: 16, 1>}, {pipeline_mode = #tpu.pipeline_mode<synchronous>, transform_indices = @transform_33, window_bounds = array<i64: 16, 48>}, {pipeline_mode = #tpu.pipeline_mode<synchronous>, transform_indices = @transform_34, window_bounds = array<i64: 16, 1>}, {pipeline_mode = #tpu.pipeline_mode<synchronous>, transform_indices = @transform_35, window_bounds = array<i64: 16, 48>}, {pipeline_mode = #tpu.pipeline_mode<synchronous>, transform_indices = @transform_36, window_bounds = array<i64: 16, 1>}, {pipeline_mode = #tpu.pipeline_mode<synchronous>, transform_indices = @transform_37, window_bounds = array<i64: 16, 16>}, {pipeline_mode = #tpu.pipeline_mode<synchronous>, transform_indices = @transform_38, window_bounds = array<i64: 16, 1>}, {pipeline_mode = #tpu.pipeline_mode<synchronous>, transform_indices = @transform_39, window_bounds = array<i64: 16, 96>}, {pipeline_mode = #tpu.pipeline_mode<synchronous>, transform_indices = @transform_40, window_bounds = array<i64: 16, 1>}, {pipeline_mode = #tpu.pipeline_mode<synchronous>, transform_indices = @transform_41, window_bounds = array<i64: 16, 48>}, {pipeline_mode = #tpu.pipeline_mode<synchronous>, transform_indices = @transform_42, window_bounds = array<i64: 16, 1>}, {pipeline_mode = #tpu.pipeline_mode<synchronous>, transform_indices = @transform_43, window_bounds = array<i64: 16, 48>}, {pipeline_mode = #tpu.pipeline_mode<synchronous>, transform_indices = @transform_44, window_bounds = array<i64: 16, 1>}, {pipeline_mode = #tpu.pipeline_mode<synchronous>, transform_indices = @transform_45, window_bounds = array<i64: 16, 48>}, {pipeline_mode = #tpu.pipeline_mode<synchronous>, transform_indices = @transform_46, window_bounds = array<i64: 16, 1>}, {pipeline_mode = #tpu.pipeline_mode<synchronous>, transform_indices = @transform_47, window_bounds = array<i64: 16, 48>}, {pipeline_mode = #tpu.pipeline_mode<synchronous>, transform_indices = @transform_48, window_bounds = array<i64: 16, 1>}, {pipeline_mode = #tpu.pipeline_mode<synchronous>, transform_indices = @transform_49, window_bounds = array<i64: 16, 16>}, {pipeline_mode = #tpu.pipeline_mode<synchronous>, transform_indices = @transform_50, window_bounds = array<i64: 16, 1>}, {pipeline_mode = #tpu.pipeline_mode<synchronous>, transform_indices = @transform_51, window_bounds = array<i64: 16, 16>}, {pipeline_mode = #tpu.pipeline_mode<synchronous>, transform_indices = @transform_52, window_bounds = array<i64: 16, 1>}, {pipeline_mode = #tpu.pipeline_mode<synchronous>, transform_indices = @transform_53, window_bounds = array<i64: 16, 16>}, {pipeline_mode = #tpu.pipeline_mode<synchronous>, transform_indices = @transform_54, window_bounds = array<i64: 16, 1>}, {pipeline_mode = #tpu.pipeline_mode<synchronous>, transform_indices = @transform_55, window_bounds = array<i64: 16, 48>}, {pipeline_mode = #tpu.pipeline_mode<synchronous>, transform_indices = @transform_56, window_bounds = array<i64: 16, 1>}, {pipeline_mode = #tpu.pipeline_mode<synchronous>, transform_indices = @transform_57, window_bounds = array<i64: 16, 48>}, {pipeline_mode = #tpu.pipeline_mode<synchronous>, transform_indices = @transform_58, window_bounds = array<i64: 16, 1>}, {pipeline_mode = #tpu.pipeline_mode<synchronous>, transform_indices = @transform_59, window_bounds = array<i64: 16, 48>}, {pipeline_mode = #tpu.pipeline_mode<synchronous>, transform_indices = @transform_60, window_bounds = array<i64: 16, 1>}, {pipeline_mode = #tpu.pipeline_mode<synchronous>, transform_indices = @transform_61, window_bounds = array<i64: 16, 16>}, {pipeline_mode = #tpu.pipeline_mode<synchronous>, transform_indices = @transform_62, window_bounds = array<i64: 16, 1>}, {pipeline_mode = #tpu.pipeline_mode<synchronous>, transform_indices = @transform_63, window_bounds = array<i64: 16, 48>}, {pipeline_mode = #tpu.pipeline_mode<synchronous>, transform_indices = @transform_64, window_bounds = array<i64: 16, 1>}, {pipeline_mode = #tpu.pipeline_mode<synchronous>, transform_indices = @transform_65, window_bounds = array<i64: 16, 48>}, {pipeline_mode = #tpu.pipeline_mode<synchronous>, transform_indices = @transform_66, window_bounds = array<i64: 16, 1>}, {pipeline_mode = #tpu.pipeline_mode<synchronous>, transform_indices = @transform_67, window_bounds = array<i64: 16, 48>}, {pipeline_mode = #tpu.pipeline_mode<synchronous>, transform_indices = @transform_68, window_bounds = array<i64: 16, 1>}, {pipeline_mode = #tpu.pipeline_mode<synchronous>, transform_indices = @transform_69, window_bounds = array<i64: 16, 16>}, {pipeline_mode = #tpu.pipeline_mode<synchronous>, transform_indices = @transform_70, window_bounds = array<i64: 16, 1>}, {pipeline_mode = #tpu.pipeline_mode<synchronous>, transform_indices = @transform_71, window_bounds = array<i64: 16, 48>}, {pipeline_mode = #tpu.pipeline_mode<synchronous>, transform_indices = @transform_72, window_bounds = array<i64: 16, 1>}, {pipeline_mode = #tpu.pipeline_mode<synchronous>, transform_indices = @transform_73, window_bounds = array<i64: 16, 48>}, {pipeline_mode = #tpu.pipeline_mode<synchronous>, transform_indices = @transform_74, window_bounds = array<i64: 16, 1>}, {pipeline_mode = #tpu.pipeline_mode<synchronous>, transform_indices = @transform_75, window_bounds = array<i64: 16, 48>}, {pipeline_mode = #tpu.pipeline_mode<synchronous>, transform_indices = @transform_76, window_bounds = array<i64: 16, 1>}, {pipeline_mode = #tpu.pipeline_mode<synchronous>, transform_indices = @transform_77, window_bounds = array<i64: 16, 16>}, {pipeline_mode = #tpu.pipeline_mode<synchronous>, transform_indices = @transform_78, window_bounds = array<i64: 8, 1>}, {pipeline_mode = #tpu.pipeline_mode<synchronous>, transform_indices = @transform_79, window_bounds = array<i64: 8, 144>}, {pipeline_mode = #tpu.pipeline_mode<synchronous>, transform_indices = @transform_80, window_bounds = array<i64: 16, 1>}, {pipeline_mode = #tpu.pipeline_mode<synchronous>, transform_indices = @transform_81, window_bounds = array<i64: 16, 48>}, {pipeline_mode = #tpu.pipeline_mode<synchronous>, transform_indices = @transform_82, window_bounds = array<i64: 16, 1>}, {pipeline_mode = #tpu.pipeline_mode<synchronous>, transform_indices = @transform_83, window_bounds = array<i64: 16, 8>}, {transform_indices = @transform_84, window_bounds = array<i64: 1, 8, 256>}]} {
    %c0 = arith.constant 0 : index
    %c0_0 = arith.constant 0 : index
    %c0_1 = arith.constant 0 : index
    %0 = vector.load %arg1[%c0, %c0_0, %c0_1] : memref<1x8x256xf32, #tpu.memory_space<vmem>>, vector<1x8x256xf32>
    %1 = vector.shape_cast %0 : vector<1x8x256xf32> to vector<8x256xf32>
    %c0_2 = arith.constant 0 : index
    %c0_3 = arith.constant 0 : index
    %2 = vector.load %arg84[%c0_2, %c0_3] : memref<16x8xf32, #tpu.memory_space<vmem>>, vector<16x8xf32>
    %c0_4 = arith.constant 0 : index
    %c0_5 = arith.constant 0 : index
    %3 = vector.load %arg83[%c0_4, %c0_5] : memref<16x1xf32, #tpu.memory_space<vmem>>, vector<16x1xf32>
    %cst = arith.constant dense<0.000000e+00> : vector<16x256xf32>
    %4 = tpu.matmul %2, %1, %cst {dimension_numbers = #tpu.dot_dimension_numbers<[1], [0], [0], [1], [0, 0, 1, 1], [], []>} : vector<16x8xf32>, vector<8x256xf32>, vector<16x256xf32> -> vector<16x256xf32>
    %5 = vector.broadcast %3 : vector<16x1xf32> to vector<16x256xf32>
    %6 = arith.addf %4, %5 : vector<16x256xf32>
    %c0_6 = arith.constant 0 : index
    %c0_7 = arith.constant 0 : index
    %7 = vector.load %arg42[%c0_6, %c0_7] : memref<16x48xf32, #tpu.memory_space<vmem>>, vector<16x48xf32>
    %c0_8 = arith.constant 0 : index
    %c0_9 = arith.constant 0 : index
    %8 = vector.load %arg41[%c0_8, %c0_9] : memref<16x1xf32, #tpu.memory_space<vmem>>, vector<16x1xf32>
    %9 = tpu.iota {dimensions = array<i32: 1>} : vector<16x256xi32>
    %c1_i32 = arith.constant 1 : i32
    %10 = vector.broadcast %c1_i32 : i32 to vector<16x256xi32>
    %11 = arith.cmpi sge, %9, %10 : vector<16x256xi32>
    %c1_i32_10 = arith.constant 1 : i32
    %12 = tpu.dynamic_rotate %6 by %c1_i32_10 dim 1 : vector<16x256xf32>, i32 -> vector<16x256xf32>
    %cst_11 = arith.constant 0.000000e+00 : f32
    %13 = vector.broadcast %cst_11 : f32 to vector<16x256xf32>
    %14 = arith.select %11, %12, %13 : vector<16x256xi1>, vector<16x256xf32>
    %15 = tpu.iota {dimensions = array<i32: 1>} : vector<16x256xi32>
    %c255_i32 = arith.constant 255 : i32
    %16 = vector.broadcast %c255_i32 : i32 to vector<16x256xi32>
    %17 = arith.cmpi slt, %15, %16 : vector<16x256xi32>
    %c255_i32_12 = arith.constant 255 : i32
    %18 = tpu.dynamic_rotate %6 by %c255_i32_12 dim 1 : vector<16x256xf32>, i32 -> vector<16x256xf32>
    %cst_13 = arith.constant 0.000000e+00 : f32
    %19 = vector.broadcast %cst_13 : f32 to vector<16x256xf32>
    %20 = arith.select %17, %18, %19 : vector<16x256xi1>, vector<16x256xf32>
    %21 = tpu.concatenate %14, %6, %20 in 0 : vector<16x256xf32>, vector<16x256xf32>, vector<16x256xf32> -> vector<48x256xf32>
    %cst_14 = arith.constant dense<0.000000e+00> : vector<16x256xf32>
    %22 = tpu.matmul %7, %21, %cst_14 {dimension_numbers = #tpu.dot_dimension_numbers<[1], [0], [0], [1], [0, 0, 1, 1], [], []>} : vector<16x48xf32>, vector<48x256xf32>, vector<16x256xf32> -> vector<16x256xf32>
    %23 = vector.broadcast %8 : vector<16x1xf32> to vector<16x256xf32>
    %24 = arith.addf %22, %23 : vector<16x256xf32>
    %25 = arith.mulf %24, %24 : vector<16x256xf32>
    %26 = arith.mulf %24, %25 : vector<16x256xf32>
    %cst_15 = arith.constant 4.471500e-02 : f32
    %27 = vector.broadcast %cst_15 : f32 to vector<16x256xf32>
    %28 = arith.mulf %27, %26 : vector<16x256xf32>
    %29 = arith.addf %24, %28 : vector<16x256xf32>
    %cst_16 = arith.constant 0.797884583 : f32
    %30 = vector.broadcast %cst_16 : f32 to vector<16x256xf32>
    %31 = arith.mulf %30, %29 : vector<16x256xf32>
    %32 = math.tanh %31 : vector<16x256xf32>
    %cst_17 = arith.constant 1.000000e+00 : f32
    %33 = vector.broadcast %cst_17 : f32 to vector<16x256xf32>
    %34 = arith.addf %33, %32 : vector<16x256xf32>
    %cst_18 = arith.constant 5.000000e-01 : f32
    %35 = vector.broadcast %cst_18 : f32 to vector<16x256xf32>
    %36 = arith.mulf %35, %34 : vector<16x256xf32>
    %37 = arith.mulf %24, %36 : vector<16x256xf32>
    %c0_19 = arith.constant 0 : index
    %c0_20 = arith.constant 0 : index
    %38 = vector.load %arg44[%c0_19, %c0_20] : memref<16x48xf32, #tpu.memory_space<vmem>>, vector<16x48xf32>
    %c0_21 = arith.constant 0 : index
    %c0_22 = arith.constant 0 : index
    %39 = vector.load %arg43[%c0_21, %c0_22] : memref<16x1xf32, #tpu.memory_space<vmem>>, vector<16x1xf32>
    %c1_i32_23 = arith.constant 1 : i32
    %40 = tpu.dynamic_rotate %37 by %c1_i32_23 dim 1 : vector<16x256xf32>, i32 -> vector<16x256xf32>
    %cst_24 = arith.constant 0.000000e+00 : f32
    %41 = vector.broadcast %cst_24 : f32 to vector<16x256xf32>
    %42 = arith.select %11, %40, %41 : vector<16x256xi1>, vector<16x256xf32>
    %c255_i32_25 = arith.constant 255 : i32
    %43 = tpu.dynamic_rotate %37 by %c255_i32_25 dim 1 : vector<16x256xf32>, i32 -> vector<16x256xf32>
    %cst_26 = arith.constant 0.000000e+00 : f32
    %44 = vector.broadcast %cst_26 : f32 to vector<16x256xf32>
    %45 = arith.select %17, %43, %44 : vector<16x256xi1>, vector<16x256xf32>
    %46 = tpu.concatenate %42, %37, %45 in 0 : vector<16x256xf32>, vector<16x256xf32>, vector<16x256xf32> -> vector<48x256xf32>
    %cst_27 = arith.constant dense<0.000000e+00> : vector<16x256xf32>
    %47 = tpu.matmul %38, %46, %cst_27 {dimension_numbers = #tpu.dot_dimension_numbers<[1], [0], [0], [1], [0, 0, 1, 1], [], []>} : vector<16x48xf32>, vector<48x256xf32>, vector<16x256xf32> -> vector<16x256xf32>
    %48 = vector.broadcast %39 : vector<16x1xf32> to vector<16x256xf32>
    %49 = arith.addf %47, %48 : vector<16x256xf32>
    %50 = arith.addf %49, %6 : vector<16x256xf32>
    %c0_28 = arith.constant 0 : index
    %c0_29 = arith.constant 0 : index
    %51 = vector.load %arg46[%c0_28, %c0_29] : memref<16x48xf32, #tpu.memory_space<vmem>>, vector<16x48xf32>
    %c0_30 = arith.constant 0 : index
    %c0_31 = arith.constant 0 : index
    %52 = vector.load %arg45[%c0_30, %c0_31] : memref<16x1xf32, #tpu.memory_space<vmem>>, vector<16x1xf32>
    %c1_i32_32 = arith.constant 1 : i32
    %53 = tpu.dynamic_rotate %50 by %c1_i32_32 dim 1 : vector<16x256xf32>, i32 -> vector<16x256xf32>
    %cst_33 = arith.constant 0.000000e+00 : f32
    %54 = vector.broadcast %cst_33 : f32 to vector<16x256xf32>
    %55 = arith.select %11, %53, %54 : vector<16x256xi1>, vector<16x256xf32>
    %c255_i32_34 = arith.constant 255 : i32
    %56 = tpu.dynamic_rotate %50 by %c255_i32_34 dim 1 : vector<16x256xf32>, i32 -> vector<16x256xf32>
    %cst_35 = arith.constant 0.000000e+00 : f32
    %57 = vector.broadcast %cst_35 : f32 to vector<16x256xf32>
    %58 = arith.select %17, %56, %57 : vector<16x256xi1>, vector<16x256xf32>
    %59 = tpu.concatenate %55, %50, %58 in 0 : vector<16x256xf32>, vector<16x256xf32>, vector<16x256xf32> -> vector<48x256xf32>
    %cst_36 = arith.constant dense<0.000000e+00> : vector<16x256xf32>
    %60 = tpu.matmul %51, %59, %cst_36 {dimension_numbers = #tpu.dot_dimension_numbers<[1], [0], [0], [1], [0, 0, 1, 1], [], []>} : vector<16x48xf32>, vector<48x256xf32>, vector<16x256xf32> -> vector<16x256xf32>
    %61 = vector.broadcast %52 : vector<16x1xf32> to vector<16x256xf32>
    %62 = arith.addf %60, %61 : vector<16x256xf32>
    %63 = arith.mulf %62, %62 : vector<16x256xf32>
    %64 = arith.mulf %62, %63 : vector<16x256xf32>
    %cst_37 = arith.constant 4.471500e-02 : f32
    %65 = vector.broadcast %cst_37 : f32 to vector<16x256xf32>
    %66 = arith.mulf %65, %64 : vector<16x256xf32>
    %67 = arith.addf %62, %66 : vector<16x256xf32>
    %cst_38 = arith.constant 0.797884583 : f32
    %68 = vector.broadcast %cst_38 : f32 to vector<16x256xf32>
    %69 = arith.mulf %68, %67 : vector<16x256xf32>
    %70 = math.tanh %69 : vector<16x256xf32>
    %cst_39 = arith.constant 1.000000e+00 : f32
    %71 = vector.broadcast %cst_39 : f32 to vector<16x256xf32>
    %72 = arith.addf %71, %70 : vector<16x256xf32>
    %cst_40 = arith.constant 5.000000e-01 : f32
    %73 = vector.broadcast %cst_40 : f32 to vector<16x256xf32>
    %74 = arith.mulf %73, %72 : vector<16x256xf32>
    %75 = arith.mulf %62, %74 : vector<16x256xf32>
    %c0_41 = arith.constant 0 : index
    %c0_42 = arith.constant 0 : index
    %76 = vector.load %arg48[%c0_41, %c0_42] : memref<16x48xf32, #tpu.memory_space<vmem>>, vector<16x48xf32>
    %c0_43 = arith.constant 0 : index
    %c0_44 = arith.constant 0 : index
    %77 = vector.load %arg47[%c0_43, %c0_44] : memref<16x1xf32, #tpu.memory_space<vmem>>, vector<16x1xf32>
    %c1_i32_45 = arith.constant 1 : i32
    %78 = tpu.dynamic_rotate %75 by %c1_i32_45 dim 1 : vector<16x256xf32>, i32 -> vector<16x256xf32>
    %cst_46 = arith.constant 0.000000e+00 : f32
    %79 = vector.broadcast %cst_46 : f32 to vector<16x256xf32>
    %80 = arith.select %11, %78, %79 : vector<16x256xi1>, vector<16x256xf32>
    %c255_i32_47 = arith.constant 255 : i32
    %81 = tpu.dynamic_rotate %75 by %c255_i32_47 dim 1 : vector<16x256xf32>, i32 -> vector<16x256xf32>
    %cst_48 = arith.constant 0.000000e+00 : f32
    %82 = vector.broadcast %cst_48 : f32 to vector<16x256xf32>
    %83 = arith.select %17, %81, %82 : vector<16x256xi1>, vector<16x256xf32>
    %84 = tpu.concatenate %80, %75, %83 in 0 : vector<16x256xf32>, vector<16x256xf32>, vector<16x256xf32> -> vector<48x256xf32>
    %cst_49 = arith.constant dense<0.000000e+00> : vector<16x256xf32>
    %85 = tpu.matmul %76, %84, %cst_49 {dimension_numbers = #tpu.dot_dimension_numbers<[1], [0], [0], [1], [0, 0, 1, 1], [], []>} : vector<16x48xf32>, vector<48x256xf32>, vector<16x256xf32> -> vector<16x256xf32>
    %86 = vector.broadcast %77 : vector<16x1xf32> to vector<16x256xf32>
    %87 = arith.addf %85, %86 : vector<16x256xf32>
    %88 = arith.addf %87, %50 : vector<16x256xf32>
    %c0_50 = arith.constant 0 : index
    %c0_51 = arith.constant 0 : index
    %89 = vector.load %arg60[%c0_50, %c0_51] : memref<16x48xf32, #tpu.memory_space<vmem>>, vector<16x48xf32>
    %c0_52 = arith.constant 0 : index
    %c0_53 = arith.constant 0 : index
    %90 = vector.load %arg59[%c0_52, %c0_53] : memref<16x1xf32, #tpu.memory_space<vmem>>, vector<16x1xf32>
    %c1_i32_54 = arith.constant 1 : i32
    %91 = tpu.dynamic_rotate %88 by %c1_i32_54 dim 1 : vector<16x256xf32>, i32 -> vector<16x256xf32>
    %cst_55 = arith.constant 0.000000e+00 : f32
    %92 = vector.broadcast %cst_55 : f32 to vector<16x256xf32>
    %93 = arith.select %11, %91, %92 : vector<16x256xi1>, vector<16x256xf32>
    %c255_i32_56 = arith.constant 255 : i32
    %94 = tpu.dynamic_rotate %88 by %c255_i32_56 dim 1 : vector<16x256xf32>, i32 -> vector<16x256xf32>
    %cst_57 = arith.constant 0.000000e+00 : f32
    %95 = vector.broadcast %cst_57 : f32 to vector<16x256xf32>
    %96 = arith.select %17, %94, %95 : vector<16x256xi1>, vector<16x256xf32>
    %97 = tpu.concatenate %93, %88, %96 in 0 : vector<16x256xf32>, vector<16x256xf32>, vector<16x256xf32> -> vector<48x256xf32>
    %cst_58 = arith.constant dense<0.000000e+00> : vector<16x256xf32>
    %98 = tpu.matmul %89, %97, %cst_58 {dimension_numbers = #tpu.dot_dimension_numbers<[1], [0], [0], [1], [0, 0, 1, 1], [], []>} : vector<16x48xf32>, vector<48x256xf32>, vector<16x256xf32> -> vector<16x256xf32>
    %99 = vector.broadcast %90 : vector<16x1xf32> to vector<16x256xf32>
    %100 = arith.addf %98, %99 : vector<16x256xf32>
    %c0_59 = arith.constant 0 : index
    %c0_60 = arith.constant 0 : index
    %101 = vector.load %arg56[%c0_59, %c0_60] : memref<16x48xf32, #tpu.memory_space<vmem>>, vector<16x48xf32>
    %c0_61 = arith.constant 0 : index
    %c0_62 = arith.constant 0 : index
    %102 = vector.load %arg55[%c0_61, %c0_62] : memref<16x1xf32, #tpu.memory_space<vmem>>, vector<16x1xf32>
    %c1_i32_63 = arith.constant 1 : i32
    %103 = tpu.dynamic_rotate %100 by %c1_i32_63 dim 1 : vector<16x256xf32>, i32 -> vector<16x256xf32>
    %cst_64 = arith.constant 0.000000e+00 : f32
    %104 = vector.broadcast %cst_64 : f32 to vector<16x256xf32>
    %105 = arith.select %11, %103, %104 : vector<16x256xi1>, vector<16x256xf32>
    %c255_i32_65 = arith.constant 255 : i32
    %106 = tpu.dynamic_rotate %100 by %c255_i32_65 dim 1 : vector<16x256xf32>, i32 -> vector<16x256xf32>
    %cst_66 = arith.constant 0.000000e+00 : f32
    %107 = vector.broadcast %cst_66 : f32 to vector<16x256xf32>
    %108 = arith.select %17, %106, %107 : vector<16x256xi1>, vector<16x256xf32>
    %109 = tpu.concatenate %105, %100, %108 in 0 : vector<16x256xf32>, vector<16x256xf32>, vector<16x256xf32> -> vector<48x256xf32>
    %cst_67 = arith.constant dense<0.000000e+00> : vector<16x256xf32>
    %110 = tpu.matmul %101, %109, %cst_67 {dimension_numbers = #tpu.dot_dimension_numbers<[1], [0], [0], [1], [0, 0, 1, 1], [], []>} : vector<16x48xf32>, vector<48x256xf32>, vector<16x256xf32> -> vector<16x256xf32>
    %111 = vector.broadcast %102 : vector<16x1xf32> to vector<16x256xf32>
    %112 = arith.addf %110, %111 : vector<16x256xf32>
    %113 = math.tanh %112 : vector<16x256xf32>
    %c0_68 = arith.constant 0 : index
    %c0_69 = arith.constant 0 : index
    %114 = vector.load %arg58[%c0_68, %c0_69] : memref<16x48xf32, #tpu.memory_space<vmem>>, vector<16x48xf32>
    %c0_70 = arith.constant 0 : index
    %c0_71 = arith.constant 0 : index
    %115 = vector.load %arg57[%c0_70, %c0_71] : memref<16x1xf32, #tpu.memory_space<vmem>>, vector<16x1xf32>
    %c1_i32_72 = arith.constant 1 : i32
    %116 = tpu.dynamic_rotate %100 by %c1_i32_72 dim 1 : vector<16x256xf32>, i32 -> vector<16x256xf32>
    %cst_73 = arith.constant 0.000000e+00 : f32
    %117 = vector.broadcast %cst_73 : f32 to vector<16x256xf32>
    %118 = arith.select %11, %116, %117 : vector<16x256xi1>, vector<16x256xf32>
    %c255_i32_74 = arith.constant 255 : i32
    %119 = tpu.dynamic_rotate %100 by %c255_i32_74 dim 1 : vector<16x256xf32>, i32 -> vector<16x256xf32>
    %cst_75 = arith.constant 0.000000e+00 : f32
    %120 = vector.broadcast %cst_75 : f32 to vector<16x256xf32>
    %121 = arith.select %17, %119, %120 : vector<16x256xi1>, vector<16x256xf32>
    %122 = tpu.concatenate %118, %100, %121 in 0 : vector<16x256xf32>, vector<16x256xf32>, vector<16x256xf32> -> vector<48x256xf32>
    %cst_76 = arith.constant dense<0.000000e+00> : vector<16x256xf32>
    %123 = tpu.matmul %114, %122, %cst_76 {dimension_numbers = #tpu.dot_dimension_numbers<[1], [0], [0], [1], [0, 0, 1, 1], [], []>} : vector<16x48xf32>, vector<48x256xf32>, vector<16x256xf32> -> vector<16x256xf32>
    %124 = vector.broadcast %115 : vector<16x1xf32> to vector<16x256xf32>
    %125 = arith.addf %123, %124 : vector<16x256xf32>
    %126 = arith.negf %125 : vector<16x256xf32>
    %127 = math.exp %126 : vector<16x256xf32>
    %cst_77 = arith.constant 1.000000e+00 : f32
    %128 = vector.broadcast %cst_77 : f32 to vector<16x256xf32>
    %129 = arith.addf %128, %127 : vector<16x256xf32>
    %130 = arith.divf %128, %129 : vector<16x256xf32>
    %131 = arith.mulf %113, %130 : vector<16x256xf32>
    %c0_78 = arith.constant 0 : index
    %c0_79 = arith.constant 0 : index
    %132 = vector.load %arg62[%c0_78, %c0_79] : memref<16x16xf32, #tpu.memory_space<vmem>>, vector<16x16xf32>
    %c0_80 = arith.constant 0 : index
    %c0_81 = arith.constant 0 : index
    %133 = vector.load %arg61[%c0_80, %c0_81] : memref<16x1xf32, #tpu.memory_space<vmem>>, vector<16x1xf32>
    %cst_82 = arith.constant dense<0.000000e+00> : vector<16x256xf32>
    %134 = tpu.matmul %132, %131, %cst_82 {dimension_numbers = #tpu.dot_dimension_numbers<[1], [0], [0], [1], [0, 0, 1, 1], [], []>} : vector<16x16xf32>, vector<16x256xf32>, vector<16x256xf32> -> vector<16x256xf32>
    %135 = vector.broadcast %133 : vector<16x1xf32> to vector<16x256xf32>
    %136 = arith.addf %134, %135 : vector<16x256xf32>
    %137 = arith.addf %136, %88 : vector<16x256xf32>
    %c0_83 = arith.constant 0 : index
    %c0_84 = arith.constant 0 : index
    %138 = vector.load %arg4[%c0_83, %c0_84] : memref<256x128xf32, #tpu.memory_space<vmem>>, vector<256x128xf32>
    %cst_85 = arith.constant dense<0.000000e+00> : vector<16x128xf32>
    %139 = tpu.matmul %137, %138, %cst_85 {dimension_numbers = #tpu.dot_dimension_numbers<[1], [0], [0], [1], [0, 0, 1, 1], [], []>} : vector<16x256xf32>, vector<256x128xf32>, vector<16x128xf32> -> vector<16x128xf32>
    %c0_86 = arith.constant 0 : index
    %c0_87 = arith.constant 0 : index
    %140 = vector.load %arg50[%c0_86, %c0_87] : memref<16x16xf32, #tpu.memory_space<vmem>>, vector<16x16xf32>
    %c0_88 = arith.constant 0 : index
    %c0_89 = arith.constant 0 : index
    %141 = vector.load %arg49[%c0_88, %c0_89] : memref<16x1xf32, #tpu.memory_space<vmem>>, vector<16x1xf32>
    %cst_90 = arith.constant dense<0.000000e+00> : vector<16x128xf32>
    %142 = tpu.matmul %140, %139, %cst_90 {dimension_numbers = #tpu.dot_dimension_numbers<[1], [0], [0], [1], [0, 0, 1, 1], [], []>} : vector<16x16xf32>, vector<16x128xf32>, vector<16x128xf32> -> vector<16x128xf32>
    %143 = vector.broadcast %141 : vector<16x1xf32> to vector<16x128xf32>
    %144 = arith.addf %142, %143 : vector<16x128xf32>
    %c0_91 = arith.constant 0 : index
    %c0_92 = arith.constant 0 : index
    %145 = vector.load %arg68[%c0_91, %c0_92] : memref<16x48xf32, #tpu.memory_space<vmem>>, vector<16x48xf32>
    %c0_93 = arith.constant 0 : index
    %c0_94 = arith.constant 0 : index
    %146 = vector.load %arg67[%c0_93, %c0_94] : memref<16x1xf32, #tpu.memory_space<vmem>>, vector<16x1xf32>
    %147 = tpu.iota {dimensions = array<i32: 1>} : vector<16x128xi32>
    %c1_i32_95 = arith.constant 1 : i32
    %148 = vector.broadcast %c1_i32_95 : i32 to vector<16x128xi32>
    %149 = arith.cmpi sge, %147, %148 : vector<16x128xi32>
    %c1_i32_96 = arith.constant 1 : i32
    %150 = tpu.dynamic_rotate %144 by %c1_i32_96 dim 1 : vector<16x128xf32>, i32 -> vector<16x128xf32>
    %cst_97 = arith.constant 0.000000e+00 : f32
    %151 = vector.broadcast %cst_97 : f32 to vector<16x128xf32>
    %152 = arith.select %149, %150, %151 : vector<16x128xi1>, vector<16x128xf32>
    %153 = tpu.iota {dimensions = array<i32: 1>} : vector<16x128xi32>
    %c127_i32 = arith.constant 127 : i32
    %154 = vector.broadcast %c127_i32 : i32 to vector<16x128xi32>
    %155 = arith.cmpi slt, %153, %154 : vector<16x128xi32>
    %c127_i32_98 = arith.constant 127 : i32
    %156 = tpu.dynamic_rotate %144 by %c127_i32_98 dim 1 : vector<16x128xf32>, i32 -> vector<16x128xf32>
    %cst_99 = arith.constant 0.000000e+00 : f32
    %157 = vector.broadcast %cst_99 : f32 to vector<16x128xf32>
    %158 = arith.select %155, %156, %157 : vector<16x128xi1>, vector<16x128xf32>
    %159 = tpu.concatenate %152, %144, %158 in 0 : vector<16x128xf32>, vector<16x128xf32>, vector<16x128xf32> -> vector<48x128xf32>
    %cst_100 = arith.constant dense<0.000000e+00> : vector<16x128xf32>
    %160 = tpu.matmul %145, %159, %cst_100 {dimension_numbers = #tpu.dot_dimension_numbers<[1], [0], [0], [1], [0, 0, 1, 1], [], []>} : vector<16x48xf32>, vector<48x128xf32>, vector<16x128xf32> -> vector<16x128xf32>
    %161 = vector.broadcast %146 : vector<16x1xf32> to vector<16x128xf32>
    %162 = arith.addf %160, %161 : vector<16x128xf32>
    %c0_101 = arith.constant 0 : index
    %c0_102 = arith.constant 0 : index
    %163 = vector.load %arg64[%c0_101, %c0_102] : memref<16x48xf32, #tpu.memory_space<vmem>>, vector<16x48xf32>
    %c0_103 = arith.constant 0 : index
    %c0_104 = arith.constant 0 : index
    %164 = vector.load %arg63[%c0_103, %c0_104] : memref<16x1xf32, #tpu.memory_space<vmem>>, vector<16x1xf32>
    %c1_i32_105 = arith.constant 1 : i32
    %165 = tpu.dynamic_rotate %162 by %c1_i32_105 dim 1 : vector<16x128xf32>, i32 -> vector<16x128xf32>
    %cst_106 = arith.constant 0.000000e+00 : f32
    %166 = vector.broadcast %cst_106 : f32 to vector<16x128xf32>
    %167 = arith.select %149, %165, %166 : vector<16x128xi1>, vector<16x128xf32>
    %c127_i32_107 = arith.constant 127 : i32
    %168 = tpu.dynamic_rotate %162 by %c127_i32_107 dim 1 : vector<16x128xf32>, i32 -> vector<16x128xf32>
    %cst_108 = arith.constant 0.000000e+00 : f32
    %169 = vector.broadcast %cst_108 : f32 to vector<16x128xf32>
    %170 = arith.select %155, %168, %169 : vector<16x128xi1>, vector<16x128xf32>
    %171 = tpu.concatenate %167, %162, %170 in 0 : vector<16x128xf32>, vector<16x128xf32>, vector<16x128xf32> -> vector<48x128xf32>
    %cst_109 = arith.constant dense<0.000000e+00> : vector<16x128xf32>
    %172 = tpu.matmul %163, %171, %cst_109 {dimension_numbers = #tpu.dot_dimension_numbers<[1], [0], [0], [1], [0, 0, 1, 1], [], []>} : vector<16x48xf32>, vector<48x128xf32>, vector<16x128xf32> -> vector<16x128xf32>
    %173 = vector.broadcast %164 : vector<16x1xf32> to vector<16x128xf32>
    %174 = arith.addf %172, %173 : vector<16x128xf32>
    %175 = math.tanh %174 : vector<16x128xf32>
    %c0_110 = arith.constant 0 : index
    %c0_111 = arith.constant 0 : index
    %176 = vector.load %arg66[%c0_110, %c0_111] : memref<16x48xf32, #tpu.memory_space<vmem>>, vector<16x48xf32>
    %c0_112 = arith.constant 0 : index
    %c0_113 = arith.constant 0 : index
    %177 = vector.load %arg65[%c0_112, %c0_113] : memref<16x1xf32, #tpu.memory_space<vmem>>, vector<16x1xf32>
    %c1_i32_114 = arith.constant 1 : i32
    %178 = tpu.dynamic_rotate %162 by %c1_i32_114 dim 1 : vector<16x128xf32>, i32 -> vector<16x128xf32>
    %cst_115 = arith.constant 0.000000e+00 : f32
    %179 = vector.broadcast %cst_115 : f32 to vector<16x128xf32>
    %180 = arith.select %149, %178, %179 : vector<16x128xi1>, vector<16x128xf32>
    %c127_i32_116 = arith.constant 127 : i32
    %181 = tpu.dynamic_rotate %162 by %c127_i32_116 dim 1 : vector<16x128xf32>, i32 -> vector<16x128xf32>
    %cst_117 = arith.constant 0.000000e+00 : f32
    %182 = vector.broadcast %cst_117 : f32 to vector<16x128xf32>
    %183 = arith.select %155, %181, %182 : vector<16x128xi1>, vector<16x128xf32>
    %184 = tpu.concatenate %180, %162, %183 in 0 : vector<16x128xf32>, vector<16x128xf32>, vector<16x128xf32> -> vector<48x128xf32>
    %cst_118 = arith.constant dense<0.000000e+00> : vector<16x128xf32>
    %185 = tpu.matmul %176, %184, %cst_118 {dimension_numbers = #tpu.dot_dimension_numbers<[1], [0], [0], [1], [0, 0, 1, 1], [], []>} : vector<16x48xf32>, vector<48x128xf32>, vector<16x128xf32> -> vector<16x128xf32>
    %186 = vector.broadcast %177 : vector<16x1xf32> to vector<16x128xf32>
    %187 = arith.addf %185, %186 : vector<16x128xf32>
    %188 = arith.negf %187 : vector<16x128xf32>
    %189 = math.exp %188 : vector<16x128xf32>
    %cst_119 = arith.constant 1.000000e+00 : f32
    %190 = vector.broadcast %cst_119 : f32 to vector<16x128xf32>
    %191 = arith.addf %190, %189 : vector<16x128xf32>
    %192 = arith.divf %190, %191 : vector<16x128xf32>
    %193 = arith.mulf %175, %192 : vector<16x128xf32>
    %c0_120 = arith.constant 0 : index
    %c0_121 = arith.constant 0 : index
    %194 = vector.load %arg70[%c0_120, %c0_121] : memref<16x16xf32, #tpu.memory_space<vmem>>, vector<16x16xf32>
    %c0_122 = arith.constant 0 : index
    %c0_123 = arith.constant 0 : index
    %195 = vector.load %arg69[%c0_122, %c0_123] : memref<16x1xf32, #tpu.memory_space<vmem>>, vector<16x1xf32>
    %cst_124 = arith.constant dense<0.000000e+00> : vector<16x128xf32>
    %196 = tpu.matmul %194, %193, %cst_124 {dimension_numbers = #tpu.dot_dimension_numbers<[1], [0], [0], [1], [0, 0, 1, 1], [], []>} : vector<16x16xf32>, vector<16x128xf32>, vector<16x128xf32> -> vector<16x128xf32>
    %197 = vector.broadcast %195 : vector<16x1xf32> to vector<16x128xf32>
    %198 = arith.addf %196, %197 : vector<16x128xf32>
    %199 = arith.addf %198, %144 : vector<16x128xf32>
    %c0_125 = arith.constant 0 : index
    %c0_126 = arith.constant 0 : index
    %200 = vector.load %arg5[%c0_125, %c0_126] : memref<128x64xf32, #tpu.memory_space<vmem>>, vector<128x64xf32>
    %cst_127 = arith.constant dense<0.000000e+00> : vector<16x64xf32>
    %201 = tpu.matmul %199, %200, %cst_127 {dimension_numbers = #tpu.dot_dimension_numbers<[1], [0], [0], [1], [0, 0, 1, 1], [], []>} : vector<16x128xf32>, vector<128x64xf32>, vector<16x64xf32> -> vector<16x64xf32>
    %c0_128 = arith.constant 0 : index
    %c0_129 = arith.constant 0 : index
    %202 = vector.load %arg52[%c0_128, %c0_129] : memref<16x16xf32, #tpu.memory_space<vmem>>, vector<16x16xf32>
    %c0_130 = arith.constant 0 : index
    %c0_131 = arith.constant 0 : index
    %203 = vector.load %arg51[%c0_130, %c0_131] : memref<16x1xf32, #tpu.memory_space<vmem>>, vector<16x1xf32>
    %cst_132 = arith.constant dense<0.000000e+00> : vector<16x64xf32>
    %204 = tpu.matmul %202, %201, %cst_132 {dimension_numbers = #tpu.dot_dimension_numbers<[1], [0], [0], [1], [0, 0, 1, 1], [], []>} : vector<16x16xf32>, vector<16x64xf32>, vector<16x64xf32> -> vector<16x64xf32>
    %205 = vector.broadcast %203 : vector<16x1xf32> to vector<16x64xf32>
    %206 = arith.addf %204, %205 : vector<16x64xf32>
    %c0_133 = arith.constant 0 : index
    %c0_134 = arith.constant 0 : index
    %207 = vector.load %arg76[%c0_133, %c0_134] : memref<16x48xf32, #tpu.memory_space<vmem>>, vector<16x48xf32>
    %c0_135 = arith.constant 0 : index
    %c0_136 = arith.constant 0 : index
    %208 = vector.load %arg75[%c0_135, %c0_136] : memref<16x1xf32, #tpu.memory_space<vmem>>, vector<16x1xf32>
    %209 = tpu.iota {dimensions = array<i32: 1>} : vector<16x64xi32>
    %c1_i32_137 = arith.constant 1 : i32
    %210 = vector.broadcast %c1_i32_137 : i32 to vector<16x64xi32>
    %211 = arith.cmpi sge, %209, %210 : vector<16x64xi32>
    %c1_i32_138 = arith.constant 1 : i32
    %212 = tpu.dynamic_rotate %206 by %c1_i32_138 dim 1 : vector<16x64xf32>, i32 -> vector<16x64xf32>
    %cst_139 = arith.constant 0.000000e+00 : f32
    %213 = vector.broadcast %cst_139 : f32 to vector<16x64xf32>
    %214 = arith.select %211, %212, %213 : vector<16x64xi1>, vector<16x64xf32>
    %215 = tpu.iota {dimensions = array<i32: 1>} : vector<16x64xi32>
    %c63_i32 = arith.constant 63 : i32
    %216 = vector.broadcast %c63_i32 : i32 to vector<16x64xi32>
    %217 = arith.cmpi slt, %215, %216 : vector<16x64xi32>
    %c63_i32_140 = arith.constant 63 : i32
    %218 = tpu.dynamic_rotate %206 by %c63_i32_140 dim 1 : vector<16x64xf32>, i32 -> vector<16x64xf32>
    %cst_141 = arith.constant 0.000000e+00 : f32
    %219 = vector.broadcast %cst_141 : f32 to vector<16x64xf32>
    %220 = arith.select %217, %218, %219 : vector<16x64xi1>, vector<16x64xf32>
    %221 = tpu.concatenate %214, %206, %220 in 0 : vector<16x64xf32>, vector<16x64xf32>, vector<16x64xf32> -> vector<48x64xf32>
    %cst_142 = arith.constant dense<0.000000e+00> : vector<16x64xf32>
    %222 = tpu.matmul %207, %221, %cst_142 {dimension_numbers = #tpu.dot_dimension_numbers<[1], [0], [0], [1], [0, 0, 1, 1], [], []>} : vector<16x48xf32>, vector<48x64xf32>, vector<16x64xf32> -> vector<16x64xf32>
    %223 = vector.broadcast %208 : vector<16x1xf32> to vector<16x64xf32>
    %224 = arith.addf %222, %223 : vector<16x64xf32>
    %c0_143 = arith.constant 0 : index
    %c0_144 = arith.constant 0 : index
    %225 = vector.load %arg72[%c0_143, %c0_144] : memref<16x48xf32, #tpu.memory_space<vmem>>, vector<16x48xf32>
    %c0_145 = arith.constant 0 : index
    %c0_146 = arith.constant 0 : index
    %226 = vector.load %arg71[%c0_145, %c0_146] : memref<16x1xf32, #tpu.memory_space<vmem>>, vector<16x1xf32>
    %c1_i32_147 = arith.constant 1 : i32
    %227 = tpu.dynamic_rotate %224 by %c1_i32_147 dim 1 : vector<16x64xf32>, i32 -> vector<16x64xf32>
    %cst_148 = arith.constant 0.000000e+00 : f32
    %228 = vector.broadcast %cst_148 : f32 to vector<16x64xf32>
    %229 = arith.select %211, %227, %228 : vector<16x64xi1>, vector<16x64xf32>
    %c63_i32_149 = arith.constant 63 : i32
    %230 = tpu.dynamic_rotate %224 by %c63_i32_149 dim 1 : vector<16x64xf32>, i32 -> vector<16x64xf32>
    %cst_150 = arith.constant 0.000000e+00 : f32
    %231 = vector.broadcast %cst_150 : f32 to vector<16x64xf32>
    %232 = arith.select %217, %230, %231 : vector<16x64xi1>, vector<16x64xf32>
    %233 = tpu.concatenate %229, %224, %232 in 0 : vector<16x64xf32>, vector<16x64xf32>, vector<16x64xf32> -> vector<48x64xf32>
    %cst_151 = arith.constant dense<0.000000e+00> : vector<16x64xf32>
    %234 = tpu.matmul %225, %233, %cst_151 {dimension_numbers = #tpu.dot_dimension_numbers<[1], [0], [0], [1], [0, 0, 1, 1], [], []>} : vector<16x48xf32>, vector<48x64xf32>, vector<16x64xf32> -> vector<16x64xf32>
    %235 = vector.broadcast %226 : vector<16x1xf32> to vector<16x64xf32>
    %236 = arith.addf %234, %235 : vector<16x64xf32>
    %237 = math.tanh %236 : vector<16x64xf32>
    %c0_152 = arith.constant 0 : index
    %c0_153 = arith.constant 0 : index
    %238 = vector.load %arg74[%c0_152, %c0_153] : memref<16x48xf32, #tpu.memory_space<vmem>>, vector<16x48xf32>
    %c0_154 = arith.constant 0 : index
    %c0_155 = arith.constant 0 : index
    %239 = vector.load %arg73[%c0_154, %c0_155] : memref<16x1xf32, #tpu.memory_space<vmem>>, vector<16x1xf32>
    %c1_i32_156 = arith.constant 1 : i32
    %240 = tpu.dynamic_rotate %224 by %c1_i32_156 dim 1 : vector<16x64xf32>, i32 -> vector<16x64xf32>
    %cst_157 = arith.constant 0.000000e+00 : f32
    %241 = vector.broadcast %cst_157 : f32 to vector<16x64xf32>
    %242 = arith.select %211, %240, %241 : vector<16x64xi1>, vector<16x64xf32>
    %c63_i32_158 = arith.constant 63 : i32
    %243 = tpu.dynamic_rotate %224 by %c63_i32_158 dim 1 : vector<16x64xf32>, i32 -> vector<16x64xf32>
    %cst_159 = arith.constant 0.000000e+00 : f32
    %244 = vector.broadcast %cst_159 : f32 to vector<16x64xf32>
    %245 = arith.select %217, %243, %244 : vector<16x64xi1>, vector<16x64xf32>
    %246 = tpu.concatenate %242, %224, %245 in 0 : vector<16x64xf32>, vector<16x64xf32>, vector<16x64xf32> -> vector<48x64xf32>
    %cst_160 = arith.constant dense<0.000000e+00> : vector<16x64xf32>
    %247 = tpu.matmul %238, %246, %cst_160 {dimension_numbers = #tpu.dot_dimension_numbers<[1], [0], [0], [1], [0, 0, 1, 1], [], []>} : vector<16x48xf32>, vector<48x64xf32>, vector<16x64xf32> -> vector<16x64xf32>
    %248 = vector.broadcast %239 : vector<16x1xf32> to vector<16x64xf32>
    %249 = arith.addf %247, %248 : vector<16x64xf32>
    %250 = arith.negf %249 : vector<16x64xf32>
    %251 = math.exp %250 : vector<16x64xf32>
    %cst_161 = arith.constant 1.000000e+00 : f32
    %252 = vector.broadcast %cst_161 : f32 to vector<16x64xf32>
    %253 = arith.addf %252, %251 : vector<16x64xf32>
    %254 = arith.divf %252, %253 : vector<16x64xf32>
    %255 = arith.mulf %237, %254 : vector<16x64xf32>
    %c0_162 = arith.constant 0 : index
    %c0_163 = arith.constant 0 : index
    %256 = vector.load %arg78[%c0_162, %c0_163] : memref<16x16xf32, #tpu.memory_space<vmem>>, vector<16x16xf32>
    %c0_164 = arith.constant 0 : index
    %c0_165 = arith.constant 0 : index
    %257 = vector.load %arg77[%c0_164, %c0_165] : memref<16x1xf32, #tpu.memory_space<vmem>>, vector<16x1xf32>
    %cst_166 = arith.constant dense<0.000000e+00> : vector<16x64xf32>
    %258 = tpu.matmul %256, %255, %cst_166 {dimension_numbers = #tpu.dot_dimension_numbers<[1], [0], [0], [1], [0, 0, 1, 1], [], []>} : vector<16x16xf32>, vector<16x64xf32>, vector<16x64xf32> -> vector<16x64xf32>
    %259 = vector.broadcast %257 : vector<16x1xf32> to vector<16x64xf32>
    %260 = arith.addf %258, %259 : vector<16x64xf32>
    %261 = arith.addf %260, %206 : vector<16x64xf32>
    %c0_167 = arith.constant 0 : index
    %c0_168 = arith.constant 0 : index
    %262 = vector.load %arg6[%c0_167, %c0_168] : memref<64x32xf32, #tpu.memory_space<vmem>>, vector<64x32xf32>
    %cst_169 = arith.constant dense<0.000000e+00> : vector<16x32xf32>
    %263 = tpu.matmul %261, %262, %cst_169 {dimension_numbers = #tpu.dot_dimension_numbers<[1], [0], [0], [1], [0, 0, 1, 1], [], []>} : vector<16x64xf32>, vector<64x32xf32>, vector<16x32xf32> -> vector<16x32xf32>
    %c0_170 = arith.constant 0 : index
    %c0_171 = arith.constant 0 : index
    %264 = vector.load %arg54[%c0_170, %c0_171] : memref<16x16xf32, #tpu.memory_space<vmem>>, vector<16x16xf32>
    %c0_172 = arith.constant 0 : index
    %c0_173 = arith.constant 0 : index
    %265 = vector.load %arg53[%c0_172, %c0_173] : memref<16x1xf32, #tpu.memory_space<vmem>>, vector<16x1xf32>
    %cst_174 = arith.constant dense<0.000000e+00> : vector<16x32xf32>
    %266 = tpu.matmul %264, %263, %cst_174 {dimension_numbers = #tpu.dot_dimension_numbers<[1], [0], [0], [1], [0, 0, 1, 1], [], []>} : vector<16x16xf32>, vector<16x32xf32>, vector<16x32xf32> -> vector<16x32xf32>
    %267 = vector.broadcast %265 : vector<16x1xf32> to vector<16x32xf32>
    %268 = arith.addf %266, %267 : vector<16x32xf32>
    %c0_175 = arith.constant 0 : index
    %c0_176 = arith.constant 0 : index
    %269 = vector.load %arg82[%c0_175, %c0_176] : memref<16x48xf32, #tpu.memory_space<vmem>>, vector<16x48xf32>
    %c0_177 = arith.constant 0 : index
    %c0_178 = arith.constant 0 : index
    %270 = vector.load %arg81[%c0_177, %c0_178] : memref<16x1xf32, #tpu.memory_space<vmem>>, vector<16x1xf32>
    %271 = tpu.iota {dimensions = array<i32: 1>} : vector<16x32xi32>
    %c1_i32_179 = arith.constant 1 : i32
    %272 = vector.broadcast %c1_i32_179 : i32 to vector<16x32xi32>
    %273 = arith.cmpi sge, %271, %272 : vector<16x32xi32>
    %c1_i32_180 = arith.constant 1 : i32
    %274 = tpu.dynamic_rotate %268 by %c1_i32_180 dim 1 : vector<16x32xf32>, i32 -> vector<16x32xf32>
    %cst_181 = arith.constant 0.000000e+00 : f32
    %275 = vector.broadcast %cst_181 : f32 to vector<16x32xf32>
    %276 = arith.select %273, %274, %275 : vector<16x32xi1>, vector<16x32xf32>
    %277 = tpu.iota {dimensions = array<i32: 1>} : vector<16x32xi32>
    %c31_i32 = arith.constant 31 : i32
    %278 = vector.broadcast %c31_i32 : i32 to vector<16x32xi32>
    %279 = arith.cmpi slt, %277, %278 : vector<16x32xi32>
    %c31_i32_182 = arith.constant 31 : i32
    %280 = tpu.dynamic_rotate %268 by %c31_i32_182 dim 1 : vector<16x32xf32>, i32 -> vector<16x32xf32>
    %cst_183 = arith.constant 0.000000e+00 : f32
    %281 = vector.broadcast %cst_183 : f32 to vector<16x32xf32>
    %282 = arith.select %279, %280, %281 : vector<16x32xi1>, vector<16x32xf32>
    %283 = tpu.concatenate %276, %268, %282 in 0 : vector<16x32xf32>, vector<16x32xf32>, vector<16x32xf32> -> vector<48x32xf32>
    %cst_184 = arith.constant dense<0.000000e+00> : vector<16x32xf32>
    %284 = tpu.matmul %269, %283, %cst_184 {dimension_numbers = #tpu.dot_dimension_numbers<[1], [0], [0], [1], [0, 0, 1, 1], [], []>} : vector<16x48xf32>, vector<48x32xf32>, vector<16x32xf32> -> vector<16x32xf32>
    %285 = vector.broadcast %270 : vector<16x1xf32> to vector<16x32xf32>
    %286 = arith.addf %284, %285 : vector<16x32xf32>
    %287 = arith.mulf %286, %286 : vector<16x32xf32>
    %288 = arith.mulf %286, %287 : vector<16x32xf32>
    %cst_185 = arith.constant 4.471500e-02 : f32
    %289 = vector.broadcast %cst_185 : f32 to vector<16x32xf32>
    %290 = arith.mulf %289, %288 : vector<16x32xf32>
    %291 = arith.addf %286, %290 : vector<16x32xf32>
    %cst_186 = arith.constant 0.797884583 : f32
    %292 = vector.broadcast %cst_186 : f32 to vector<16x32xf32>
    %293 = arith.mulf %292, %291 : vector<16x32xf32>
    %294 = math.tanh %293 : vector<16x32xf32>
    %cst_187 = arith.constant 1.000000e+00 : f32
    %295 = vector.broadcast %cst_187 : f32 to vector<16x32xf32>
    %296 = arith.addf %295, %294 : vector<16x32xf32>
    %cst_188 = arith.constant 5.000000e-01 : f32
    %297 = vector.broadcast %cst_188 : f32 to vector<16x32xf32>
    %298 = arith.mulf %297, %296 : vector<16x32xf32>
    %299 = arith.mulf %286, %298 : vector<16x32xf32>
    %c0_189 = arith.constant 0 : index
    %c0_190 = arith.constant 0 : index
    %300 = vector.load %arg8[%c0_189, %c0_190] : memref<32x64xf32, #tpu.memory_space<vmem>>, vector<32x64xf32>
    %cst_191 = arith.constant dense<0.000000e+00> : vector<16x64xf32>
    %301 = tpu.matmul %299, %300, %cst_191 {dimension_numbers = #tpu.dot_dimension_numbers<[1], [0], [0], [1], [0, 0, 1, 1], [], []>} : vector<16x32xf32>, vector<32x64xf32>, vector<16x64xf32> -> vector<16x64xf32>
    %302 = tpu.concatenate %301, %261 in 0 : vector<16x64xf32>, vector<16x64xf32> -> vector<32x64xf32>
    %c0_192 = arith.constant 0 : index
    %c0_193 = arith.constant 0 : index
    %303 = vector.load %arg20[%c0_192, %c0_193] : memref<16x96xf32, #tpu.memory_space<vmem>>, vector<16x96xf32>
    %c0_194 = arith.constant 0 : index
    %c0_195 = arith.constant 0 : index
    %304 = vector.load %arg19[%c0_194, %c0_195] : memref<16x1xf32, #tpu.memory_space<vmem>>, vector<16x1xf32>
    %305 = tpu.iota {dimensions = array<i32: 1>} : vector<32x64xi32>
    %c1_i32_196 = arith.constant 1 : i32
    %306 = vector.broadcast %c1_i32_196 : i32 to vector<32x64xi32>
    %307 = arith.cmpi sge, %305, %306 : vector<32x64xi32>
    %c1_i32_197 = arith.constant 1 : i32
    %308 = tpu.dynamic_rotate %302 by %c1_i32_197 dim 1 : vector<32x64xf32>, i32 -> vector<32x64xf32>
    %cst_198 = arith.constant 0.000000e+00 : f32
    %309 = vector.broadcast %cst_198 : f32 to vector<32x64xf32>
    %310 = arith.select %307, %308, %309 : vector<32x64xi1>, vector<32x64xf32>
    %311 = tpu.iota {dimensions = array<i32: 1>} : vector<32x64xi32>
    %c63_i32_199 = arith.constant 63 : i32
    %312 = vector.broadcast %c63_i32_199 : i32 to vector<32x64xi32>
    %313 = arith.cmpi slt, %311, %312 : vector<32x64xi32>
    %c63_i32_200 = arith.constant 63 : i32
    %314 = tpu.dynamic_rotate %302 by %c63_i32_200 dim 1 : vector<32x64xf32>, i32 -> vector<32x64xf32>
    %cst_201 = arith.constant 0.000000e+00 : f32
    %315 = vector.broadcast %cst_201 : f32 to vector<32x64xf32>
    %316 = arith.select %313, %314, %315 : vector<32x64xi1>, vector<32x64xf32>
    %317 = tpu.concatenate %310, %302, %316 in 0 : vector<32x64xf32>, vector<32x64xf32>, vector<32x64xf32> -> vector<96x64xf32>
    %cst_202 = arith.constant dense<0.000000e+00> : vector<16x64xf32>
    %318 = tpu.matmul %303, %317, %cst_202 {dimension_numbers = #tpu.dot_dimension_numbers<[1], [0], [0], [1], [0, 0, 1, 1], [], []>} : vector<16x96xf32>, vector<96x64xf32>, vector<16x64xf32> -> vector<16x64xf32>
    %319 = vector.broadcast %304 : vector<16x1xf32> to vector<16x64xf32>
    %320 = arith.addf %318, %319 : vector<16x64xf32>
    %c0_203 = arith.constant 0 : index
    %c0_204 = arith.constant 0 : index
    %321 = vector.load %arg16[%c0_203, %c0_204] : memref<16x48xf32, #tpu.memory_space<vmem>>, vector<16x48xf32>
    %c0_205 = arith.constant 0 : index
    %c0_206 = arith.constant 0 : index
    %322 = vector.load %arg15[%c0_205, %c0_206] : memref<16x1xf32, #tpu.memory_space<vmem>>, vector<16x1xf32>
    %c1_i32_207 = arith.constant 1 : i32
    %323 = tpu.dynamic_rotate %320 by %c1_i32_207 dim 1 : vector<16x64xf32>, i32 -> vector<16x64xf32>
    %cst_208 = arith.constant 0.000000e+00 : f32
    %324 = vector.broadcast %cst_208 : f32 to vector<16x64xf32>
    %325 = arith.select %211, %323, %324 : vector<16x64xi1>, vector<16x64xf32>
    %c63_i32_209 = arith.constant 63 : i32
    %326 = tpu.dynamic_rotate %320 by %c63_i32_209 dim 1 : vector<16x64xf32>, i32 -> vector<16x64xf32>
    %cst_210 = arith.constant 0.000000e+00 : f32
    %327 = vector.broadcast %cst_210 : f32 to vector<16x64xf32>
    %328 = arith.select %217, %326, %327 : vector<16x64xi1>, vector<16x64xf32>
    %329 = tpu.concatenate %325, %320, %328 in 0 : vector<16x64xf32>, vector<16x64xf32>, vector<16x64xf32> -> vector<48x64xf32>
    %cst_211 = arith.constant dense<0.000000e+00> : vector<16x64xf32>
    %330 = tpu.matmul %321, %329, %cst_211 {dimension_numbers = #tpu.dot_dimension_numbers<[1], [0], [0], [1], [0, 0, 1, 1], [], []>} : vector<16x48xf32>, vector<48x64xf32>, vector<16x64xf32> -> vector<16x64xf32>
    %331 = vector.broadcast %322 : vector<16x1xf32> to vector<16x64xf32>
    %332 = arith.addf %330, %331 : vector<16x64xf32>
    %c0_212 = arith.constant 0 : index
    %c0_213 = arith.constant 0 : index
    %333 = vector.load %arg12[%c0_212, %c0_213] : memref<16x48xf32, #tpu.memory_space<vmem>>, vector<16x48xf32>
    %c0_214 = arith.constant 0 : index
    %c0_215 = arith.constant 0 : index
    %334 = vector.load %arg11[%c0_214, %c0_215] : memref<16x1xf32, #tpu.memory_space<vmem>>, vector<16x1xf32>
    %c1_i32_216 = arith.constant 1 : i32
    %335 = tpu.dynamic_rotate %332 by %c1_i32_216 dim 1 : vector<16x64xf32>, i32 -> vector<16x64xf32>
    %cst_217 = arith.constant 0.000000e+00 : f32
    %336 = vector.broadcast %cst_217 : f32 to vector<16x64xf32>
    %337 = arith.select %211, %335, %336 : vector<16x64xi1>, vector<16x64xf32>
    %c63_i32_218 = arith.constant 63 : i32
    %338 = tpu.dynamic_rotate %332 by %c63_i32_218 dim 1 : vector<16x64xf32>, i32 -> vector<16x64xf32>
    %cst_219 = arith.constant 0.000000e+00 : f32
    %339 = vector.broadcast %cst_219 : f32 to vector<16x64xf32>
    %340 = arith.select %217, %338, %339 : vector<16x64xi1>, vector<16x64xf32>
    %341 = tpu.concatenate %337, %332, %340 in 0 : vector<16x64xf32>, vector<16x64xf32>, vector<16x64xf32> -> vector<48x64xf32>
    %cst_220 = arith.constant dense<0.000000e+00> : vector<16x64xf32>
    %342 = tpu.matmul %333, %341, %cst_220 {dimension_numbers = #tpu.dot_dimension_numbers<[1], [0], [0], [1], [0, 0, 1, 1], [], []>} : vector<16x48xf32>, vector<48x64xf32>, vector<16x64xf32> -> vector<16x64xf32>
    %343 = vector.broadcast %334 : vector<16x1xf32> to vector<16x64xf32>
    %344 = arith.addf %342, %343 : vector<16x64xf32>
    %345 = math.tanh %344 : vector<16x64xf32>
    %c0_221 = arith.constant 0 : index
    %c0_222 = arith.constant 0 : index
    %346 = vector.load %arg14[%c0_221, %c0_222] : memref<16x48xf32, #tpu.memory_space<vmem>>, vector<16x48xf32>
    %c0_223 = arith.constant 0 : index
    %c0_224 = arith.constant 0 : index
    %347 = vector.load %arg13[%c0_223, %c0_224] : memref<16x1xf32, #tpu.memory_space<vmem>>, vector<16x1xf32>
    %c1_i32_225 = arith.constant 1 : i32
    %348 = tpu.dynamic_rotate %332 by %c1_i32_225 dim 1 : vector<16x64xf32>, i32 -> vector<16x64xf32>
    %cst_226 = arith.constant 0.000000e+00 : f32
    %349 = vector.broadcast %cst_226 : f32 to vector<16x64xf32>
    %350 = arith.select %211, %348, %349 : vector<16x64xi1>, vector<16x64xf32>
    %c63_i32_227 = arith.constant 63 : i32
    %351 = tpu.dynamic_rotate %332 by %c63_i32_227 dim 1 : vector<16x64xf32>, i32 -> vector<16x64xf32>
    %cst_228 = arith.constant 0.000000e+00 : f32
    %352 = vector.broadcast %cst_228 : f32 to vector<16x64xf32>
    %353 = arith.select %217, %351, %352 : vector<16x64xi1>, vector<16x64xf32>
    %354 = tpu.concatenate %350, %332, %353 in 0 : vector<16x64xf32>, vector<16x64xf32>, vector<16x64xf32> -> vector<48x64xf32>
    %cst_229 = arith.constant dense<0.000000e+00> : vector<16x64xf32>
    %355 = tpu.matmul %346, %354, %cst_229 {dimension_numbers = #tpu.dot_dimension_numbers<[1], [0], [0], [1], [0, 0, 1, 1], [], []>} : vector<16x48xf32>, vector<48x64xf32>, vector<16x64xf32> -> vector<16x64xf32>
    %356 = vector.broadcast %347 : vector<16x1xf32> to vector<16x64xf32>
    %357 = arith.addf %355, %356 : vector<16x64xf32>
    %358 = arith.negf %357 : vector<16x64xf32>
    %359 = math.exp %358 : vector<16x64xf32>
    %cst_230 = arith.constant 1.000000e+00 : f32
    %360 = vector.broadcast %cst_230 : f32 to vector<16x64xf32>
    %361 = arith.addf %360, %359 : vector<16x64xf32>
    %362 = arith.divf %360, %361 : vector<16x64xf32>
    %363 = arith.mulf %345, %362 : vector<16x64xf32>
    %c0_231 = arith.constant 0 : index
    %c0_232 = arith.constant 0 : index
    %364 = vector.load %arg18[%c0_231, %c0_232] : memref<16x16xf32, #tpu.memory_space<vmem>>, vector<16x16xf32>
    %c0_233 = arith.constant 0 : index
    %c0_234 = arith.constant 0 : index
    %365 = vector.load %arg17[%c0_233, %c0_234] : memref<16x1xf32, #tpu.memory_space<vmem>>, vector<16x1xf32>
    %cst_235 = arith.constant dense<0.000000e+00> : vector<16x64xf32>
    %366 = tpu.matmul %364, %363, %cst_235 {dimension_numbers = #tpu.dot_dimension_numbers<[1], [0], [0], [1], [0, 0, 1, 1], [], []>} : vector<16x16xf32>, vector<16x64xf32>, vector<16x64xf32> -> vector<16x64xf32>
    %367 = vector.broadcast %365 : vector<16x1xf32> to vector<16x64xf32>
    %368 = arith.addf %366, %367 : vector<16x64xf32>
    %369 = arith.addf %368, %320 : vector<16x64xf32>
    %c0_236 = arith.constant 0 : index
    %c0_237 = arith.constant 0 : index
    %370 = vector.load %arg9[%c0_236, %c0_237] : memref<64x128xf32, #tpu.memory_space<vmem>>, vector<64x128xf32>
    %cst_238 = arith.constant dense<0.000000e+00> : vector<16x128xf32>
    %371 = tpu.matmul %369, %370, %cst_238 {dimension_numbers = #tpu.dot_dimension_numbers<[1], [0], [0], [1], [0, 0, 1, 1], [], []>} : vector<16x64xf32>, vector<64x128xf32>, vector<16x128xf32> -> vector<16x128xf32>
    %372 = tpu.concatenate %371, %199 in 0 : vector<16x128xf32>, vector<16x128xf32> -> vector<32x128xf32>
    %c0_239 = arith.constant 0 : index
    %c0_240 = arith.constant 0 : index
    %373 = vector.load %arg30[%c0_239, %c0_240] : memref<16x96xf32, #tpu.memory_space<vmem>>, vector<16x96xf32>
    %c0_241 = arith.constant 0 : index
    %c0_242 = arith.constant 0 : index
    %374 = vector.load %arg29[%c0_241, %c0_242] : memref<16x1xf32, #tpu.memory_space<vmem>>, vector<16x1xf32>
    %375 = tpu.iota {dimensions = array<i32: 1>} : vector<32x128xi32>
    %c1_i32_243 = arith.constant 1 : i32
    %376 = vector.broadcast %c1_i32_243 : i32 to vector<32x128xi32>
    %377 = arith.cmpi sge, %375, %376 : vector<32x128xi32>
    %c1_i32_244 = arith.constant 1 : i32
    %378 = tpu.dynamic_rotate %372 by %c1_i32_244 dim 1 : vector<32x128xf32>, i32 -> vector<32x128xf32>
    %cst_245 = arith.constant 0.000000e+00 : f32
    %379 = vector.broadcast %cst_245 : f32 to vector<32x128xf32>
    %380 = arith.select %377, %378, %379 : vector<32x128xi1>, vector<32x128xf32>
    %381 = tpu.iota {dimensions = array<i32: 1>} : vector<32x128xi32>
    %c127_i32_246 = arith.constant 127 : i32
    %382 = vector.broadcast %c127_i32_246 : i32 to vector<32x128xi32>
    %383 = arith.cmpi slt, %381, %382 : vector<32x128xi32>
    %c127_i32_247 = arith.constant 127 : i32
    %384 = tpu.dynamic_rotate %372 by %c127_i32_247 dim 1 : vector<32x128xf32>, i32 -> vector<32x128xf32>
    %cst_248 = arith.constant 0.000000e+00 : f32
    %385 = vector.broadcast %cst_248 : f32 to vector<32x128xf32>
    %386 = arith.select %383, %384, %385 : vector<32x128xi1>, vector<32x128xf32>
    %387 = tpu.concatenate %380, %372, %386 in 0 : vector<32x128xf32>, vector<32x128xf32>, vector<32x128xf32> -> vector<96x128xf32>
    %cst_249 = arith.constant dense<0.000000e+00> : vector<16x128xf32>
    %388 = tpu.matmul %373, %387, %cst_249 {dimension_numbers = #tpu.dot_dimension_numbers<[1], [0], [0], [1], [0, 0, 1, 1], [], []>} : vector<16x96xf32>, vector<96x128xf32>, vector<16x128xf32> -> vector<16x128xf32>
    %389 = vector.broadcast %374 : vector<16x1xf32> to vector<16x128xf32>
    %390 = arith.addf %388, %389 : vector<16x128xf32>
    %c0_250 = arith.constant 0 : index
    %c0_251 = arith.constant 0 : index
    %391 = vector.load %arg26[%c0_250, %c0_251] : memref<16x48xf32, #tpu.memory_space<vmem>>, vector<16x48xf32>
    %c0_252 = arith.constant 0 : index
    %c0_253 = arith.constant 0 : index
    %392 = vector.load %arg25[%c0_252, %c0_253] : memref<16x1xf32, #tpu.memory_space<vmem>>, vector<16x1xf32>
    %c1_i32_254 = arith.constant 1 : i32
    %393 = tpu.dynamic_rotate %390 by %c1_i32_254 dim 1 : vector<16x128xf32>, i32 -> vector<16x128xf32>
    %cst_255 = arith.constant 0.000000e+00 : f32
    %394 = vector.broadcast %cst_255 : f32 to vector<16x128xf32>
    %395 = arith.select %149, %393, %394 : vector<16x128xi1>, vector<16x128xf32>
    %c127_i32_256 = arith.constant 127 : i32
    %396 = tpu.dynamic_rotate %390 by %c127_i32_256 dim 1 : vector<16x128xf32>, i32 -> vector<16x128xf32>
    %cst_257 = arith.constant 0.000000e+00 : f32
    %397 = vector.broadcast %cst_257 : f32 to vector<16x128xf32>
    %398 = arith.select %155, %396, %397 : vector<16x128xi1>, vector<16x128xf32>
    %399 = tpu.concatenate %395, %390, %398 in 0 : vector<16x128xf32>, vector<16x128xf32>, vector<16x128xf32> -> vector<48x128xf32>
    %cst_258 = arith.constant dense<0.000000e+00> : vector<16x128xf32>
    %400 = tpu.matmul %391, %399, %cst_258 {dimension_numbers = #tpu.dot_dimension_numbers<[1], [0], [0], [1], [0, 0, 1, 1], [], []>} : vector<16x48xf32>, vector<48x128xf32>, vector<16x128xf32> -> vector<16x128xf32>
    %401 = vector.broadcast %392 : vector<16x1xf32> to vector<16x128xf32>
    %402 = arith.addf %400, %401 : vector<16x128xf32>
    %c0_259 = arith.constant 0 : index
    %c0_260 = arith.constant 0 : index
    %403 = vector.load %arg22[%c0_259, %c0_260] : memref<16x48xf32, #tpu.memory_space<vmem>>, vector<16x48xf32>
    %c0_261 = arith.constant 0 : index
    %c0_262 = arith.constant 0 : index
    %404 = vector.load %arg21[%c0_261, %c0_262] : memref<16x1xf32, #tpu.memory_space<vmem>>, vector<16x1xf32>
    %c1_i32_263 = arith.constant 1 : i32
    %405 = tpu.dynamic_rotate %402 by %c1_i32_263 dim 1 : vector<16x128xf32>, i32 -> vector<16x128xf32>
    %cst_264 = arith.constant 0.000000e+00 : f32
    %406 = vector.broadcast %cst_264 : f32 to vector<16x128xf32>
    %407 = arith.select %149, %405, %406 : vector<16x128xi1>, vector<16x128xf32>
    %c127_i32_265 = arith.constant 127 : i32
    %408 = tpu.dynamic_rotate %402 by %c127_i32_265 dim 1 : vector<16x128xf32>, i32 -> vector<16x128xf32>
    %cst_266 = arith.constant 0.000000e+00 : f32
    %409 = vector.broadcast %cst_266 : f32 to vector<16x128xf32>
    %410 = arith.select %155, %408, %409 : vector<16x128xi1>, vector<16x128xf32>
    %411 = tpu.concatenate %407, %402, %410 in 0 : vector<16x128xf32>, vector<16x128xf32>, vector<16x128xf32> -> vector<48x128xf32>
    %cst_267 = arith.constant dense<0.000000e+00> : vector<16x128xf32>
    %412 = tpu.matmul %403, %411, %cst_267 {dimension_numbers = #tpu.dot_dimension_numbers<[1], [0], [0], [1], [0, 0, 1, 1], [], []>} : vector<16x48xf32>, vector<48x128xf32>, vector<16x128xf32> -> vector<16x128xf32>
    %413 = vector.broadcast %404 : vector<16x1xf32> to vector<16x128xf32>
    %414 = arith.addf %412, %413 : vector<16x128xf32>
    %415 = math.tanh %414 : vector<16x128xf32>
    %c0_268 = arith.constant 0 : index
    %c0_269 = arith.constant 0 : index
    %416 = vector.load %arg24[%c0_268, %c0_269] : memref<16x48xf32, #tpu.memory_space<vmem>>, vector<16x48xf32>
    %c0_270 = arith.constant 0 : index
    %c0_271 = arith.constant 0 : index
    %417 = vector.load %arg23[%c0_270, %c0_271] : memref<16x1xf32, #tpu.memory_space<vmem>>, vector<16x1xf32>
    %c1_i32_272 = arith.constant 1 : i32
    %418 = tpu.dynamic_rotate %402 by %c1_i32_272 dim 1 : vector<16x128xf32>, i32 -> vector<16x128xf32>
    %cst_273 = arith.constant 0.000000e+00 : f32
    %419 = vector.broadcast %cst_273 : f32 to vector<16x128xf32>
    %420 = arith.select %149, %418, %419 : vector<16x128xi1>, vector<16x128xf32>
    %c127_i32_274 = arith.constant 127 : i32
    %421 = tpu.dynamic_rotate %402 by %c127_i32_274 dim 1 : vector<16x128xf32>, i32 -> vector<16x128xf32>
    %cst_275 = arith.constant 0.000000e+00 : f32
    %422 = vector.broadcast %cst_275 : f32 to vector<16x128xf32>
    %423 = arith.select %155, %421, %422 : vector<16x128xi1>, vector<16x128xf32>
    %424 = tpu.concatenate %420, %402, %423 in 0 : vector<16x128xf32>, vector<16x128xf32>, vector<16x128xf32> -> vector<48x128xf32>
    %cst_276 = arith.constant dense<0.000000e+00> : vector<16x128xf32>
    %425 = tpu.matmul %416, %424, %cst_276 {dimension_numbers = #tpu.dot_dimension_numbers<[1], [0], [0], [1], [0, 0, 1, 1], [], []>} : vector<16x48xf32>, vector<48x128xf32>, vector<16x128xf32> -> vector<16x128xf32>
    %426 = vector.broadcast %417 : vector<16x1xf32> to vector<16x128xf32>
    %427 = arith.addf %425, %426 : vector<16x128xf32>
    %428 = arith.negf %427 : vector<16x128xf32>
    %429 = math.exp %428 : vector<16x128xf32>
    %cst_277 = arith.constant 1.000000e+00 : f32
    %430 = vector.broadcast %cst_277 : f32 to vector<16x128xf32>
    %431 = arith.addf %430, %429 : vector<16x128xf32>
    %432 = arith.divf %430, %431 : vector<16x128xf32>
    %433 = arith.mulf %415, %432 : vector<16x128xf32>
    %c0_278 = arith.constant 0 : index
    %c0_279 = arith.constant 0 : index
    %434 = vector.load %arg28[%c0_278, %c0_279] : memref<16x16xf32, #tpu.memory_space<vmem>>, vector<16x16xf32>
    %c0_280 = arith.constant 0 : index
    %c0_281 = arith.constant 0 : index
    %435 = vector.load %arg27[%c0_280, %c0_281] : memref<16x1xf32, #tpu.memory_space<vmem>>, vector<16x1xf32>
    %cst_282 = arith.constant dense<0.000000e+00> : vector<16x128xf32>
    %436 = tpu.matmul %434, %433, %cst_282 {dimension_numbers = #tpu.dot_dimension_numbers<[1], [0], [0], [1], [0, 0, 1, 1], [], []>} : vector<16x16xf32>, vector<16x128xf32>, vector<16x128xf32> -> vector<16x128xf32>
    %437 = vector.broadcast %435 : vector<16x1xf32> to vector<16x128xf32>
    %438 = arith.addf %436, %437 : vector<16x128xf32>
    %439 = arith.addf %438, %390 : vector<16x128xf32>
    %c0_283 = arith.constant 0 : index
    %c0_284 = arith.constant 0 : index
    %440 = vector.load %arg10[%c0_283, %c0_284] : memref<128x256xf32, #tpu.memory_space<vmem>>, vector<128x256xf32>
    %cst_285 = arith.constant dense<0.000000e+00> : vector<16x256xf32>
    %441 = tpu.matmul %439, %440, %cst_285 {dimension_numbers = #tpu.dot_dimension_numbers<[1], [0], [0], [1], [0, 0, 1, 1], [], []>} : vector<16x128xf32>, vector<128x256xf32>, vector<16x256xf32> -> vector<16x256xf32>
    %442 = tpu.concatenate %441, %137 in 0 : vector<16x256xf32>, vector<16x256xf32> -> vector<32x256xf32>
    %c0_286 = arith.constant 0 : index
    %c0_287 = arith.constant 0 : index
    %443 = vector.load %arg40[%c0_286, %c0_287] : memref<16x96xf32, #tpu.memory_space<vmem>>, vector<16x96xf32>
    %c0_288 = arith.constant 0 : index
    %c0_289 = arith.constant 0 : index
    %444 = vector.load %arg39[%c0_288, %c0_289] : memref<16x1xf32, #tpu.memory_space<vmem>>, vector<16x1xf32>
    %445 = tpu.iota {dimensions = array<i32: 1>} : vector<32x256xi32>
    %c1_i32_290 = arith.constant 1 : i32
    %446 = vector.broadcast %c1_i32_290 : i32 to vector<32x256xi32>
    %447 = arith.cmpi sge, %445, %446 : vector<32x256xi32>
    %c1_i32_291 = arith.constant 1 : i32
    %448 = tpu.dynamic_rotate %442 by %c1_i32_291 dim 1 : vector<32x256xf32>, i32 -> vector<32x256xf32>
    %cst_292 = arith.constant 0.000000e+00 : f32
    %449 = vector.broadcast %cst_292 : f32 to vector<32x256xf32>
    %450 = arith.select %447, %448, %449 : vector<32x256xi1>, vector<32x256xf32>
    %451 = tpu.iota {dimensions = array<i32: 1>} : vector<32x256xi32>
    %c255_i32_293 = arith.constant 255 : i32
    %452 = vector.broadcast %c255_i32_293 : i32 to vector<32x256xi32>
    %453 = arith.cmpi slt, %451, %452 : vector<32x256xi32>
    %c255_i32_294 = arith.constant 255 : i32
    %454 = tpu.dynamic_rotate %442 by %c255_i32_294 dim 1 : vector<32x256xf32>, i32 -> vector<32x256xf32>
    %cst_295 = arith.constant 0.000000e+00 : f32
    %455 = vector.broadcast %cst_295 : f32 to vector<32x256xf32>
    %456 = arith.select %453, %454, %455 : vector<32x256xi1>, vector<32x256xf32>
    %457 = tpu.concatenate %450, %442, %456 in 0 : vector<32x256xf32>, vector<32x256xf32>, vector<32x256xf32> -> vector<96x256xf32>
    %cst_296 = arith.constant dense<0.000000e+00> : vector<16x256xf32>
    %458 = tpu.matmul %443, %457, %cst_296 {dimension_numbers = #tpu.dot_dimension_numbers<[1], [0], [0], [1], [0, 0, 1, 1], [], []>} : vector<16x96xf32>, vector<96x256xf32>, vector<16x256xf32> -> vector<16x256xf32>
    %459 = vector.broadcast %444 : vector<16x1xf32> to vector<16x256xf32>
    %460 = arith.addf %458, %459 : vector<16x256xf32>
    %c0_297 = arith.constant 0 : index
    %c0_298 = arith.constant 0 : index
    %461 = vector.load %arg36[%c0_297, %c0_298] : memref<16x48xf32, #tpu.memory_space<vmem>>, vector<16x48xf32>
    %c0_299 = arith.constant 0 : index
    %c0_300 = arith.constant 0 : index
    %462 = vector.load %arg35[%c0_299, %c0_300] : memref<16x1xf32, #tpu.memory_space<vmem>>, vector<16x1xf32>
    %c1_i32_301 = arith.constant 1 : i32
    %463 = tpu.dynamic_rotate %460 by %c1_i32_301 dim 1 : vector<16x256xf32>, i32 -> vector<16x256xf32>
    %cst_302 = arith.constant 0.000000e+00 : f32
    %464 = vector.broadcast %cst_302 : f32 to vector<16x256xf32>
    %465 = arith.select %11, %463, %464 : vector<16x256xi1>, vector<16x256xf32>
    %c255_i32_303 = arith.constant 255 : i32
    %466 = tpu.dynamic_rotate %460 by %c255_i32_303 dim 1 : vector<16x256xf32>, i32 -> vector<16x256xf32>
    %cst_304 = arith.constant 0.000000e+00 : f32
    %467 = vector.broadcast %cst_304 : f32 to vector<16x256xf32>
    %468 = arith.select %17, %466, %467 : vector<16x256xi1>, vector<16x256xf32>
    %469 = tpu.concatenate %465, %460, %468 in 0 : vector<16x256xf32>, vector<16x256xf32>, vector<16x256xf32> -> vector<48x256xf32>
    %cst_305 = arith.constant dense<0.000000e+00> : vector<16x256xf32>
    %470 = tpu.matmul %461, %469, %cst_305 {dimension_numbers = #tpu.dot_dimension_numbers<[1], [0], [0], [1], [0, 0, 1, 1], [], []>} : vector<16x48xf32>, vector<48x256xf32>, vector<16x256xf32> -> vector<16x256xf32>
    %471 = vector.broadcast %462 : vector<16x1xf32> to vector<16x256xf32>
    %472 = arith.addf %470, %471 : vector<16x256xf32>
    %c0_306 = arith.constant 0 : index
    %c0_307 = arith.constant 0 : index
    %473 = vector.load %arg32[%c0_306, %c0_307] : memref<16x48xf32, #tpu.memory_space<vmem>>, vector<16x48xf32>
    %c0_308 = arith.constant 0 : index
    %c0_309 = arith.constant 0 : index
    %474 = vector.load %arg31[%c0_308, %c0_309] : memref<16x1xf32, #tpu.memory_space<vmem>>, vector<16x1xf32>
    %c1_i32_310 = arith.constant 1 : i32
    %475 = tpu.dynamic_rotate %472 by %c1_i32_310 dim 1 : vector<16x256xf32>, i32 -> vector<16x256xf32>
    %cst_311 = arith.constant 0.000000e+00 : f32
    %476 = vector.broadcast %cst_311 : f32 to vector<16x256xf32>
    %477 = arith.select %11, %475, %476 : vector<16x256xi1>, vector<16x256xf32>
    %c255_i32_312 = arith.constant 255 : i32
    %478 = tpu.dynamic_rotate %472 by %c255_i32_312 dim 1 : vector<16x256xf32>, i32 -> vector<16x256xf32>
    %cst_313 = arith.constant 0.000000e+00 : f32
    %479 = vector.broadcast %cst_313 : f32 to vector<16x256xf32>
    %480 = arith.select %17, %478, %479 : vector<16x256xi1>, vector<16x256xf32>
    %481 = tpu.concatenate %477, %472, %480 in 0 : vector<16x256xf32>, vector<16x256xf32>, vector<16x256xf32> -> vector<48x256xf32>
    %cst_314 = arith.constant dense<0.000000e+00> : vector<16x256xf32>
    %482 = tpu.matmul %473, %481, %cst_314 {dimension_numbers = #tpu.dot_dimension_numbers<[1], [0], [0], [1], [0, 0, 1, 1], [], []>} : vector<16x48xf32>, vector<48x256xf32>, vector<16x256xf32> -> vector<16x256xf32>
    %483 = vector.broadcast %474 : vector<16x1xf32> to vector<16x256xf32>
    %484 = arith.addf %482, %483 : vector<16x256xf32>
    %485 = math.tanh %484 : vector<16x256xf32>
    %c0_315 = arith.constant 0 : index
    %c0_316 = arith.constant 0 : index
    %486 = vector.load %arg34[%c0_315, %c0_316] : memref<16x48xf32, #tpu.memory_space<vmem>>, vector<16x48xf32>
    %c0_317 = arith.constant 0 : index
    %c0_318 = arith.constant 0 : index
    %487 = vector.load %arg33[%c0_317, %c0_318] : memref<16x1xf32, #tpu.memory_space<vmem>>, vector<16x1xf32>
    %c1_i32_319 = arith.constant 1 : i32
    %488 = tpu.dynamic_rotate %472 by %c1_i32_319 dim 1 : vector<16x256xf32>, i32 -> vector<16x256xf32>
    %cst_320 = arith.constant 0.000000e+00 : f32
    %489 = vector.broadcast %cst_320 : f32 to vector<16x256xf32>
    %490 = arith.select %11, %488, %489 : vector<16x256xi1>, vector<16x256xf32>
    %c255_i32_321 = arith.constant 255 : i32
    %491 = tpu.dynamic_rotate %472 by %c255_i32_321 dim 1 : vector<16x256xf32>, i32 -> vector<16x256xf32>
    %cst_322 = arith.constant 0.000000e+00 : f32
    %492 = vector.broadcast %cst_322 : f32 to vector<16x256xf32>
    %493 = arith.select %17, %491, %492 : vector<16x256xi1>, vector<16x256xf32>
    %494 = tpu.concatenate %490, %472, %493 in 0 : vector<16x256xf32>, vector<16x256xf32>, vector<16x256xf32> -> vector<48x256xf32>
    %cst_323 = arith.constant dense<0.000000e+00> : vector<16x256xf32>
    %495 = tpu.matmul %486, %494, %cst_323 {dimension_numbers = #tpu.dot_dimension_numbers<[1], [0], [0], [1], [0, 0, 1, 1], [], []>} : vector<16x48xf32>, vector<48x256xf32>, vector<16x256xf32> -> vector<16x256xf32>
    %496 = vector.broadcast %487 : vector<16x1xf32> to vector<16x256xf32>
    %497 = arith.addf %495, %496 : vector<16x256xf32>
    %498 = arith.negf %497 : vector<16x256xf32>
    %499 = math.exp %498 : vector<16x256xf32>
    %cst_324 = arith.constant 1.000000e+00 : f32
    %500 = vector.broadcast %cst_324 : f32 to vector<16x256xf32>
    %501 = arith.addf %500, %499 : vector<16x256xf32>
    %502 = arith.divf %500, %501 : vector<16x256xf32>
    %503 = arith.mulf %485, %502 : vector<16x256xf32>
    %c0_325 = arith.constant 0 : index
    %c0_326 = arith.constant 0 : index
    %504 = vector.load %arg38[%c0_325, %c0_326] : memref<16x16xf32, #tpu.memory_space<vmem>>, vector<16x16xf32>
    %c0_327 = arith.constant 0 : index
    %c0_328 = arith.constant 0 : index
    %505 = vector.load %arg37[%c0_327, %c0_328] : memref<16x1xf32, #tpu.memory_space<vmem>>, vector<16x1xf32>
    %cst_329 = arith.constant dense<0.000000e+00> : vector<16x256xf32>
    %506 = tpu.matmul %504, %503, %cst_329 {dimension_numbers = #tpu.dot_dimension_numbers<[1], [0], [0], [1], [0, 0, 1, 1], [], []>} : vector<16x16xf32>, vector<16x256xf32>, vector<16x256xf32> -> vector<16x256xf32>
    %507 = vector.broadcast %505 : vector<16x1xf32> to vector<16x256xf32>
    %508 = arith.addf %506, %507 : vector<16x256xf32>
    %509 = arith.addf %508, %460 : vector<16x256xf32>
    %c0_330 = arith.constant 0 : index
    %c0_331 = arith.constant 0 : index
    %510 = vector.load %arg2[%c0_330, %c0_331] : memref<64x256xf32, #tpu.memory_space<vmem>>, vector<64x256xf32>
    %cst_332 = arith.constant dense<0.000000e+00> : vector<16x256xf32>
    %511 = tpu.matmul %369, %510, %cst_332 {dimension_numbers = #tpu.dot_dimension_numbers<[1], [0], [0], [1], [0, 0, 1, 1], [], []>} : vector<16x64xf32>, vector<64x256xf32>, vector<16x256xf32> -> vector<16x256xf32>
    %c0_333 = arith.constant 0 : index
    %c0_334 = arith.constant 0 : index
    %512 = vector.load %arg3[%c0_333, %c0_334] : memref<128x256xf32, #tpu.memory_space<vmem>>, vector<128x256xf32>
    %cst_335 = arith.constant dense<0.000000e+00> : vector<16x256xf32>
    %513 = tpu.matmul %439, %512, %cst_335 {dimension_numbers = #tpu.dot_dimension_numbers<[1], [0], [0], [1], [0, 0, 1, 1], [], []>} : vector<16x128xf32>, vector<128x256xf32>, vector<16x256xf32> -> vector<16x256xf32>
    %514 = tpu.concatenate %511, %513, %509 in 0 : vector<16x256xf32>, vector<16x256xf32>, vector<16x256xf32> -> vector<48x256xf32>
    %c0_336 = arith.constant 0 : index
    %c0_337 = arith.constant 0 : index
    %515 = vector.load %arg80[%c0_336, %c0_337] : memref<8x144xf32, #tpu.memory_space<vmem>>, vector<8x144xf32>
    %c0_338 = arith.constant 0 : index
    %c0_339 = arith.constant 0 : index
    %516 = vector.load %arg79[%c0_338, %c0_339] : memref<8x1xf32, #tpu.memory_space<vmem>>, vector<8x1xf32>
    %517 = tpu.iota {dimensions = array<i32: 1>} : vector<48x256xi32>
    %c1_i32_340 = arith.constant 1 : i32
    %518 = vector.broadcast %c1_i32_340 : i32 to vector<48x256xi32>
    %519 = arith.cmpi sge, %517, %518 : vector<48x256xi32>
    %c1_i32_341 = arith.constant 1 : i32
    %520 = tpu.dynamic_rotate %514 by %c1_i32_341 dim 1 : vector<48x256xf32>, i32 -> vector<48x256xf32>
    %cst_342 = arith.constant 0.000000e+00 : f32
    %521 = vector.broadcast %cst_342 : f32 to vector<48x256xf32>
    %522 = arith.select %519, %520, %521 : vector<48x256xi1>, vector<48x256xf32>
    %523 = tpu.iota {dimensions = array<i32: 1>} : vector<48x256xi32>
    %c255_i32_343 = arith.constant 255 : i32
    %524 = vector.broadcast %c255_i32_343 : i32 to vector<48x256xi32>
    %525 = arith.cmpi slt, %523, %524 : vector<48x256xi32>
    %c255_i32_344 = arith.constant 255 : i32
    %526 = tpu.dynamic_rotate %514 by %c255_i32_344 dim 1 : vector<48x256xf32>, i32 -> vector<48x256xf32>
    %cst_345 = arith.constant 0.000000e+00 : f32
    %527 = vector.broadcast %cst_345 : f32 to vector<48x256xf32>
    %528 = arith.select %525, %526, %527 : vector<48x256xi1>, vector<48x256xf32>
    %529 = tpu.concatenate %522, %514, %528 in 0 : vector<48x256xf32>, vector<48x256xf32>, vector<48x256xf32> -> vector<144x256xf32>
    %cst_346 = arith.constant dense<0.000000e+00> : vector<8x256xf32>
    %530 = tpu.matmul %515, %529, %cst_346 {dimension_numbers = #tpu.dot_dimension_numbers<[1], [0], [0], [1], [0, 0, 1, 1], [], []>} : vector<8x144xf32>, vector<144x256xf32>, vector<8x256xf32> -> vector<8x256xf32>
    %531 = vector.broadcast %516 : vector<8x1xf32> to vector<8x256xf32>
    %532 = arith.addf %530, %531 : vector<8x256xf32>
    %c0_347 = arith.constant 0 : index
    %c0_348 = arith.constant 0 : index
    %533 = vector.load %arg7[%c0_347, %c0_348] : memref<8x8xf32, #tpu.memory_space<vmem>>, vector<8x8xf32>
    %534 = arith.mulf %532, %532 : vector<8x256xf32>
    %cst_349 = arith.constant dense<0.000000e+00> : vector<8x256xf32>
    %535 = tpu.matmul %533, %534, %cst_349 {dimension_numbers = #tpu.dot_dimension_numbers<[1], [0], [0], [1], [0, 0, 1, 1], [], []>} : vector<8x8xf32>, vector<8x256xf32>, vector<8x256xf32> -> vector<8x256xf32>
    %cst_350 = arith.constant 1.000000e-24 : f32
    %536 = vector.broadcast %cst_350 : f32 to vector<8x256xf32>
    %537 = arith.maximumf %535, %536 : vector<8x256xf32>
    %538 = math.rsqrt %537 : vector<8x256xf32>
    %539 = arith.mulf %532, %538 : vector<8x256xf32>
    %c0_351 = arith.constant 0 : index
    %c0_352 = arith.constant 0 : index
    %c0_353 = arith.constant 0 : index
    %540 = vector.load %arg85[%c0_351, %c0_352, %c0_353] : memref<1x8x256xf32, #tpu.memory_space<vmem>>, vector<1x8x256xf32>
    %541 = vector.shape_cast %540 : vector<1x8x256xf32> to vector<8x256xf32>
    %542 = vector.shape_cast %539 : vector<8x256xf32> to vector<1x8x256xf32>
    tpu.vector_store %arg85[%c0_351, %c0_352, %c0_353], %542 {strides = array<i32>} : memref<1x8x256xf32, #tpu.memory_space<vmem>>, vector<1x8x256xf32>,
    return
  }
  func.func @transform_0(%arg0: i32) -> (i32, i32, i32) {
    %c0_i32 = arith.constant 0 : i32
    %c0_i32_0 = arith.constant 0 : i32
    %c0_i32_1 = arith.constant 0 : i32
    return %arg0, %c0_i32, %c0_i32_0 : i32, i32, i32
  }
  func.func @transform_1(%arg0: i32) -> (i32, i32) {
    %c0_i32 = arith.constant 0 : i32
    %c0_i32_0 = arith.constant 0 : i32
    %c0_i32_1 = arith.constant 0 : i32
    return %c0_i32, %c0_i32_0 : i32, i32
  }
  func.func @transform_2(%arg0: i32) -> (i32, i32) {
    %c0_i32 = arith.constant 0 : i32
    %c0_i32_0 = arith.constant 0 : i32
    %c0_i32_1 = arith.constant 0 : i32
    return %c0_i32, %c0_i32_0 : i32, i32
  }
  func.func @transform_3(%arg0: i32) -> (i32, i32) {
    %c0_i32 = arith.constant 0 : i32
    %c0_i32_0 = arith.constant 0 : i32
    %c0_i32_1 = arith.constant 0 : i32
    return %c0_i32, %c0_i32_0 : i32, i32
  }
  func.func @transform_4(%arg0: i32) -> (i32, i32) {
    %c0_i32 = arith.constant 0 : i32
    %c0_i32_0 = arith.constant 0 : i32
    %c0_i32_1 = arith.constant 0 : i32
    return %c0_i32, %c0_i32_0 : i32, i32
  }
  func.func @transform_5(%arg0: i32) -> (i32, i32) {
    %c0_i32 = arith.constant 0 : i32
    %c0_i32_0 = arith.constant 0 : i32
    %c0_i32_1 = arith.constant 0 : i32
    return %c0_i32, %c0_i32_0 : i32, i32
  }
  func.func @transform_6(%arg0: i32) -> (i32, i32) {
    %c0_i32 = arith.constant 0 : i32
    %c0_i32_0 = arith.constant 0 : i32
    %c0_i32_1 = arith.constant 0 : i32
    return %c0_i32, %c0_i32_0 : i32, i32
  }
  func.func @transform_7(%arg0: i32) -> (i32, i32) {
    %c0_i32 = arith.constant 0 : i32
    %c0_i32_0 = arith.constant 0 : i32
    %c0_i32_1 = arith.constant 0 : i32
    return %c0_i32, %c0_i32_0 : i32, i32
  }
  func.func @transform_8(%arg0: i32) -> (i32, i32) {
    %c0_i32 = arith.constant 0 : i32
    %c0_i32_0 = arith.constant 0 : i32
    %c0_i32_1 = arith.constant 0 : i32
    return %c0_i32, %c0_i32_0 : i32, i32
  }
  func.func @transform_9(%arg0: i32) -> (i32, i32) {
    %c0_i32 = arith.constant 0 : i32
    %c0_i32_0 = arith.constant 0 : i32
    %c0_i32_1 = arith.constant 0 : i32
    return %c0_i32, %c0_i32_0 : i32, i32
  }
  func.func @transform_10(%arg0: i32) -> (i32, i32) {
    %c0_i32 = arith.constant 0 : i32
    %c0_i32_0 = arith.constant 0 : i32
    %c0_i32_1 = arith.constant 0 : i32
    return %c0_i32, %c0_i32_0 : i32, i32
  }
  func.func @transform_11(%arg0: i32) -> (i32, i32) {
    %c0_i32 = arith.constant 0 : i32
    %c0_i32_0 = arith.constant 0 : i32
    %c0_i32_1 = arith.constant 0 : i32
    return %c0_i32, %c0_i32_0 : i32, i32
  }
  func.func @transform_12(%arg0: i32) -> (i32, i32) {
    %c0_i32 = arith.constant 0 : i32
    %c0_i32_0 = arith.constant 0 : i32
    %c0_i32_1 = arith.constant 0 : i32
    return %c0_i32, %c0_i32_0 : i32, i32
  }
  func.func @transform_13(%arg0: i32) -> (i32, i32) {
    %c0_i32 = arith.constant 0 : i32
    %c0_i32_0 = arith.constant 0 : i32
    %c0_i32_1 = arith.constant 0 : i32
    return %c0_i32, %c0_i32_0 : i32, i32
  }
  func.func @transform_14(%arg0: i32) -> (i32, i32) {
    %c0_i32 = arith.constant 0 : i32
    %c0_i32_0 = arith.constant 0 : i32
    %c0_i32_1 = arith.constant 0 : i32
    return %c0_i32, %c0_i32_0 : i32, i32
  }
  func.func @transform_15(%arg0: i32) -> (i32, i32) {
    %c0_i32 = arith.constant 0 : i32
    %c0_i32_0 = arith.constant 0 : i32
    %c0_i32_1 = arith.constant 0 : i32
    return %c0_i32, %c0_i32_0 : i32, i32
  }
  func.func @transform_16(%arg0: i32) -> (i32, i32) {
    %c0_i32 = arith.constant 0 : i32
    %c0_i32_0 = arith.constant 0 : i32
    %c0_i32_1 = arith.constant 0 : i32
    return %c0_i32, %c0_i32_0 : i32, i32
  }
  func.func @transform_17(%arg0: i32) -> (i32, i32) {
    %c0_i32 = arith.constant 0 : i32
    %c0_i32_0 = arith.constant 0 : i32
    %c0_i32_1 = arith.constant 0 : i32
    return %c0_i32, %c0_i32_0 : i32, i32
  }
  func.func @transform_18(%arg0: i32) -> (i32, i32) {
    %c0_i32 = arith.constant 0 : i32
    %c0_i32_0 = arith.constant 0 : i32
    %c0_i32_1 = arith.constant 0 : i32
    return %c0_i32, %c0_i32_0 : i32, i32
  }
  func.func @transform_19(%arg0: i32) -> (i32, i32) {
    %c0_i32 = arith.constant 0 : i32
    %c0_i32_0 = arith.constant 0 : i32
    %c0_i32_1 = arith.constant 0 : i32
    return %c0_i32, %c0_i32_0 : i32, i32
  }
  func.func @transform_20(%arg0: i32) -> (i32, i32) {
    %c0_i32 = arith.constant 0 : i32
    %c0_i32_0 = arith.constant 0 : i32
    %c0_i32_1 = arith.constant 0 : i32
    return %c0_i32, %c0_i32_0 : i32, i32
  }
  func.func @transform_21(%arg0: i32) -> (i32, i32) {
    %c0_i32 = arith.constant 0 : i32
    %c0_i32_0 = arith.constant 0 : i32
    %c0_i32_1 = arith.constant 0 : i32
    return %c0_i32, %c0_i32_0 : i32, i32
  }
  func.func @transform_22(%arg0: i32) -> (i32, i32) {
    %c0_i32 = arith.constant 0 : i32
    %c0_i32_0 = arith.constant 0 : i32
    %c0_i32_1 = arith.constant 0 : i32
    return %c0_i32, %c0_i32_0 : i32, i32
  }
  func.func @transform_23(%arg0: i32) -> (i32, i32) {
    %c0_i32 = arith.constant 0 : i32
    %c0_i32_0 = arith.constant 0 : i32
    %c0_i32_1 = arith.constant 0 : i32
    return %c0_i32, %c0_i32_0 : i32, i32
  }
  func.func @transform_24(%arg0: i32) -> (i32, i32) {
    %c0_i32 = arith.constant 0 : i32
    %c0_i32_0 = arith.constant 0 : i32
    %c0_i32_1 = arith.constant 0 : i32
    return %c0_i32, %c0_i32_0 : i32, i32
  }
  func.func @transform_25(%arg0: i32) -> (i32, i32) {
    %c0_i32 = arith.constant 0 : i32
    %c0_i32_0 = arith.constant 0 : i32
    %c0_i32_1 = arith.constant 0 : i32
    return %c0_i32, %c0_i32_0 : i32, i32
  }
  func.func @transform_26(%arg0: i32) -> (i32, i32) {
    %c0_i32 = arith.constant 0 : i32
    %c0_i32_0 = arith.constant 0 : i32
    %c0_i32_1 = arith.constant 0 : i32
    return %c0_i32, %c0_i32_0 : i32, i32
  }
  func.func @transform_27(%arg0: i32) -> (i32, i32) {
    %c0_i32 = arith.constant 0 : i32
    %c0_i32_0 = arith.constant 0 : i32
    %c0_i32_1 = arith.constant 0 : i32
    return %c0_i32, %c0_i32_0 : i32, i32
  }
  func.func @transform_28(%arg0: i32) -> (i32, i32) {
    %c0_i32 = arith.constant 0 : i32
    %c0_i32_0 = arith.constant 0 : i32
    %c0_i32_1 = arith.constant 0 : i32
    return %c0_i32, %c0_i32_0 : i32, i32
  }
  func.func @transform_29(%arg0: i32) -> (i32, i32) {
    %c0_i32 = arith.constant 0 : i32
    %c0_i32_0 = arith.constant 0 : i32
    %c0_i32_1 = arith.constant 0 : i32
    return %c0_i32, %c0_i32_0 : i32, i32
  }
  func.func @transform_30(%arg0: i32) -> (i32, i32) {
    %c0_i32 = arith.constant 0 : i32
    %c0_i32_0 = arith.constant 0 : i32
    %c0_i32_1 = arith.constant 0 : i32
    return %c0_i32, %c0_i32_0 : i32, i32
  }
  func.func @transform_31(%arg0: i32) -> (i32, i32) {
    %c0_i32 = arith.constant 0 : i32
    %c0_i32_0 = arith.constant 0 : i32
    %c0_i32_1 = arith.constant 0 : i32
    return %c0_i32, %c0_i32_0 : i32, i32
  }
  func.func @transform_32(%arg0: i32) -> (i32, i32) {
    %c0_i32 = arith.constant 0 : i32
    %c0_i32_0 = arith.constant 0 : i32
    %c0_i32_1 = arith.constant 0 : i32
    return %c0_i32, %c0_i32_0 : i32, i32
  }
  func.func @transform_33(%arg0: i32) -> (i32, i32) {
    %c0_i32 = arith.constant 0 : i32
    %c0_i32_0 = arith.constant 0 : i32
    %c0_i32_1 = arith.constant 0 : i32
    return %c0_i32, %c0_i32_0 : i32, i32
  }
  func.func @transform_34(%arg0: i32) -> (i32, i32) {
    %c0_i32 = arith.constant 0 : i32
    %c0_i32_0 = arith.constant 0 : i32
    %c0_i32_1 = arith.constant 0 : i32
    return %c0_i32, %c0_i32_0 : i32, i32
  }
  func.func @transform_35(%arg0: i32) -> (i32, i32) {
    %c0_i32 = arith.constant 0 : i32
    %c0_i32_0 = arith.constant 0 : i32
    %c0_i32_1 = arith.constant 0 : i32
    return %c0_i32, %c0_i32_0 : i32, i32
  }
  func.func @transform_36(%arg0: i32) -> (i32, i32) {
    %c0_i32 = arith.constant 0 : i32
    %c0_i32_0 = arith.constant 0 : i32
    %c0_i32_1 = arith.constant 0 : i32
    return %c0_i32, %c0_i32_0 : i32, i32
  }
  func.func @transform_37(%arg0: i32) -> (i32, i32) {
    %c0_i32 = arith.constant 0 : i32
    %c0_i32_0 = arith.constant 0 : i32
    %c0_i32_1 = arith.constant 0 : i32
    return %c0_i32, %c0_i32_0 : i32, i32
  }
  func.func @transform_38(%arg0: i32) -> (i32, i32) {
    %c0_i32 = arith.constant 0 : i32
    %c0_i32_0 = arith.constant 0 : i32
    %c0_i32_1 = arith.constant 0 : i32
    return %c0_i32, %c0_i32_0 : i32, i32
  }
  func.func @transform_39(%arg0: i32) -> (i32, i32) {
    %c0_i32 = arith.constant 0 : i32
    %c0_i32_0 = arith.constant 0 : i32
    %c0_i32_1 = arith.constant 0 : i32
    return %c0_i32, %c0_i32_0 : i32, i32
  }
  func.func @transform_40(%arg0: i32) -> (i32, i32) {
    %c0_i32 = arith.constant 0 : i32
    %c0_i32_0 = arith.constant 0 : i32
    %c0_i32_1 = arith.constant 0 : i32
    return %c0_i32, %c0_i32_0 : i32, i32
  }
  func.func @transform_41(%arg0: i32) -> (i32, i32) {
    %c0_i32 = arith.constant 0 : i32
    %c0_i32_0 = arith.constant 0 : i32
    %c0_i32_1 = arith.constant 0 : i32
    return %c0_i32, %c0_i32_0 : i32, i32
  }
  func.func @transform_42(%arg0: i32) -> (i32, i32) {
    %c0_i32 = arith.constant 0 : i32
    %c0_i32_0 = arith.constant 0 : i32
    %c0_i32_1 = arith.constant 0 : i32
    return %c0_i32, %c0_i32_0 : i32, i32
  }
  func.func @transform_43(%arg0: i32) -> (i32, i32) {
    %c0_i32 = arith.constant 0 : i32
    %c0_i32_0 = arith.constant 0 : i32
    %c0_i32_1 = arith.constant 0 : i32
    return %c0_i32, %c0_i32_0 : i32, i32
  }
  func.func @transform_44(%arg0: i32) -> (i32, i32) {
    %c0_i32 = arith.constant 0 : i32
    %c0_i32_0 = arith.constant 0 : i32
    %c0_i32_1 = arith.constant 0 : i32
    return %c0_i32, %c0_i32_0 : i32, i32
  }
  func.func @transform_45(%arg0: i32) -> (i32, i32) {
    %c0_i32 = arith.constant 0 : i32
    %c0_i32_0 = arith.constant 0 : i32
    %c0_i32_1 = arith.constant 0 : i32
    return %c0_i32, %c0_i32_0 : i32, i32
  }
  func.func @transform_46(%arg0: i32) -> (i32, i32) {
    %c0_i32 = arith.constant 0 : i32
    %c0_i32_0 = arith.constant 0 : i32
    %c0_i32_1 = arith.constant 0 : i32
    return %c0_i32, %c0_i32_0 : i32, i32
  }
  func.func @transform_47(%arg0: i32) -> (i32, i32) {
    %c0_i32 = arith.constant 0 : i32
    %c0_i32_0 = arith.constant 0 : i32
    %c0_i32_1 = arith.constant 0 : i32
    return %c0_i32, %c0_i32_0 : i32, i32
  }
  func.func @transform_48(%arg0: i32) -> (i32, i32) {
    %c0_i32 = arith.constant 0 : i32
    %c0_i32_0 = arith.constant 0 : i32
    %c0_i32_1 = arith.constant 0 : i32
    return %c0_i32, %c0_i32_0 : i32, i32
  }
  func.func @transform_49(%arg0: i32) -> (i32, i32) {
    %c0_i32 = arith.constant 0 : i32
    %c0_i32_0 = arith.constant 0 : i32
    %c0_i32_1 = arith.constant 0 : i32
    return %c0_i32, %c0_i32_0 : i32, i32
  }
  func.func @transform_50(%arg0: i32) -> (i32, i32) {
    %c0_i32 = arith.constant 0 : i32
    %c0_i32_0 = arith.constant 0 : i32
    %c0_i32_1 = arith.constant 0 : i32
    return %c0_i32, %c0_i32_0 : i32, i32
  }
  func.func @transform_51(%arg0: i32) -> (i32, i32) {
    %c0_i32 = arith.constant 0 : i32
    %c0_i32_0 = arith.constant 0 : i32
    %c0_i32_1 = arith.constant 0 : i32
    return %c0_i32, %c0_i32_0 : i32, i32
  }
  func.func @transform_52(%arg0: i32) -> (i32, i32) {
    %c0_i32 = arith.constant 0 : i32
    %c0_i32_0 = arith.constant 0 : i32
    %c0_i32_1 = arith.constant 0 : i32
    return %c0_i32, %c0_i32_0 : i32, i32
  }
  func.func @transform_53(%arg0: i32) -> (i32, i32) {
    %c0_i32 = arith.constant 0 : i32
    %c0_i32_0 = arith.constant 0 : i32
    %c0_i32_1 = arith.constant 0 : i32
    return %c0_i32, %c0_i32_0 : i32, i32
  }
  func.func @transform_54(%arg0: i32) -> (i32, i32) {
    %c0_i32 = arith.constant 0 : i32
    %c0_i32_0 = arith.constant 0 : i32
    %c0_i32_1 = arith.constant 0 : i32
    return %c0_i32, %c0_i32_0 : i32, i32
  }
  func.func @transform_55(%arg0: i32) -> (i32, i32) {
    %c0_i32 = arith.constant 0 : i32
    %c0_i32_0 = arith.constant 0 : i32
    %c0_i32_1 = arith.constant 0 : i32
    return %c0_i32, %c0_i32_0 : i32, i32
  }
  func.func @transform_56(%arg0: i32) -> (i32, i32) {
    %c0_i32 = arith.constant 0 : i32
    %c0_i32_0 = arith.constant 0 : i32
    %c0_i32_1 = arith.constant 0 : i32
    return %c0_i32, %c0_i32_0 : i32, i32
  }
  func.func @transform_57(%arg0: i32) -> (i32, i32) {
    %c0_i32 = arith.constant 0 : i32
    %c0_i32_0 = arith.constant 0 : i32
    %c0_i32_1 = arith.constant 0 : i32
    return %c0_i32, %c0_i32_0 : i32, i32
  }
  func.func @transform_58(%arg0: i32) -> (i32, i32) {
    %c0_i32 = arith.constant 0 : i32
    %c0_i32_0 = arith.constant 0 : i32
    %c0_i32_1 = arith.constant 0 : i32
    return %c0_i32, %c0_i32_0 : i32, i32
  }
  func.func @transform_59(%arg0: i32) -> (i32, i32) {
    %c0_i32 = arith.constant 0 : i32
    %c0_i32_0 = arith.constant 0 : i32
    %c0_i32_1 = arith.constant 0 : i32
    return %c0_i32, %c0_i32_0 : i32, i32
  }
  func.func @transform_60(%arg0: i32) -> (i32, i32) {
    %c0_i32 = arith.constant 0 : i32
    %c0_i32_0 = arith.constant 0 : i32
    %c0_i32_1 = arith.constant 0 : i32
    return %c0_i32, %c0_i32_0 : i32, i32
  }
  func.func @transform_61(%arg0: i32) -> (i32, i32) {
    %c0_i32 = arith.constant 0 : i32
    %c0_i32_0 = arith.constant 0 : i32
    %c0_i32_1 = arith.constant 0 : i32
    return %c0_i32, %c0_i32_0 : i32, i32
  }
  func.func @transform_62(%arg0: i32) -> (i32, i32) {
    %c0_i32 = arith.constant 0 : i32
    %c0_i32_0 = arith.constant 0 : i32
    %c0_i32_1 = arith.constant 0 : i32
    return %c0_i32, %c0_i32_0 : i32, i32
  }
  func.func @transform_63(%arg0: i32) -> (i32, i32) {
    %c0_i32 = arith.constant 0 : i32
    %c0_i32_0 = arith.constant 0 : i32
    %c0_i32_1 = arith.constant 0 : i32
    return %c0_i32, %c0_i32_0 : i32, i32
  }
  func.func @transform_64(%arg0: i32) -> (i32, i32) {
    %c0_i32 = arith.constant 0 : i32
    %c0_i32_0 = arith.constant 0 : i32
    %c0_i32_1 = arith.constant 0 : i32
    return %c0_i32, %c0_i32_0 : i32, i32
  }
  func.func @transform_65(%arg0: i32) -> (i32, i32) {
    %c0_i32 = arith.constant 0 : i32
    %c0_i32_0 = arith.constant 0 : i32
    %c0_i32_1 = arith.constant 0 : i32
    return %c0_i32, %c0_i32_0 : i32, i32
  }
  func.func @transform_66(%arg0: i32) -> (i32, i32) {
    %c0_i32 = arith.constant 0 : i32
    %c0_i32_0 = arith.constant 0 : i32
    %c0_i32_1 = arith.constant 0 : i32
    return %c0_i32, %c0_i32_0 : i32, i32
  }
  func.func @transform_67(%arg0: i32) -> (i32, i32) {
    %c0_i32 = arith.constant 0 : i32
    %c0_i32_0 = arith.constant 0 : i32
    %c0_i32_1 = arith.constant 0 : i32
    return %c0_i32, %c0_i32_0 : i32, i32
  }
  func.func @transform_68(%arg0: i32) -> (i32, i32) {
    %c0_i32 = arith.constant 0 : i32
    %c0_i32_0 = arith.constant 0 : i32
    %c0_i32_1 = arith.constant 0 : i32
    return %c0_i32, %c0_i32_0 : i32, i32
  }
  func.func @transform_69(%arg0: i32) -> (i32, i32) {
    %c0_i32 = arith.constant 0 : i32
    %c0_i32_0 = arith.constant 0 : i32
    %c0_i32_1 = arith.constant 0 : i32
    return %c0_i32, %c0_i32_0 : i32, i32
  }
  func.func @transform_70(%arg0: i32) -> (i32, i32) {
    %c0_i32 = arith.constant 0 : i32
    %c0_i32_0 = arith.constant 0 : i32
    %c0_i32_1 = arith.constant 0 : i32
    return %c0_i32, %c0_i32_0 : i32, i32
  }
  func.func @transform_71(%arg0: i32) -> (i32, i32) {
    %c0_i32 = arith.constant 0 : i32
    %c0_i32_0 = arith.constant 0 : i32
    %c0_i32_1 = arith.constant 0 : i32
    return %c0_i32, %c0_i32_0 : i32, i32
  }
  func.func @transform_72(%arg0: i32) -> (i32, i32) {
    %c0_i32 = arith.constant 0 : i32
    %c0_i32_0 = arith.constant 0 : i32
    %c0_i32_1 = arith.constant 0 : i32
    return %c0_i32, %c0_i32_0 : i32, i32
  }
  func.func @transform_73(%arg0: i32) -> (i32, i32) {
    %c0_i32 = arith.constant 0 : i32
    %c0_i32_0 = arith.constant 0 : i32
    %c0_i32_1 = arith.constant 0 : i32
    return %c0_i32, %c0_i32_0 : i32, i32
  }
  func.func @transform_74(%arg0: i32) -> (i32, i32) {
    %c0_i32 = arith.constant 0 : i32
    %c0_i32_0 = arith.constant 0 : i32
    %c0_i32_1 = arith.constant 0 : i32
    return %c0_i32, %c0_i32_0 : i32, i32
  }
  func.func @transform_75(%arg0: i32) -> (i32, i32) {
    %c0_i32 = arith.constant 0 : i32
    %c0_i32_0 = arith.constant 0 : i32
    %c0_i32_1 = arith.constant 0 : i32
    return %c0_i32, %c0_i32_0 : i32, i32
  }
  func.func @transform_76(%arg0: i32) -> (i32, i32) {
    %c0_i32 = arith.constant 0 : i32
    %c0_i32_0 = arith.constant 0 : i32
    %c0_i32_1 = arith.constant 0 : i32
    return %c0_i32, %c0_i32_0 : i32, i32
  }
  func.func @transform_77(%arg0: i32) -> (i32, i32) {
    %c0_i32 = arith.constant 0 : i32
    %c0_i32_0 = arith.constant 0 : i32
    %c0_i32_1 = arith.constant 0 : i32
    return %c0_i32, %c0_i32_0 : i32, i32
  }
  func.func @transform_78(%arg0: i32) -> (i32, i32) {
    %c0_i32 = arith.constant 0 : i32
    %c0_i32_0 = arith.constant 0 : i32
    %c0_i32_1 = arith.constant 0 : i32
    return %c0_i32, %c0_i32_0 : i32, i32
  }
  func.func @transform_79(%arg0: i32) -> (i32, i32) {
    %c0_i32 = arith.constant 0 : i32
    %c0_i32_0 = arith.constant 0 : i32
    %c0_i32_1 = arith.constant 0 : i32
    return %c0_i32, %c0_i32_0 : i32, i32
  }
  func.func @transform_80(%arg0: i32) -> (i32, i32) {
    %c0_i32 = arith.constant 0 : i32
    %c0_i32_0 = arith.constant 0 : i32
    %c0_i32_1 = arith.constant 0 : i32
    return %c0_i32, %c0_i32_0 : i32, i32
  }
  func.func @transform_81(%arg0: i32) -> (i32, i32) {
    %c0_i32 = arith.constant 0 : i32
    %c0_i32_0 = arith.constant 0 : i32
    %c0_i32_1 = arith.constant 0 : i32
    return %c0_i32, %c0_i32_0 : i32, i32
  }
  func.func @transform_82(%arg0: i32) -> (i32, i32) {
    %c0_i32 = arith.constant 0 : i32
    %c0_i32_0 = arith.constant 0 : i32
    %c0_i32_1 = arith.constant 0 : i32
    return %c0_i32, %c0_i32_0 : i32, i32
  }
  func.func @transform_83(%arg0: i32) -> (i32, i32) {
    %c0_i32 = arith.constant 0 : i32
    %c0_i32_0 = arith.constant 0 : i32
    %c0_i32_1 = arith.constant 0 : i32
    return %c0_i32, %c0_i32_0 : i32, i32
  }
  func.func @transform_84(%arg0: i32) -> (i32, i32, i32) {
    %c0_i32 = arith.constant 0 : i32
    %c0_i32_0 = arith.constant 0 : i32
    %c0_i32_1 = arith.constant 0 : i32
    return %arg0, %c0_i32, %c0_i32_0 : i32, i32, i32
  }
}

</mosaic_0001>

<bundles_post_ra>
// kernel: hvatnet_forward.1
= control target key start
LH: loop header
LB: loop body
LE: loop exit
PB: predicated region body
PF: predicated region fallthrough
CT: control target
= control target key end

     0   :  { %s12501_s6 = smov 1   ;;  %s12502_s10 = smov 2   ;;  %s14982_s0 = inlined_call_operand.smem [shape: u32[85], index: -1, kind: input, shape index: {}] }
   0x1   :  { %s12640_s5 = sld [smem:[%s14982_s0]]   ;;  %s12503_s14 = smov 3  }
   0x2   :  { %s12645_s9 = sld [smem:[%s14982_s0 + %s12501_s6]]   ;;  %s12504_s18 = smov 4  }
   0x3   :  { %s12650_s13 = sld [smem:[%s14982_s0 + %s12502_s10]]   ;;  %s12505_s22 = smov 5  }
   0x4   :  { %s12655_s17 = sld [smem:[%s14982_s0 + %s12503_s14]]   ;;  %s12506_s26 = smov 6  }
   0x5   :  { %s12660_s21 = sld [smem:[%s14982_s0 + %s12504_s18]]   ;;  %s12507_s30 = smov 7  }
   0x6   :  { %s12665_s25 = sld [smem:[%s14982_s0 + %s12505_s22]]   ;;  %s12508_s4 = smov 8  }
   0x7   :  { %15121 = sst [smem:[#allocation77_spill]] %s12640_s5  ;;  %s12509_s10 = smov 9  }
   0x8   :  { %15122 = sst [smem:[#allocation78_spill]] %s12645_s9  ;;  %s12510_s15 = smov 10  }
   0x9   :  { %15123 = sst [smem:[#allocation79_spill]] %s12650_s13  ;;  %s12511_s20 = smov 11  }
   0xa   :  { %15124 = sst [smem:[#allocation80_spill]] %s12655_s17  ;;  %s12513_s1 = smov 13  }
   0xb   :  { %15125 = sst [smem:[#allocation81_spill]] %s12660_s21  ;;  %s12514_s7 = smov 14  }
   0xc   :  { %15126 = sst [smem:[#allocation82_spill]] %s12665_s25  ;;  %s12516_s22 = smov 16  }
   0xd   :  { %s12670_s29 = sld [smem:[%s14982_s0 + %s12506_s26]]   ;;  %s12512_s26 = smov 12  }
   0xe   :  { %s12675_s3 = sld [smem:[%s14982_s0 + %s12507_s30]]   ;;  %s12517_s28 = smov 17  }
   0xf   :  { %s12680_s8 = sld [smem:[%s14982_s0 + %s12508_s4]]  }
  0x10   :  { %s12685_s14 = sld [smem:[%s14982_s0 + %s12509_s10]]  }
  0x11   :  { %s12690_s19 = sld [smem:[%s14982_s0 + %s12510_s15]]   ;;  %s12515_s15 = smov 15  }
  0x12   :  { %s12695_s24 = sld [smem:[%s14982_s0 + %s12511_s20]]  }
  0x13   :  { %15127 = sst [smem:[#allocation83_spill]] %s12670_s29 }
  0x14   :  { %15128 = sst [smem:[#allocation84_spill]] %s12675_s3 }
  0x15   :  { %15129 = sst [smem:[#allocation85_spill]] %s12680_s8 }
  0x16   :  { %15130 = sst [smem:[#allocation86_spill]] %s12685_s14 }
  0x17   :  { %15131 = sst [smem:[#allocation87_spill]] %s12690_s19 }
  0x18   :  { %s12700_s30 = sld [smem:[%s14982_s0 + %s12512_s26]]  }
  0x19   :  { %s12705_s6 = sld [smem:[%s14982_s0 + %s12513_s1]]  }
  0x1a   :  { %s12710_s12 = sld [smem:[%s14982_s0 + %s12514_s7]]   ;;  %s12518_s7 = smov 18  }
  0x1b   :  { %s12715_s20 = sld [smem:[%s14982_s0 + %s12515_s15]]   ;;  %s12519_s15 = smov 19  }
  0x1c   :  { %s12720_s27 = sld [smem:[%s14982_s0 + %s12516_s22]]   ;;  %s12520_s22 = smov 20  }
  0x1d   :  { %s12725_s4 = sld [smem:[%s14982_s0 + %s12517_s28]]   ;;  %s12521_s28 = smov 21  }
  0x1e   :  { %15132 = sst [smem:[#allocation88_spill]] %s12700_s30 }
  0x1f   :  { %15133 = sst [smem:[#allocation89_spill]] %s12705_s6 }
  0x20   :  { %15134 = sst [smem:[#allocation90_spill]] %s12710_s12 }
  0x21   :  { %s12730_s29 = sld [smem:[%s14982_s0 + %s12518_s7]]   ;;  %s12522_s7 = smov 22  }
  0x22   :  { %15135 = sst [smem:[#allocation91_spill]] %s12720_s27 }
  0x23   :  { %15136 = sst [smem:[#allocation92_spill]] %s12725_s4 }
  0x24   :  { %s12735_s13 = sld [smem:[%s14982_s0 + %s12519_s15]]   ;;  %s12523_s15 = smov 23  }
  0x25   :  { %s12740_s9 = sld [smem:[%s14982_s0 + %s12520_s22]]   ;;  %s12524_s22 = smov 24  }
  0x26   :  { %s12745_s14 = sld [smem:[%s14982_s0 + %s12521_s28]]   ;;  %s12525_s28 = smov 25  }
  0x27   :  { %15137 = sst [smem:[#allocation93_spill]] %s12730_s29 }
  0x28   :  { %s12750_s8 = sld [smem:[%s14982_s0 + %s12522_s7]]   ;;  %s12526_s7 = smov 26  }
  0x29   :  { %s12755_s27 = sld [smem:[%s14982_s0 + %s12523_s15]]   ;;  %s12527_s15 = smov 27  }
  0x2a   :  { %15138 = sst [smem:[#allocation94_spill]] %s12735_s13 }
  0x2b   :  { %15139 = sst [smem:[#allocation95_spill]] %s12740_s9 }
  0x2c   :  { %15140 = sst [smem:[#allocation96_spill]] %s12745_s14 }
  0x2d   :  { %s12760_s9 = sld [smem:[%s14982_s0 + %s12524_s22]]   ;;  %s12528_s22 = smov 28  }
  0x2e   :  { %15141 = sst [smem:[#allocation97_spill]] %s12750_s8 }
  0x2f   :  { %s12765_s19 = sld [smem:[%s14982_s0 + %s12525_s28]]   ;;  %s12529_s28 = smov 29  }
  0x30   :  { %s12770_s8 = sld [smem:[%s14982_s0 + %s12526_s7]]   ;;  %s12530_s7 = smov 30  }
  0x31   :  { %s12775_s30 = sld [smem:[%s14982_s0 + %s12527_s15]]   ;;  %s12531_s15 = smov 31  }
  0x32   :  { %s12785_s12 = sld [smem:[%s14982_s0 + %s12529_s28]]   ;;  %s12533_s28 = smov 33  }
  0x33   :  { %15142 = sst [smem:[#allocation98_spill]] %s12760_s9 }
  0x34   :  { %s12780_s9 = sld [smem:[%s14982_s0 + %s12528_s22]]   ;;  %s12532_s22 = smov 32  }
  0x35   :  { %15143 = sst [smem:[#allocation99_spill]] %s12765_s19 }
  0x36   :  { %15144 = sst [smem:[#allocation100_spill]] %s12770_s8 }
  0x37   :  { %s12790_s8 = sld [smem:[%s14982_s0 + %s12530_s7]]   ;;  %s12534_s7 = smov 34  }
  0x38   :  { %15146 = sst [smem:[#allocation102_spill]] %s12785_s12 }
  0x39   :  { %s12795_s29 = sld [smem:[%s14982_s0 + %s12531_s15]]   ;;  %s12535_s15 = smov 35  }
  0x3a   :  { %15145 = sst [smem:[#allocation101_spill]] %s12780_s9 }
  0x3b   :  { %s12800_s9 = sld [smem:[%s14982_s0 + %s12532_s22]]   ;;  %s12536_s22 = smov 36  }
  0x3c   :  { %s12805_s3 = sld [smem:[%s14982_s0 + %s12533_s28]]   ;;  %s12537_s28 = smov 37  }
  0x3d   :  { %15147 = sst [smem:[#allocation103_spill]] %s12790_s8 }
  0x3e   :  { %s12810_s8 = sld [smem:[%s14982_s0 + %s12534_s7]]   ;;  %s12538_s7 = smov 38  }
  0x3f   :  { %s12815_s25 = sld [smem:[%s14982_s0 + %s12535_s15]]   ;;  %s12539_s15 = smov 39  }
  0x40   :  { %s12825_s21 = sld [smem:[%s14982_s0 + %s12537_s28]]   ;;  %s12541_s28 = smov 41  }
  0x41   :  { %15148 = sst [smem:[#allocation104_spill]] %s12800_s9 }
  0x42   :  { %15149 = sst [smem:[#allocation105_spill]] %s12805_s3 }
  0x43   :  { %s12820_s9 = sld [smem:[%s14982_s0 + %s12536_s22]]   ;;  %s12540_s22 = smov 40  }
  0x44   :  { %15150 = sst [smem:[#allocation106_spill]] %s12810_s8 }
  0x45   :  { %s12830_s8 = sld [smem:[%s14982_s0 + %s12538_s7]]   ;;  %s12542_s7 = smov 42  }
  0x46   :  { %15152 = sst [smem:[#allocation108_spill]] %s12825_s21 }
  0x47   :  { %s12835_s17 = sld [smem:[%s14982_s0 + %s12539_s15]]   ;;  %s12543_s15 = smov 43  }
  0x48   :  { %s12845_s5 = sld [smem:[%s14982_s0 + %s12541_s28]]   ;;  %s12545_s28 = smov 45  }
  0x49   :  { %15151 = sst [smem:[#allocation107_spill]] %s12820_s9 }
  0x4a   :  { %s12840_s9 = sld [smem:[%s14982_s0 + %s12540_s22]]   ;;  %s12544_s22 = smov 44  }
  0x4b   :  { %15153 = sst [smem:[#allocation109_spill]] %s12830_s8 }
  0x4c   :  { %s12850_s8 = sld [smem:[%s14982_s0 + %s12542_s7]]   ;;  %s12546_s7 = smov 46  }
  0x4d   :  { %s12855_s21 = sld [smem:[%s14982_s0 + %s12543_s15]]   ;;  %s12547_s15 = smov 47  }
  0x4e   :  { %15155 = sst [smem:[#allocation111_spill]] %s12845_s5 }
  0x4f   :  { %s12865_s5 = sld [smem:[%s14982_s0 + %s12545_s28]]   ;;  %s12549_s28 = smov 49  }
  0x50   :  { %15154 = sst [smem:[#allocation110_spill]] %s12840_s9 }
  0x51   :  { %s12860_s9 = sld [smem:[%s14982_s0 + %s12544_s22]]   ;;  %s12548_s22 = smov 48  }
  0x52   :  { %15156 = sst [smem:[#allocation112_spill]] %s12850_s8 }
  0x53   :  { %s12870_s8 = sld [smem:[%s14982_s0 + %s12546_s7]]   ;;  %s12550_s7 = smov 50  }
  0x54   :  { %s12875_s3 = sld [smem:[%s14982_s0 + %s12547_s15]]   ;;  %s12551_s15 = smov 51  }
  0x55   :  { %15158 = sst [smem:[#allocation114_spill]] %s12865_s5 }
  0x56   :  { %s12885_s5 = sld [smem:[%s14982_s0 + %s12549_s28]]   ;;  %s12553_s28 = smov 53  }
  0x57   :  { %15157 = sst [smem:[#allocation113_spill]] %s12860_s9 }
  0x58   :  { %s12880_s9 = sld [smem:[%s14982_s0 + %s12548_s22]]   ;;  %s12552_s22 = smov 52  }
  0x59   :  { %15159 = sst [smem:[#allocation115_spill]] %s12870_s8 }
  0x5a   :  { %15160 = sst [smem:[#allocation116_spill]] %s12875_s3 }
  0x5b   :  { %s12890_s8 = sld [smem:[%s14982_s0 + %s12550_s7]]   ;;  %s12554_s7 = smov 54  }
  0x5c   :  { %15162 = sst [smem:[#allocation118_spill]] %s12885_s5 }
  0x5d   :  { %s12895_s12 = sld [smem:[%s14982_s0 + %s12551_s15]]   ;;  %s12555_s15 = smov 55  }
  0x5e   :  { %15161 = sst [smem:[#allocation117_spill]] %s12880_s9 }
  0x5f   :  { %s12900_s9 = sld [smem:[%s14982_s0 + %s12552_s22]]   ;;  %s12556_s22 = smov 56  }
  0x60   :  { %s12905_s5 = sld [smem:[%s14982_s0 + %s12553_s28]]   ;;  %s12557_s28 = smov 57  }
  0x61   :  { %15163 = sst [smem:[#allocation119_spill]] %s12890_s8 }
  0x62   :  { %s12910_s8 = sld [smem:[%s14982_s0 + %s12554_s7]]   ;;  %s12558_s7 = smov 58  }
  0x63   :  { %15164 = sst [smem:[#allocation120_spill]] %s12895_s12 }
  0x64   :  { %s12915_s19 = sld [smem:[%s14982_s0 + %s12555_s15]]   ;;  %s12559_s15 = smov 59  }
  0x65   :  { %15165 = sst [smem:[#allocation121_spill]] %s12900_s9 }
  0x66   :  { %15166 = sst [smem:[#allocation122_spill]] %s12905_s5 }
  0x67   :  { %s12920_s9 = sld [smem:[%s14982_s0 + %s12556_s22]]   ;;  %s12560_s22 = smov 60  }
  0x68   :  { %15167 = sst [smem:[#allocation123_spill]] %s12910_s8 }
  0x69   :  { %s12925_s5 = sld [smem:[%s14982_s0 + %s12557_s28]]   ;;  %s12561_s28 = smov 61  }
  0x6a   :  { %s12930_s8 = sld [smem:[%s14982_s0 + %s12558_s7]]   ;;  %s12562_s7 = smov 62  }
  0x6b   :  { %s12935_s14 = sld [smem:[%s14982_s0 + %s12559_s15]]   ;;  %s12563_s15 = smov 63  }
  0x6c   :  { %s12955_s4 = sld [smem:[%s14982_s0 + %s12563_s15]]   ;;  %s12567_s15 = smov 67  }
  0x6d   :  { %15168 = sst [smem:[#allocation124_spill]] %s12920_s9 }
  0x6e   :  { %s12940_s9 = sld [smem:[%s14982_s0 + %s12560_s22]]   ;;  %s12564_s22 = smov 64  }
  0x6f   :  { %15169 = sst [smem:[#allocation125_spill]] %s12925_s5 }
  0x70   :  { %15170 = sst [smem:[#allocation126_spill]] %s12930_s8 }
  0x71   :  { %s12945_s5 = sld [smem:[%s14982_s0 + %s12561_s28]]   ;;  %s12565_s28 = smov 65  }
  0x72   :  { %s12950_s8 = sld [smem:[%s14982_s0 + %s12562_s7]]   ;;  %s12566_s7 = smov 66  }
  0x73   :  { %15174 = sst [smem:[#allocation130_spill]] %s12955_s4 }
  0x74   :  { %15171 = sst [smem:[#allocation127_spill]] %s12940_s9 }
  0x75   :  { %s12960_s9 = sld [smem:[%s14982_s0 + %s12564_s22]]   ;;  %s12568_s22 = smov 68  }
  0x76   :  { %s12975_s6 = sld [smem:[%s14982_s0 + %s12567_s15]]   ;;  %s12571_s15 = smov 71  }
  0x77   :  { %15172 = sst [smem:[#allocation128_spill]] %s12945_s5 }
  0x78   :  { %15173 = sst [smem:[#allocation129_spill]] %s12950_s8 }
  0x79   :  { %s12965_s5 = sld [smem:[%s14982_s0 + %s12565_s28]]   ;;  %s12569_s28 = smov 69  }
  0x7a   :  { %s12970_s8 = sld [smem:[%s14982_s0 + %s12566_s7]]   ;;  %s12570_s7 = smov 70  }
  0x7b   :  { %15175 = sst [smem:[#allocation131_spill]] %s12960_s9 }
  0x7c   :  { %15178 = sst [smem:[#allocation134_spill]] %s12975_s6 }
  0x7d   :  { %s12980_s9 = sld [smem:[%s14982_s0 + %s12568_s22]]   ;;  %s12572_s22 = smov 72  }
  0x7e   :  { %s12995_s6 = sld [smem:[%s14982_s0 + %s12571_s15]]   ;;  %s12575_s15 = smov 75  }
  0x7f   :  { %15176 = sst [smem:[#allocation132_spill]] %s12965_s5 }
  0x80   :  { %15177 = sst [smem:[#allocation133_spill]] %s12970_s8 }
  0x81   :  { %s12985_s5 = sld [smem:[%s14982_s0 + %s12569_s28]]   ;;  %s12573_s28 = smov 73  }
  0x82   :  { %s12990_s8 = sld [smem:[%s14982_s0 + %s12570_s7]]   ;;  %s12574_s7 = smov 74  }
  0x83   :  { %15179 = sst [smem:[#allocation135_spill]] %s12980_s9 }
  0x84   :  { %15182 = sst [smem:[#allocation138_spill]] %s12995_s6 }
  0x85   :  { %s13000_s9 = sld [smem:[%s14982_s0 + %s12572_s22]]   ;;  %s12576_s22 = smov 76  }
  0x86   :  { %s13015_s6 = sld [smem:[%s14982_s0 + %s12575_s15]]   ;;  %s12579_s15 = smov 79  }
  0x87   :  { %15180 = sst [smem:[#allocation136_spill]] %s12985_s5 }
  0x88   :  { %15181 = sst [smem:[#allocation137_spill]] %s12990_s8 }
  0x89   :  { %s13005_s5 = sld [smem:[%s14982_s0 + %s12573_s28]]   ;;  %s12577_s28 = smov 77  }
  0x8a   :  { %s13010_s8 = sld [smem:[%s14982_s0 + %s12574_s7]]   ;;  %s12578_s7 = smov 78  }
  0x8b   :  { %15183 = sst [smem:[#allocation139_spill]] %s13000_s9 }
  0x8c   :  { %15186 = sst [smem:[#allocation142_spill]] %s13015_s6 }
  0x8d   :  { %s13020_s9 = sld [smem:[%s14982_s0 + %s12576_s22]]   ;;  %s12580_s22 = smov 80  }
  0x8e   :  { %s13035_s6 = sld [smem:[%s14982_s0 + %s12579_s15]]   ;;  %s12583_s15 = smov 83  }
  0x8f   :  { %15184 = sst [smem:[#allocation140_spill]] %s13005_s5 }
  0x90   :  { %15185 = sst [smem:[#allocation141_spill]] %s13010_s8 }
  0x91   :  { %s13025_s5 = sld [smem:[%s14982_s0 + %s12577_s28]]   ;;  %s12581_s28 = smov 81  }
  0x92   :  { %s13030_s8 = sld [smem:[%s14982_s0 + %s12578_s7]]   ;;  %s12582_s7 = smov 82  }
  0x93   :  { %15187 = sst [smem:[#allocation143_spill]] %s13020_s9 }
  0x94   :  { %15190 = sst [smem:[#allocation146_spill]] %s13035_s6 }
  0x95   :  { %s13040_s9 = sld [smem:[%s14982_s0 + %s12580_s22]]   ;;  %s12584_s22 = smov 84  }
  0x96   :  { %s13055_s6 = sld [smem:[%s14982_s0 + %s12583_s15]]  }
  0x97   :  { %15188 = sst [smem:[#allocation144_spill]] %s13025_s5 }
  0x98   :  { %15189 = sst [smem:[#allocation145_spill]] %s13030_s8 }
  0x99   :  { %s13045_s5 = sld [smem:[%s14982_s0 + %s12581_s28]]  }
  0x9a   :  { %s13050_s8 = sld [smem:[%s14982_s0 + %s12582_s7]]  }
  0x9b   :  { %15191 = sst [smem:[#allocation147_spill]] %s13040_s9 }
  0x9c   :  { %15194 = sst [smem:[#allocation150_spill]] %s13055_s6 }
  0x9d   :  { %s13060_s9 = sld [smem:[%s14982_s0 + %s12584_s22]]  }
  0x9f   :  { %15192 = sst [smem:[#allocation148_spill]] %s13045_s5 }
  0xa0   :  { %15193 = sst [smem:[#allocation149_spill]] %s13050_s8 }
  0xa3   :  { %15195 = sst [smem:[#allocation151_spill]] %s13060_s9 }
  0xa4   :  { %174 = vsyncpa [#allocation3], 0 }
  0xa5   :  { %176 = vsyncpa [#allocation3 + $0x1], 0 }
  0xa6   :  { %177 = vsyncpa [#allocation5], 0 }
  0xa7   :  { %178 = vsyncpa [#allocation8], 0 }
  0xa8   :  { %179 = vsyncpa [#allocation11], 0 }
  0xa9   :  { %180 = vsyncpa [#allocation14], 0 }
  0xaa   :  { %181 = vsyncpa [#allocation17], 0 }
  0xab   :  { %182 = vsyncpa [#allocation20], 0 }
  0xac   :  { %183 = vsyncpa [#allocation23], 0 }
  0xad   :  { %184 = vsyncpa [#allocation26], 0 }
  0xae   :  { %185 = vsyncpa [#allocation29], 0 }
  0xaf   :  { %186 = vsyncpa [#allocation32], 0 }
  0xb0   :  { %187 = vsyncpa [#allocation35], 0 }
  0xb1   :  { %188 = vsyncpa [#allocation38], 0 }
  0xb2   :  { %189 = vsyncpa [#allocation41], 0 }
  0xb3   :  { %190 = vsyncpa [#allocation44], 0 }
  0xb4   :  { %191 = vsyncpa [#allocation47], 0 }
  0xb5   :  { %192 = vsyncpa [#allocation50], 0 }
  0xb6   :  { %193 = vsyncpa [#allocation53], 0 }
  0xb7   :  { %194 = vsyncpa [#allocation56], 0  ;;  %s13062_s0 = smov 0   ;;  %s13064_s28 = smov 0  }
  0xb8   :  { %s13066_s1 = smov 0   ;;  %s13068_s2 = smov 0  }
  0xb9   :  { %15196 = sst [smem:[#allocation152_spill]] %s13068_s2 }
  0xba LB: > { %s15198_s5 = sld [smem:[#allocation148_spill]]  ;;  %s15199_s13 = sld [smem:[#allocation94_spill]]  ;;  %s12487_s0 = sphi %s13062_s0, %s15352_s0   ;;  %s12495_s1 = sphi %s13066_s1, %s15354_s1   ;;  %s12491_s28 = sphi %s13064_s28, %s15353_s28  }
  0xbb   : > { %s15200_s12 = sld [smem:[#allocation120_spill]]  ;;  %s15201_s4 = sld [smem:[#allocation130_spill]] }
  0xbc   : > { %s15202_s3 = sld [smem:[#allocation116_spill]]  ;;  %s15203_s2 = sld [smem:[#allocation152_spill]] }
  0xbd   : > { %s207_s15 = sadd.s32 1, %s12495_s1  ;;  %p214_p1 = scmp.ne.s32.totalorder %s12495_s1, %s12491_s28 }
  0xbe   : > { %p220_p3 = scmp.ne.s32.totalorder %s12491_s28, %s12487_s0 }
  0xc2   : > { %s13081_s7 = sadd.s32 4294967295, %s15203_s2   ;;  %s13084_s10 = sadd.s32 1, %s15203_s2  }
  0xc3   : > { %15204 = sst [smem:[#allocation152_spill]] %s13084_s10  ;;  %s204_s11 = ssub.s32 %s15203_s2, %s13084_s10 }
  0xc4   : > { %p205_p0 = scmp.eq.s32.totalorder %s204_s11, 0  ;;  %p215_p2 = scmp.eq.s32.totalorder %s15203_s2, 0 }
  0xc5   : > { %p15075_p5 = scmp.eq.s32.totalorder %s13081_s7, 0  ;;  %p8823_p6 = scmp.ge.s32.totalorder %s15203_s2, 1 }
  0xc6   : > { %s13094_s16 = scalar_select %p205_p0, %s12495_s1, %s207_s15  }
  0xc7   : > { %p13096_p4 = por %p215_p2, %p214_p1  ;;  %p2000_p7 = scmp.lt.s32.totalorder %s15203_s2, 3 }
  0xc8   : > { %15205 = sst [smem:[#allocation153_spill]] %s13094_s16  ;;  %p13105_p8 = por %p15075_p5, %p220_p3 }
  0xc9   : > { %p13109_p9 = pnand %p8823_p6, %p2000_p7 }
  0xca   : > { %s15207_s22 = scalar_select %p13105_p8, 1, 0 }
  0xcb   : > { %s15208_s23 = scalar_select %p13109_p9, 1, 0 }
  0xcc   : > { %2004 = sbr.rel (%p13109_p9) target bundleno = 1081 (0x439), region = 12  ;;  %s12585_s26 = smov (!%p13109_p9), [#allocation4]  }
  0xcd   : > { %s2042_s0 = sshll.u32 (!%p13109_p9), %s12585_s26, 4  ;;  %s11427_s11 = scalar_lea.hbm (!%p13109_p9), %s12695_s24, 256  ;;  %s2043_s0 = int_to_ptr.vmem [resolvable:$true] %s2042_s0 }
  0xce   : > { %p11428_p10 = scmp.ne.s32.totalorder (!%p13109_p9), %s12695_s24, %s11427_s11  ;;  %p11433_p13 = scmp.lt.u32.totalorder (!%p13109_p9), %s11427_s11, %s12695_s24 }
  0xd0   : > { %p11429_p11 = pnand (!%p13109_p9), %p11428_p10, %p15075_p5 }
  0xd2   : > { %p11430_p12 = pneg (!%p13109_p9), %p11429_p11 }
  0xd4   : > { %p11435_p0 = pnand %p11433_p13, %p11430_p12 }
  0xd6   : > { %11438 = shalt.err (!%p11435_p0)
}
  0xd7   : > { %s11439_s15 = scalar_lea.vmem %s2043_s0, 256  ;;  %p11446_p6 = scmp.lt.s32.totalorder %s2043_s0, %s2043_s0 }
  0xd8   : > { %p11440_p1 = scmp.ne.s32.totalorder %s2043_s0, %s11439_s15  ;;  %p11447_p7 = scmp.lt.s32.totalorder %s11439_s15, %s11439_s15 }
  0xda   : > { %p11441_p2 = pnand %p11440_p1, %p15075_p5  ;;  %p11448_p8 = por %p11447_p7, %p11446_p6 }
  0xdc   : > { %p11442_p3 = pneg %p11441_p2 }
  0xde   : > { %p11449_p9 = pnand %p11448_p8, %p11442_p3 }
  0xe0   : > { %11452 = shalt.err (!%p11449_p9)
}
  0xe1   : > { %s12586_s26 = smov 128   ;;  %s12587_s11 = smov 8  }
  0xe2   : > { %10461 = dma.hbm_to_vmem [thread:$0]  (%p15075_p5), %s12695_s24, 256, %s2043_s0, [#allocation5], %s12586_s26, %s12586_s26, %s12587_s11  }
  0xe3   : > { %s12588_s16 = smov [#allocation7]   ;;  %s12589_s9 = smov [#allocation10]  }
  0xe4   : > { %s2074_s10 = sshll.u32 %s12588_s16, 4  ;;  %s2106_s15 = sshll.u32 %s12589_s9, 4  ;;  %s2075_s10 = int_to_ptr.vmem [resolvable:$true] %s2074_s10  ;;  %s13128_s15 = int_to_ptr.vmem [resolvable:$true] %s2106_s15 }
  0xe5   : > { %s11453_s8 = scalar_lea.hbm %s12715_s20, 256 }
  0xe6   : > { %p11454_p8 = scmp.ne.s32.totalorder %s12715_s20, %s11453_s8  ;;  %p11459_p11 = scmp.lt.u32.totalorder %s11453_s8, %s12715_s20 }
  0xe8   : > { %p11455_p9 = pnand %p11454_p8, %p15075_p5 }
  0xea   : > { %p11456_p10 = pneg %p11455_p9 }
  0xec   : > { %p11461_p12 = pnand %p11459_p11, %p11456_p10 }
  0xee   : > { %11464 = shalt.err (!%p11461_p12)
}
  0xef   : > { %s11465_s6 = scalar_lea.vmem %s2075_s10, 256  ;;  %p11472_p2 = scmp.lt.s32.totalorder %s2075_s10, %s2075_s10 }
  0xf0   : > { %p11466_p13 = scmp.ne.s32.totalorder %s2075_s10, %s11465_s6  ;;  %p11473_p3 = scmp.lt.s32.totalorder %s11465_s6, %s11465_s6 }
  0xf2   : > { %p11467_p0 = pnand %p11466_p13, %p15075_p5  ;;  %p11474_p6 = por %p11473_p3, %p11472_p2 }
  0xf4   : > { %p11468_p1 = pneg %p11467_p0 }
  0xf6   : > { %p11475_p7 = pnand %p11474_p6, %p11468_p1 }
  0xf8   : > { %11478 = shalt.err (!%p11475_p7)
}
  0xf9   : > { %10465 = dma.hbm_to_vmem [thread:$0]  (%p15075_p5), %s12715_s20, 256, %s2075_s10, [#allocation8], %s12586_s26, %s12586_s26, %s12587_s11  }
  0xfa   : > { %s11479_s9 = scalar_lea.hbm %s15199_s13, 256 }
  0xfb   : > { %p11480_p8 = scmp.ne.s32.totalorder %s15199_s13, %s11479_s9  ;;  %p11485_p11 = scmp.lt.u32.totalorder %s11479_s9, %s15199_s13 }
  0xfd   : > { %p11481_p9 = pnand %p11480_p8, %p15075_p5 }
  0xff   : > { %p11482_p10 = pneg %p11481_p9 }
 0x101   : > { %p11487_p12 = pnand %p11485_p11, %p11482_p10 }
 0x103   : > { %11490 = shalt.err (!%p11487_p12)
}
 0x104   : > { %s11491_s8 = scalar_lea.vmem %s13128_s15, 256  ;;  %p11498_p2 = scmp.lt.s32.totalorder %s13128_s15, %s13128_s15 }
 0x105   : > { %p11492_p13 = scmp.ne.s32.totalorder %s13128_s15, %s11491_s8  ;;  %p11499_p3 = scmp.lt.s32.totalorder %s11491_s8, %s11491_s8 }
 0x107   : > { %p11493_p0 = pnand %p11492_p13, %p15075_p5  ;;  %p11500_p6 = por %p11499_p3, %p11498_p2 }
 0x109   : > { %p11494_p1 = pneg %p11493_p0 }
 0x10b   : > { %p11501_p7 = pnand %p11500_p6, %p11494_p1 }
 0x10d   : > { %11504 = shalt.err (!%p11501_p7)
}
 0x10e   : > { %10469 = dma.hbm_to_vmem [thread:$0]  (%p15075_p5), %s15199_s13, 256, %s13128_s15, [#allocation11], %s12586_s26, %s12586_s26, %s12587_s11  }
 0x10f   : > { %s12590_s6 = smov [#allocation13]   ;;  %s12591_s16 = smov [#allocation16]  }
 0x110   : > { %s2138_s10 = sshll.u32 %s12590_s6, 4  ;;  %s2170_s0 = sshll.u32 %s12591_s16, 4  ;;  %s2139_s10 = int_to_ptr.vmem [resolvable:$true] %s2138_s10  ;;  %s13161_s0 = int_to_ptr.vmem [resolvable:$true] %s2170_s0 }
 0x111   : > { %s11505_s9 = scalar_lea.hbm %s12755_s27, 256 }
 0x112   : > { %p11506_p8 = scmp.ne.s32.totalorder %s12755_s27, %s11505_s9  ;;  %p11511_p11 = scmp.lt.u32.totalorder %s11505_s9, %s12755_s27 }
 0x114   : > { %p11507_p9 = pnand %p11506_p8, %p15075_p5 }
 0x116   : > { %p11508_p10 = pneg %p11507_p9 }
 0x118   : > { %p11513_p12 = pnand %p11511_p11, %p11508_p10 }
 0x11a   : > { %11516 = shalt.err (!%p11513_p12)
}
 0x11b   : > { %s11517_s8 = scalar_lea.vmem %s2139_s10, 256  ;;  %p11524_p2 = scmp.lt.s32.totalorder %s2139_s10, %s2139_s10 }
 0x11c   : > { %p11518_p13 = scmp.ne.s32.totalorder %s2139_s10, %s11517_s8  ;;  %p11525_p3 = scmp.lt.s32.totalorder %s11517_s8, %s11517_s8 }
 0x11e   : > { %p11519_p0 = pnand %p11518_p13, %p15075_p5  ;;  %p11526_p6 = por %p11525_p3, %p11524_p2 }
 0x120   : > { %p11520_p1 = pneg %p11519_p0 }
 0x122   : > { %p11527_p7 = pnand %p11526_p6, %p11520_p1 }
 0x124   : > { %11530 = shalt.err (!%p11527_p7)
}
 0x125   : > { %10473 = dma.hbm_to_vmem [thread:$0]  (%p15075_p5), %s12755_s27, 256, %s2139_s10, [#allocation14], %s12586_s26, %s12586_s26, %s12587_s11  }
 0x126   : > { %s11531_s15 = scalar_lea.hbm %s12775_s30, 256 }
 0x127   : > { %p11532_p8 = scmp.ne.s32.totalorder %s12775_s30, %s11531_s15  ;;  %p11537_p11 = scmp.lt.u32.totalorder %s11531_s15, %s12775_s30 }
 0x129   : > { %p11533_p9 = pnand %p11532_p8, %p15075_p5 }
 0x12b   : > { %p11534_p10 = pneg %p11533_p9 }
 0x12d   : > { %p11539_p12 = pnand %p11537_p11, %p11534_p10 }
 0x12f   : > { %11542 = shalt.err (!%p11539_p12)
}
 0x130   : > { %s11543_s6 = scalar_lea.vmem %s13161_s0, 256  ;;  %p11550_p2 = scmp.lt.s32.totalorder %s13161_s0, %s13161_s0 }
 0x131   : > { %p11544_p13 = scmp.ne.s32.totalorder %s13161_s0, %s11543_s6  ;;  %p11551_p3 = scmp.lt.s32.totalorder %s11543_s6, %s11543_s6 }
 0x133   : > { %p11545_p0 = pnand %p11544_p13, %p15075_p5  ;;  %p11552_p6 = por %p11551_p3, %p11550_p2 }
 0x135   : > { %p11546_p1 = pneg %p11545_p0 }
 0x137   : > { %p11553_p7 = pnand %p11552_p6, %p11546_p1 }
 0x139   : > { %11556 = shalt.err (!%p11553_p7)
}
 0x13a   : > { %10477 = dma.hbm_to_vmem [thread:$0]  (%p15075_p5), %s12775_s30, 256, %s13161_s0, [#allocation17], %s12586_s26, %s12586_s26, %s12587_s11  }
 0x13b   : > { %s12592_s10 = smov [#allocation19]   ;;  %s12593_s9 = smov [#allocation22]  }
 0x13c   : > { %s2202_s16 = sshll.u32 %s12592_s10, 4  ;;  %s2234_s8 = sshll.u32 %s12593_s9, 4  ;;  %s2203_s16 = int_to_ptr.vmem [resolvable:$true] %s2202_s16  ;;  %s13194_s8 = int_to_ptr.vmem [resolvable:$true] %s2234_s8 }
 0x13d   : > { %s11557_s15 = scalar_lea.hbm %s12795_s29, 256 }
 0x13e   : > { %p11558_p8 = scmp.ne.s32.totalorder %s12795_s29, %s11557_s15  ;;  %p11563_p11 = scmp.lt.u32.totalorder %s11557_s15, %s12795_s29 }
 0x140   : > { %p11559_p9 = pnand %p11558_p8, %p15075_p5 }
 0x142   : > { %p11560_p10 = pneg %p11559_p9 }
 0x144   : > { %p11565_p12 = pnand %p11563_p11, %p11560_p10 }
 0x146   : > { %11568 = shalt.err (!%p11565_p12)
}
 0x147   : > { %s11569_s6 = scalar_lea.vmem %s2203_s16, 256  ;;  %p11576_p2 = scmp.lt.s32.totalorder %s2203_s16, %s2203_s16 }
 0x148   : > { %p11570_p13 = scmp.ne.s32.totalorder %s2203_s16, %s11569_s6  ;;  %p11577_p3 = scmp.lt.s32.totalorder %s11569_s6, %s11569_s6 }
 0x14a   : > { %p11571_p0 = pnand %p11570_p13, %p15075_p5  ;;  %p11578_p6 = por %p11577_p3, %p11576_p2 }
 0x14c   : > { %p11572_p1 = pneg %p11571_p0 }
 0x14e   : > { %p11579_p7 = pnand %p11578_p6, %p11572_p1 }
 0x150   : > { %11582 = shalt.err (!%p11579_p7)
}
 0x151   : > { %10481 = dma.hbm_to_vmem [thread:$0]  (%p15075_p5), %s12795_s29, 256, %s2203_s16, [#allocation20], %s12586_s26, %s12586_s26, %s12587_s11  }
 0x152   : > { %s11583_s0 = scalar_lea.hbm %s12815_s25, 256 }
 0x153   : > { %p11584_p8 = scmp.ne.s32.totalorder %s12815_s25, %s11583_s0  ;;  %p11589_p11 = scmp.lt.u32.totalorder %s11583_s0, %s12815_s25 }
 0x155   : > { %p11585_p9 = pnand %p11584_p8, %p15075_p5 }
 0x157   : > { %p11586_p10 = pneg %p11585_p9 }
 0x159   : > { %p11591_p12 = pnand %p11589_p11, %p11586_p10 }
 0x15b   : > { %11594 = shalt.err (!%p11591_p12)
}
 0x15c   : > { %s11595_s10 = scalar_lea.vmem %s13194_s8, 256  ;;  %p11602_p2 = scmp.lt.s32.totalorder %s13194_s8, %s13194_s8 }
 0x15d   : > { %p11596_p13 = scmp.ne.s32.totalorder %s13194_s8, %s11595_s10  ;;  %p11603_p3 = scmp.lt.s32.totalorder %s11595_s10, %s11595_s10 }
 0x15f   : > { %p11597_p0 = pnand %p11596_p13, %p15075_p5  ;;  %p11604_p6 = por %p11603_p3, %p11602_p2 }
 0x161   : > { %p11598_p1 = pneg %p11597_p0 }
 0x163   : > { %p11605_p7 = pnand %p11604_p6, %p11598_p1 }
 0x165   : > { %11608 = shalt.err (!%p11605_p7)
}
 0x166   : > { %10485 = dma.hbm_to_vmem [thread:$0]  (%p15075_p5), %s12815_s25, 256, %s13194_s8, [#allocation23], %s12586_s26, %s12586_s26, %s12587_s11  }
 0x167   : > { %s12594_s16 = smov [#allocation25]   ;;  %s12595_s15 = smov [#allocation28]  }
 0x168   : > { %s2266_s9 = sshll.u32 %s12594_s16, 4  ;;  %s2298_s6 = sshll.u32 %s12595_s15, 4  ;;  %s2267_s9 = int_to_ptr.vmem [resolvable:$true] %s2266_s9  ;;  %s13227_s6 = int_to_ptr.vmem [resolvable:$true] %s2298_s6 }
 0x169   : > { %s11609_s0 = scalar_lea.hbm %s12835_s17, 256 }
 0x16a   : > { %p11610_p8 = scmp.ne.s32.totalorder %s12835_s17, %s11609_s0  ;;  %p11615_p11 = scmp.lt.u32.totalorder %s11609_s0, %s12835_s17 }
 0x16c   : > { %p11611_p9 = pnand %p11610_p8, %p15075_p5 }
 0x16e   : > { %p11612_p10 = pneg %p11611_p9 }
 0x170   : > { %p11617_p12 = pnand %p11615_p11, %p11612_p10 }
 0x172   : > { %11620 = shalt.err (!%p11617_p12)
}
 0x173   : > { %s11621_s10 = scalar_lea.vmem %s2267_s9, 256  ;;  %p11628_p2 = scmp.lt.s32.totalorder %s2267_s9, %s2267_s9 }
 0x174   : > { %p11622_p13 = scmp.ne.s32.totalorder %s2267_s9, %s11621_s10  ;;  %p11629_p3 = scmp.lt.s32.totalorder %s11621_s10, %s11621_s10 }
 0x176   : > { %p11623_p0 = pnand %p11622_p13, %p15075_p5  ;;  %p11630_p6 = por %p11629_p3, %p11628_p2 }
 0x178   : > { %p11624_p1 = pneg %p11623_p0 }
 0x17a   : > { %p11631_p7 = pnand %p11630_p6, %p11624_p1 }
 0x17c   : > { %11634 = shalt.err (!%p11631_p7)
}
 0x17d   : > { %10489 = dma.hbm_to_vmem [thread:$0]  (%p15075_p5), %s12835_s17, 256, %s2267_s9, [#allocation26], %s12586_s26, %s12586_s26, %s12587_s11  }
 0x17e   : > { %s11635_s8 = scalar_lea.hbm %s12855_s21, 256 }
 0x17f   : > { %p11636_p8 = scmp.ne.s32.totalorder %s12855_s21, %s11635_s8  ;;  %p11641_p11 = scmp.lt.u32.totalorder %s11635_s8, %s12855_s21 }
 0x181   : > { %p11637_p9 = pnand %p11636_p8, %p15075_p5 }
 0x183   : > { %p11638_p10 = pneg %p11637_p9 }
 0x185   : > { %p11643_p12 = pnand %p11641_p11, %p11638_p10 }
 0x187   : > { %11646 = shalt.err (!%p11643_p12)
}
 0x188   : > { %s11647_s16 = scalar_lea.vmem %s13227_s6, 256  ;;  %p11654_p2 = scmp.lt.s32.totalorder %s13227_s6, %s13227_s6 }
 0x189   : > { %p11648_p13 = scmp.ne.s32.totalorder %s13227_s6, %s11647_s16  ;;  %p11655_p3 = scmp.lt.s32.totalorder %s11647_s16, %s11647_s16 }
 0x18b   : > { %p11649_p0 = pnand %p11648_p13, %p15075_p5  ;;  %p11656_p6 = por %p11655_p3, %p11654_p2 }
 0x18d   : > { %p11650_p1 = pneg %p11649_p0 }
 0x18f   : > { %p11657_p7 = pnand %p11656_p6, %p11650_p1 }
 0x191   : > { %11660 = shalt.err (!%p11657_p7)
}
 0x192   : > { %10493 = dma.hbm_to_vmem [thread:$0]  (%p15075_p5), %s12855_s21, 256, %s13227_s6, [#allocation29], %s12586_s26, %s12586_s26, %s12587_s11  }
 0x193   : > { %s12596_s9 = smov [#allocation31]   ;;  %s12597_s0 = smov [#allocation34]  }
 0x194   : > { %s2330_s15 = sshll.u32 %s12596_s9, 4  ;;  %s2362_s10 = sshll.u32 %s12597_s0, 4  ;;  %s2331_s15 = int_to_ptr.vmem [resolvable:$true] %s2330_s15  ;;  %s13260_s10 = int_to_ptr.vmem [resolvable:$true] %s2362_s10 }
 0x195   : > { %s11661_s8 = scalar_lea.hbm %s15202_s3, 256 }
 0x196   : > { %p11662_p8 = scmp.ne.s32.totalorder %s15202_s3, %s11661_s8  ;;  %p11667_p11 = scmp.lt.u32.totalorder %s11661_s8, %s15202_s3 }
 0x198   : > { %p11663_p9 = pnand %p11662_p8, %p15075_p5 }
 0x19a   : > { %p11664_p10 = pneg %p11663_p9 }
 0x19c   : > { %p11669_p12 = pnand %p11667_p11, %p11664_p10 }
 0x19e   : > { %11672 = shalt.err (!%p11669_p12)
}
 0x19f   : > { %s11673_s16 = scalar_lea.vmem %s2331_s15, 256  ;;  %p11680_p2 = scmp.lt.s32.totalorder %s2331_s15, %s2331_s15 }
 0x1a0   : > { %p11674_p13 = scmp.ne.s32.totalorder %s2331_s15, %s11673_s16  ;;  %p11681_p3 = scmp.lt.s32.totalorder %s11673_s16, %s11673_s16 }
 0x1a2   : > { %p11675_p0 = pnand %p11674_p13, %p15075_p5  ;;  %p11682_p6 = por %p11681_p3, %p11680_p2 }
 0x1a4   : > { %p11676_p1 = pneg %p11675_p0 }
 0x1a6   : > { %p11683_p7 = pnand %p11682_p6, %p11676_p1 }
 0x1a8   : > { %11686 = shalt.err (!%p11683_p7)
}
 0x1a9   : > { %10497 = dma.hbm_to_vmem [thread:$0]  (%p15075_p5), %s15202_s3, 256, %s2331_s15, [#allocation32], %s12586_s26, %s12586_s26, %s12587_s11  }
 0x1aa   : > { %s11687_s6 = scalar_lea.hbm %s15200_s12, 256 }
 0x1ab   : > { %p11688_p8 = scmp.ne.s32.totalorder %s15200_s12, %s11687_s6  ;;  %p11693_p11 = scmp.lt.u32.totalorder %s11687_s6, %s15200_s12 }
 0x1ad   : > { %p11689_p9 = pnand %p11688_p8, %p15075_p5 }
 0x1af   : > { %p11690_p10 = pneg %p11689_p9 }
 0x1b1   : > { %p11695_p12 = pnand %p11693_p11, %p11690_p10 }
 0x1b3   : > { %11698 = shalt.err (!%p11695_p12)
}
 0x1b4   : > { %s11699_s9 = scalar_lea.vmem %s13260_s10, 256  ;;  %p11706_p2 = scmp.lt.s32.totalorder %s13260_s10, %s13260_s10 }
 0x1b5   : > { %p11700_p13 = scmp.ne.s32.totalorder %s13260_s10, %s11699_s9  ;;  %p11707_p3 = scmp.lt.s32.totalorder %s11699_s9, %s11699_s9 }
 0x1b7   : > { %p11701_p0 = pnand %p11700_p13, %p15075_p5  ;;  %p11708_p6 = por %p11707_p3, %p11706_p2 }
 0x1b9   : > { %p11702_p1 = pneg %p11701_p0 }
 0x1bb   : > { %p11709_p7 = pnand %p11708_p6, %p11702_p1 }
 0x1bd   : > { %11712 = shalt.err (!%p11709_p7)
}
 0x1be   : > { %10501 = dma.hbm_to_vmem [thread:$0]  (%p15075_p5), %s15200_s12, 256, %s13260_s10, [#allocation35], %s12586_s26, %s12586_s26, %s12587_s11  }
 0x1bf   : > { %s12598_s15 = smov [#allocation37]   ;;  %s12599_s8 = smov [#allocation40]  }
 0x1c0   : > { %s2394_s0 = sshll.u32 %s12598_s15, 4  ;;  %s2426_s16 = sshll.u32 %s12599_s8, 4  ;;  %s2395_s0 = int_to_ptr.vmem [resolvable:$true] %s2394_s0  ;;  %s13293_s16 = int_to_ptr.vmem [resolvable:$true] %s2426_s16 }
 0x1c1   : > { %s11713_s6 = scalar_lea.hbm %s12915_s19, 256 }
 0x1c2   : > { %p11714_p8 = scmp.ne.s32.totalorder %s12915_s19, %s11713_s6  ;;  %p11719_p11 = scmp.lt.u32.totalorder %s11713_s6, %s12915_s19 }
 0x1c4   : > { %p11715_p9 = pnand %p11714_p8, %p15075_p5 }
 0x1c6   : > { %p11716_p10 = pneg %p11715_p9 }
 0x1c8   : > { %p11721_p12 = pnand %p11719_p11, %p11716_p10 }
 0x1ca   : > { %11724 = shalt.err (!%p11721_p12)
}
 0x1cb   : > { %s11725_s9 = scalar_lea.vmem %s2395_s0, 256  ;;  %p11732_p2 = scmp.lt.s32.totalorder %s2395_s0, %s2395_s0 }
 0x1cc   : > { %p11726_p13 = scmp.ne.s32.totalorder %s2395_s0, %s11725_s9  ;;  %p11733_p3 = scmp.lt.s32.totalorder %s11725_s9, %s11725_s9 }
 0x1ce   : > { %p11727_p0 = pnand %p11726_p13, %p15075_p5  ;;  %p11734_p6 = por %p11733_p3, %p11732_p2 }
 0x1d0   : > { %p11728_p1 = pneg %p11727_p0 }
 0x1d2   : > { %p11735_p7 = pnand %p11734_p6, %p11728_p1 }
 0x1d4   : > { %11738 = shalt.err (!%p11735_p7)
}
 0x1d5   : > { %10505 = dma.hbm_to_vmem [thread:$0]  (%p15075_p5), %s12915_s19, 256, %s2395_s0, [#allocation38], %s12586_s26, %s12586_s26, %s12587_s11  }
 0x1d6   : > { %s11739_s10 = scalar_lea.hbm %s12935_s14, 256 }
 0x1d7   : > { %p11740_p8 = scmp.ne.s32.totalorder %s12935_s14, %s11739_s10  ;;  %p11745_p11 = scmp.lt.u32.totalorder %s11739_s10, %s12935_s14 }
 0x1d9   : > { %p11741_p9 = pnand %p11740_p8, %p15075_p5 }
 0x1db   : > { %p11742_p10 = pneg %p11741_p9 }
 0x1dd   : > { %p11747_p12 = pnand %p11745_p11, %p11742_p10 }
 0x1df   : > { %11750 = shalt.err (!%p11747_p12)
}
 0x1e0   : > { %s11751_s15 = scalar_lea.vmem %s13293_s16, 256  ;;  %p11758_p2 = scmp.lt.s32.totalorder %s13293_s16, %s13293_s16 }
 0x1e1   : > { %p11752_p13 = scmp.ne.s32.totalorder %s13293_s16, %s11751_s15  ;;  %p11759_p3 = scmp.lt.s32.totalorder %s11751_s15, %s11751_s15 }
 0x1e3   : > { %p11753_p0 = pnand %p11752_p13, %p15075_p5  ;;  %p11760_p6 = por %p11759_p3, %p11758_p2 }
 0x1e5   : > { %p11754_p1 = pneg %p11753_p0 }
 0x1e7   : > { %p11761_p7 = pnand %p11760_p6, %p11754_p1 }
 0x1e9   : > { %11764 = shalt.err (!%p11761_p7)
}
 0x1ea   : > { %10509 = dma.hbm_to_vmem [thread:$0]  (%p15075_p5), %s12935_s14, 256, %s13293_s16, [#allocation41], %s12586_s26, %s12586_s26, %s12587_s11  }
 0x1eb   : > { %s12600_s0 = smov [#allocation43]   ;;  %s12601_s6 = smov [#allocation46]  }
 0x1ec   : > { %s2458_s8 = sshll.u32 %s12600_s0, 4  ;;  %s2490_s9 = sshll.u32 %s12601_s6, 4  ;;  %s2459_s8 = int_to_ptr.vmem [resolvable:$true] %s2458_s8  ;;  %s13326_s9 = int_to_ptr.vmem [resolvable:$true] %s2490_s9 }
 0x1ed   : > { %s11765_s10 = scalar_lea.hbm %s15201_s4, 256 }
 0x1ee   : > { %p11766_p8 = scmp.ne.s32.totalorder %s15201_s4, %s11765_s10  ;;  %p11771_p11 = scmp.lt.u32.totalorder %s11765_s10, %s15201_s4 }
 0x1f0   : > { %p11767_p9 = pnand %p11766_p8, %p15075_p5 }
 0x1f2   : > { %p11768_p10 = pneg %p11767_p9 }
 0x1f4   : > { %p11773_p12 = pnand %p11771_p11, %p11768_p10 }
 0x1f6   : > { %11776 = shalt.err (!%p11773_p12)
}
 0x1f7   : > { %s11777_s15 = scalar_lea.vmem %s2459_s8, 256  ;;  %p11784_p2 = scmp.lt.s32.totalorder %s2459_s8, %s2459_s8 }
 0x1f8   : > { %p11778_p13 = scmp.ne.s32.totalorder %s2459_s8, %s11777_s15  ;;  %p11785_p3 = scmp.lt.s32.totalorder %s11777_s15, %s11777_s15 }
 0x1fa   : > { %p11779_p0 = pnand %p11778_p13, %p15075_p5  ;;  %p11786_p6 = por %p11785_p3, %p11784_p2 }
 0x1fc   : > { %p11780_p1 = pneg %p11779_p0 }
 0x1fe   : > { %p11787_p7 = pnand %p11786_p6, %p11780_p1 }
 0x200   : > { %11790 = shalt.err (!%p11787_p7)
}
 0x201   : > { %s15209_s16 = sld [smem:[#allocation134_spill]] }
 0x202   : > { %10513 = dma.hbm_to_vmem [thread:$0]  (%p15075_p5), %s15201_s4, 256, %s2459_s8, [#allocation44], %s12586_s26, %s12586_s26, %s12587_s11  }
 0x207   : > { %s11791_s0 = scalar_lea.hbm %s15209_s16, 256 }
 0x208   : > { %p11792_p8 = scmp.ne.s32.totalorder %s15209_s16, %s11791_s0  ;;  %p11797_p11 = scmp.lt.u32.totalorder %s11791_s0, %s15209_s16 }
 0x20a   : > { %p11793_p9 = pnand %p11792_p8, %p15075_p5 }
 0x20c   : > { %p11794_p10 = pneg %p11793_p9 }
 0x20e   : > { %p11799_p12 = pnand %p11797_p11, %p11794_p10 }
 0x210   : > { %11802 = shalt.err (!%p11799_p12)
}
 0x211   : > { %s11803_s6 = scalar_lea.vmem %s13326_s9, 256  ;;  %p11810_p2 = scmp.lt.s32.totalorder %s13326_s9, %s13326_s9 }
 0x212   : > { %p11804_p13 = scmp.ne.s32.totalorder %s13326_s9, %s11803_s6  ;;  %p11811_p3 = scmp.lt.s32.totalorder %s11803_s6, %s11803_s6 }
 0x214   : > { %p11805_p0 = pnand %p11804_p13, %p15075_p5  ;;  %p11812_p6 = por %p11811_p3, %p11810_p2 }
 0x216   : > { %p11806_p1 = pneg %p11805_p0 }
 0x218   : > { %p11813_p7 = pnand %p11812_p6, %p11806_p1 }
 0x21a   : > { %11816 = shalt.err (!%p11813_p7)
}
 0x21b   : > { %s15210_s8 = sld [smem:[#allocation138_spill]]  ;;  %s12602_s10 = smov [#allocation49]  }
 0x21c   : > { %10517 = dma.hbm_to_vmem [thread:$0]  (%p15075_p5), %s15209_s16, 256, %s13326_s9, [#allocation47], %s12586_s26, %s12586_s26, %s12587_s11  }
 0x21d   : > { %s2522_s15 = sshll.u32 %s12602_s10, 4  ;;  %s12603_s0 = smov [#allocation52]   ;;  %s2523_s15 = int_to_ptr.vmem [resolvable:$true] %s2522_s15 }
 0x21e   : > { %s2554_s3 = sshll.u32 %s12603_s0, 4  ;;  %s13359_s3 = int_to_ptr.vmem [resolvable:$true] %s2554_s3 }
 0x221   : > { %s11817_s6 = scalar_lea.hbm %s15210_s8, 256 }
 0x222   : > { %p11818_p8 = scmp.ne.s32.totalorder %s15210_s8, %s11817_s6  ;;  %p11823_p11 = scmp.lt.u32.totalorder %s11817_s6, %s15210_s8 }
 0x224   : > { %p11819_p9 = pnand %p11818_p8, %p15075_p5 }
 0x226   : > { %p11820_p10 = pneg %p11819_p9 }
 0x228   : > { %p11825_p12 = pnand %p11823_p11, %p11820_p10 }
 0x22a   : > { %11828 = shalt.err (!%p11825_p12)
}
 0x22b   : > { %s11829_s4 = scalar_lea.vmem %s2523_s15, 256  ;;  %p11836_p2 = scmp.lt.s32.totalorder %s2523_s15, %s2523_s15 }
 0x22c   : > { %p11830_p13 = scmp.ne.s32.totalorder %s2523_s15, %s11829_s4  ;;  %p11837_p3 = scmp.lt.s32.totalorder %s11829_s4, %s11829_s4 }
 0x22e   : > { %p11831_p0 = pnand %p11830_p13, %p15075_p5  ;;  %p11838_p6 = por %p11837_p3, %p11836_p2 }
 0x230   : > { %p11832_p1 = pneg %p11831_p0 }
 0x232   : > { %p11839_p7 = pnand %p11838_p6, %p11832_p1 }
 0x234   : > { %11842 = shalt.err (!%p11839_p7)
}
 0x235   : > { %s15211_s9 = sld [smem:[#allocation142_spill]] }
 0x236   : > { %10521 = dma.hbm_to_vmem [thread:$0]  (%p15075_p5), %s15210_s8, 256, %s2523_s15, [#allocation50], %s12586_s26, %s12586_s26, %s12587_s11  }
 0x23b   : > { %s11843_s10 = scalar_lea.hbm %s15211_s9, 256 }
 0x23c   : > { %p11844_p8 = scmp.ne.s32.totalorder %s15211_s9, %s11843_s10  ;;  %p11849_p11 = scmp.lt.u32.totalorder %s11843_s10, %s15211_s9 }
 0x23e   : > { %p11845_p9 = pnand %p11844_p8, %p15075_p5 }
 0x240   : > { %p11846_p10 = pneg %p11845_p9 }
 0x242   : > { %p11851_p12 = pnand %p11849_p11, %p11846_p10 }
 0x244   : > { %11854 = shalt.err (!%p11851_p12)
}
 0x245   : > { %s11855_s4 = scalar_lea.vmem %s13359_s3, 256  ;;  %p11862_p2 = scmp.lt.s32.totalorder %s13359_s3, %s13359_s3 }
 0x246   : > { %p11856_p13 = scmp.ne.s32.totalorder %s13359_s3, %s11855_s4  ;;  %p11863_p3 = scmp.lt.s32.totalorder %s11855_s4, %s11855_s4 }
 0x248   : > { %p11857_p0 = pnand %p11856_p13, %p15075_p5  ;;  %p11864_p6 = por %p11863_p3, %p11862_p2 }
 0x24a   : > { %p11858_p1 = pneg %p11857_p0 }
 0x24c   : > { %p11865_p7 = pnand %p11864_p6, %p11858_p1 }
 0x24e   : > { %11868 = shalt.err (!%p11865_p7)
}
 0x24f   : > { %s15212_s15 = sld [smem:[#allocation146_spill]]  ;;  %s12604_s0 = smov [#allocation55]  }
 0x250   : > { %10525 = dma.hbm_to_vmem [thread:$0]  (%p15075_p5), %s15211_s9, 256, %s13359_s3, [#allocation53], %s12586_s26, %s12586_s26, %s12587_s11  }
 0x251   : > { %s2587_s6 = sshll.u32 %s12604_s0, 4  ;;  %s12605_s10 = smov [#allocation6]   ;;  %s2588_s6 = int_to_ptr.vmem [resolvable:$true] %s2587_s6 }
 0x252   : > { %s2058_s8 = sshll.u32 %s12605_s10, 4  ;;  %s13392_s8 = int_to_ptr.vmem [resolvable:$true] %s2058_s8 }
 0x255   : > { %s11869_s4 = scalar_lea.hbm %s15212_s15, 256 }
 0x256   : > { %p11870_p8 = scmp.ne.s32.totalorder %s15212_s15, %s11869_s4  ;;  %p11875_p11 = scmp.lt.u32.totalorder %s11869_s4, %s15212_s15 }
 0x258   : > { %p11871_p9 = pnand %p11870_p8, %p15075_p5 }
 0x25a   : > { %p11872_p10 = pneg %p11871_p9 }
 0x25c   : > { %p11877_p12 = pnand %p11875_p11, %p11872_p10 }
 0x25e   : > { %11880 = shalt.err (!%p11877_p12)
}
 0x25f   : > { %s11881_s12 = scalar_lea.vmem %s2588_s6, 256  ;;  %p11888_p2 = scmp.lt.s32.totalorder %s2588_s6, %s2588_s6 }
 0x260   : > { %p11882_p13 = scmp.ne.s32.totalorder %s2588_s6, %s11881_s12  ;;  %p11889_p3 = scmp.lt.s32.totalorder %s11881_s12, %s11881_s12 }
 0x262   : > { %p11883_p0 = pnand %p11882_p13, %p15075_p5  ;;  %p11890_p6 = por %p11889_p3, %p11888_p2 }
 0x264   : > { %p11884_p1 = pneg %p11883_p0 }
 0x266   : > { %p11891_p7 = pnand %p11890_p6, %p11884_p1 }
 0x268   : > { %11894 = shalt.err (!%p11891_p7)
}
 0x269   : > { %s15213_s3 = sld [smem:[#allocation89_spill]] }
 0x26a   : > { %10529 = dma.hbm_to_vmem [thread:$0]  (%p15075_p5), %s15212_s15, 256, %s2588_s6, [#allocation56]  }
 0x26f   : > { %s11895_s0 = scalar_lea.hbm %s15213_s3, 256 }
 0x270   : > { %p11896_p8 = scmp.ne.s32.totalorder %s15213_s3, %s11895_s0  ;;  %p11901_p11 = scmp.lt.u32.totalorder %s11895_s0, %s15213_s3 }
 0x272   : > { %p11897_p9 = pnand %p11896_p8, %p15075_p5 }
 0x274   : > { %p11898_p10 = pneg %p11897_p9 }
 0x276   : > { %p11903_p12 = pnand %p11901_p11, %p11898_p10 }
 0x278   : > { %11906 = shalt.err (!%p11903_p12)
}
 0x279   : > { %s11907_s12 = scalar_lea.vmem %s13392_s8, 256  ;;  %p11914_p2 = scmp.lt.s32.totalorder %s13392_s8, %s13392_s8 }
 0x27a   : > { %p11908_p13 = scmp.ne.s32.totalorder %s13392_s8, %s11907_s12  ;;  %p11915_p3 = scmp.lt.s32.totalorder %s11907_s12, %s11907_s12 }
 0x27c   : > { %p11909_p0 = pnand %p11908_p13, %p15075_p5  ;;  %p11916_p6 = por %p11915_p3, %p11914_p2 }
 0x27e   : > { %p11910_p1 = pneg %p11909_p0 }
 0x280   : > { %p11917_p7 = pnand %p11916_p6, %p11910_p1 }
 0x282   : > { %11920 = shalt.err (!%p11917_p7)
}
 0x283   : > { %s15214_s6 = sld [smem:[#allocation92_spill]]  ;;  %s12606_s10 = smov [#allocation9]  }
 0x284   : > { %10463 = dma.hbm_to_vmem [thread:$0]  (%p15075_p5), %s15213_s3, 256, %s13392_s8, [#allocation5], %s12586_s26, %s12586_s26, %s12587_s11  }
 0x285   : > { %s2090_s4 = sshll.u32 %s12606_s10, 4  ;;  %s12607_s0 = smov [#allocation12]   ;;  %s2091_s4 = int_to_ptr.vmem [resolvable:$true] %s2090_s4 }
 0x286   : > { %s2122_s9 = sshll.u32 %s12607_s0, 4  ;;  %s13422_s9 = int_to_ptr.vmem [resolvable:$true] %s2122_s9 }
 0x289   : > { %s11921_s12 = scalar_lea.hbm %s15214_s6, 256 }
 0x28a   : > { %p11922_p8 = scmp.ne.s32.totalorder %s15214_s6, %s11921_s12  ;;  %p11927_p11 = scmp.lt.u32.totalorder %s11921_s12, %s15214_s6 }
 0x28c   : > { %p11923_p9 = pnand %p11922_p8, %p15075_p5 }
 0x28e   : > { %p11924_p10 = pneg %p11923_p9 }
 0x290   : > { %p11929_p12 = pnand %p11927_p11, %p11924_p10 }
 0x292   : > { %11932 = shalt.err (!%p11929_p12)
}
 0x293   : > { %s11933_s13 = scalar_lea.vmem %s2091_s4, 256  ;;  %p11940_p2 = scmp.lt.s32.totalorder %s2091_s4, %s2091_s4 }
 0x294   : > { %p11934_p13 = scmp.ne.s32.totalorder %s2091_s4, %s11933_s13  ;;  %p11941_p3 = scmp.lt.s32.totalorder %s11933_s13, %s11933_s13 }
 0x296   : > { %p11935_p0 = pnand %p11934_p13, %p15075_p5  ;;  %p11942_p6 = por %p11941_p3, %p11940_p2 }
 0x298   : > { %p11936_p1 = pneg %p11935_p0 }
 0x29a   : > { %p11943_p7 = pnand %p11942_p6, %p11936_p1 }
 0x29c   : > { %11946 = shalt.err (!%p11943_p7)
}
 0x29d   : > { %s15215_s8 = sld [smem:[#allocation96_spill]] }
 0x29e   : > { %10467 = dma.hbm_to_vmem [thread:$0]  (%p15075_p5), %s15214_s6, 256, %s2091_s4, [#allocation8], %s12586_s26, %s12586_s26, %s12587_s11  }
 0x2a3   : > { %s11947_s10 = scalar_lea.hbm %s15215_s8, 256 }
 0x2a4   : > { %p11948_p8 = scmp.ne.s32.totalorder %s15215_s8, %s11947_s10  ;;  %p11953_p11 = scmp.lt.u32.totalorder %s11947_s10, %s15215_s8 }
 0x2a6   : > { %p11949_p9 = pnand %p11948_p8, %p15075_p5 }
 0x2a8   : > { %p11950_p10 = pneg %p11949_p9 }
 0x2aa   : > { %p11955_p12 = pnand %p11953_p11, %p11950_p10 }
 0x2ac   : > { %11958 = shalt.err (!%p11955_p12)
}
 0x2ad   : > { %s11959_s13 = scalar_lea.vmem %s13422_s9, 256  ;;  %p11966_p2 = scmp.lt.s32.totalorder %s13422_s9, %s13422_s9 }
 0x2ae   : > { %p11960_p13 = scmp.ne.s32.totalorder %s13422_s9, %s11959_s13  ;;  %p11967_p3 = scmp.lt.s32.totalorder %s11959_s13, %s11959_s13 }
 0x2b0   : > { %p11961_p0 = pnand %p11960_p13, %p15075_p5  ;;  %p11968_p6 = por %p11967_p3, %p11966_p2 }
 0x2b2   : > { %p11962_p1 = pneg %p11961_p0 }
 0x2b4   : > { %p11969_p7 = pnand %p11968_p6, %p11962_p1 }
 0x2b6   : > { %11972 = shalt.err (!%p11969_p7)
}
 0x2b7   : > { %s15216_s4 = sld [smem:[#allocation99_spill]]  ;;  %s12608_s0 = smov [#allocation15]  }
 0x2b8   : > { %10471 = dma.hbm_to_vmem [thread:$0]  (%p15075_p5), %s15215_s8, 256, %s13422_s9, [#allocation11], %s12586_s26, %s12586_s26, %s12587_s11  }
 0x2b9   : > { %s2154_s12 = sshll.u32 %s12608_s0, 4  ;;  %s12609_s10 = smov [#allocation18]   ;;  %s2155_s12 = int_to_ptr.vmem [resolvable:$true] %s2154_s12 }
 0x2ba   : > { %s2186_s3 = sshll.u32 %s12609_s10, 4  ;;  %s13455_s3 = int_to_ptr.vmem [resolvable:$true] %s2186_s3 }
 0x2bd   : > { %s11973_s13 = scalar_lea.hbm %s15216_s4, 256 }
 0x2be   : > { %p11974_p8 = scmp.ne.s32.totalorder %s15216_s4, %s11973_s13  ;;  %p11979_p11 = scmp.lt.u32.totalorder %s11973_s13, %s15216_s4 }
 0x2c0   : > { %p11975_p9 = pnand %p11974_p8, %p15075_p5 }
 0x2c2   : > { %p11976_p10 = pneg %p11975_p9 }
 0x2c4   : > { %p11981_p12 = pnand %p11979_p11, %p11976_p10 }
 0x2c6   : > { %11984 = shalt.err (!%p11981_p12)
}
 0x2c7   : > { %s11985_s6 = scalar_lea.vmem %s2155_s12, 256  ;;  %p11992_p2 = scmp.lt.s32.totalorder %s2155_s12, %s2155_s12 }
 0x2c8   : > { %p11986_p13 = scmp.ne.s32.totalorder %s2155_s12, %s11985_s6  ;;  %p11993_p3 = scmp.lt.s32.totalorder %s11985_s6, %s11985_s6 }
 0x2ca   : > { %p11987_p0 = pnand %p11986_p13, %p15075_p5  ;;  %p11994_p6 = por %p11993_p3, %p11992_p2 }
 0x2cc   : > { %p11988_p1 = pneg %p11987_p0 }
 0x2ce   : > { %p11995_p7 = pnand %p11994_p6, %p11988_p1 }
 0x2d0   : > { %11998 = shalt.err (!%p11995_p7)
}
 0x2d1   : > { %s15217_s9 = sld [smem:[#allocation102_spill]] }
 0x2d2   : > { %10475 = dma.hbm_to_vmem [thread:$0]  (%p15075_p5), %s15216_s4, 256, %s2155_s12, [#allocation14], %s12586_s26, %s12586_s26, %s12587_s11  }
 0x2d7   : > { %s11999_s0 = scalar_lea.hbm %s15217_s9, 256 }
 0x2d8   : > { %p12000_p8 = scmp.ne.s32.totalorder %s15217_s9, %s11999_s0  ;;  %p12005_p11 = scmp.lt.u32.totalorder %s11999_s0, %s15217_s9 }
 0x2da   : > { %p12001_p9 = pnand %p12000_p8, %p15075_p5 }
 0x2dc   : > { %p12002_p10 = pneg %p12001_p9 }
 0x2de   : > { %p12007_p12 = pnand %p12005_p11, %p12002_p10 }
 0x2e0   : > { %12010 = shalt.err (!%p12007_p12)
}
 0x2e1   : > { %s12011_s6 = scalar_lea.vmem %s13455_s3, 256  ;;  %p12018_p2 = scmp.lt.s32.totalorder %s13455_s3, %s13455_s3 }
 0x2e2   : > { %p12012_p13 = scmp.ne.s32.totalorder %s13455_s3, %s12011_s6  ;;  %p12019_p3 = scmp.lt.s32.totalorder %s12011_s6, %s12011_s6 }
 0x2e4   : > { %p12013_p0 = pnand %p12012_p13, %p15075_p5  ;;  %p12020_p6 = por %p12019_p3, %p12018_p2 }
 0x2e6   : > { %p12014_p1 = pneg %p12013_p0 }
 0x2e8   : > { %p12021_p7 = pnand %p12020_p6, %p12014_p1 }
 0x2ea   : > { %12024 = shalt.err (!%p12021_p7)
}
 0x2eb   : > { %s15218_s12 = sld [smem:[#allocation105_spill]]  ;;  %s12610_s10 = smov [#allocation21]  }
 0x2ec   : > { %10479 = dma.hbm_to_vmem [thread:$0]  (%p15075_p5), %s15217_s9, 256, %s13455_s3, [#allocation17], %s12586_s26, %s12586_s26, %s12587_s11  }
 0x2ed   : > { %s2218_s13 = sshll.u32 %s12610_s10, 4  ;;  %s12611_s0 = smov [#allocation24]   ;;  %s2219_s13 = int_to_ptr.vmem [resolvable:$true] %s2218_s13 }
 0x2ee   : > { %s2250_s4 = sshll.u32 %s12611_s0, 4  ;;  %s13488_s4 = int_to_ptr.vmem [resolvable:$true] %s2250_s4 }
 0x2f1   : > { %s12025_s6 = scalar_lea.hbm %s15218_s12, 256 }
 0x2f2   : > { %p12026_p8 = scmp.ne.s32.totalorder %s15218_s12, %s12025_s6  ;;  %p12031_p11 = scmp.lt.u32.totalorder %s12025_s6, %s15218_s12 }
 0x2f4   : > { %p12027_p9 = pnand %p12026_p8, %p15075_p5 }
 0x2f6   : > { %p12028_p10 = pneg %p12027_p9 }
 0x2f8   : > { %p12033_p12 = pnand %p12031_p11, %p12028_p10 }
 0x2fa   : > { %12036 = shalt.err (!%p12033_p12)
}
 0x2fb   : > { %s12037_s8 = scalar_lea.vmem %s2219_s13, 256  ;;  %p12044_p2 = scmp.lt.s32.totalorder %s2219_s13, %s2219_s13 }
 0x2fc   : > { %p12038_p13 = scmp.ne.s32.totalorder %s2219_s13, %s12037_s8  ;;  %p12045_p3 = scmp.lt.s32.totalorder %s12037_s8, %s12037_s8 }
 0x2fe   : > { %p12039_p0 = pnand %p12038_p13, %p15075_p5  ;;  %p12046_p6 = por %p12045_p3, %p12044_p2 }
 0x300   : > { %p12040_p1 = pneg %p12039_p0 }
 0x302   : > { %p12047_p7 = pnand %p12046_p6, %p12040_p1 }
 0x304   : > { %12050 = shalt.err (!%p12047_p7)
}
 0x305   : > { %s15219_s3 = sld [smem:[#allocation108_spill]] }
 0x306   : > { %10483 = dma.hbm_to_vmem [thread:$0]  (%p15075_p5), %s15218_s12, 256, %s2219_s13, [#allocation20], %s12586_s26, %s12586_s26, %s12587_s11  }
 0x30b   : > { %s12051_s10 = scalar_lea.hbm %s15219_s3, 256 }
 0x30c   : > { %p12052_p8 = scmp.ne.s32.totalorder %s15219_s3, %s12051_s10  ;;  %p12057_p11 = scmp.lt.u32.totalorder %s12051_s10, %s15219_s3 }
 0x30e   : > { %p12053_p9 = pnand %p12052_p8, %p15075_p5 }
 0x310   : > { %p12054_p10 = pneg %p12053_p9 }
 0x312   : > { %p12059_p12 = pnand %p12057_p11, %p12054_p10 }
 0x314   : > { %12062 = shalt.err (!%p12059_p12)
}
 0x315   : > { %s12063_s8 = scalar_lea.vmem %s13488_s4, 256  ;;  %p12070_p2 = scmp.lt.s32.totalorder %s13488_s4, %s13488_s4 }
 0x316   : > { %p12064_p13 = scmp.ne.s32.totalorder %s13488_s4, %s12063_s8  ;;  %p12071_p3 = scmp.lt.s32.totalorder %s12063_s8, %s12063_s8 }
 0x318   : > { %p12065_p0 = pnand %p12064_p13, %p15075_p5  ;;  %p12072_p6 = por %p12071_p3, %p12070_p2 }
 0x31a   : > { %p12066_p1 = pneg %p12065_p0 }
 0x31c   : > { %p12073_p7 = pnand %p12072_p6, %p12066_p1 }
 0x31e   : > { %12076 = shalt.err (!%p12073_p7)
}
 0x31f   : > { %s15220_s13 = sld [smem:[#allocation111_spill]]  ;;  %s12612_s0 = smov [#allocation27]  }
 0x320   : > { %10487 = dma.hbm_to_vmem [thread:$0]  (%p15075_p5), %s15219_s3, 256, %s13488_s4, [#allocation23], %s12586_s26, %s12586_s26, %s12587_s11  }
 0x321   : > { %s2282_s6 = sshll.u32 %s12612_s0, 4  ;;  %s12613_s10 = smov [#allocation30]   ;;  %s2283_s6 = int_to_ptr.vmem [resolvable:$true] %s2282_s6 }
 0x322   : > { %s2314_s9 = sshll.u32 %s12613_s10, 4  ;;  %s13521_s9 = int_to_ptr.vmem [resolvable:$true] %s2314_s9 }
 0x325   : > { %s12077_s8 = scalar_lea.hbm %s15220_s13, 256 }
 0x326   : > { %p12078_p8 = scmp.ne.s32.totalorder %s15220_s13, %s12077_s8  ;;  %p12083_p11 = scmp.lt.u32.totalorder %s12077_s8, %s15220_s13 }
 0x328   : > { %p12079_p9 = pnand %p12078_p8, %p15075_p5 }
 0x32a   : > { %p12080_p10 = pneg %p12079_p9 }
 0x32c   : > { %p12085_p12 = pnand %p12083_p11, %p12080_p10 }
 0x32e   : > { %12088 = shalt.err (!%p12085_p12)
}
 0x32f   : > { %s12089_s12 = scalar_lea.vmem %s2283_s6, 256  ;;  %p12096_p2 = scmp.lt.s32.totalorder %s2283_s6, %s2283_s6 }
 0x330   : > { %p12090_p13 = scmp.ne.s32.totalorder %s2283_s6, %s12089_s12  ;;  %p12097_p3 = scmp.lt.s32.totalorder %s12089_s12, %s12089_s12 }
 0x332   : > { %p12091_p0 = pnand %p12090_p13, %p15075_p5  ;;  %p12098_p6 = por %p12097_p3, %p12096_p2 }
 0x334   : > { %p12092_p1 = pneg %p12091_p0 }
 0x336   : > { %p12099_p7 = pnand %p12098_p6, %p12092_p1 }
 0x338   : > { %12102 = shalt.err (!%p12099_p7)
}
 0x339   : > { %s15221_s4 = sld [smem:[#allocation114_spill]] }
 0x33a   : > { %10491 = dma.hbm_to_vmem [thread:$0]  (%p15075_p5), %s15220_s13, 256, %s2283_s6, [#allocation26], %s12586_s26, %s12586_s26, %s12587_s11  }
 0x33f   : > { %s12103_s0 = scalar_lea.hbm %s15221_s4, 256 }
 0x340   : > { %p12104_p8 = scmp.ne.s32.totalorder %s15221_s4, %s12103_s0  ;;  %p12109_p11 = scmp.lt.u32.totalorder %s12103_s0, %s15221_s4 }
 0x342   : > { %p12105_p9 = pnand %p12104_p8, %p15075_p5 }
 0x344   : > { %p12106_p10 = pneg %p12105_p9 }
 0x346   : > { %p12111_p12 = pnand %p12109_p11, %p12106_p10 }
 0x348   : > { %12114 = shalt.err (!%p12111_p12)
}
 0x349   : > { %s12115_s12 = scalar_lea.vmem %s13521_s9, 256  ;;  %p12122_p2 = scmp.lt.s32.totalorder %s13521_s9, %s13521_s9 }
 0x34a   : > { %p12116_p13 = scmp.ne.s32.totalorder %s13521_s9, %s12115_s12  ;;  %p12123_p3 = scmp.lt.s32.totalorder %s12115_s12, %s12115_s12 }
 0x34c   : > { %p12117_p0 = pnand %p12116_p13, %p15075_p5  ;;  %p12124_p6 = por %p12123_p3, %p12122_p2 }
 0x34e   : > { %p12118_p1 = pneg %p12117_p0 }
 0x350   : > { %p12125_p7 = pnand %p12124_p6, %p12118_p1 }
 0x352   : > { %12128 = shalt.err (!%p12125_p7)
}
 0x353   : > { %s15222_s6 = sld [smem:[#allocation118_spill]]  ;;  %s12614_s10 = smov [#allocation33]  }
 0x354   : > { %10495 = dma.hbm_to_vmem [thread:$0]  (%p15075_p5), %s15221_s4, 256, %s13521_s9, [#allocation29], %s12586_s26, %s12586_s26, %s12587_s11  }
 0x355   : > { %s2346_s8 = sshll.u32 %s12614_s10, 4  ;;  %s12615_s0 = smov [#allocation36]   ;;  %s2347_s8 = int_to_ptr.vmem [resolvable:$true] %s2346_s8 }
 0x356   : > { %s2378_s3 = sshll.u32 %s12615_s0, 4  ;;  %s13554_s3 = int_to_ptr.vmem [resolvable:$true] %s2378_s3 }
 0x359   : > { %s12129_s12 = scalar_lea.hbm %s15222_s6, 256 }
 0x35a   : > { %p12130_p8 = scmp.ne.s32.totalorder %s15222_s6, %s12129_s12  ;;  %p12135_p11 = scmp.lt.u32.totalorder %s12129_s12, %s15222_s6 }
 0x35c   : > { %p12131_p9 = pnand %p12130_p8, %p15075_p5 }
 0x35e   : > { %p12132_p10 = pneg %p12131_p9 }
 0x360   : > { %p12137_p12 = pnand %p12135_p11, %p12132_p10 }
 0x362   : > { %12140 = shalt.err (!%p12137_p12)
}
 0x363   : > { %s12141_s13 = scalar_lea.vmem %s2347_s8, 256  ;;  %p12148_p2 = scmp.lt.s32.totalorder %s2347_s8, %s2347_s8 }
 0x364   : > { %p12142_p13 = scmp.ne.s32.totalorder %s2347_s8, %s12141_s13  ;;  %p12149_p3 = scmp.lt.s32.totalorder %s12141_s13, %s12141_s13 }
 0x366   : > { %p12143_p0 = pnand %p12142_p13, %p15075_p5  ;;  %p12150_p6 = por %p12149_p3, %p12148_p2 }
 0x368   : > { %p12144_p1 = pneg %p12143_p0 }
 0x36a   : > { %p12151_p7 = pnand %p12150_p6, %p12144_p1 }
 0x36c   : > { %12154 = shalt.err (!%p12151_p7)
}
 0x36d   : > { %s15223_s9 = sld [smem:[#allocation122_spill]] }
 0x36e   : > { %10499 = dma.hbm_to_vmem [thread:$0]  (%p15075_p5), %s15222_s6, 256, %s2347_s8, [#allocation32], %s12586_s26, %s12586_s26, %s12587_s11  }
 0x373   : > { %s12155_s10 = scalar_lea.hbm %s15223_s9, 256 }
 0x374   : > { %p12156_p8 = scmp.ne.s32.totalorder %s15223_s9, %s12155_s10  ;;  %p12161_p11 = scmp.lt.u32.totalorder %s12155_s10, %s15223_s9 }
 0x376   : > { %p12157_p9 = pnand %p12156_p8, %p15075_p5 }
 0x378   : > { %p12158_p10 = pneg %p12157_p9 }
 0x37a   : > { %p12163_p12 = pnand %p12161_p11, %p12158_p10 }
 0x37c   : > { %12166 = shalt.err (!%p12163_p12)
}
 0x37d   : > { %s12167_s13 = scalar_lea.vmem %s13554_s3, 256  ;;  %p12174_p2 = scmp.lt.s32.totalorder %s13554_s3, %s13554_s3 }
 0x37e   : > { %p12168_p13 = scmp.ne.s32.totalorder %s13554_s3, %s12167_s13  ;;  %p12175_p3 = scmp.lt.s32.totalorder %s12167_s13, %s12167_s13 }
 0x380   : > { %p12169_p0 = pnand %p12168_p13, %p15075_p5  ;;  %p12176_p6 = por %p12175_p3, %p12174_p2 }
 0x382   : > { %p12170_p1 = pneg %p12169_p0 }
 0x384   : > { %p12177_p7 = pnand %p12176_p6, %p12170_p1 }
 0x386   : > { %12180 = shalt.err (!%p12177_p7)
}
 0x387   : > { %s15224_s8 = sld [smem:[#allocation125_spill]]  ;;  %s12616_s0 = smov [#allocation39]  }
 0x388   : > { %10503 = dma.hbm_to_vmem [thread:$0]  (%p15075_p5), %s15223_s9, 256, %s13554_s3, [#allocation35], %s12586_s26, %s12586_s26, %s12587_s11  }
 0x389   : > { %s2410_s12 = sshll.u32 %s12616_s0, 4  ;;  %s12617_s10 = smov [#allocation42]   ;;  %s2411_s12 = int_to_ptr.vmem [resolvable:$true] %s2410_s12 }
 0x38a   : > { %s2442_s4 = sshll.u32 %s12617_s10, 4  ;;  %s13587_s4 = int_to_ptr.vmem [resolvable:$true] %s2442_s4 }
 0x38d   : > { %s12181_s13 = scalar_lea.hbm %s15224_s8, 256 }
 0x38e   : > { %p12182_p8 = scmp.ne.s32.totalorder %s15224_s8, %s12181_s13  ;;  %p12187_p11 = scmp.lt.u32.totalorder %s12181_s13, %s15224_s8 }
 0x390   : > { %p12183_p9 = pnand %p12182_p8, %p15075_p5 }
 0x392   : > { %p12184_p10 = pneg %p12183_p9 }
 0x394   : > { %p12189_p12 = pnand %p12187_p11, %p12184_p10 }
 0x396   : > { %12192 = shalt.err (!%p12189_p12)
}
 0x397   : > { %s12193_s6 = scalar_lea.vmem %s2411_s12, 256  ;;  %p12200_p2 = scmp.lt.s32.totalorder %s2411_s12, %s2411_s12 }
 0x398   : > { %p12194_p13 = scmp.ne.s32.totalorder %s2411_s12, %s12193_s6  ;;  %p12201_p3 = scmp.lt.s32.totalorder %s12193_s6, %s12193_s6 }
 0x39a   : > { %p12195_p0 = pnand %p12194_p13, %p15075_p5  ;;  %p12202_p6 = por %p12201_p3, %p12200_p2 }
 0x39c   : > { %p12196_p1 = pneg %p12195_p0 }
 0x39e   : > { %p12203_p7 = pnand %p12202_p6, %p12196_p1 }
 0x3a0   : > { %12206 = shalt.err (!%p12203_p7)
}
 0x3a1   : > { %s15225_s3 = sld [smem:[#allocation128_spill]] }
 0x3a2   : > { %10507 = dma.hbm_to_vmem [thread:$0]  (%p15075_p5), %s15224_s8, 256, %s2411_s12, [#allocation38], %s12586_s26, %s12586_s26, %s12587_s11  }
 0x3a7   : > { %s12207_s0 = scalar_lea.hbm %s15225_s3, 256 }
 0x3a8   : > { %p12208_p8 = scmp.ne.s32.totalorder %s15225_s3, %s12207_s0  ;;  %p12213_p11 = scmp.lt.u32.totalorder %s12207_s0, %s15225_s3 }
 0x3aa   : > { %p12209_p9 = pnand %p12208_p8, %p15075_p5 }
 0x3ac   : > { %p12210_p10 = pneg %p12209_p9 }
 0x3ae   : > { %p12215_p12 = pnand %p12213_p11, %p12210_p10 }
 0x3b0   : > { %12218 = shalt.err (!%p12215_p12)
}
 0x3b1   : > { %s12219_s6 = scalar_lea.vmem %s13587_s4, 256  ;;  %p12226_p2 = scmp.lt.s32.totalorder %s13587_s4, %s13587_s4 }
 0x3b2   : > { %p12220_p13 = scmp.ne.s32.totalorder %s13587_s4, %s12219_s6  ;;  %p12227_p3 = scmp.lt.s32.totalorder %s12219_s6, %s12219_s6 }
 0x3b4   : > { %p12221_p0 = pnand %p12220_p13, %p15075_p5  ;;  %p12228_p6 = por %p12227_p3, %p12226_p2 }
 0x3b6   : > { %p12222_p1 = pneg %p12221_p0 }
 0x3b8   : > { %p12229_p7 = pnand %p12228_p6, %p12222_p1 }
 0x3ba   : > { %12232 = shalt.err (!%p12229_p7)
}
 0x3bb   : > { %s15226_s12 = sld [smem:[#allocation132_spill]]  ;;  %s12618_s10 = smov [#allocation45]  }
 0x3bc   : > { %10511 = dma.hbm_to_vmem [thread:$0]  (%p15075_p5), %s15225_s3, 256, %s13587_s4, [#allocation41], %s12586_s26, %s12586_s26, %s12587_s11  }
 0x3bd   : > { %s2474_s13 = sshll.u32 %s12618_s10, 4  ;;  %s12619_s0 = smov [#allocation48]   ;;  %s2475_s13 = int_to_ptr.vmem [resolvable:$true] %s2474_s13 }
 0x3be   : > { %s2506_s8 = sshll.u32 %s12619_s0, 4  ;;  %s13620_s8 = int_to_ptr.vmem [resolvable:$true] %s2506_s8 }
 0x3c1   : > { %s12233_s6 = scalar_lea.hbm %s15226_s12, 256 }
 0x3c2   : > { %p12234_p8 = scmp.ne.s32.totalorder %s15226_s12, %s12233_s6  ;;  %p12239_p11 = scmp.lt.u32.totalorder %s12233_s6, %s15226_s12 }
 0x3c4   : > { %p12235_p9 = pnand %p12234_p8, %p15075_p5 }
 0x3c6   : > { %p12236_p10 = pneg %p12235_p9 }
 0x3c8   : > { %p12241_p12 = pnand %p12239_p11, %p12236_p10 }
 0x3ca   : > { %12244 = shalt.err (!%p12241_p12)
}
 0x3cb   : > { %s12245_s9 = scalar_lea.vmem %s2475_s13, 256  ;;  %p12252_p2 = scmp.lt.s32.totalorder %s2475_s13, %s2475_s13 }
 0x3cc   : > { %p12246_p13 = scmp.ne.s32.totalorder %s2475_s13, %s12245_s9  ;;  %p12253_p3 = scmp.lt.s32.totalorder %s12245_s9, %s12245_s9 }
 0x3ce   : > { %p12247_p0 = pnand %p12246_p13, %p15075_p5  ;;  %p12254_p6 = por %p12253_p3, %p12252_p2 }
 0x3d0   : > { %p12248_p1 = pneg %p12247_p0 }
 0x3d2   : > { %p12255_p7 = pnand %p12254_p6, %p12248_p1 }
 0x3d4   : > { %12258 = shalt.err (!%p12255_p7)
}
 0x3d5   : > { %s15227_s4 = sld [smem:[#allocation136_spill]] }
 0x3d6   : > { %10515 = dma.hbm_to_vmem [thread:$0]  (%p15075_p5), %s15226_s12, 256, %s2475_s13, [#allocation44], %s12586_s26, %s12586_s26, %s12587_s11  }
 0x3db   : > { %s12259_s10 = scalar_lea.hbm %s15227_s4, 256 }
 0x3dc   : > { %p12260_p8 = scmp.ne.s32.totalorder %s15227_s4, %s12259_s10  ;;  %p12265_p11 = scmp.lt.u32.totalorder %s12259_s10, %s15227_s4 }
 0x3de   : > { %p12261_p9 = pnand %p12260_p8, %p15075_p5 }
 0x3e0   : > { %p12262_p10 = pneg %p12261_p9 }
 0x3e2   : > { %p12267_p12 = pnand %p12265_p11, %p12262_p10 }
 0x3e4   : > { %12270 = shalt.err (!%p12267_p12)
}
 0x3e5   : > { %s12271_s9 = scalar_lea.vmem %s13620_s8, 256  ;;  %p12278_p2 = scmp.lt.s32.totalorder %s13620_s8, %s13620_s8 }
 0x3e6   : > { %p12272_p13 = scmp.ne.s32.totalorder %s13620_s8, %s12271_s9  ;;  %p12279_p3 = scmp.lt.s32.totalorder %s12271_s9, %s12271_s9 }
 0x3e8   : > { %p12273_p0 = pnand %p12272_p13, %p15075_p5  ;;  %p12280_p6 = por %p12279_p3, %p12278_p2 }
 0x3ea   : > { %p12274_p1 = pneg %p12273_p0 }
 0x3ec   : > { %p12281_p7 = pnand %p12280_p6, %p12274_p1 }
 0x3ee   : > { %12284 = shalt.err (!%p12281_p7)
}
 0x3ef   : > { %s15228_s13 = sld [smem:[#allocation140_spill]]  ;;  %s12620_s0 = smov [#allocation51]  }
 0x3f0   : > { %10519 = dma.hbm_to_vmem [thread:$0]  (%p15075_p5), %s15227_s4, 256, %s13620_s8, [#allocation47], %s12586_s26, %s12586_s26, %s12587_s11  }
 0x3f1   : > { %s2538_s6 = sshll.u32 %s12620_s0, 4  ;;  %s12621_s10 = smov [#allocation54]   ;;  %s2539_s6 = int_to_ptr.vmem [resolvable:$true] %s2538_s6 }
 0x3f2   : > { %s2570_s3 = sshll.u32 %s12621_s10, 4  ;;  %s13653_s3 = int_to_ptr.vmem [resolvable:$true] %s2570_s3 }
 0x3f5   : > { %s12285_s9 = scalar_lea.hbm %s15228_s13, 256 }
 0x3f6   : > { %p12286_p8 = scmp.ne.s32.totalorder %s15228_s13, %s12285_s9  ;;  %p12291_p11 = scmp.lt.u32.totalorder %s12285_s9, %s15228_s13 }
 0x3f8   : > { %p12287_p9 = pnand %p12286_p8, %p15075_p5 }
 0x3fa   : > { %p12288_p10 = pneg %p12287_p9 }
 0x3fc   : > { %p12293_p12 = pnand %p12291_p11, %p12288_p10 }
 0x3fe   : > { %12296 = shalt.err (!%p12293_p12)
}
 0x3ff   : > { %s12297_s12 = scalar_lea.vmem %s2539_s6, 256  ;;  %p12304_p2 = scmp.lt.s32.totalorder %s2539_s6, %s2539_s6 }
 0x400   : > { %p12298_p13 = scmp.ne.s32.totalorder %s2539_s6, %s12297_s12  ;;  %p12305_p3 = scmp.lt.s32.totalorder %s12297_s12, %s12297_s12 }
 0x402   : > { %p12299_p0 = pnand %p12298_p13, %p15075_p5  ;;  %p12306_p6 = por %p12305_p3, %p12304_p2 }
 0x404   : > { %p12300_p1 = pneg %p12299_p0 }
 0x406   : > { %p12307_p7 = pnand %p12306_p6, %p12300_p1 }
 0x408   : > { %12310 = shalt.err (!%p12307_p7)
}
 0x409   : > { %s15229_s8 = sld [smem:[#allocation144_spill]] }
 0x40a   : > { %10523 = dma.hbm_to_vmem [thread:$0]  (%p15075_p5), %s15228_s13, 256, %s2539_s6, [#allocation50], %s12586_s26, %s12586_s26, %s12587_s11  }
 0x40f   : > { %s12311_s0 = scalar_lea.hbm %s15229_s8, 256 }
 0x410   : > { %p12312_p8 = scmp.ne.s32.totalorder %s15229_s8, %s12311_s0  ;;  %p12317_p11 = scmp.lt.u32.totalorder %s12311_s0, %s15229_s8 }
 0x412   : > { %p12313_p9 = pnand %p12312_p8, %p15075_p5 }
 0x414   : > { %p12314_p10 = pneg %p12313_p9 }
 0x416   : > { %p12319_p12 = pnand %p12317_p11, %p12314_p10 }
 0x418   : > { %12322 = shalt.err (!%p12319_p12)
}
 0x419   : > { %s12323_s12 = scalar_lea.vmem %s13653_s3, 256  ;;  %p12330_p2 = scmp.lt.s32.totalorder %s13653_s3, %s13653_s3 }
 0x41a   : > { %p12324_p13 = scmp.ne.s32.totalorder %s13653_s3, %s12323_s12  ;;  %p12331_p3 = scmp.lt.s32.totalorder %s12323_s12, %s12323_s12 }
 0x41c   : > { %p12325_p0 = pnand %p12324_p13, %p15075_p5  ;;  %p12332_p6 = por %p12331_p3, %p12330_p2 }
 0x41e   : > { %p12326_p1 = pneg %p12325_p0 }
 0x420   : > { %p12333_p7 = pnand %p12332_p6, %p12326_p1 }
 0x422   : > { %12336 = shalt.err (!%p12333_p7)
}
 0x423   : > { %10527 = dma.hbm_to_vmem [thread:$0]  (%p15075_p5), %s15229_s8, 256, %s13653_s3, [#allocation53], %s12586_s26, %s12586_s26, %s12587_s11  }
 0x424   : > { %s12622_s6 = smov [#allocation57]   ;;  %s12337_s9 = scalar_lea.hbm %s15198_s5, 256 }
 0x425   : > { %s2600_s10 = sshll.u32 %s12622_s6, 4  ;;  %p12338_p8 = scmp.ne.s32.totalorder %s15198_s5, %s12337_s9  ;;  %s2601_s10 = int_to_ptr.vmem [resolvable:$true] %s2600_s10 }
 0x426   : > { %p12343_p11 = scmp.lt.u32.totalorder %s12337_s9, %s15198_s5 }
 0x427   : > { %p12339_p9 = pnand %p12338_p8, %p15075_p5 }
 0x429   : > { %p12340_p10 = pneg %p12339_p9 }
 0x42b   : > { %p12345_p12 = pnand %p12343_p11, %p12340_p10 }
 0x42d   : > { %12348 = shalt.err (!%p12345_p12)
}
 0x42e   : > { %s12349_s0 = scalar_lea.vmem %s2601_s10, 256  ;;  %p12356_p2 = scmp.lt.s32.totalorder %s2601_s10, %s2601_s10 }
 0x42f   : > { %p12350_p13 = scmp.ne.s32.totalorder %s2601_s10, %s12349_s0  ;;  %p12357_p3 = scmp.lt.s32.totalorder %s12349_s0, %s12349_s0 }
 0x431   : > { %p12351_p0 = pnand %p12350_p13, %p15075_p5  ;;  %p12358_p6 = por %p12357_p3, %p12356_p2 }
 0x433   : > { %p12352_p1 = pneg %p12351_p0 }
 0x435   : > { %p12359_p7 = pnand %p12358_p6, %p12352_p1 }
 0x437   : > { %12362 = shalt.err (!%p12359_p7)
}
 0x438   : > { %10531 = dma.hbm_to_vmem [thread:$0]  (%p15075_p5), %s15198_s5, 256, %s2601_s10, [#allocation56], %s12586_s26, %s12586_s26, %s12587_s11  }
 0x439 PF: > { %s15230_s3 = sld [smem:[#allocation77_spill]]  ;;  %p10646_p8 = scmp.lt.s32.totalorder %s15203_s2, 2 }
 0x43a   : > { %s2620_s12 = sand.u32 1, %s12495_s1   ;;  %s9132_s6 = sshll.u32 %s15203_s2, 8 }
 0x43b   : > { %s8861_s9 = sshll.u32 %s2620_s12, 4  ;;  %p13707_p9 = pnand %p10646_p8, %p13096_p4 }
 0x43c   : > { %s2624_s4 = scalar_lea.vmem [#allocation2], %s8861_s9  ;;  %s2621_s10 = scalar_lea.sflag [#allocation3], %s2620_s12 }
 0x43d   : > { %s2632_s26 = sshll.u32 %s2624_s4, 4  ;;  %p12365_p11 = pneg %p13707_p9  ;;  %s13711_s26 = int_to_ptr.vmem [resolvable:$true] %s2632_s26 }
 0x43f   : > { %s13703_s0 = scalar_lea.hbm %s15230_s3, %s9132_s6  ;;  %s12368_s6 = scalar_lea.hbm %s15230_s3, 512 }
 0x440   : > { %s12363_s2 = scalar_lea.hbm %s13703_s0, 256  ;;  %p12369_p0 = scmp.lt.u32.totalorder %s13703_s0, %s15230_s3 }
 0x441   : > { %p12364_p10 = scmp.ne.s32.totalorder %s13703_s0, %s12363_s2  ;;  %p12370_p1 = scmp.lt.u32.totalorder %s12368_s6, %s12363_s2 }
 0x442   : > { %p12372_p2 = scmp.lt.u32.totalorder %s12363_s2, %s13703_s0 }
 0x443   : > { %p12366_p12 = pnand %p12365_p11, %p12364_p10  ;;  %p12371_p4 = por %p12370_p1, %p12369_p0 }
 0x445   : > { %p12367_p13 = pneg %p12366_p12  ;;  %p12373_p3 = por %p12372_p2, %p12371_p4 }
 0x447   : > { %p12374_p6 = pnand %p12373_p3, %p12367_p13 }
 0x449   : > { %12377 = shalt.err (!%p12374_p6)
}
 0x44a   : > { %s12378_s18 = scalar_lea.vmem %s13711_s26, 256  ;;  %s12623_s4 = smov [#allocation2]  }
 0x44b   : > { %p12379_p7 = scmp.ne.s32.totalorder %s13711_s26, %s12378_s18  ;;  %s12383_s12 = sshll.u32 %s12623_s4, 4  ;;  %s12384_s12 = int_to_ptr.vmem [resolvable:$false] %s12383_s12 }
 0x44c   : > { %s12385_s9 = scalar_lea.vmem %s12384_s12, 512  ;;  %p12386_p10 = scmp.lt.s32.totalorder %s13711_s26, %s12384_s12 }
 0x44d   : > { %p12381_p8 = pnand %p12379_p7, %p12365_p11  ;;  %p12387_p12 = scmp.lt.s32.totalorder %s12385_s9, %s12378_s18 }
 0x44f   : > { %p12382_p5 = pneg %p12381_p8  ;;  %p12388_p0 = por %p12387_p12, %p12386_p10 }
 0x451   : > { %p12389_p1 = pnand %p12388_p0, %p12382_p5 }
 0x453   : > { %12392 = shalt.err (!%p12389_p1)
}
 0x454   : > { %10609 = dma.hbm_to_vmem [thread:$0]  (!%p13707_p9), %s13703_s0, 256, %s13711_s26, %s2621_s10  }
 0x455   : > { %p15232_p13 = scmp.ne.s32.totalorder %s15208_s23, 0 }
 0x456   : > { %s2643_s2 = sand.u32 (!%p15232_p13), 1, %s12491_s28   ;;  %p15233_p11 = scmp.ne.s32.totalorder (!%p15232_p13), %s15207_s22, 0 }
 0x457   : > { %2641 = sbr.rel (%p15232_p13) target bundleno = 14065 (0x36f1), region = 356  ;;  %s13737_s6 = sshll.u32 (!%p15232_p13), %s2643_s2, 4 }
 0x458   : > { %s2644_s4 = scalar_lea.sflag (!%p15232_p13), [#allocation3], %s2643_s2  ;;  %s2647_s12 = scalar_lea.vmem (!%p15232_p13), [#allocation2], %s13737_s6 }
 0x45e   : > { %12410 = dma.done.wait (%p15233_p11), %s2644_s4, 256  }
 0x45f   : > { %12412 = vsyncadd (%p15233_p11), %s2644_s4, 4294967040  ;;  %p15234_p5 = scmp.eq.s32.totalorder %s13081_s7, 0 }
 0x461   : > { %12414 = dma.done.wait (%p15234_p5), [#allocation5], 512   ;;  %p15235_p9 = pmov %p15234_p5 }
 0x462   : > { %p15236_p4 = pmov %p15234_p5 }
 0x463   : > { %12416 = vsyncadd (%p15235_p9), [#allocation5], 4294966784 }
 0x464   : > { %12418 = dma.done.wait (%p15236_p4), [#allocation8], 512   ;;  %p15237_p2 = pmov %p15236_p4 }
 0x466   : > { %12420 = vsyncadd (%p15237_p2), [#allocation8], 4294966784  ;;  %p15238_p3 = pmov %p15237_p2 }
 0x467   : > { %p15239_p6 = pmov %p15237_p2 }
 0x468   : > { %12422 = dma.done.wait (%p15238_p3), [#allocation11], 512  }
 0x469   : > { %12424 = vsyncadd (%p15239_p6), [#allocation11], 4294966784  ;;  %p15240_p7 = pmov %p15237_p2 }
 0x46a   : > { %p15241_p8 = pmov %p15237_p2 }
 0x46b   : > { %12426 = dma.done.wait (%p15240_p7), [#allocation14], 512  }
 0x46c   : > { %12428 = vsyncadd (%p15241_p8), [#allocation14], 4294966784  ;;  %p15242_p10 = pmov %p15237_p2 }
 0x46d   : > { %p15243_p12 = pmov %p15237_p2 }
 0x46e   : > { %12430 = dma.done.wait (%p15242_p10), [#allocation17], 512  }
 0x46f   : > { %12432 = vsyncadd (%p15243_p12), [#allocation17], 4294966784  ;;  %p15244_p0 = pmov %p15237_p2 }
 0x471   : > { %12434 = dma.done.wait (%p15244_p0), [#allocation20], 512   ;;  %p15245_p1 = pmov %p15244_p0 }
 0x472   : > { %p15246_p13 = pmov %p15244_p0 }
 0x473   : > { %12436 = vsyncadd (%p15245_p1), [#allocation20], 4294966784 }
 0x474   : > { %12438 = dma.done.wait (%p15246_p13), [#allocation23], 512   ;;  %p15247_p11 = pmov %p15244_p0 }
 0x475   : > { %p15248_p5 = pmov %p15244_p0 }
 0x476   : > { %12440 = vsyncadd (%p15247_p11), [#allocation23], 4294966784 }
 0x477   : > { %12442 = dma.done.wait (%p15248_p5), [#allocation26], 512   ;;  %p15249_p9 = pmov %p15244_p0 }
 0x478   : > { %p15250_p4 = pmov %p15244_p0 }
 0x479   : > { %12444 = vsyncadd (%p15249_p9), [#allocation26], 4294966784 }
 0x47a   : > { %12446 = dma.done.wait (%p15250_p4), [#allocation29], 512   ;;  %p15251_p2 = pmov %p15244_p0 }
 0x47b   : > { %p15252_p3 = pmov %p15244_p0 }
 0x47c   : > { %12448 = vsyncadd (%p15251_p2), [#allocation29], 4294966784 }
 0x47d   : > { %12450 = dma.done.wait (%p15252_p3), [#allocation32], 512   ;;  %p15253_p6 = pmov %p15244_p0 }
 0x47e   : > { %p15254_p7 = pmov %p15244_p0 }
 0x47f   : > { %12452 = vsyncadd (%p15253_p6), [#allocation32], 4294966784 }
 0x480   : > { %12454 = dma.done.wait (%p15254_p7), [#allocation35], 512   ;;  %p15255_p8 = pmov %p15244_p0 }
 0x481   : > { %p15256_p10 = pmov %p15244_p0 }
 0x482   : > { %12456 = vsyncadd (%p15255_p8), [#allocation35], 4294966784 }
 0x483   : > { %12458 = dma.done.wait (%p15256_p10), [#allocation38], 512   ;;  %p15257_p12 = pmov %p15244_p0 }
 0x485   : > { %12460 = vsyncadd (%p15257_p12), [#allocation38], 4294966784 }
 0x486   : > { %12462 = dma.done.wait (%p15244_p0), [#allocation41], 512   ;;  %p15258_p1 = pmov %p15244_p0 }
 0x487   : > { %p15259_p13 = pmov %p15244_p0 }
 0x488   : > { %12464 = vsyncadd (%p15258_p1), [#allocation41], 4294966784 }
 0x489   : > { %12466 = dma.done.wait (%p15259_p13), [#allocation44], 512   ;;  %p15260_p11 = pmov %p15244_p0 }
 0x48a   : > { %p15261_p5 = pmov %p15244_p0 }
 0x48b   : > { %12468 = vsyncadd (%p15260_p11), [#allocation44], 4294966784 }
 0x48c   : > { %12470 = dma.done.wait (%p15261_p5), [#allocation47], 512   ;;  %p15262_p9 = pmov %p15244_p0 }
 0x48d   : > { %p15263_p4 = pmov %p15244_p0 }
 0x48e   : > { %12472 = vsyncadd (%p15262_p9), [#allocation47], 4294966784 }
 0x48f   : > { %12474 = dma.done.wait (%p15263_p4), [#allocation50], 512   ;;  %p15264_p2 = pmov %p15244_p0 }
 0x490   : > { %p15265_p3 = pmov %p15244_p0 }
 0x491   : > { %12476 = vsyncadd (%p15264_p2), [#allocation50], 4294966784 }
 0x492   : > { %12478 = dma.done.wait (%p15265_p3), [#allocation53], 512   ;;  %p15266_p6 = pmov %p15244_p0 }
 0x493   : > { %p15267_p7 = pmov %p15244_p0 }
 0x494   : > { %12480 = vsyncadd (%p15266_p6), [#allocation53], 4294966784 }
 0x495   : > { %12482 = dma.done.wait (%p15267_p7), [#allocation56], 512   ;;  %p15268_p8 = pmov %p15244_p0 }
 0x496   : > { %s15269_s22 = sld [smem:[#allocation150_spill]]  ;;  %s15270_s23 = sld [smem:[#allocation149_spill]]  ;;  %v12624_v0 = vmov 0.0   ;;  %v12625_v1 = vmov 0   ;;  %v2982_v2 = vld [vmem:[%s2647_s12 + $0x8] sm:$0xff]  ;;  %v2981_v3 = vld [vmem:[%s2647_s12] sm:$0xff]  ;;  %v3085_v22 = vlaneseq }
 0x497   : > { %12484 = vsyncadd (%p15268_p8), [#allocation56], 4294966784  ;;  %3068 = vmatprep.mubr.f32.mxu0 %v12624_v0  ;;  %10845 = vset.pattern.permute.xlu0 %v12625_v1  ;;  %vm2997_vm0 = vcmask 64512   ;;  %s15271_s0 = sld [smem:[#allocation110_spill]]  ;;  %s15076_s11 = smov 127   ;;  %v3081_v53 = vld [vmem:[#allocation27] sm:$0xff] }
 0x498   : > { %3207 = vmatprep.mubr.f32.mxu1 %v12624_v0  ;;  %10866 = vset.pattern.permute.xlu1 %v12625_v1  ;;  %s15078_s10 = smov 1   ;;  %v13848_v24 = vand.u32 127, %v3085_v22  ;;  %vm3136_vm7 = vcmask 392192   ;;  %v3082_v54 = vld [vmem:[#allocation27 + $0x8] sm:$0xff]  ;;  %s15277_s18 = sld [smem:[#allocation112_spill]]  ;;  %vm4088_vm8 = vcmask 130048  }
 0x499   : > { %3004 = vmatprep.subr.mxu0 %v2982_v2  ;;  %s15278_s9 = sld [smem:[#allocation113_spill]]  ;;  %s15279_s2 = sld [smem:[#allocation115_spill]]  ;;  %vm4990_vm10 = vcmask 1048064   ;;  %vm5454_vm13 = vcmask 523264   ;;  %vm5635_vm14 = vcmask 1047808  }
 0x49a   : > { %3005 = vmatpush1.msra.mxu0 %v2981_v3  ;;  %vm3098_vm1 = vcmp.lt.s32.totalorder %v13848_v24, 1  ;;  %vm3088_vm2 = vcmp.ge.s32.totalorder %v13848_v24, 1  ;;  %v3087_v31 = vadd.s32 128, %v13848_v24  ;;  %vm3117_vm3 = vcmp.lt.s32.totalorder %v13848_v24, 127  ;;  %s15281_s4 = sld [smem:[#allocation126_spill]]  ;;  %s15282_s12 = sld [smem:[#allocation124_spill]] }
 0x49b   : > { %vm13862_vm4 = vmpackc.low %vm3088_vm2, %vm3088_vm2  ;;  %s15287_s3 = smov 1   ;;  %s15289_s5 = smov 127   ;;  %vm5013_vm11 = vcmp.lt.s32.totalorder %v13848_v24, 63  ;;  %vm5658_vm15 = vcmp.lt.s32.totalorder %v13848_v24, 31 }
 0x49c   : > { %v2983_v4 = vld [vmem:[%s15269_s22] sm:$0xff]  ;;  %v2986_v6 = vld [vmem:[%s15270_s23 + $0x8] sm:$0xff]  ;;  %vm3108_vm5 = vcmp.lt.s32.totalorder %v3087_v31, 255  ;;  %vm14178_vm9 = vmpackc.low %vm3117_vm3, %vm3117_vm3  ;;  %s15300_s8 = sld [smem:[#allocation135_spill]]  ;;  %p2976_p10 = scmp.lt.s32.totalorder %s13081_s7, 1 }
 0x49d   : > { %v2985_v5 = vld [vmem:[%s15270_s23] sm:$0xff]  ;;  %8904 = vmatmul.mubr.msk.f32.vlgmr.msra.gmra.mrb[0].mxu0 %vm2997_vm0, %v2983_v4  ;;  %v2984_v7 = vld [vmem:[%s15269_s22 + $0x8] sm:$0xff]  ;;  %s15272_s26 = smov %s15271_s0  ;;  %vm13876_vm6 = vmpackc.low %vm3108_vm5, %vm3108_vm5  ;;  %vm5780_vm5 = vcmask 261120  }
 0x49e   : > { %2989 = vperm.xlu0 %10845, %v2985_v5   ;;  %3074 = vmatprep.mubr.f32.mxu0 %v12624_v0  ;;  %v3083_v19 = vld [vmem:[%s15271_s0] sm:$0xff]  ;;  %v3084_v21 = vld [vmem:[%s15272_s26 + $0x8] sm:$0xff]  ;;  %s15283_s0 = sld [smem:[#allocation123_spill]]  ;;  %vm14271_vm12 = vmpackc.low %vm5013_vm11, %vm5013_vm11  ;;  %vm5936_vm11 = vcmask 785408   ;;  %s15357_s7 = smov (!%p2976_p10, %s13081_s7), 1 }
 0x49f   : > { %s15280_s6 = smov %s15279_s2  ;;  %vm10067_vm2 = vmpackc.low %vm5658_vm15, %vm5658_vm15 }
 0x4a1   : > { %8905 = vmatmul.mubr.msk.f32.gmra.mrb[2].mxu0 %vm2997_vm0, %v2984_v7 }
 0x4a2   : > { %2994 = vperm.xlu0 %10845, %v2986_v6   ;;  %3372 = vmatprep.mubr.f32.mxu0 %v12624_v0 }
 0x51d   : > { %v2990_v8 = vpop.permute.xlu0 %2989 }
 0x521   : > { %v2995_v11 = vpop.permute.xlu0 %2994 }
 0x570   : > { %v3070_v9 = vpop.f32.mrb[0].mxu0 }
 0x571   : > { %v3072_v10 = vpop.f32.mrb[1].mxu0  ;;  %v13830_v13 = vadd.f32 %v3070_v9, %v2990_v8 }
 0x572   : > { %v13838_v18 = vadd.f32 %v3072_v10, %v2990_v8 }
 0x574   : > { %v3076_v12 = vpop.f32.mrb[2].mxu0 }
 0x575   : > { %v13832_v14 = vadd.f32 %v3076_v12, %v2995_v11  ;;  %v3078_v15 = vpop.f32.mrb[3].mxu0 }
 0x576   : > { %v13834_v16 = vadd.f32 %v3078_v15, %v2995_v11 }
 0x577   : > { %v10856_v17 = vpack.i.bf16 %v13832_v14, %v13830_v13  ;;  %v9765_v47 = vpack.c.bf16 %v13832_v14, %v13830_v13 }
 0x578   : > { %v10851_v20 = vpack.i.bf16 %v13834_v16, %v13838_v18  ;;  %v9763_v44 = vpack.c.bf16 %v13834_v16, %v13838_v18 }
 0x579   : > { %10857 = vrot.lane.b32.xlu0 %v10856_v17, %s15076_s11  ;;  %10847 = vrot.lane.b32.xlu1 %v10856_v17, %s15078_s10 }
 0x57d   : > { %3128 = vperm.xlu0 %10845, %v3083_v19   ;;  %10852 = vrot.lane.b32.xlu1 %v10851_v20, %s15078_s10 }
 0x581   : > { %10862 = vrot.lane.b32.xlu1 %v10851_v20, %s15076_s11 }
 0x585   : > { %3133 = vperm.xlu1 %10866, %v3084_v21  }
 0x5eb   : > { %v10848_v23 = vpop.permute.xlu1 %10847  ;;  %v10858_v30 = vpop.permute.xlu0 %10857 }
 0x5ec   : > { %v10850_v26 = vunpack.i.h.bf16 %v10848_v23  ;;  %v10849_v27 = vunpack.i.l.bf16 %v10848_v23  ;;  %v10860_v40 = vunpack.i.h.bf16 %v10858_v30  ;;  %v10859_v41 = vunpack.i.l.bf16 %v10858_v30 }
 0x5ef   : > { %v10853_v25 = vpop.permute.xlu1 %10852 }
 0x5f0   : > { %v10855_v28 = vunpack.i.h.bf16 %v10853_v25  ;;  %v10854_v29 = vunpack.i.l.bf16 %v10853_v25 }
 0x5f2   : > { %v3099_v32 = vsel %vm3098_vm1, %v10849_v27, %v10854_v29  ;;  %v3100_v33 = vsel %vm3098_vm1, %v10850_v26, %v10855_v28  ;;  %v3101_v34 = vsel %vm3098_vm1, %v10854_v29, %v10849_v27  ;;  %v3102_v35 = vsel %vm3098_vm1, %v10855_v28, %v10850_v26 }
 0x5f3   : > { %v10863_v36 = vpop.permute.xlu1 %10862  ;;  %v9758_v37 = vpack.c.bf16 %v3100_v33, %v3099_v32  ;;  %v9760_v38 = vpack.c.bf16 %v3102_v35, %v3101_v34 }
 0x5f4   : > { %v10865_v42 = vunpack.i.h.bf16 %v10863_v36  ;;  %v10864_v43 = vunpack.i.l.bf16 %v10863_v36 }
 0x5f5   : > { %9759 = vmatprep.subr.bf16.mxu1 %v9758_v37 }
 0x5f6   : > { %v3121_v45 = vsel %vm3117_vm3, %v10865_v42, %v10860_v40  ;;  %v3120_v46 = vsel %vm3117_vm3, %v10864_v43, %v10859_v41  ;;  %9762 = vmatpush1.bf16.msk.msra.mxu1 %vm13862_vm4, %v9760_v38  ;;  %v3118_v50 = vsel %vm3117_vm3, %v10859_v41, %v10864_v43  ;;  %v3119_v51 = vsel %vm3117_vm3, %v10860_v40, %v10865_v42 }
 0x5f7   : > { %9764 = vmatprep.subr.bf16.mxu1 %v9763_v44  ;;  %v9767_v49 = vpack.c.bf16 %v3121_v45, %v3120_v46  ;;  %v9770_v52 = vpack.c.bf16 %v3119_v51, %v3118_v50  ;;  %v3259_v50 = vld [vmem:[%s15277_s18 + $0x8] sm:$0xff] }
 0x5fa   : > { %9766 = vmatpush1.bf16.msra.mxu1 %v9765_v47 }
 0x5fb   : > { %9769 = vmatprep.subr.msk.bf16.mxu1 %vm13876_vm6, %v9767_v49  ;;  %v3258_v49 = vld [vmem:[%s15277_s18] sm:$0xff] }
 0x5fc   : > { %v3129_v55 = vpop.permute.xlu0 %3128 }
 0x5fe   : > { %9771 = vmatpush1.bf16.msra.mxu1 %v9770_v52 }
 0x601   : > { %8910 = vmatmul.mubr.msk.f32.vlgmr.msra.gmra.mrb[0].mxu1 %vm3136_vm7, %v3081_v53 }
 0x602   : > { %3213 = vmatprep.mubr.f32.mxu1 %v12624_v0 }
 0x604   : > { %v3134_v60 = vpop.permute.xlu1 %3133 }
 0x605   : > { %8911 = vmatmul.mubr.msk.f32.gmra.mrb[2].mxu1 %vm3136_vm7, %v3082_v54 }
 0x606   : > { %3505 = vmatprep.mubr.f32.mxu1 %v12624_v0 }
 0x6d4   : > { %v3209_v56 = vpop.f32.mrb[0].mxu1 }
 0x6d5   : > { %v3210_v57 = vadd.f32 %v3209_v56, %v3129_v55  ;;  %v3211_v58 = vpop.f32.mrb[1].mxu1 }
 0x6d6   : > { %v3212_v59 = vadd.f32 %v3211_v58, %v3129_v55 }
 0x6d7   : > { %v3220_v61 = vmul.f32 %v3210_v57, %v3210_v57 }
 0x6d8   : > { %v3221_v62 = vmul.f32 %v3212_v59, %v3212_v59  ;;  %v3215_v63 = vpop.f32.mrb[2].mxu1 }
 0x6d9   : > { %v3224_v1 = vmul.f32 %v3220_v61, %v3210_v57  ;;  %v3216_v2 = vadd.f32 %v3215_v63, %v3134_v60  ;;  %v3217_v3 = vpop.f32.mrb[3].mxu1 }
 0x6da   : > { %v3225_v4 = vmul.f32 %v3221_v62, %v3212_v59  ;;  %v3218_v5 = vadd.f32 %v3217_v3, %v3134_v60 }
 0x6db   : > { %v3228_v6 = vmul.f32 0.044715, %v3224_v1  ;;  %v3222_v7 = vmul.f32 %v3216_v2, %v3216_v2 }
 0x6dc   : > { %v3229_v8 = vmul.f32 0.044715, %v3225_v4  ;;  %v3223_v9 = vmul.f32 %v3218_v5, %v3218_v5 }
 0x6dd   : > { %v3232_v10 = vadd.f32 %v3228_v6, %v3210_v57  ;;  %v3226_v11 = vmul.f32 %v3222_v7, %v3216_v2 }
 0x6de   : > { %v3233_v12 = vadd.f32 %v3229_v8, %v3212_v59  ;;  %v3227_v15 = vmul.f32 %v3223_v9, %v3218_v5 }
 0x6df   : > { %v3236_v17 = vmul.f32 0.7978846, %v3232_v10  ;;  %v3230_v19 = vmul.f32 0.044715, %v3226_v11 }
 0x6e0   : > { %v3237_v20 = vmul.f32 0.7978846, %v3233_v12  ;;  %v3231_v21 = vmul.f32 0.044715, %v3227_v15  ;;  %v3256_v12 = vld [vmem:[#allocation28] sm:$0xff]  ;;  %v3257_v15 = vld [vmem:[#allocation28 + $0x8] sm:$0xff] }
 0x6e1   : > { %11307 = vtanh.f32 %v3236_v17  ;;  %v3234_v22 = vadd.f32 %v3230_v19, %v3216_v2 }
 0x6e2   : > { %11309 = vtanh.f32 %v3237_v20  ;;  %v3235_v23 = vadd.f32 %v3231_v21, %v3218_v5 }
 0x6e3   : > { %v3238_v25 = vmul.f32 0.7978846, %v3234_v22 }
 0x6e4   : > { %v3239_v26 = vmul.f32 0.7978846, %v3235_v23 }
 0x6e5   : > { %11311 = vtanh.f32 %v3238_v25 }
 0x6e6   : > { %11313 = vtanh.f32 %v3239_v26 }
 0x6eb   : > { %v11308_v27 = vpop.eup %11307 }
 0x6ec   : > { %v11310_v28 = vpop.eup %11309  ;;  %v3244_v29 = vadd.f32 1.0, %v11308_v27 }
 0x6ed   : > { %v3245_v30 = vadd.f32 1.0, %v11310_v28 }
 0x6ee   : > { %v3248_v34 = vmul.f32 0.5, %v3244_v29 }
 0x6ef   : > { %v11312_v31 = vpop.eup %11311  ;;  %v3249_v36 = vmul.f32 0.5, %v3245_v30 }
 0x6f0   : > { %v11314_v32 = vpop.eup %11313  ;;  %v3246_v33 = vadd.f32 1.0, %v11312_v31  ;;  %v3252_v40 = vmul.f32 %v3248_v34, %v3210_v57 }
 0x6f1   : > { %v3247_v35 = vadd.f32 1.0, %v11314_v32  ;;  %v3253_v42 = vmul.f32 %v3249_v36, %v3212_v59 }
 0x6f2   : > { %v3250_v37 = vmul.f32 0.5, %v3246_v33 }
 0x6f3   : > { %v3251_v38 = vmul.f32 0.5, %v3247_v35 }
 0x6f4   : > { %v3254_v41 = vmul.f32 %v3250_v37, %v3216_v2 }
 0x6f5   : > { %v3255_v43 = vmul.f32 %v3251_v38, %v3218_v5 }
 0x6f6   : > { %v10867_v44 = vpack.i.bf16 %v3254_v41, %v3252_v40  ;;  %v9779_v45 = vpack.c.bf16 %v3254_v41, %v3252_v40 }
 0x6f7   : > { %v10872_v46 = vpack.i.bf16 %v3255_v43, %v3253_v42  ;;  %v9777_v47 = vpack.c.bf16 %v3255_v43, %v3253_v42 }
 0x6f8   : > { %10868 = vrot.lane.b32.xlu0 %v10867_v44, %s15078_s10 }
 0x6f9   : > { %10873 = vrot.lane.b32.xlu1 %v10872_v46, %s15078_s10 }
 0x6fc   : > { %10878 = vrot.lane.b32.xlu0 %v10867_v44, %s15076_s11 }
 0x6fd   : > { %10883 = vrot.lane.b32.xlu1 %v10872_v46, %s15076_s11 }
 0x700   : > { %3294 = vperm.xlu0 %10845, %v3258_v49  }
 0x701   : > { %3299 = vperm.xlu1 %10866, %v3259_v50  }
 0x76a   : > { %v10869_v51 = vpop.permute.xlu0 %10868 }
 0x76b   : > { %v10871_v52 = vunpack.i.h.bf16 %v10869_v51  ;;  %v10870_v53 = vunpack.i.l.bf16 %v10869_v51  ;;  %v10874_v54 = vpop.permute.xlu1 %10873 }
 0x76c   : > { %v10876_v55 = vunpack.i.h.bf16 %v10874_v54  ;;  %v10875_v56 = vunpack.i.l.bf16 %v10874_v54 }
 0x76e   : > { %v3270_v57 = vsel %vm3098_vm1, %v10875_v56, %v10870_v53  ;;  %v3271_v58 = vsel %vm3098_vm1, %v10876_v55, %v10871_v52  ;;  %v10879_v59 = vpop.permute.xlu0 %10878  ;;  %v3268_v60 = vsel %vm3098_vm1, %v10870_v53, %v10875_v56  ;;  %v3269_v61 = vsel %vm3098_vm1, %v10871_v52, %v10876_v55 }
 0x76f   : > { %v9774_v62 = vpack.c.bf16 %v3271_v58, %v3270_v57  ;;  %v10881_v63 = vunpack.i.h.bf16 %v10879_v59  ;;  %v10880_v1 = vunpack.i.l.bf16 %v10879_v59  ;;  %v10884_v2 = vpop.permute.xlu1 %10883  ;;  %v9772_v3 = vpack.c.bf16 %v3269_v61, %v3268_v60  ;;  %v3389_v61 = vld [vmem:[#allocation30] sm:$0xff] }
 0x770   : > { %v10886_v4 = vunpack.i.h.bf16 %v10884_v2  ;;  %v10885_v5 = vunpack.i.l.bf16 %v10884_v2 }
 0x771   : > { %9773 = vmatprep.subr.bf16.mxu0 %v9772_v3 }
 0x772   : > { %v3286_v6 = vsel %vm3117_vm3, %v10885_v5, %v10880_v1  ;;  %v3287_v7 = vsel %vm3117_vm3, %v10886_v4, %v10881_v63  ;;  %9776 = vmatpush1.bf16.msk.msra.mxu0 %vm13862_vm4, %v9774_v62  ;;  %v3284_v8 = vsel %vm3117_vm3, %v10880_v1, %v10885_v5  ;;  %v3285_v9 = vsel %vm3117_vm3, %v10881_v63, %v10886_v4  ;;  %v3390_v62 = vld [vmem:[#allocation30 + $0x8] sm:$0xff] }
 0x773   : > { %9778 = vmatprep.subr.bf16.mxu0 %v9777_v47  ;;  %v9781_v10 = vpack.c.bf16 %v3287_v7, %v3286_v6  ;;  %v9784_v11 = vpack.c.bf16 %v3285_v9, %v3284_v8 }
 0x776   : > { %9780 = vmatpush1.bf16.msra.mxu0 %v9779_v45 }
 0x777   : > { %9783 = vmatprep.subr.msk.bf16.mxu0 %vm13876_vm6, %v9781_v10 }
 0x77a   : > { %9785 = vmatpush1.bf16.msra.mxu0 %v9784_v11 }
 0x77d   : > { %8916 = vmatmul.mubr.msk.f32.vlgmr.msra.gmra.mrb[4].mxu0 %vm3136_vm7, %v3256_v12 }
 0x77e   : > { %3378 = vmatprep.mubr.f32.mxu0 %v12624_v0 }
 0x77f   : > { %v3295_v20 = vpop.permute.xlu0 %3294 }
 0x780   : > { %v3300_v22 = vpop.permute.xlu1 %3299 }
 0x781   : > { %8917 = vmatmul.mubr.msk.f32.gmra.mrb[6].mxu0 %vm3136_vm7, %v3257_v15 }
 0x782   : > { %3670 = vmatprep.mubr.f32.mxu0 %v12624_v0 }
 0x850   : > { %v3374_v17 = vpop.f32.mrb[4].mxu0 }
 0x851   : > { %v3376_v19 = vpop.f32.mrb[5].mxu0  ;;  %v3375_v21 = vadd.f32 %v3374_v17, %v3295_v20 }
 0x852   : > { %v3377_v23 = vadd.f32 %v3376_v19, %v3295_v20 }
 0x853   : > { %v13921_v29 = vadd.f32 %v3375_v21, %v13830_v13  ;;  %v3391_v13 = vld [vmem:[%s15278_s9] sm:$0xff] }
 0x854   : > { %v3380_v25 = vpop.f32.mrb[6].mxu0  ;;  %v13927_v31 = vadd.f32 %v3377_v23, %v13838_v18 }
 0x855   : > { %v3381_v26 = vadd.f32 %v3380_v25, %v3300_v22  ;;  %v3382_v27 = vpop.f32.mrb[7].mxu0 }
 0x856   : > { %v3383_v28 = vadd.f32 %v3382_v27, %v3300_v22 }
 0x857   : > { %v13924_v30 = vadd.f32 %v3381_v26, %v13832_v14  ;;  %v3392_v14 = vld [vmem:[%s15278_s9 + $0x8] sm:$0xff]  ;;  %s15301_s9 = sld [smem:[#allocation119_spill]] }
 0x858   : > { %v13930_v32 = vadd.f32 %v3383_v28, %v13834_v16 }
 0x859   : > { %v10887_v33 = vpack.i.bf16 %v13924_v30, %v13921_v29  ;;  %v9793_v56 = vpack.c.bf16 %v13924_v30, %v13921_v29 }
 0x85a   : > { %v10892_v34 = vpack.i.bf16 %v13930_v32, %v13927_v31  ;;  %v9791_v53 = vpack.c.bf16 %v13930_v32, %v13927_v31 }
 0x85b   : > { %10888 = vrot.lane.b32.xlu0 %v10887_v33, %s15078_s10 }
 0x85c   : > { %10893 = vrot.lane.b32.xlu1 %v10892_v34, %s15078_s10 }
 0x85f   : > { %10898 = vrot.lane.b32.xlu0 %v10887_v33, %s15076_s11 }
 0x860   : > { %10903 = vrot.lane.b32.xlu1 %v10892_v34, %s15076_s11 }
 0x863   : > { %3427 = vperm.xlu0 %10845, %v3391_v13  }
 0x864   : > { %3432 = vperm.xlu1 %10866, %v3392_v14  }
 0x8cd   : > { %v10889_v16 = vpop.permute.xlu0 %10888 }
 0x8ce   : > { %v10891_v18 = vunpack.i.h.bf16 %v10889_v16  ;;  %v10890_v35 = vunpack.i.l.bf16 %v10889_v16  ;;  %v10894_v36 = vpop.permute.xlu1 %10893 }
 0x8cf   : > { %v10896_v37 = vunpack.i.h.bf16 %v10894_v36  ;;  %v10895_v38 = vunpack.i.l.bf16 %v10894_v36 }
 0x8d1   : > { %v3403_v40 = vsel %vm3098_vm1, %v10895_v38, %v10890_v35  ;;  %v3404_v41 = vsel %vm3098_vm1, %v10896_v37, %v10891_v18  ;;  %v10899_v42 = vpop.permute.xlu0 %10898  ;;  %v3401_v43 = vsel %vm3098_vm1, %v10890_v35, %v10895_v38  ;;  %v3402_v44 = vsel %vm3098_vm1, %v10891_v18, %v10896_v37 }
 0x8d2   : > { %v9788_v45 = vpack.c.bf16 %v3404_v41, %v3403_v40  ;;  %v10901_v46 = vunpack.i.h.bf16 %v10899_v42  ;;  %v10900_v47 = vunpack.i.l.bf16 %v10899_v42  ;;  %v10904_v49 = vpop.permute.xlu1 %10903  ;;  %v9786_v50 = vpack.c.bf16 %v3402_v44, %v3401_v43 }
 0x8d3   : > { %v10906_v51 = vunpack.i.h.bf16 %v10904_v49  ;;  %v10905_v52 = vunpack.i.l.bf16 %v10904_v49 }
 0x8d4   : > { %9787 = vmatprep.subr.bf16.mxu1 %v9786_v50 }
 0x8d5   : > { %v3419_v54 = vsel %vm3117_vm3, %v10905_v52, %v10900_v47  ;;  %v3420_v55 = vsel %vm3117_vm3, %v10906_v51, %v10901_v46  ;;  %9790 = vmatpush1.bf16.msk.msra.mxu1 %vm13862_vm4, %v9788_v45  ;;  %v3417_v57 = vsel %vm3117_vm3, %v10900_v47, %v10905_v52  ;;  %v3418_v58 = vsel %vm3117_vm3, %v10901_v46, %v10906_v51 }
 0x8d6   : > { %9792 = vmatprep.subr.bf16.mxu1 %v9791_v53  ;;  %v9795_v59 = vpack.c.bf16 %v3420_v55, %v3419_v54  ;;  %v9798_v60 = vpack.c.bf16 %v3418_v58, %v3417_v57  ;;  %v3556_v57 = vld [vmem:[%s15279_s2] sm:$0xff]  ;;  %v3557_v58 = vld [vmem:[%s15280_s6 + $0x8] sm:$0xff]  ;;  %s15285_s2 = sld [smem:[#allocation127_spill]] }
 0x8d9   : > { %9794 = vmatpush1.bf16.msra.mxu1 %v9793_v56 }
 0x8da   : > { %9797 = vmatprep.subr.msk.bf16.mxu1 %vm13876_vm6, %v9795_v59 }
 0x8dd   : > { %9799 = vmatpush1.bf16.msra.mxu1 %v9798_v60 }
 0x8e0   : > { %8922 = vmatmul.mubr.msk.f32.vlgmr.msra.gmra.mrb[4].mxu1 %vm3136_vm7, %v3389_v61 }
 0x8e1   : > { %3511 = vmatprep.mubr.f32.mxu1 %v12624_v0 }
 0x8e2   : > { %v3428_v63 = vpop.permute.xlu0 %3427 }
 0x8e3   : > { %v3433_v6 = vpop.permute.xlu1 %3432 }
 0x8e4   : > { %8923 = vmatmul.mubr.msk.f32.gmra.mrb[6].mxu1 %vm3136_vm7, %v3390_v62 }
 0x8e5   : > { %3803 = vmatprep.mubr.f32.mxu1 %v12624_v0 }
 0x9b3   : > { %v3507_v1 = vpop.f32.mrb[4].mxu1 }
 0x9b4   : > { %v3508_v2 = vadd.f32 %v3507_v1, %v3428_v63  ;;  %v3509_v3 = vpop.f32.mrb[5].mxu1 }
 0x9b5   : > { %v3510_v4 = vadd.f32 %v3509_v3, %v3428_v63 }
 0x9b6   : > { %v3518_v5 = vmul.f32 %v3508_v2, %v3508_v2 }
 0x9b7   : > { %v3519_v7 = vmul.f32 %v3510_v4, %v3510_v4  ;;  %v3513_v8 = vpop.f32.mrb[6].mxu1 }
 0x9b8   : > { %v3522_v9 = vmul.f32 %v3518_v5, %v3508_v2  ;;  %v3514_v10 = vadd.f32 %v3513_v8, %v3433_v6  ;;  %v3515_v11 = vpop.f32.mrb[7].mxu1 }
 0x9b9   : > { %v3523_v12 = vmul.f32 %v3519_v7, %v3510_v4  ;;  %v3516_v15 = vadd.f32 %v3515_v11, %v3433_v6 }
 0x9ba   : > { %v3526_v17 = vmul.f32 0.044715, %v3522_v9  ;;  %v3520_v19 = vmul.f32 %v3514_v10, %v3514_v10 }
 0x9bb   : > { %v3527_v20 = vmul.f32 0.044715, %v3523_v12  ;;  %v3521_v21 = vmul.f32 %v3516_v15, %v3516_v15 }
 0x9bc   : > { %v3530_v22 = vadd.f32 %v3526_v17, %v3508_v2  ;;  %v3524_v23 = vmul.f32 %v3520_v19, %v3514_v10 }
 0x9bd   : > { %v3531_v25 = vadd.f32 %v3527_v20, %v3510_v4  ;;  %v3525_v26 = vmul.f32 %v3521_v21, %v3516_v15 }
 0x9be   : > { %v3534_v27 = vmul.f32 0.7978846, %v3530_v22  ;;  %v3528_v28 = vmul.f32 0.044715, %v3524_v23 }
 0x9bf   : > { %v3535_v33 = vmul.f32 0.7978846, %v3531_v25  ;;  %v3529_v34 = vmul.f32 0.044715, %v3525_v26  ;;  %v3554_v25 = vld [vmem:[#allocation31] sm:$0xff]  ;;  %v3555_v26 = vld [vmem:[#allocation31 + $0x8] sm:$0xff] }
 0x9c0   : > { %11315 = vtanh.f32 %v3534_v27  ;;  %v3532_v13 = vadd.f32 %v3528_v28, %v3514_v10 }
 0x9c1   : > { %11317 = vtanh.f32 %v3535_v33  ;;  %v3533_v14 = vadd.f32 %v3529_v34, %v3516_v15 }
 0x9c2   : > { %v3536_v16 = vmul.f32 0.7978846, %v3532_v13 }
 0x9c3   : > { %v3537_v18 = vmul.f32 0.7978846, %v3533_v14 }
 0x9c4   : > { %11319 = vtanh.f32 %v3536_v16 }
 0x9c5   : > { %11321 = vtanh.f32 %v3537_v18 }
 0x9ca   : > { %v11316_v35 = vpop.eup %11315 }
 0x9cb   : > { %v11318_v36 = vpop.eup %11317  ;;  %v3542_v37 = vadd.f32 1.0, %v11316_v35 }
 0x9cc   : > { %v3543_v38 = vadd.f32 1.0, %v11318_v36 }
 0x9cd   : > { %v3546_v43 = vmul.f32 0.5, %v3542_v37 }
 0x9ce   : > { %v11320_v40 = vpop.eup %11319  ;;  %v3547_v45 = vmul.f32 0.5, %v3543_v38 }
 0x9cf   : > { %v11322_v41 = vpop.eup %11321  ;;  %v3544_v42 = vadd.f32 1.0, %v11320_v40  ;;  %v3550_v49 = vmul.f32 %v3546_v43, %v3508_v2 }
 0x9d0   : > { %v3545_v44 = vadd.f32 1.0, %v11322_v41  ;;  %v3551_v51 = vmul.f32 %v3547_v45, %v3510_v4 }
 0x9d1   : > { %v3548_v46 = vmul.f32 0.5, %v3544_v42 }
 0x9d2   : > { %v3549_v47 = vmul.f32 0.5, %v3545_v44 }
 0x9d3   : > { %v3552_v50 = vmul.f32 %v3548_v46, %v3514_v10 }
 0x9d4   : > { %v3553_v52 = vmul.f32 %v3549_v47, %v3516_v15 }
 0x9d5   : > { %v10907_v53 = vpack.i.bf16 %v3552_v50, %v3550_v49  ;;  %v9807_v54 = vpack.c.bf16 %v3552_v50, %v3550_v49 }
 0x9d6   : > { %v10912_v55 = vpack.i.bf16 %v3553_v52, %v3551_v51  ;;  %v9805_v56 = vpack.c.bf16 %v3553_v52, %v3551_v51 }
 0x9d7   : > { %10908 = vrot.lane.b32.xlu0 %v10907_v53, %s15078_s10 }
 0x9d8   : > { %10913 = vrot.lane.b32.xlu1 %v10912_v55, %s15078_s10 }
 0x9db   : > { %10918 = vrot.lane.b32.xlu0 %v10907_v53, %s15076_s11 }
 0x9dc   : > { %10923 = vrot.lane.b32.xlu1 %v10912_v55, %s15076_s11 }
 0x9df   : > { %3592 = vperm.xlu0 %10845, %v3556_v57  }
 0x9e0   : > { %3597 = vperm.xlu1 %10866, %v3557_v58  }
 0xa49   : > { %v10909_v59 = vpop.permute.xlu0 %10908 }
 0xa4a   : > { %v10911_v60 = vunpack.i.h.bf16 %v10909_v59  ;;  %v10910_v61 = vunpack.i.l.bf16 %v10909_v59  ;;  %v10914_v62 = vpop.permute.xlu1 %10913 }
 0xa4b   : > { %v10916_v63 = vunpack.i.h.bf16 %v10914_v62  ;;  %v10915_v1 = vunpack.i.l.bf16 %v10914_v62 }
 0xa4d   : > { %v3568_v2 = vsel %vm3098_vm1, %v10915_v1, %v10910_v61  ;;  %v3569_v3 = vsel %vm3098_vm1, %v10916_v63, %v10911_v60  ;;  %v10919_v4 = vpop.permute.xlu0 %10918  ;;  %v3566_v5 = vsel %vm3098_vm1, %v10910_v61, %v10915_v1  ;;  %v3567_v6 = vsel %vm3098_vm1, %v10911_v60, %v10916_v63 }
 0xa4e   : > { %v9802_v7 = vpack.c.bf16 %v3569_v3, %v3568_v2  ;;  %v10921_v8 = vunpack.i.h.bf16 %v10919_v4  ;;  %v10920_v9 = vunpack.i.l.bf16 %v10919_v4  ;;  %v10924_v10 = vpop.permute.xlu1 %10923  ;;  %v9800_v11 = vpack.c.bf16 %v3567_v6, %v3566_v5  ;;  %v3687_v6 = vld [vmem:[#allocation40] sm:$0xff] }
 0xa4f   : > { %v10926_v12 = vunpack.i.h.bf16 %v10924_v10  ;;  %v10925_v15 = vunpack.i.l.bf16 %v10924_v10 }
 0xa50   : > { %9801 = vmatprep.subr.bf16.mxu0 %v9800_v11 }
 0xa51   : > { %v3584_v17 = vsel %vm3117_vm3, %v10925_v15, %v10920_v9  ;;  %v3585_v19 = vsel %vm3117_vm3, %v10926_v12, %v10921_v8  ;;  %9804 = vmatpush1.bf16.msk.msra.mxu0 %vm13862_vm4, %v9802_v7  ;;  %v3582_v20 = vsel %vm3117_vm3, %v10920_v9, %v10925_v15  ;;  %v3583_v21 = vsel %vm3117_vm3, %v10921_v8, %v10926_v12  ;;  %v3688_v7 = vld [vmem:[#allocation40 + $0x8] sm:$0xff] }
 0xa52   : > { %9806 = vmatprep.subr.bf16.mxu0 %v9805_v56  ;;  %v9809_v22 = vpack.c.bf16 %v3585_v19, %v3584_v17  ;;  %v9812_v23 = vpack.c.bf16 %v3583_v21, %v3582_v20 }
 0xa55   : > { %9808 = vmatpush1.bf16.msra.mxu0 %v9807_v54 }
 0xa56   : > { %9811 = vmatprep.subr.msk.bf16.mxu0 %vm13876_vm6, %v9809_v22 }
 0xa59   : > { %9813 = vmatpush1.bf16.msra.mxu0 %v9812_v23 }
 0xa5c   : > { %8928 = vmatmul.mubr.msk.f32.vlgmr.msra.gmra.mrb[8].mxu0 %vm3136_vm7, %v3554_v25 }
 0xa5d   : > { %3676 = vmatprep.mubr.f32.mxu0 %v12624_v0 }
 0xa5e   : > { %v3593_v33 = vpop.permute.xlu0 %3592 }
 0xa5f   : > { %v3598_v13 = vpop.permute.xlu1 %3597 }
 0xa60   : > { %8929 = vmatmul.mubr.msk.f32.gmra.mrb[10].mxu0 %vm3136_vm7, %v3555_v26 }
 0xa61   : > { %3932 = vmatprep.mubr.f32.mxu0 %v12624_v0 }
 0xb2f   : > { %v3672_v27 = vpop.f32.mrb[8].mxu0 }
 0xb30   : > { %v3674_v28 = vpop.f32.mrb[9].mxu0  ;;  %v3673_v34 = vadd.f32 %v3672_v27, %v3593_v33  ;;  %v3951_v27 = vld [vmem:[%s15282_s12] sm:$0xff] }
 0xb31   : > { %v3675_v14 = vadd.f32 %v3674_v28, %v3593_v33  ;;  %v3952_v28 = vld [vmem:[%s15282_s12 + $0x8] sm:$0xff]  ;;  %v3818_v33 = vld [vmem:[%s15283_s0] sm:$0xff] }
 0xb32   : > { %v14001_v37 = vadd.f32 %v3673_v34, %v13921_v29  ;;  %v3689_v29 = vld [vmem:[%s15281_s4] sm:$0xff] }
 0xb33   : > { %v3678_v16 = vpop.f32.mrb[10].mxu0  ;;  %v14007_v40 = vadd.f32 %v3675_v14, %v13927_v31 }
 0xb34   : > { %v3679_v18 = vadd.f32 %v3678_v16, %v3598_v13  ;;  %v3680_v35 = vpop.f32.mrb[11].mxu0 }
 0xb35   : > { %v3681_v36 = vadd.f32 %v3680_v35, %v3598_v13  ;;  %v4076_v13 = vld [vmem:[%s15285_s2] sm:$0xff] }
 0xb36   : > { %v14004_v38 = vadd.f32 %v3679_v18, %v13924_v30  ;;  %v3690_v30 = vld [vmem:[%s15281_s4 + $0x8] sm:$0xff]  ;;  %s15288_s4 = sld [smem:[#allocation117_spill]] }
 0xb37   : > { %v14010_v41 = vadd.f32 %v3681_v36, %v13930_v32 }
 0xb38   : > { %v10927_v42 = vpack.i.bf16 %v14004_v38, %v14001_v37  ;;  %v9821_v1 = vpack.c.bf16 %v14004_v38, %v14001_v37 }
 0xb39   : > { %v10932_v43 = vpack.i.bf16 %v14010_v41, %v14007_v40  ;;  %v9819_v61 = vpack.c.bf16 %v14010_v41, %v14007_v40 }
 0xb3a   : > { %10928 = vrot.lane.b32.xlu0 %v10927_v42, %s15078_s10 }
 0xb3b   : > { %10933 = vrot.lane.b32.xlu1 %v10932_v43, %s15078_s10  ;;  %s15286_s10 = smov %s15285_s2  ;;  %s15292_s2 = sld [smem:[#allocation133_spill]] }
 0xb3c   : > { %v4077_v14 = vld [vmem:[%s15286_s10 + $0x8] sm:$0xff]  ;;  %v4285_v16 = vld [vmem:[%s15288_s4] sm:$0xff]  ;;  %s15313_s10 = sld [smem:[#allocation121_spill]] }
 0xb3d   : > { %v4286_v18 = vld [vmem:[%s15288_s4 + $0x8] sm:$0xff] }
 0xb3e   : > { %10938 = vrot.lane.b32.xlu0 %v10927_v42, %s15076_s11 }
 0xb3f   : > { %10943 = vrot.lane.b32.xlu1 %v10932_v43, %s15076_s11  ;;  %s15284_s11 = smov %s15283_s0  ;;  %s15290_s0 = sld [smem:[#allocation80_spill]] }
 0xb40   : > { %v3819_v34 = vld [vmem:[%s15284_s11 + $0x8] sm:$0xff] }
 0xb42   : > { %3725 = vperm.xlu0 %10845, %v3689_v29  }
 0xb43   : > { %3730 = vperm.xlu1 %10866, %v3690_v30  }
 0xb45   : > { %s15291_s4 = smov %s15290_s0 }
 0xbac   : > { %v10929_v31 = vpop.permute.xlu0 %10928 }
 0xbad   : > { %v10931_v32 = vunpack.i.h.bf16 %v10929_v31  ;;  %v10930_v44 = vunpack.i.l.bf16 %v10929_v31  ;;  %v10934_v45 = vpop.permute.xlu1 %10933 }
 0xbae   : > { %v10936_v46 = vunpack.i.h.bf16 %v10934_v45  ;;  %v10935_v47 = vunpack.i.l.bf16 %v10934_v45 }
 0xbb0   : > { %v3701_v49 = vsel %vm3098_vm1, %v10935_v47, %v10930_v44  ;;  %v3702_v50 = vsel %vm3098_vm1, %v10936_v46, %v10931_v32  ;;  %v10939_v51 = vpop.permute.xlu0 %10938  ;;  %v3699_v52 = vsel %vm3098_vm1, %v10930_v44, %v10935_v47  ;;  %v3700_v53 = vsel %vm3098_vm1, %v10931_v32, %v10936_v46 }
 0xbb1   : > { %v9816_v54 = vpack.c.bf16 %v3702_v50, %v3701_v49  ;;  %v10941_v55 = vunpack.i.h.bf16 %v10939_v51  ;;  %v10940_v56 = vunpack.i.l.bf16 %v10939_v51  ;;  %v10944_v57 = vpop.permute.xlu1 %10943  ;;  %v9814_v58 = vpack.c.bf16 %v3700_v53, %v3699_v52 }
 0xbb2   : > { %v10946_v59 = vunpack.i.h.bf16 %v10944_v57  ;;  %v10945_v60 = vunpack.i.l.bf16 %v10944_v57 }
 0xbb3   : > { %9815 = vmatprep.subr.bf16.mxu1 %v9814_v58 }
 0xbb4   : > { %v3717_v62 = vsel %vm3117_vm3, %v10945_v60, %v10940_v56  ;;  %v3718_v63 = vsel %vm3117_vm3, %v10946_v59, %v10941_v55  ;;  %9818 = vmatpush1.bf16.msk.msra.mxu1 %vm13862_vm4, %v9816_v54  ;;  %v3715_v2 = vsel %vm3117_vm3, %v10940_v56, %v10945_v60  ;;  %v3716_v3 = vsel %vm3117_vm3, %v10941_v55, %v10946_v59 }
 0xbb5   : > { %9820 = vmatprep.subr.bf16.mxu1 %v9819_v61  ;;  %v9823_v4 = vpack.c.bf16 %v3718_v63, %v3717_v62  ;;  %v9826_v5 = vpack.c.bf16 %v3716_v3, %v3715_v2  ;;  %v3816_v61 = vld [vmem:[#allocation37] sm:$0xff]  ;;  %v3949_v62 = vld [vmem:[#allocation39] sm:$0xff]  ;;  %v3817_v63 = vld [vmem:[#allocation37 + $0x8] sm:$0xff] }
 0xbb8   : > { %9822 = vmatpush1.bf16.msra.mxu1 %v9821_v1  ;;  %v3950_v1 = vld [vmem:[#allocation39 + $0x8] sm:$0xff] }
 0xbb9   : > { %9825 = vmatprep.subr.msk.bf16.mxu1 %vm13876_vm6, %v9823_v4 }
 0xbbc   : > { %9827 = vmatpush1.bf16.msra.mxu1 %v9826_v5 }
 0xbbf   : > { %8934 = vmatmul.mubr.msk.f32.vlgmr.msra.gmra.mrb[8].mxu1 %vm3136_vm7, %v3687_v6 }
 0xbc0   : > { %3809 = vmatprep.mubr.f32.mxu1 %v12624_v0 }
 0xbc1   : > { %v3726_v10 = vpop.permute.xlu0 %3725 }
 0xbc2   : > { %v3731_v11 = vpop.permute.xlu1 %3730 }
 0xbc3   : > { %8935 = vmatmul.mubr.msk.f32.gmra.mrb[10].mxu1 %vm3136_vm7, %v3688_v7 }
 0xbc4   : > { %4033 = vmatprep.mubr.f32.mxu1 %v12624_v0 }
 0xc92   : > { %v3805_v8 = vpop.f32.mrb[8].mxu1 }
 0xc93   : > { %v3807_v9 = vpop.f32.mrb[9].mxu1  ;;  %v3806_v15 = vadd.f32 %v3805_v8, %v3726_v10 }
 0xc94   : > { %v3808_v20 = vadd.f32 %v3807_v9, %v3726_v10 }
 0xc96   : > { %v3811_v12 = vpop.f32.mrb[10].mxu1 }
 0xc97   : > { %v3812_v17 = vadd.f32 %v3811_v12, %v3731_v11  ;;  %v3813_v19 = vpop.f32.mrb[11].mxu1 }
 0xc98   : > { %v3814_v21 = vadd.f32 %v3813_v19, %v3731_v11 }
 0xc99   : > { %v9835_v22 = vpack.c.bf16 %v3812_v17, %v3806_v15  ;;  %v10947_v23 = vpack.i.bf16 %v3812_v17, %v3806_v15 }
 0xc9a   : > { %v10952_v25 = vpack.i.bf16 %v3814_v21, %v3808_v20  ;;  %v9833_v26 = vpack.c.bf16 %v3814_v21, %v3808_v20 }
 0xc9b   : > { %10948 = vrot.lane.b32.xlu0 %v10947_v23, %s15287_s3 }
 0xc9c   : > { %10953 = vrot.lane.b32.xlu1 %v10952_v25, %s15287_s3 }
 0xc9f   : > { %10958 = vrot.lane.b32.xlu0 %v10947_v23, %s15289_s5 }
 0xca0   : > { %10963 = vrot.lane.b32.xlu1 %v10952_v25, %s15289_s5 }
 0xca3   : > { %3955 = vperm.xlu0 %10845, %v3951_v27  }
 0xca4   : > { %3960 = vperm.xlu1 %10866, %v3952_v28  }
 0xca7   : > { %3854 = vperm.xlu0 %10845, %v3818_v33  }
 0xca8   : > { %3859 = vperm.xlu1 %10866, %v3819_v34  }
 0xcab   : > { %4080 = vperm.xlu0 %10845, %v4076_v13  }
 0xcac   : > { %4085 = vperm.xlu1 %10866, %v4077_v14  }
 0xcaf   : > { %4289 = vperm.xlu0 %10845, %v4285_v16  }
 0xcb0   : > { %4294 = vperm.xlu1 %10866, %v4286_v18  }
 0xd0d   : > { %v10949_v35 = vpop.permute.xlu0 %10948 }
 0xd0e   : > { %v10951_v36 = vunpack.i.h.bf16 %v10949_v35  ;;  %v10950_v42 = vunpack.i.l.bf16 %v10949_v35  ;;  %v10954_v43 = vpop.permute.xlu1 %10953 }
 0xd0f   : > { %v10956_v29 = vunpack.i.h.bf16 %v10954_v43  ;;  %v10955_v30 = vunpack.i.l.bf16 %v10954_v43 }
 0xd11   : > { %v3830_v31 = vsel %vm3098_vm1, %v10955_v30, %v10950_v42  ;;  %v3831_v32 = vsel %vm3098_vm1, %v10956_v29, %v10951_v36  ;;  %v10959_v44 = vpop.permute.xlu0 %10958  ;;  %v3828_v45 = vsel %vm3098_vm1, %v10950_v42, %v10955_v30  ;;  %v3829_v46 = vsel %vm3098_vm1, %v10951_v36, %v10956_v29 }
 0xd12   : > { %v9830_v47 = vpack.c.bf16 %v3831_v32, %v3830_v31  ;;  %v10961_v49 = vunpack.i.h.bf16 %v10959_v44  ;;  %v10960_v50 = vunpack.i.l.bf16 %v10959_v44  ;;  %v10964_v51 = vpop.permute.xlu1 %10963  ;;  %v9828_v52 = vpack.c.bf16 %v3829_v46, %v3828_v45 }
 0xd13   : > { %v10966_v53 = vunpack.i.h.bf16 %v10964_v51  ;;  %v10965_v54 = vunpack.i.l.bf16 %v10964_v51 }
 0xd14   : > { %9829 = vmatprep.subr.bf16.mxu0 %v9828_v52  ;;  %9843 = vmatprep.subr.bf16.mxu1 %v9828_v52  ;;  %v4192_v52 = vld [vmem:[%s15290_s0 + $0x80] sm:$0xff]  ;;  %s15296_s0 = sld [smem:[#allocation131_spill]] }
 0xd15   : > { %v3846_v55 = vsel %vm3117_vm3, %v10965_v54, %v10960_v50  ;;  %v3847_v56 = vsel %vm3117_vm3, %v10966_v53, %v10961_v49  ;;  %9832 = vmatpush1.bf16.msk.msra.mxu0 %vm13862_vm4, %v9830_v47  ;;  %9846 = vmatpush1.bf16.msk.msra.mxu1 %vm13862_vm4, %v9830_v47  ;;  %v3844_v57 = vsel %vm3117_vm3, %v10960_v50, %v10965_v54 }
 0xd16   : > { %9834 = vmatprep.subr.bf16.mxu0 %v9833_v26  ;;  %9848 = vmatprep.subr.bf16.mxu1 %v9833_v26  ;;  %v3845_v58 = vsel %vm3117_vm3, %v10961_v49, %v10966_v53  ;;  %v9837_v59 = vpack.c.bf16 %v3847_v56, %v3846_v55  ;;  %v4193_v53 = vld [vmem:[%s15291_s4 + $0x88] sm:$0xff] }
 0xd17   : > { %v9840_v60 = vpack.c.bf16 %v3845_v58, %v3844_v57  ;;  %v9860_v57 = vpack.c.bf16 %v4193_v53, %v4192_v52  ;;  %v4176_v58 = vld [vmem:[%s15291_s4] sm:$0xff] }
 0xd19   : > { %9836 = vmatpush1.bf16.msra.mxu0 %v9835_v22  ;;  %9850 = vmatpush1.bf16.msra.mxu1 %v9835_v22 }
 0xd1a   : > { %9839 = vmatprep.subr.msk.bf16.mxu0 %vm13876_vm6, %v9837_v59  ;;  %9853 = vmatprep.subr.msk.bf16.mxu1 %vm13876_vm6, %v9837_v59  ;;  %v4177_v59 = vld [vmem:[%s15291_s4 + $0x8] sm:$0xff] }
 0xd1d   : > { %9841 = vmatpush1.bf16.msra.mxu0 %v9840_v60  ;;  %9855 = vmatpush1.bf16.msra.mxu1 %v9840_v60  ;;  %v4194_v60 = vld [vmem:[%s15291_s4 + $0x90] sm:$0xff] }
 0xd20   : > { %8940 = vmatmul.mubr.msk.f32.vlgmr.msra.gmra.mrb[12].mxu0 %vm3136_vm7, %v3816_v61  ;;  %8946 = vmatmul.mubr.msk.f32.vlgmr.msra.gmra.mrb[12].mxu1 %vm3136_vm7, %v3949_v62  ;;  %v4195_v61 = vld [vmem:[%s15291_s4 + $0x98] sm:$0xff]  ;;  %v4074_v62 = vld [vmem:[#allocation42] sm:$0xff] }
 0xd21   : > { %3938 = vmatprep.mubr.f32.mxu0 %v12624_v0  ;;  %4039 = vmatprep.mubr.f32.mxu1 %v12624_v0 }
 0xd22   : > { %v3956_v2 = vpop.permute.xlu0 %3955 }
 0xd23   : > { %v3961_v9 = vpop.permute.xlu1 %3960 }
 0xd24   : > { %8941 = vmatmul.mubr.msk.f32.gmra.mrb[14].mxu0 %vm3136_vm7, %v3817_v63  ;;  %8947 = vmatmul.mubr.msk.f32.gmra.mrb[14].mxu1 %vm3136_vm7, %v3950_v1  ;;  %v9862_v63 = vpack.c.bf16 %v4177_v59, %v4176_v58  ;;  %v9864_v1 = vpack.c.bf16 %v4195_v61, %v4194_v60 }
 0xd25   : > { %4159 = vmatprep.mubr.f32.mxu0 %v12624_v0 }
 0xd26   : > { %v3855_v25 = vpop.permute.xlu0 %3854 }
 0xd27   : > { %v3860_v33 = vpop.permute.xlu1 %3859 }
 0xdf3   : > { %v3934_v3 = vpop.f32.mrb[12].mxu0  ;;  %v4035_v4 = vpop.f32.mrb[12].mxu1 }
 0xdf4   : > { %v3936_v5 = vpop.f32.mrb[13].mxu0  ;;  %v4036_v6 = vadd.f32 %v4035_v4, %v3956_v2  ;;  %v4037_v7 = vpop.f32.mrb[13].mxu1  ;;  %v3935_v26 = vadd.f32 %v3934_v3, %v3855_v25  ;;  %v4179_v3 = vld [vmem:[%s15291_s4 + $0x18] sm:$0xff]  ;;  %v4196_v4 = vld [vmem:[%s15291_s4 + $0xa0] sm:$0xff] }
 0xdf5   : > { %v4038_v8 = vadd.f32 %v4037_v7, %v3956_v2  ;;  %v3937_v27 = vadd.f32 %v3936_v5, %v3855_v25  ;;  %v4178_v2 = vld [vmem:[%s15291_s4 + $0x10] sm:$0xff]  ;;  %v4197_v5 = vld [vmem:[%s15291_s4 + $0xa8] sm:$0xff] }
 0xdf6   : > { %v8948_v10 = vmul.f32 -1.442695, %v4036_v6  ;;  %v4075_v6 = vld [vmem:[#allocation42 + $0x8] sm:$0xff]  ;;  %v9866_v7 = vpack.c.bf16 %v4179_v3, %v4178_v2 }
 0xdf7   : > { %v3940_v11 = vpop.f32.mrb[14].mxu0  ;;  %v8949_v12 = vmul.f32 -1.442695, %v4038_v8  ;;  %v4041_v15 = vpop.f32.mrb[14].mxu1  ;;  %v9868_v8 = vpack.c.bf16 %v4197_v5, %v4196_v4 }
 0xdf8   : > { %v3942_v17 = vpop.f32.mrb[15].mxu0  ;;  %11323 = vpow2.f32 %v8948_v10  ;;  %v4042_v19 = vadd.f32 %v4041_v15, %v3961_v9  ;;  %v4043_v20 = vpop.f32.mrb[15].mxu1  ;;  %v3941_v14 = vadd.f32 %v3940_v11, %v3860_v33  ;;  %v4181_v10 = vld [vmem:[%s15291_s4 + $0x28] sm:$0xff]  ;;  %v4198_v11 = vld [vmem:[%s15291_s4 + $0xb0] sm:$0xff] }
 0xdf9   : > { %11325 = vpow2.f32 %v8949_v12  ;;  %v4044_v21 = vadd.f32 %v4043_v20, %v3961_v9  ;;  %v3943_v18 = vadd.f32 %v3942_v17, %v3860_v33  ;;  %v4180_v9 = vld [vmem:[%s15291_s4 + $0x20] sm:$0xff]  ;;  %v4199_v12 = vld [vmem:[%s15291_s4 + $0xb8] sm:$0xff] }
 0xdfa   : > { %v8950_v22 = vmul.f32 -1.442695, %v4042_v19  ;;  %v9870_v15 = vpack.c.bf16 %v4181_v10, %v4180_v9  ;;  %v9872_v17 = vpack.c.bf16 %v4199_v12, %v4198_v11  ;;  %v4182_v19 = vld [vmem:[%s15291_s4 + $0x30] sm:$0xff]  ;;  %v4183_v20 = vld [vmem:[%s15291_s4 + $0x38] sm:$0xff] }
 0xdfb   : > { %v8951_v23 = vmul.f32 -1.442695, %v4044_v21  ;;  %v4200_v21 = vld [vmem:[%s15291_s4 + $0xc0] sm:$0xff]  ;;  %v4203_v33 = vld [vmem:[%s15291_s4 + $0xd8] sm:$0xff] }
 0xdfc   : > { %11327 = vpow2.f32 %v8950_v22  ;;  %v4201_v22 = vld [vmem:[%s15291_s4 + $0xc8] sm:$0xff] }
 0xdfd   : > { %11329 = vpow2.f32 %v8951_v23  ;;  %v9874_v23 = vpack.c.bf16 %v4183_v20, %v4182_v19  ;;  %v9876_v25 = vpack.c.bf16 %v4201_v22, %v4200_v21  ;;  %v4378_v20 = vld [vmem:[#allocation46] sm:$0xff]  ;;  %v4381_v21 = vld [vmem:[%s15292_s2 + $0x8] sm:$0xff] }
 0xdfe   : > { %11331 = vtanh.f32 %v3935_v26  ;;  %v4184_v26 = vld [vmem:[%s15291_s4 + $0x40] sm:$0xff] }
 0xdff   : > { %11333 = vtanh.f32 %v3937_v27  ;;  %v4185_v27 = vld [vmem:[%s15291_s4 + $0x48] sm:$0xff] }
 0xe02   : > { %v11324_v28 = vpop.eup %11323 }
 0xe03   : > { %v11326_v34 = vpop.eup %11325  ;;  %v4058_v13 = vadd.f32 1.0, %v11324_v28  ;;  %v4202_v28 = vld [vmem:[%s15291_s4 + $0xd0] sm:$0xff] }
 0xe04   : > { %v4059_v16 = vadd.f32 1.0, %v11326_v34  ;;  %v9878_v34 = vpack.c.bf16 %v4185_v27, %v4184_v26 }
 0xe05   : > { %11335 = vrcp.f32 %v4058_v13  ;;  %v9880_v13 = vpack.c.bf16 %v4203_v33, %v4202_v28 }
 0xe06   : > { %v11328_v35 = vpop.eup %11327  ;;  %11337 = vrcp.f32 %v4059_v16  ;;  %v4187_v16 = vld [vmem:[%s15291_s4 + $0x58] sm:$0xff] }
 0xe07   : > { %v11330_v36 = vpop.eup %11329  ;;  %11339 = vtanh.f32 %v3941_v14  ;;  %v4060_v42 = vadd.f32 1.0, %v11328_v35  ;;  %v4186_v14 = vld [vmem:[%s15291_s4 + $0x50] sm:$0xff]  ;;  %v4205_v35 = vld [vmem:[%s15291_s4 + $0xe8] sm:$0xff] }
 0xe08   : > { %11341 = vtanh.f32 %v3943_v18  ;;  %v4061_v43 = vadd.f32 1.0, %v11330_v36  ;;  %v11332_v29 = vpop.eup %11331  ;;  %v4204_v18 = vld [vmem:[%s15291_s4 + $0xe0] sm:$0xff]  ;;  %v9882_v36 = vpack.c.bf16 %v4187_v16, %v4186_v14 }
 0xe09   : > { %11343 = vrcp.f32 %v4060_v42  ;;  %v11334_v30 = vpop.eup %11333  ;;  %v9884_v42 = vpack.c.bf16 %v4205_v35, %v4204_v18  ;;  %v4379_v18 = vld [vmem:[#allocation46 + $0x8] sm:$0xff] }
 0xe0a   : > { %11345 = vrcp.f32 %v4061_v43  ;;  %v4188_v43 = vld [vmem:[%s15291_s4 + $0x60] sm:$0xff] }
 0xe0f   : > { %v11336_v31 = vpop.eup %11335 }
 0xe10   : > { %v11338_v32 = vpop.eup %11337  ;;  %v4070_v44 = vmul.f32 %v11336_v31, %v11332_v29  ;;  %v4189_v29 = vld [vmem:[%s15291_s4 + $0x68] sm:$0xff]  ;;  %v4206_v31 = vld [vmem:[%s15291_s4 + $0xf0] sm:$0xff] }
 0xe11   : > { %v11340_v45 = vpop.eup %11339  ;;  %v4071_v46 = vmul.f32 %v11338_v32, %v11334_v30  ;;  %v9886_v30 = vpack.c.bf16 %v4189_v29, %v4188_v43  ;;  %v4207_v32 = vld [vmem:[%s15291_s4 + $0xf8] sm:$0xff] }
 0xe12   : > { %v11342_v47 = vpop.eup %11341 }
 0xe13   : > { %v11344_v49 = vpop.eup %11343 }
 0xe14   : > { %v11346_v50 = vpop.eup %11345  ;;  %v4072_v51 = vmul.f32 %v11344_v49, %v11340_v45  ;;  %v4190_v45 = vld [vmem:[%s15291_s4 + $0x70] sm:$0xff]  ;;  %v4081_v49 = vpop.permute.xlu0 %4080 }
 0xe15   : > { %v4073_v54 = vmul.f32 %v11346_v50, %v11342_v47 }
 0xe16   : > { %v9858_v55 = vpack.c.bf16 %v4072_v51, %v4070_v44  ;;  %v9888_v44 = vpack.c.bf16 %v4207_v32, %v4206_v31 }
 0xe17   : > { %v9856_v56 = vpack.c.bf16 %v4073_v54, %v4071_v46  ;;  %v4191_v46 = vld [vmem:[%s15291_s4 + $0x78] sm:$0xff]  ;;  %v4086_v54 = vpop.permute.xlu1 %4085  ;;  %s15293_s4 = smov %s15292_s2  ;;  %s15298_s2 = sld [smem:[#allocation129_spill]] }
 0xe18   : > { %v9890_v47 = vpack.c.bf16 %v4191_v46, %v4190_v45  ;;  %v4290_v11 = vpop.permute.xlu0 %4289  ;;  %v4380_v22 = vld [vmem:[%s15293_s4] sm:$0xff]  ;;  %s15297_s4 = smov %s15296_s0  ;;  %v4594_v45 = vld [vmem:[#allocation45] sm:$0xff]  ;;  %v4597_v46 = vld [vmem:[%s15296_s0 + $0x8] sm:$0xff]  ;;  %s15302_s0 = sld [smem:[#allocation81_spill]] }
 0xe19   : > { %9857 = vmatprep.subr.bf16.mxu0 %v9856_v56 }
 0xe1a   : > { %9859 = vmatpush1.bf16.msra.mxu0 %v9858_v55 }
 0xe1b   : > { %9861 = vmatprep.subr.bf16.mxu0 %v9860_v57  ;;  %v4295_v9 = vpop.permute.xlu1 %4294 }
 0xe1d   : > { %8952 = vmatmul.mubr.msk.f32.vlgmr.msra.gmra.mrb[16].mxu0 %vm4088_vm8, %v4074_v62  ;;  %s15299_s6 = smov %s15298_s2 }
 0xe1e   : > { %4165 = vmatprep.mubr.f32.mxu0 %v12624_v0  ;;  %9863 = vmatpush3.bf16.msra.mxu0 %v9862_v63 }
 0xe1f   : > { %9865 = vmatprep.subr.bf16.mxu0 %v9864_v1 }
 0xe21   : > { %8953 = vmatmul.mubr.msk.f32.gmra.mrb[18].mxu0 %vm4088_vm8, %v4075_v6 }
 0xe22   : > { %9867 = vmatpush3.bf16.msra.mxu0 %v9866_v7 }
 0xe23   : > { %9869 = vmatprep.subr.bf16.mxu0 %v9868_v8  ;;  %v4284_v8 = vld [vmem:[#allocation33 + $0x8] sm:$0xff] }
 0xe26   : > { %9871 = vmatpush3.bf16.msra.mxu0 %v9870_v15 }
 0xe27   : > { %9873 = vmatprep.subr.bf16.mxu0 %v9872_v17 }
 0xe2a   : > { %9875 = vmatpush3.bf16.msra.mxu0 %v9874_v23 }
 0xe2b   : > { %9877 = vmatprep.subr.bf16.mxu0 %v9876_v25 }
 0xe2e   : > { %9879 = vmatpush3.bf16.msra.mxu0 %v9878_v34 }
 0xe2f   : > { %9881 = vmatprep.subr.bf16.mxu0 %v9880_v13 }
 0xe32   : > { %9883 = vmatpush3.bf16.msra.mxu0 %v9882_v36 }
 0xe33   : > { %9885 = vmatprep.subr.bf16.mxu0 %v9884_v42 }
 0xe36   : > { %9887 = vmatpush3.bf16.msra.mxu0 %v9886_v30 }
 0xe37   : > { %9889 = vmatprep.subr.bf16.mxu0 %v9888_v44  ;;  %v4485_v44 = vld [vmem:[#allocation43] sm:$0xff] }
 0xe3a   : > { %9891 = vmatpush3.bf16.msra.mxu0 %v9890_v47  ;;  %v4596_v47 = vld [vmem:[%s15297_s4] sm:$0xff]  ;;  %s15303_s4 = smov %s15302_s0 }
 0xef0   : > { %v4161_v50 = vpop.f32.mrb[16].mxu0 }
 0xef1   : > { %v4162_v51 = vadd.f32 %v4161_v50, %v4081_v49  ;;  %v4163_v52 = vpop.f32.mrb[17].mxu0  ;;  %v4487_v50 = vld [vmem:[%s15299_s6] sm:$0xff]  ;;  %s15092_s6 = smov 65  }
 0xef2   : > { %v4164_v53 = vadd.f32 %v4163_v52, %v4081_v49  ;;  %v4488_v49 = vld [vmem:[%s15298_s2 + $0x8] sm:$0xff]  ;;  %v4705_v52 = vld [vmem:[%s15300_s8] sm:$0xff]  ;;  %s15098_s2 = smov 64  }
 0xef3   : > { %v14132_v57 = vadd.f32 %v4162_v51, %v14001_v37  ;;  %v4706_v51 = vld [vmem:[%s15300_s8 + $0x8] sm:$0xff]  ;;  %s15311_s8 = sld [smem:[#allocation143_spill]] }
 0xef4   : > { %v14129_v55 = vadd.f32 %v4164_v53, %v14007_v40  ;;  %v4167_v56 = vpop.f32.mrb[18].mxu0  ;;  %v4894_v53 = vld [vmem:[%s15301_s9 + $0x8] sm:$0xff] }
 0xef5   : > { %v4168_v58 = vadd.f32 %v4167_v56, %v4086_v54  ;;  %v4169_v59 = vpop.f32.mrb[19].mxu0 }
 0xef6   : > { %v4170_v60 = vadd.f32 %v4169_v59, %v4086_v54  ;;  %4272 = vmatprep.mubr.f32.mxu0 %v14129_v55  ;;  %v4893_v54 = vld [vmem:[%s15301_s9] sm:$0xff]  ;;  %s15312_s9 = smov 65  }
 0xef7   : > { %v14136_v61 = vadd.f32 %v4168_v58, %v14004_v38  ;;  %4273 = vmatmul.mubr.f32.vlgmr.msra.gmra.mrb[20].mxu0 %v14132_v57 }
 0xef8   : > { %v14140_v62 = vadd.f32 %v4170_v60, %v14010_v41  ;;  %v4283_v41 = vld [vmem:[#allocation33] sm:$0xff] }
 0xef9   : > { %v14144_v40 = vpack.i.bf16 %v14136_v61, %v14132_v57  ;;  %v10312_v37 = vpack.c.bf16 %v14136_v61, %v14132_v57  ;;  %9380 = vmatprep.mubr.msk.f32.mxu1 %vm4088_vm8, %v4283_v41  ;;  %v7216_v57 = vld [vmem:[#allocation25 + $0x8] sm:$0xff] }
 0xefa   : > { %4277 = vmatprep.mubr.f32.mxu0 %v14140_v62  ;;  %v14151_v63 = vpack.i.bf16 %v14140_v62, %v14129_v55  ;;  %v10310_v38 = vpack.c.bf16 %v14140_v62, %v14129_v55 }
 0xefb   : > { %4278 = vmatmul.mubr.f32.gmra.mrb[22].mxu0 %v14136_v61 }
 0xefc   : > { %9425 = vmatprep.mubr.msk.f32.mxu0 %vm3136_vm7, %v4594_v45  ;;  %v4803_v45 = vld [vmem:[%s15303_s4 + $0x18] sm:$0xff] }
 0xfca   : > { %v9166_v1 = vpop.f32.mrb[20].mxu0 }
 0xfcb   : > { %v9167_v2 = vpop.f32.mrb[21].mxu0 }
 0xfcc   : > { %v9168_v3 = vadd.f32 %v9167_v2, %v9166_v1 }
 0xfce   : > { %v9169_v4 = vpop.f32.mrb[22].mxu0 }
 0xfcf   : > { %v9170_v5 = vpop.f32.mrb[23].mxu0 }
 0xfd0   : > { %v9171_v6 = vadd.f32 %v9170_v5, %v9169_v4  ;;  %v4486_v4 = vld [vmem:[#allocation43 + $0x8] sm:$0xff]  ;;  %v4595_v5 = vld [vmem:[#allocation45 + $0x8] sm:$0xff] }
 0xfd2   : > { %v9892_v7 = vpack.c.bf16 %v9171_v6, %v9168_v3  ;;  %v4703_v6 = vld [vmem:[#allocation48] sm:$0xff] }
 0xfd4   : > { %9893 = vmatprep.subr.bf16.mxu1 %v9892_v7 }
 0xfd5   : > { %9895 = vmatpush3.bf16.msra.mxu1 %v9892_v7 }
 0xfd8   : > { %9381 = vmatmul.mubr.msk.f32.vlgmr.msra.gmra.mrb[16].mxu1 %vm4088_vm8, %v4284_v8 }
 0xfd9   : > { %9395 = vmatprep.mubr.msk.f32.mxu1 %vm3136_vm7, %v4378_v20 }
0x10ab   : > { %v9382_v10 = vpop.f32.mrb[16].mxu1 }
0x10ac   : > { %v14158_v12 = vadd.f32 %v9382_v10, %v4295_v9  ;;  %v4369_v15 = vpop.f32.mrb[17].mxu1 }
0x10ad   : > { %v14160_v17 = vadd.f32 %v4369_v15, %v4290_v11 }
0x10af   : > { %v10972_v19 = vpack.i.bf16 %v14158_v12, %v14160_v17  ;;  %v9902_v13 = vpack.c.bf16 %v14158_v12, %v14160_v17 }
0x10b1   : > { %10973 = vrot.lane.b32.xlu1 %v10972_v19, %s15289_s5  ;;  %10968 = vrot.lane.b32.xlu0 %v10972_v19, %s15287_s3 }
0x10b5   : > { %4401 = vperm.xlu1 %10866, %v4381_v21   ;;  %4396 = vperm.xlu0 %10845, %v4380_v22  }
0x1123   : > { %v10969_v23 = vpop.permute.xlu0 %10968  ;;  %v10974_v27 = vpop.permute.xlu1 %10973 }
0x1124   : > { %v10971_v25 = vunpack.i.h.bf16 %v10969_v23  ;;  %v10970_v26 = vunpack.i.l.bf16 %v10969_v23  ;;  %v10976_v33 = vunpack.i.h.bf16 %v10974_v27  ;;  %v10975_v34 = vunpack.i.l.bf16 %v10974_v27 }
0x1126   : > { %v9896_v28 = vpack.c.bf16 %v10971_v25, %v10970_v26  ;;  %v9906_v16 = vpack.c.bf16 %v10976_v33, %v10975_v34 }
0x1128   : > { %9898 = vmatprep.subr.msk.bf16.mxu1 %vm13862_vm4, %v9896_v28 }
0x1129   : > { %9901 = vmatpush3.bf16.msk.msra.mxu1 %vm13862_vm4, %v9896_v28 }
0x112a   : > { %9903 = vmatprep.subr.bf16.mxu1 %v9902_v13 }
0x112d   : > { %9905 = vmatpush3.bf16.msra.mxu1 %v9902_v13 }
0x112e   : > { %9908 = vmatprep.subr.msk.bf16.mxu1 %vm14178_vm9, %v9906_v16 }
0x1131   : > { %9911 = vmatpush3.bf16.msk.msra.mxu1 %vm14178_vm9, %v9906_v16 }
0x1134   : > { %9396 = vmatmul.mubr.msk.f32.vlgmr.msra.gmra.mrb[18].mxu1 %vm3136_vm7, %v4379_v18  ;;  %v4402_v35 = vpop.permute.xlu1 %4401  ;;  %v4397_v42 = vpop.permute.xlu0 %4396 }
0x1135   : > { %9410 = vmatprep.mubr.msk.f32.mxu1 %vm3136_vm7, %v4485_v44  ;;  %v4802_v44 = vld [vmem:[%s15303_s4 + $0x10] sm:$0xff] }
0x1207   : > { %v9397_v36 = vpop.f32.mrb[18].mxu1 }
0x1208   : > { %v4482_v43 = vadd.f32 %v9397_v36, %v4402_v35  ;;  %v4476_v29 = vpop.f32.mrb[19].mxu1 }
0x1209   : > { %v4477_v30 = vadd.f32 %v4476_v29, %v4397_v42  ;;  %v4801_v29 = vld [vmem:[%s15303_s4 + $0x8] sm:$0xff] }
0x120b   : > { %v9918_v31 = vpack.c.bf16 %v4482_v43, %v4477_v30  ;;  %v10982_v32 = vpack.i.bf16 %v4482_v43, %v4477_v30  ;;  %v4800_v43 = vld [vmem:[%s15302_s0] sm:$0xff]  ;;  %s15304_s0 = sld [smem:[#allocation141_spill]] }
0x120d   : > { %10983 = vrot.lane.b32.xlu1 %v10982_v32, %s15289_s5  ;;  %10978 = vrot.lane.b32.xlu0 %v10982_v32, %s15287_s3  ;;  %v9948_v32 = vpack.c.bf16 %v4801_v29, %v4800_v43 }
0x1211   : > { %4605 = vperm.xlu1 %10866, %v4597_v46   ;;  %4600 = vperm.xlu0 %10845, %v4596_v47   ;;  %v4704_v46 = vld [vmem:[#allocation48 + $0x8] sm:$0xff]  ;;  %v9952_v47 = vpack.c.bf16 %v4803_v45, %v4802_v44 }
0x1215   : > { %4508 = vperm.xlu1 %10866, %v4488_v49   ;;  %4503 = vperm.xlu0 %10845, %v4487_v50   ;;  %v4804_v49 = vld [vmem:[%s15303_s4 + $0x20] sm:$0xff]  ;;  %v4805_v50 = vld [vmem:[%s15303_s4 + $0x28] sm:$0xff] }
0x1219   : > { %4714 = vperm.xlu1 %10866, %v4706_v51   ;;  %4709 = vperm.xlu0 %10845, %v4705_v52   ;;  %v9956_v51 = vpack.c.bf16 %v4805_v50, %v4804_v49  ;;  %v4806_v52 = vld [vmem:[%s15303_s4 + $0x30] sm:$0xff]  ;;  %v4986_v50 = vld [vmem:[#allocation52] sm:$0xff] }
0x121d   : > { %4902 = vperm.xlu1 %10866, %v4894_v53   ;;  %4897 = vperm.xlu0 %10845, %v4893_v54   ;;  %v4807_v53 = vld [vmem:[%s15303_s4 + $0x38] sm:$0xff] }
0x121e   : > { %v9960_v54 = vpack.c.bf16 %v4807_v53, %v4806_v52 }
0x127f   : > { %v10979_v56 = vpop.permute.xlu0 %10978  ;;  %v10984_v60 = vpop.permute.xlu1 %10983 }
0x1280   : > { %v10981_v58 = vunpack.i.h.bf16 %v10979_v56  ;;  %v10980_v59 = vunpack.i.l.bf16 %v10979_v56  ;;  %v10986_v1 = vunpack.i.h.bf16 %v10984_v60  ;;  %v10985_v2 = vunpack.i.l.bf16 %v10984_v60  ;;  %v4808_v56 = vld [vmem:[%s15303_s4 + $0x40] sm:$0xff]  ;;  %v4810_v60 = vld [vmem:[%s15303_s4 + $0x50] sm:$0xff] }
0x1282   : > { %v9912_v41 = vpack.c.bf16 %v10981_v58, %v10980_v59  ;;  %v9922_v3 = vpack.c.bf16 %v10986_v1, %v10985_v2  ;;  %v4809_v58 = vld [vmem:[%s15303_s4 + $0x48] sm:$0xff]  ;;  %v4812_v2 = vld [vmem:[%s15303_s4 + $0x60] sm:$0xff] }
0x1283   : > { %v9964_v59 = vpack.c.bf16 %v4809_v58, %v4808_v56 }
0x1284   : > { %9914 = vmatprep.subr.msk.bf16.mxu1 %vm13862_vm4, %v9912_v41  ;;  %9930 = vmatprep.subr.msk.bf16.mxu0 %vm13862_vm4, %v9912_v41 }
0x1285   : > { %9917 = vmatpush3.bf16.msk.msra.mxu1 %vm13862_vm4, %v9912_v41  ;;  %9933 = vmatpush3.bf16.msk.msra.mxu0 %vm13862_vm4, %v9912_v41  ;;  %v4811_v41 = vld [vmem:[%s15303_s4 + $0x58] sm:$0xff] }
0x1286   : > { %9919 = vmatprep.subr.bf16.mxu1 %v9918_v31  ;;  %9935 = vmatprep.subr.bf16.mxu0 %v9918_v31  ;;  %v9968_v1 = vpack.c.bf16 %v4811_v41, %v4810_v60 }
0x1289   : > { %9921 = vmatpush3.bf16.msra.mxu1 %v9918_v31  ;;  %9937 = vmatpush3.bf16.msra.mxu0 %v9918_v31 }
0x128a   : > { %9924 = vmatprep.subr.msk.bf16.mxu1 %vm14178_vm9, %v9922_v3  ;;  %9940 = vmatprep.subr.msk.bf16.mxu0 %vm14178_vm9, %v9922_v3 }
0x128d   : > { %9927 = vmatpush3.bf16.msk.msra.mxu1 %vm14178_vm9, %v9922_v3  ;;  %9943 = vmatpush3.bf16.msk.msra.mxu0 %vm14178_vm9, %v9922_v3  ;;  %v4813_v3 = vld [vmem:[%s15303_s4 + $0x68] sm:$0xff] }
0x1290   : > { %9411 = vmatmul.mubr.msk.f32.vlgmr.msra.gmra.mrb[20].mxu1 %vm3136_vm7, %v4486_v4  ;;  %9426 = vmatmul.mubr.msk.f32.vlgmr.msra.gmra.mrb[24].mxu0 %vm3136_vm7, %v4595_v5  ;;  %v4606_v7 = vpop.permute.xlu1 %4605  ;;  %v4601_v8 = vpop.permute.xlu0 %4600  ;;  %v9972_v4 = vpack.c.bf16 %v4813_v3, %v4812_v2  ;;  %v4814_v5 = vld [vmem:[%s15303_s4 + $0x70] sm:$0xff] }
0x1291   : > { %9432 = vmatprep.mubr.msk.f32.mxu1 %vm4088_vm8, %v4703_v6  ;;  %v4815_v6 = vld [vmem:[%s15303_s4 + $0x78] sm:$0xff]  ;;  %s15305_s4 = smov %s15304_s0  ;;  %9489 = vmatprep.mubr.msk.f32.mxu0 %vm3136_vm7, %v4986_v50 }
0x1292   : > { %v4988_v52 = vld [vmem:[%s15305_s4] sm:$0xff]  ;;  %s15310_s4 = sld [smem:[#allocation137_spill]] }
0x1294   : > { %v4509_v23 = vpop.permute.xlu1 %4508  ;;  %v4504_v25 = vpop.permute.xlu0 %4503 }
0x1363   : > { %v9412_v9 = vpop.f32.mrb[20].mxu1  ;;  %v9427_v10 = vpop.f32.mrb[24].mxu0 }
0x1364   : > { %v4686_v11 = vadd.f32 %v9427_v10, %v4606_v7  ;;  %v4583_v15 = vpop.f32.mrb[21].mxu1  ;;  %v4680_v19 = vpop.f32.mrb[25].mxu0  ;;  %v4589_v26 = vadd.f32 %v9412_v9, %v4509_v23  ;;  %v9976_v7 = vpack.c.bf16 %v4815_v6, %v4814_v5 }
0x1365   : > { %v4681_v20 = vadd.f32 %v4680_v19, %v4601_v8  ;;  %v4584_v27 = vadd.f32 %v4583_v15, %v4504_v25  ;;  %v4715_v8 = vpop.permute.xlu1 %4714  ;;  %v4710_v10 = vpop.permute.xlu0 %4709  ;;  %v4891_v25 = vld [vmem:[#allocation34] sm:$0xff] }
0x1366   : > { %v8975_v21 = vmul.f32 -1.442695, %v4686_v11 }
0x1367   : > { %v8974_v22 = vmul.f32 -1.442695, %v4681_v20 }
0x1368   : > { %11347 = vpow2.f32 %v8975_v21 }
0x1369   : > { %11349 = vpow2.f32 %v8974_v22 }
0x136a   : > { %11351 = vtanh.f32 %v4589_v26 }
0x136b   : > { %11353 = vtanh.f32 %v4584_v27 }
0x1372   : > { %v11348_v28 = vpop.eup %11347 }
0x1373   : > { %v11350_v33 = vpop.eup %11349  ;;  %v4696_v34 = vadd.f32 1.0, %v11348_v28 }
0x1374   : > { %v4695_v13 = vadd.f32 1.0, %v11350_v33  ;;  %v11352_v16 = vpop.eup %11351  ;;  %v4892_v33 = vld [vmem:[#allocation34 + $0x8] sm:$0xff] }
0x1375   : > { %11355 = vrcp.f32 %v4696_v34  ;;  %v11354_v18 = vpop.eup %11353 }
0x1376   : > { %11357 = vrcp.f32 %v4695_v13 }
0x137f   : > { %v11356_v35 = vpop.eup %11355 }
0x1380   : > { %v11358_v36 = vpop.eup %11357  ;;  %v4702_v42 = vmul.f32 %v11356_v35, %v11352_v16 }
0x1381   : > { %v4701_v30 = vmul.f32 %v11358_v36, %v11354_v18 }
0x1383   : > { %v9944_v31 = vpack.c.bf16 %v4702_v42, %v4701_v30 }
0x1385   : > { %9945 = vmatprep.subr.bf16.mxu1 %v9944_v31 }
0x1386   : > { %9947 = vmatpush3.bf16.msra.mxu1 %v9944_v31 }
0x1387   : > { %9949 = vmatprep.subr.bf16.mxu1 %v9948_v32 }
0x1389   : > { %9433 = vmatmul.mubr.msk.f32.vlgmr.msra.gmra.mrb[22].mxu1 %vm4088_vm8, %v4704_v46 }
0x138a   : > { %9951 = vmatpush3.bf16.msra.mxu1 %v9948_v32 }
0x138b   : > { %9953 = vmatprep.subr.bf16.mxu1 %v9952_v47 }
0x138e   : > { %9955 = vmatpush3.bf16.msra.mxu1 %v9952_v47 }
0x138f   : > { %9957 = vmatprep.subr.bf16.mxu1 %v9956_v51 }
0x1392   : > { %9959 = vmatpush3.bf16.msra.mxu1 %v9956_v51  ;;  %v4989_v51 = vld [vmem:[%s15304_s0 + $0x8] sm:$0xff]  ;;  %s15308_s0 = sld [smem:[#allocation139_spill]] }
0x1393   : > { %9961 = vmatprep.subr.bf16.mxu1 %v9960_v54 }
0x1396   : > { %9963 = vmatpush3.bf16.msra.mxu1 %v9960_v54 }
0x1397   : > { %9965 = vmatprep.subr.bf16.mxu1 %v9964_v59 }
0x139a   : > { %9967 = vmatpush3.bf16.msra.mxu1 %v9964_v59 }
0x139b   : > { %9969 = vmatprep.subr.bf16.mxu1 %v9968_v1 }
0x139e   : > { %9971 = vmatpush3.bf16.msra.mxu1 %v9968_v1 }
0x139f   : > { %9973 = vmatprep.subr.bf16.mxu1 %v9972_v4 }
0x13a2   : > { %9975 = vmatpush3.bf16.msra.mxu1 %v9972_v4  ;;  %v4987_v4 = vld [vmem:[#allocation52 + $0x8] sm:$0xff] }
0x13a3   : > { %9977 = vmatprep.subr.bf16.mxu1 %v9976_v7 }
0x13a6   : > { %9979 = vmatpush3.bf16.msra.mxu1 %v9976_v7 }
0x145c   : > { %v9434_v9 = vpop.f32.mrb[22].mxu1 }
0x145d   : > { %v4795_v11 = vadd.f32 %v9434_v9, %v4715_v8  ;;  %v4789_v15 = vpop.f32.mrb[23].mxu1 }
0x145e   : > { %v4790_v19 = vadd.f32 %v4789_v15, %v4710_v10 }
0x145f   : > { %v4799_v20 = vadd.f32 %v4795_v11, %v14158_v12  ;;  %v4903_v12 = vpop.permute.xlu1 %4902 }
0x1460   : > { %v4798_v21 = vadd.f32 %v4790_v19, %v14160_v17  ;;  %v4898_v17 = vpop.permute.xlu0 %4897 }
0x1462   : > { %9467 = vmatprep.mubr.f32.mxu1 %v4798_v21  ;;  %v14237_v22 = vpack.i.bf16 %v4799_v20, %v4798_v21  ;;  %v14239_v23 = vpack.c.bf16 %v4799_v20, %v4798_v21 }
0x1463   : > { %9468 = vmatmul.mubr.f32.vlgmr.msra.gmra.mrb[24].mxu1 %v4799_v20 }
0x1464   : > { %9474 = vmatprep.mubr.msk.f32.mxu1 %vm4088_vm8, %v4891_v25 }
0x1536   : > { %v9469_v26 = vpop.f32.mrb[24].mxu1 }
0x1537   : > { %v4882_v27 = vpop.f32.mrb[25].mxu1 }
0x1538   : > { %v9980_v28 = vpack.c.bf16 %v9469_v26, %v4882_v27 }
0x153a   : > { %9981 = vmatprep.subr.bf16.mxu1 %v9980_v28 }
0x153b   : > { %9983 = vmatpush3.bf16.msra.mxu1 %v9980_v28 }
0x153e   : > { %9475 = vmatmul.mubr.msk.f32.vlgmr.msra.gmra.mrb[26].mxu1 %vm4088_vm8, %v4892_v33 }
0x1611   : > { %v9476_v34 = vpop.f32.mrb[26].mxu1 }
0x1612   : > { %v14243_v13 = vadd.f32 %v9476_v34, %v4903_v12  ;;  %v4977_v16 = vpop.f32.mrb[27].mxu1 }
0x1613   : > { %v14245_v18 = vadd.f32 %v4977_v16, %v4898_v17  ;;  %v5113_v16 = vld [vmem:[#allocation49] sm:$0xff] }
0x1615   : > { %v10987_v35 = vpack.i.bf16 %v14243_v13, %v14245_v18  ;;  %v9990_v1 = vpack.c.bf16 %v14243_v13, %v14245_v18 }
0x1617   : > { %10988 = vrot.lane.b32.xlu0 %v10987_v35, %s15098_s2  ;;  %v5240_v35 = vld [vmem:[#allocation51] sm:$0xff] }
0x1618   : > { %9519 = vmatprep.mubr.msk.f32.mxu1 %vm3136_vm7, %v5240_v35 }
0x1689   : > { %v10989_v36 = vpop.permute.xlu0 %10988 }
0x168a   : > { %v10991_v42 = vunpack.i.h.bf16 %v10989_v36  ;;  %v10990_v43 = vunpack.i.l.bf16 %v10989_v36  ;;  %v5243_v36 = vld [vmem:[%s15308_s0 + $0x8] sm:$0xff] }
0x168c   : > { %v4993_v29 = vsel %vm4990_vm10, %v10990_v43, %v14245_v18  ;;  %v4996_v30 = vsel %vm4990_vm10, %v10991_v42, %v14243_v13  ;;  %v5116_v43 = vld [vmem:[%s15310_s4 + $0x8] sm:$0xff] }
0x168d   : > { %v10992_v31 = vpack.i.bf16 %v4996_v30, %v4993_v29  ;;  %v5115_v29 = vld [vmem:[%s15310_s4] sm:$0xff]  ;;  %v5352_v30 = vld [vmem:[%s15311_s8 + $0x8] sm:$0xff]  ;;  %s12631_s4 = smov 97  }
0x168f   : > { %10993 = vrot.lane.b32.xlu1 %v10992_v31, %s15098_s2  ;;  %v5351_v31 = vld [vmem:[%s15311_s8] sm:$0xff] }
0x1701   : > { %v10994_v32 = vpop.permute.xlu1 %10993 }
0x1702   : > { %v10996_v44 = vunpack.i.h.bf16 %v10994_v32  ;;  %v10995_v45 = vunpack.i.l.bf16 %v10994_v32  ;;  %v5539_v32 = vld [vmem:[%s15313_s10 + $0x8] sm:$0xff] }
0x1704   : > { %v5001_v46 = vsel %vm4990_vm10, %v10995_v45, %v14245_v18  ;;  %v5002_v47 = vsel %vm4990_vm10, %v10996_v44, %v14243_v13  ;;  %v5538_v44 = vld [vmem:[%s15313_s10] sm:$0xff] }
0x1705   : > { %v11002_v49 = vpack.i.bf16 %v5002_v47, %v5001_v46 }
0x1707   : > { %11003 = vrot.lane.b32.xlu1 %v11002_v49, %s15289_s5  ;;  %10998 = vrot.lane.b32.xlu0 %v11002_v49, %s15092_s6  ;;  %s15309_s6 = smov %s15308_s0  ;;  %s15314_s0 = sld [smem:[#allocation82_spill]] }
0x1708   : > { %v5242_v42 = vld [vmem:[%s15309_s6] sm:$0xff]  ;;  %s15323_s6 = sld [smem:[#allocation91_spill]] }
0x170b   : > { %5029 = vperm.xlu1 %10866, %v4989_v51   ;;  %5024 = vperm.xlu0 %10845, %v4988_v52  }
0x1779   : > { %v10999_v53 = vpop.permute.xlu0 %10998  ;;  %v11004_v58 = vpop.permute.xlu1 %11003 }
0x177a   : > { %v11001_v54 = vunpack.i.h.bf16 %v10999_v53  ;;  %v11000_v56 = vunpack.i.l.bf16 %v10999_v53  ;;  %v11006_v60 = vunpack.i.h.bf16 %v11004_v58  ;;  %v11005_v41 = vunpack.i.l.bf16 %v11004_v58  ;;  %v5241_v58 = vld [vmem:[#allocation51 + $0x8] sm:$0xff] }
0x177c   : > { %v9984_v59 = vpack.c.bf16 %v11001_v54, %v11000_v56  ;;  %v9994_v3 = vpack.c.bf16 %v11006_v60, %v11005_v41  ;;  %v5114_v56 = vld [vmem:[#allocation49 + $0x8] sm:$0xff] }
0x177e   : > { %9986 = vmatprep.subr.msk.bf16.mxu0 %vm13862_vm4, %v9984_v59 }
0x177f   : > { %9989 = vmatpush3.bf16.msk.msra.mxu0 %vm13862_vm4, %v9984_v59  ;;  %v5349_v59 = vld [vmem:[#allocation54] sm:$0xff] }
0x1780   : > { %9991 = vmatprep.subr.bf16.mxu0 %v9990_v1 }
0x1783   : > { %9993 = vmatpush3.bf16.msra.mxu0 %v9990_v1 }
0x1784   : > { %9996 = vmatprep.subr.msk.bf16.mxu0 %vm14271_vm12, %v9994_v3 }
0x1787   : > { %9999 = vmatpush3.bf16.msk.msra.mxu0 %vm14271_vm12, %v9994_v3 }
0x178a   : > { %9490 = vmatmul.mubr.msk.f32.vlgmr.msra.gmra.mrb[26].mxu0 %vm3136_vm7, %v4987_v4  ;;  %v5030_v5 = vpop.permute.xlu1 %5029  ;;  %v5025_v7 = vpop.permute.xlu0 %5024 }
0x178b   : > { %9504 = vmatprep.mubr.msk.f32.mxu0 %vm3136_vm7, %v5113_v16 }
0x185d   : > { %v9491_v6 = vpop.f32.mrb[26].mxu0 }
0x185e   : > { %v5110_v8 = vadd.f32 %v9491_v6, %v5030_v5  ;;  %v5104_v9 = vpop.f32.mrb[27].mxu0 }
0x185f   : > { %v5105_v10 = vadd.f32 %v5104_v9, %v5025_v7 }
0x1861   : > { %v11007_v11 = vpack.i.bf16 %v5110_v8, %v5105_v10  ;;  %v10006_v53 = vpack.c.bf16 %v5110_v8, %v5105_v10 }
0x1863   : > { %11008 = vrot.lane.b32.xlu0 %v11007_v11, %s15098_s2 }
0x18d5   : > { %v11009_v15 = vpop.permute.xlu0 %11008 }
0x18d6   : > { %v11011_v19 = vunpack.i.h.bf16 %v11009_v15  ;;  %v11010_v20 = vunpack.i.l.bf16 %v11009_v15 }
0x18d8   : > { %v5119_v21 = vsel %vm4990_vm10, %v11010_v20, %v5105_v10  ;;  %v5122_v25 = vsel %vm4990_vm10, %v11011_v19, %v5110_v8 }
0x18d9   : > { %v11012_v26 = vpack.i.bf16 %v5122_v25, %v5119_v21 }
0x18db   : > { %11013 = vrot.lane.b32.xlu1 %v11012_v26, %s15098_s2  ;;  %s15315_s2 = smov %s15314_s0 }
0x18dc   : > { %v5447_v16 = vld [vmem:[%s15315_s2 + $0x8] sm:$0xff] }
0x194d   : > { %v11014_v27 = vpop.permute.xlu1 %11013 }
0x194e   : > { %v11016_v28 = vunpack.i.h.bf16 %v11014_v27  ;;  %v11015_v33 = vunpack.i.l.bf16 %v11014_v27 }
0x1950   : > { %v5127_v12 = vsel %vm4990_vm10, %v11015_v33, %v5105_v10  ;;  %v5128_v34 = vsel %vm4990_vm10, %v11016_v28, %v5110_v8 }
0x1951   : > { %v11022_v17 = vpack.i.bf16 %v5128_v34, %v5127_v12 }
0x1953   : > { %11023 = vrot.lane.b32.xlu1 %v11022_v17, %s15289_s5  ;;  %11018 = vrot.lane.b32.xlu0 %v11022_v17, %s15312_s9  ;;  %v5446_v17 = vld [vmem:[%s15314_s0] sm:$0xff]  ;;  %s12630_s0 = smov 32  }
0x1957   : > { %5251 = vperm.xlu1 %10866, %v5243_v36   ;;  %5246 = vperm.xlu0 %10845, %v5242_v42   ;;  %v10036_v42 = vpack.c.bf16 %v5447_v16, %v5446_v17 }
0x195b   : > { %5154 = vperm.xlu1 %10866, %v5116_v43   ;;  %5149 = vperm.xlu0 %10845, %v5115_v29   ;;  %v5448_v43 = vld [vmem:[%s15315_s2 + $0x10] sm:$0xff]  ;;  %v5449_v29 = vld [vmem:[%s15315_s2 + $0x18] sm:$0xff] }
0x195f   : > { %5360 = vperm.xlu1 %10866, %v5352_v30   ;;  %5355 = vperm.xlu0 %10845, %v5351_v31   ;;  %v5350_v30 = vld [vmem:[#allocation54 + $0x8] sm:$0xff]  ;;  %v10040_v31 = vpack.c.bf16 %v5449_v29, %v5448_v43 }
0x1963   : > { %5547 = vperm.xlu1 %10866, %v5539_v32   ;;  %5542 = vperm.xlu0 %10845, %v5538_v44   ;;  %v5450_v32 = vld [vmem:[%s15315_s2 + $0x20] sm:$0xff]  ;;  %v5451_v44 = vld [vmem:[%s15315_s2 + $0x28] sm:$0xff] }
0x19c5   : > { %v11019_v45 = vpop.permute.xlu0 %11018  ;;  %v11024_v49 = vpop.permute.xlu1 %11023 }
0x19c6   : > { %v11021_v46 = vunpack.i.h.bf16 %v11019_v45  ;;  %v11020_v47 = vunpack.i.l.bf16 %v11019_v45  ;;  %v11026_v51 = vunpack.i.h.bf16 %v11024_v49  ;;  %v11025_v52 = vunpack.i.l.bf16 %v11024_v49 }
0x19c7   : > { %v10044_v45 = vpack.c.bf16 %v5451_v44, %v5450_v32 }
0x19c8   : > { %v10000_v50 = vpack.c.bf16 %v11021_v46, %v11020_v47  ;;  %v10010_v54 = vpack.c.bf16 %v11026_v51, %v11025_v52  ;;  %v5452_v46 = vld [vmem:[%s15315_s2 + $0x30] sm:$0xff]  ;;  %v5453_v47 = vld [vmem:[%s15315_s2 + $0x38] sm:$0xff]  ;;  %s15316_s2 = sld [smem:[#allocation147_spill]] }
0x19c9   : > { %v10048_v49 = vpack.c.bf16 %v5453_v47, %v5452_v46  ;;  %v5632_v46 = vld [vmem:[#allocation57 + $0x8] sm:$0xff] }
0x19ca   : > { %10002 = vmatprep.subr.msk.bf16.mxu0 %vm13862_vm4, %v10000_v50  ;;  %10018 = vmatprep.subr.msk.bf16.mxu1 %vm13862_vm4, %v10000_v50 }
0x19cb   : > { %10005 = vmatpush3.bf16.msk.msra.mxu0 %vm13862_vm4, %v10000_v50  ;;  %10021 = vmatpush3.bf16.msk.msra.mxu1 %vm13862_vm4, %v10000_v50 }
0x19cc   : > { %10007 = vmatprep.subr.bf16.mxu0 %v10006_v53  ;;  %10023 = vmatprep.subr.bf16.mxu1 %v10006_v53 }
0x19ce   : > { %v5634_v17 = vld [vmem:[%s15316_s2 + $0x8] sm:$0xff]  ;;  %v5633_v16 = vld [vmem:[%s15316_s2] sm:$0xff]  ;;  %s15319_s2 = sld [smem:[#allocation93_spill]] }
0x19cf   : > { %10009 = vmatpush3.bf16.msra.mxu0 %v10006_v53  ;;  %10025 = vmatpush3.bf16.msra.mxu1 %v10006_v53 }
0x19d0   : > { %10012 = vmatprep.subr.msk.bf16.mxu0 %vm14271_vm12, %v10010_v54  ;;  %10028 = vmatprep.subr.msk.bf16.mxu1 %vm14271_vm12, %v10010_v54 }
0x19d3   : > { %10015 = vmatpush3.bf16.msk.msra.mxu0 %vm14271_vm12, %v10010_v54  ;;  %10031 = vmatpush3.bf16.msk.msra.mxu1 %vm14271_vm12, %v10010_v54 }
0x19d6   : > { %9505 = vmatmul.mubr.msk.f32.vlgmr.msra.gmra.mrb[28].mxu0 %vm3136_vm7, %v5114_v56  ;;  %9520 = vmatmul.mubr.msk.f32.vlgmr.msra.gmra.mrb[28].mxu1 %vm3136_vm7, %v5241_v58  ;;  %v5252_v60 = vpop.permute.xlu1 %5251  ;;  %v5247_v41 = vpop.permute.xlu0 %5246 }
0x19d7   : > { %9526 = vmatprep.mubr.msk.f32.mxu0 %vm4088_vm8, %v5349_v59 }
0x19da   : > { %v5155_v10 = vpop.permute.xlu1 %5154  ;;  %v5150_v11 = vpop.permute.xlu0 %5149 }
0x19de   : > { %v5361_v50 = vpop.permute.xlu1 %5360  ;;  %v5356_v52 = vpop.permute.xlu0 %5355 }
0x1aa9   : > { %v9506_v1 = vpop.f32.mrb[28].mxu0  ;;  %v9521_v3 = vpop.f32.mrb[28].mxu1 }
0x1aaa   : > { %v5332_v4 = vadd.f32 %v9521_v3, %v5252_v60  ;;  %v5229_v5 = vpop.f32.mrb[29].mxu0  ;;  %v5326_v6 = vpop.f32.mrb[29].mxu1  ;;  %v5235_v15 = vadd.f32 %v9506_v1, %v5155_v10  ;;  %v5536_v60 = vld [vmem:[#allocation36] sm:$0xff] }
0x1aab   : > { %v5327_v7 = vadd.f32 %v5326_v6, %v5247_v41  ;;  %v5230_v19 = vadd.f32 %v5229_v5, %v5150_v11  ;;  %9552 = vmatprep.mubr.msk.f32.mxu1 %vm4088_vm8, %v5536_v60  ;;  %v5543_v5 = vpop.permute.xlu0 %5542 }
0x1aac   : > { %v8999_v8 = vmul.f32 -1.442695, %v5332_v4  ;;  %v5537_v4 = vld [vmem:[#allocation36 + $0x8] sm:$0xff] }
0x1aad   : > { %v8998_v9 = vmul.f32 -1.442695, %v5327_v7 }
0x1aae   : > { %11359 = vpow2.f32 %v8999_v8 }
0x1aaf   : > { %11361 = vpow2.f32 %v8998_v9 }
0x1ab0   : > { %11363 = vtanh.f32 %v5235_v15 }
0x1ab1   : > { %11365 = vtanh.f32 %v5230_v19 }
0x1ab8   : > { %v11360_v20 = vpop.eup %11359 }
0x1ab9   : > { %v11362_v21 = vpop.eup %11361  ;;  %v5342_v25 = vadd.f32 1.0, %v11360_v20 }
0x1aba   : > { %v5341_v26 = vadd.f32 1.0, %v11362_v21  ;;  %v11364_v27 = vpop.eup %11363 }
0x1abb   : > { %11367 = vrcp.f32 %v5342_v25  ;;  %v11366_v28 = vpop.eup %11365 }
0x1abc   : > { %11369 = vrcp.f32 %v5341_v26 }
0x1ac5   : > { %v11368_v33 = vpop.eup %11367 }
0x1ac6   : > { %v11370_v12 = vpop.eup %11369  ;;  %v5348_v34 = vmul.f32 %v11368_v33, %v11364_v27 }
0x1ac7   : > { %v5347_v35 = vmul.f32 %v11370_v12, %v11366_v28 }
0x1ac9   : > { %v10032_v36 = vpack.c.bf16 %v5348_v34, %v5347_v35  ;;  %v5631_v34 = vld [vmem:[#allocation57] sm:$0xff] }
0x1acb   : > { %10033 = vmatprep.subr.bf16.mxu0 %v10032_v36 }
0x1acc   : > { %10035 = vmatpush3.bf16.msra.mxu0 %v10032_v36 }
0x1acd   : > { %10037 = vmatprep.subr.bf16.mxu0 %v10036_v42 }
0x1acf   : > { %9527 = vmatmul.mubr.msk.f32.vlgmr.msra.gmra.mrb[30].mxu0 %vm4088_vm8, %v5350_v30 }
0x1ad0   : > { %10039 = vmatpush3.bf16.msra.mxu0 %v10036_v42 }
0x1ad1   : > { %10041 = vmatprep.subr.bf16.mxu0 %v10040_v31 }
0x1ad4   : > { %10043 = vmatpush3.bf16.msra.mxu0 %v10040_v31 }
0x1ad5   : > { %10045 = vmatprep.subr.bf16.mxu0 %v10044_v45 }
0x1ad8   : > { %10047 = vmatpush3.bf16.msra.mxu0 %v10044_v45 }
0x1ad9   : > { %10049 = vmatprep.subr.bf16.mxu0 %v10048_v49 }
0x1adc   : > { %10051 = vmatpush3.bf16.msra.mxu0 %v10048_v49 }
0x1ba2   : > { %v9528_v51 = vpop.f32.mrb[30].mxu0 }
0x1ba3   : > { %v5441_v53 = vadd.f32 %v9528_v51, %v5361_v50  ;;  %v5435_v54 = vpop.f32.mrb[31].mxu0 }
0x1ba4   : > { %v5436_v56 = vadd.f32 %v5435_v54, %v5356_v52 }
0x1ba5   : > { %v14330_v59 = vadd.f32 %v5441_v53, %v14243_v13 }
0x1ba6   : > { %v14327_v58 = vadd.f32 %v5436_v56, %v14245_v18  ;;  %v5548_v18 = vpop.permute.xlu1 %5547 }
0x1ba8   : > { %9545 = vmatprep.mubr.msk.f32.mxu0 %vm5454_vm13, %v14327_v58  ;;  %v11052_v35 = vpack.i.bf16 %v14330_v59, %v14327_v58 }
0x1ba9   : > { %9546 = vmatmul.mubr.msk.f32.vlgmr.msra.gmra.mrb[32].mxu0 %vm5454_vm13, %v14330_v59 }
0x1c7c   : > { %v9547_v41 = vpop.f32.mrb[32].mxu0 }
0x1c7d   : > { %v5527_v1 = vpop.f32.mrb[33].mxu0 }
0x1c7e   : > { %v10052_v3 = vpack.c.bf16 %v9547_v41, %v5527_v1 }
0x1c80   : > { %10053 = vmatprep.subr.bf16.mxu1 %v10052_v3 }
0x1c81   : > { %10055 = vmatpush3.bf16.msra.mxu1 %v10052_v3 }
0x1c84   : > { %9553 = vmatmul.mubr.msk.f32.vlgmr.msra.gmra.mrb[30].mxu1 %vm4088_vm8, %v5537_v4 }
0x1c85   : > { %9567 = vmatprep.mubr.msk.f32.mxu1 %vm3136_vm7, %v5631_v34 }
0x1d57   : > { %v9554_v13 = vpop.f32.mrb[30].mxu1 }
0x1d58   : > { %v5628_v6 = vadd.f32 %v9554_v13, %v5548_v18  ;;  %v5622_v7 = vpop.f32.mrb[31].mxu1 }
0x1d59   : > { %v5623_v8 = vadd.f32 %v5622_v7, %v5543_v5 }
0x1d5b   : > { %v11027_v9 = vpack.i.bf16 %v5628_v6, %v5623_v8  ;;  %v10062_v44 = vpack.c.bf16 %v5628_v6, %v5623_v8 }
0x1d5d   : > { %11028 = vrot.lane.b32.xlu0 %v11027_v9, %s12630_s0  ;;  %v5865_v9 = vld [vmem:[%s15319_s2 + $0x8] sm:$0xff] }
0x1dcf   : > { %v11029_v10 = vpop.permute.xlu0 %11028 }
0x1dd0   : > { %v11031_v11 = vunpack.i.h.bf16 %v11029_v10  ;;  %v11030_v15 = vunpack.i.l.bf16 %v11029_v10 }
0x1dd2   : > { %v5638_v19 = vsel %vm5635_vm14, %v11030_v15, %v5623_v8  ;;  %v5641_v20 = vsel %vm5635_vm14, %v11031_v11, %v5628_v6 }
0x1dd3   : > { %v11032_v21 = vpack.i.bf16 %v5641_v20, %v5638_v19 }
0x1dd5   : > { %11033 = vrot.lane.b32.xlu1 %v11032_v21, %s12630_s0  ;;  %s15317_s0 = smov 64  }
0x1e47   : > { %v11034_v25 = vpop.permute.xlu1 %11033 }
0x1e48   : > { %v11036_v26 = vunpack.i.h.bf16 %v11034_v25  ;;  %v11035_v27 = vunpack.i.l.bf16 %v11034_v25 }
0x1e4a   : > { %v5646_v28 = vsel %vm5635_vm14, %v11035_v27, %v5623_v8  ;;  %v5647_v33 = vsel %vm5635_vm14, %v11036_v26, %v5628_v6 }
0x1e4b   : > { %v11042_v12 = vpack.i.bf16 %v5647_v33, %v5646_v28 }
0x1e4d   : > { %11043 = vrot.lane.b32.xlu1 %v11042_v12, %s15289_s5  ;;  %11038 = vrot.lane.b32.xlu0 %v11042_v12, %s12631_s4  ;;  %s15318_s4 = sld [smem:[#allocation84_spill]] }
0x1e51   : > { %5674 = vperm.xlu1 %10866, %v5634_v17   ;;  %5669 = vperm.xlu0 %10845, %v5633_v16  }
0x1e53   : > { %v5776_v56 = vld [vmem:[%s15318_s4] sm:$0xff]  ;;  %v5777_v60 = vld [vmem:[%s15318_s4 + $0x8] sm:$0xff]  ;;  %v5778_v1 = vld [vmem:[%s15318_s4 + $0x10] sm:$0xff] }
0x1e54   : > { %v10072_v41 = vpack.c.bf16 %v5777_v60, %v5776_v56  ;;  %v5779_v3 = vld [vmem:[%s15318_s4 + $0x18] sm:$0xff]  ;;  %s15322_s4 = sld [smem:[#allocation87_spill]] }
0x1e55   : > { %11053 = vrot.lane.b32.xlu1 %v11052_v35, %s15317_s0  ;;  %v10076_v4 = vpack.c.bf16 %v5779_v3, %v5778_v1 }
0x1e56   : > { %10073 = vmatprep.subr.bf16.mxu0 %v10072_v41 }
0x1e57   : > { %10075 = vmatpush3.bf16.msra.mxu0 %v10072_v41 }
0x1e58   : > { %10077 = vmatprep.subr.bf16.mxu0 %v10076_v4 }
0x1e5b   : > { %10079 = vmatpush3.bf16.msra.mxu0 %v10076_v4 }
0x1ebf   : > { %v11039_v36 = vpop.permute.xlu0 %11038  ;;  %v11044_v29 = vpop.permute.xlu1 %11043 }
0x1ec0   : > { %v11041_v42 = vunpack.i.h.bf16 %v11039_v36  ;;  %v11040_v43 = vunpack.i.l.bf16 %v11039_v36  ;;  %v11046_v31 = vunpack.i.h.bf16 %v11044_v29  ;;  %v11045_v32 = vunpack.i.l.bf16 %v11044_v29 }
0x1ec2   : > { %v10056_v30 = vpack.c.bf16 %v11041_v42, %v11040_v43  ;;  %v10066_v45 = vpack.c.bf16 %v11046_v31, %v11045_v32 }
0x1ec4   : > { %10058 = vmatprep.subr.msk.bf16.mxu1 %vm13862_vm4, %v10056_v30 }
0x1ec5   : > { %10061 = vmatpush3.bf16.msk.msra.mxu1 %vm13862_vm4, %v10056_v30 }
0x1ec6   : > { %10063 = vmatprep.subr.bf16.mxu1 %v10062_v44 }
0x1ec9   : > { %10065 = vmatpush3.bf16.msra.mxu1 %v10062_v44 }
0x1eca   : > { %10068 = vmatprep.subr.msk.bf16.mxu1 %vm10067_vm2, %v10066_v45 }
0x1ecd   : > { %10071 = vmatpush3.bf16.msk.msra.mxu1 %vm10067_vm2, %v10066_v45 }
0x1ed0   : > { %v5675_v47 = vpop.permute.xlu1 %5674  ;;  %9568 = vmatmul.mubr.msk.f32.vlgmr.msra.gmra.mrb[32].mxu1 %vm3136_vm7, %v5632_v46  ;;  %v5670_v11 = vpop.permute.xlu0 %5669 }
0x1ed4   : > { %v11054_v49 = vpop.permute.xlu1 %11053 }
0x1ed5   : > { %v11056_v50 = vunpack.i.h.bf16 %v11054_v49  ;;  %v11055_v51 = vunpack.i.l.bf16 %v11054_v49 }
0x1ed7   : > { %v5874_v52 = vsel %vm4990_vm10, %v11055_v51, %v14327_v58  ;;  %v5877_v53 = vsel %vm4990_vm10, %v11056_v50, %v14330_v59 }
0x1ed8   : > { %v11062_v54 = vpack.i.bf16 %v5877_v53, %v5874_v52 }
0x1eda   : > { %11063 = vrot.lane.b32.xlu1 %v11062_v54, %s15317_s0 }
0x1f4c   : > { %v11064_v18 = vpop.permute.xlu1 %11063 }
0x1f4d   : > { %v11066_v13 = vunpack.i.h.bf16 %v11064_v18  ;;  %v11065_v5 = vunpack.i.l.bf16 %v11064_v18  ;;  %v5864_v18 = vld [vmem:[%s15319_s2] sm:$0xff]  ;;  %s15320_s2 = sld [smem:[#allocation90_spill]] }
0x1f4f   : > { %v5888_v6 = vsel %vm4990_vm10, %v11065_v5, %v14327_v58  ;;  %v5889_v7 = vsel %vm4990_vm10, %v11066_v13, %v14330_v59  ;;  %v5862_v13 = vld [vmem:[#allocation10] sm:$0xff] }
0x1f50   : > { %v11072_v8 = vpack.i.bf16 %v5889_v7, %v5888_v6  ;;  %9605 = vmatprep.mubr.msk.f32.mxu1 %vm5936_vm11, %v5862_v13 }
0x1f52   : > { %11073 = vrot.lane.b32.xlu1 %v11072_v8, %s15312_s9 }
0x1f56   : > { %11083 = vrot.lane.b32.xlu1 %v11072_v8, %s15289_s5 }
0x1f5a   : > { %5933 = vperm.xlu1 %10866, %v5865_v9  }
0x1fa3   : > { %v9569_v10 = vpop.f32.mrb[32].mxu1 }
0x1fa4   : > { %v5755_v15 = vadd.f32 %v9569_v10, %v5675_v47  ;;  %v5749_v19 = vpop.f32.mrb[33].mxu1 }
0x1fa5   : > { %v5750_v20 = vadd.f32 %v5749_v19, %v5670_v11 }
0x1fa6   : > { %v5759_v21 = vmul.f32 %v5755_v15, %v5755_v15 }
0x1fa7   : > { %v5758_v25 = vmul.f32 %v5750_v20, %v5750_v20 }
0x1fa8   : > { %v5761_v26 = vmul.f32 %v5759_v21, %v5755_v15 }
0x1fa9   : > { %v5760_v27 = vmul.f32 %v5758_v25, %v5750_v20  ;;  %v10096_v25 = vpack.c.bf16 %v14330_v59, %v14327_v58  ;;  %v5863_v58 = vld [vmem:[#allocation10 + $0x8] sm:$0xff] }
0x1faa   : > { %v5763_v28 = vmul.f32 0.044715, %v5761_v26 }
0x1fab   : > { %v5762_v33 = vmul.f32 0.044715, %v5760_v27 }
0x1fac   : > { %v5765_v12 = vadd.f32 %v5763_v28, %v5755_v15 }
0x1fad   : > { %v5764_v34 = vadd.f32 %v5762_v33, %v5750_v20 }
0x1fae   : > { %v5767_v17 = vmul.f32 0.7978846, %v5765_v12 }
0x1faf   : > { %v5766_v16 = vmul.f32 0.7978846, %v5764_v34 }
0x1fb0   : > { %11371 = vtanh.f32 %v5767_v17 }
0x1fb1   : > { %11373 = vtanh.f32 %v5766_v16 }
0x1fba   : > { %v11372_v35 = vpop.eup %11371 }
0x1fbb   : > { %v11374_v36 = vpop.eup %11373  ;;  %v5771_v42 = vadd.f32 1.0, %v11372_v35 }
0x1fbc   : > { %v5770_v43 = vadd.f32 1.0, %v11374_v36 }
0x1fbd   : > { %v5773_v29 = vmul.f32 0.5, %v5771_v42 }
0x1fbe   : > { %v5772_v30 = vmul.f32 0.5, %v5770_v43 }
0x1fbf   : > { %v5775_v32 = vmul.f32 %v5773_v29, %v5755_v15 }
0x1fc0   : > { %v5774_v31 = vmul.f32 %v5772_v30, %v5750_v20 }
0x1fc2   : > { %9578 = vmatprep.mubr.msk.f32.mxu0 %vm5780_vm5, %v5774_v31 }
0x1fc3   : > { %9579 = vmatmul.mubr.msk.f32.vlgmr.msra.gmra.mrb[34].mxu0 %vm5780_vm5, %v5775_v32 }
0x1fc4   : > { %v11074_v5 = vpop.permute.xlu1 %11073 }
0x1fc5   : > { %v11076_v7 = vunpack.i.h.bf16 %v11074_v5  ;;  %v11075_v8 = vunpack.i.l.bf16 %v11074_v5 }
0x1fc7   : > { %v10086_v15 = vpack.c.bf16 %v11076_v7, %v11075_v8 }
0x1fc8   : > { %v11084_v26 = vpop.permute.xlu1 %11083 }
0x1fc9   : > { %v11086_v27 = vunpack.i.h.bf16 %v11084_v26  ;;  %v11085_v28 = vunpack.i.l.bf16 %v11084_v26 }
0x1fcb   : > { %v10106_v12 = vpack.c.bf16 %v11086_v27, %v11085_v28 }
0x1fd9   : > { %v5934_v59 = vpop.permute.xlu1 %5933 }
0x2096   : > { %v9580_v44 = vpop.f32.mrb[34].mxu0 }
0x2097   : > { %v5853_v45 = vpop.f32.mrb[35].mxu0 }
0x2098   : > { %v11047_v46 = vpack.i.bf16 %v9580_v44, %v5853_v45  ;;  %v10092_v47 = vpack.c.bf16 %v9580_v44, %v5853_v45 }
0x209a   : > { %11048 = vrot.lane.b32.xlu0 %v11047_v46, %s15317_s0 }
0x210c   : > { %v11049_v49 = vpop.permute.xlu0 %11048 }
0x210d   : > { %v11051_v50 = vunpack.i.h.bf16 %v11049_v49  ;;  %v11050_v51 = vunpack.i.l.bf16 %v11049_v49 }
0x210f   : > { %v5868_v52 = vsel %vm4990_vm10, %v11050_v51, %v5853_v45  ;;  %v5871_v53 = vsel %vm4990_vm10, %v11051_v50, %v9580_v44 }
0x2110   : > { %v11057_v54 = vpack.i.bf16 %v5871_v53, %v5868_v52  ;;  %v6018_v52 = vld [vmem:[#allocation7] sm:$0xff]  ;;  %v6021_v53 = vld [vmem:[%s15320_s2 + $0x8] sm:$0xff] }
0x2111   : > { %9620 = vmatprep.mubr.msk.f32.mxu0 %vm3136_vm7, %v6018_v52 }
0x2112   : > { %11058 = vrot.lane.b32.xlu0 %v11057_v54, %s15317_s0  ;;  %v6020_v54 = vld [vmem:[%s15320_s2] sm:$0xff]  ;;  %s15321_s2 = sld [smem:[#allocation88_spill]] }
0x2184   : > { %v11059_v56 = vpop.permute.xlu0 %11058 }
0x2185   : > { %v11061_v60 = vunpack.i.h.bf16 %v11059_v56  ;;  %v11060_v41 = vunpack.i.l.bf16 %v11059_v56 }
0x2187   : > { %v5886_v1 = vsel %vm4990_vm10, %v11060_v41, %v5853_v45  ;;  %v5887_v3 = vsel %vm4990_vm10, %v11061_v60, %v9580_v44 }
0x2188   : > { %v11067_v4 = vpack.i.bf16 %v5887_v3, %v5886_v1 }
0x218a   : > { %11068 = vrot.lane.b32.xlu0 %v11067_v4, %s15312_s9 }
0x218e   : > { %11078 = vrot.lane.b32.xlu0 %v11067_v4, %s15289_s5 }
0x2192   : > { %5928 = vperm.xlu0 %10845, %v5864_v18  }
0x21fc   : > { %v11069_v6 = vpop.permute.xlu0 %11068 }
0x21fd   : > { %v11071_v9 = vunpack.i.h.bf16 %v11069_v6  ;;  %v11070_v10 = vunpack.i.l.bf16 %v11069_v6  ;;  %v6019_v6 = vld [vmem:[#allocation7 + $0x8] sm:$0xff] }
0x21ff   : > { %v10080_v11 = vpack.c.bf16 %v11071_v9, %v11070_v10 }
0x2200   : > { %v11079_v19 = vpop.permute.xlu0 %11078 }
0x2201   : > { %10082 = vmatprep.subr.msk.bf16.mxu1 %vm13862_vm4, %v10080_v11  ;;  %v11081_v20 = vunpack.i.h.bf16 %v11079_v19  ;;  %v11080_v21 = vunpack.i.l.bf16 %v11079_v19 }
0x2202   : > { %10085 = vmatpush3.bf16.msk.msra.mxu1 %vm13862_vm4, %v10080_v11 }
0x2203   : > { %10088 = vmatprep.subr.msk.bf16.mxu1 %vm13862_vm4, %v10086_v15  ;;  %v10100_v33 = vpack.c.bf16 %v11081_v20, %v11080_v21 }
0x2206   : > { %10091 = vmatpush3.bf16.msk.msra.mxu1 %vm13862_vm4, %v10086_v15 }
0x2207   : > { %10093 = vmatprep.subr.bf16.mxu1 %v10092_v47 }
0x220a   : > { %10095 = vmatpush3.bf16.msra.mxu1 %v10092_v47 }
0x220b   : > { %10097 = vmatprep.subr.bf16.mxu1 %v10096_v25 }
0x220e   : > { %10099 = vmatpush3.bf16.msra.mxu1 %v10096_v25 }
0x220f   : > { %10102 = vmatprep.subr.msk.bf16.mxu1 %vm14271_vm12, %v10100_v33 }
0x2211   : > { %v5929_v17 = vpop.permute.xlu0 %5928 }
0x2212   : > { %10105 = vmatpush3.bf16.msk.msra.mxu1 %vm14271_vm12, %v10100_v33 }
0x2213   : > { %10108 = vmatprep.subr.msk.bf16.mxu1 %vm14271_vm12, %v10106_v12 }
0x2216   : > { %10111 = vmatpush3.bf16.msk.msra.mxu1 %vm14271_vm12, %v10106_v12 }
0x2219   : > { %9606 = vmatmul.mubr.msk.f32.vlgmr.msra.gmra.mrb[34].mxu1 %vm5936_vm11, %v5863_v58 }
0x22ec   : > { %v9607_v34 = vpop.f32.mrb[34].mxu1 }
0x22ed   : > { %v14396_v16 = vadd.f32 %v9607_v34, %v5934_v59  ;;  %v6009_v35 = vpop.f32.mrb[35].mxu1 }
0x22ee   : > { %v14398_v36 = vadd.f32 %v6009_v35, %v5929_v17  ;;  %v6143_v35 = vld [vmem:[#allocation4] sm:$0xff] }
0x22f0   : > { %v11087_v42 = vpack.i.bf16 %v14396_v16, %v14398_v36  ;;  %v10118_v13 = vpack.c.bf16 %v14396_v16, %v14398_v36 }
0x22f2   : > { %11088 = vrot.lane.b32.xlu0 %v11087_v42, %s15317_s0  ;;  %v6270_v42 = vld [vmem:[#allocation6] sm:$0xff] }
0x22f3   : > { %9650 = vmatprep.mubr.msk.f32.mxu1 %vm3136_vm7, %v6270_v42 }
0x2364   : > { %v11089_v43 = vpop.permute.xlu0 %11088 }
0x2365   : > { %v11091_v29 = vunpack.i.h.bf16 %v11089_v43  ;;  %v11090_v30 = vunpack.i.l.bf16 %v11089_v43  ;;  %v6273_v43 = vld [vmem:[%s15321_s2 + $0x8] sm:$0xff] }
0x2367   : > { %v6024_v31 = vsel %vm4990_vm10, %v11090_v30, %v14398_v36  ;;  %v6027_v32 = vsel %vm4990_vm10, %v11091_v29, %v14396_v16  ;;  %v6272_v29 = vld [vmem:[%s15321_s2] sm:$0xff]  ;;  %v6146_v30 = vld [vmem:[%s15322_s4 + $0x8] sm:$0xff] }
0x2368   : > { %v11092_v44 = vpack.i.bf16 %v6027_v32, %v6024_v31  ;;  %v6145_v31 = vld [vmem:[%s15322_s4] sm:$0xff]  ;;  %v6382_v32 = vld [vmem:[%s15323_s6 + $0x8] sm:$0xff]  ;;  %s15331_s4 = sld [smem:[#allocation95_spill]] }
0x236a   : > { %11093 = vrot.lane.b32.xlu1 %v11092_v44, %s15317_s0  ;;  %v6381_v44 = vld [vmem:[%s15323_s6] sm:$0xff]  ;;  %s15332_s6 = sld [smem:[#allocation100_spill]] }
0x23dc   : > { %v11094_v45 = vpop.permute.xlu1 %11093 }
0x23dd   : > { %v11096_v46 = vunpack.i.h.bf16 %v11094_v45  ;;  %v11095_v47 = vunpack.i.l.bf16 %v11094_v45 }
0x23df   : > { %v6032_v49 = vsel %vm4990_vm10, %v11095_v47, %v14398_v36  ;;  %v6033_v50 = vsel %vm4990_vm10, %v11096_v46, %v14396_v16 }
0x23e0   : > { %v11102_v51 = vpack.i.bf16 %v6033_v50, %v6032_v49 }
0x23e2   : > { %11103 = vrot.lane.b32.xlu1 %v11102_v51, %s15289_s5  ;;  %11098 = vrot.lane.b32.xlu0 %v11102_v51, %s15312_s9 }
0x23e6   : > { %6059 = vperm.xlu1 %10866, %v6021_v53   ;;  %6054 = vperm.xlu0 %10845, %v6020_v54  }
0x2454   : > { %v11099_v56 = vpop.permute.xlu0 %11098  ;;  %v11104_v1 = vpop.permute.xlu1 %11103 }
0x2455   : > { %v11101_v60 = vunpack.i.h.bf16 %v11099_v56  ;;  %v11100_v41 = vunpack.i.l.bf16 %v11099_v56  ;;  %v11106_v4 = vunpack.i.h.bf16 %v11104_v1  ;;  %v11105_v18 = vunpack.i.l.bf16 %v11104_v1  ;;  %v6144_v56 = vld [vmem:[#allocation4 + $0x8] sm:$0xff] }
0x2457   : > { %v10112_v3 = vpack.c.bf16 %v11101_v60, %v11100_v41  ;;  %v10122_v5 = vpack.c.bf16 %v11106_v4, %v11105_v18  ;;  %v6271_v60 = vld [vmem:[#allocation6 + $0x8] sm:$0xff]  ;;  %v6379_v41 = vld [vmem:[#allocation9] sm:$0xff] }
0x2459   : > { %10114 = vmatprep.subr.msk.bf16.mxu0 %vm13862_vm4, %v10112_v3 }
0x245a   : > { %10117 = vmatpush3.bf16.msk.msra.mxu0 %vm13862_vm4, %v10112_v3 }
0x245b   : > { %10119 = vmatprep.subr.bf16.mxu0 %v10118_v13 }
0x245e   : > { %10121 = vmatpush3.bf16.msra.mxu0 %v10118_v13 }
0x245f   : > { %10124 = vmatprep.subr.msk.bf16.mxu0 %vm14271_vm12, %v10122_v5 }
0x2462   : > { %10127 = vmatpush3.bf16.msk.msra.mxu0 %vm14271_vm12, %v10122_v5 }
0x2465   : > { %9621 = vmatmul.mubr.msk.f32.vlgmr.msra.gmra.mrb[36].mxu0 %vm3136_vm7, %v6019_v6  ;;  %v6060_v7 = vpop.permute.xlu1 %6059  ;;  %v6055_v9 = vpop.permute.xlu0 %6054 }
0x2466   : > { %9635 = vmatprep.mubr.msk.f32.mxu0 %vm3136_vm7, %v6143_v35 }
0x2538   : > { %v9622_v8 = vpop.f32.mrb[36].mxu0 }
0x2539   : > { %v6140_v10 = vadd.f32 %v9622_v8, %v6060_v7  ;;  %v6134_v11 = vpop.f32.mrb[37].mxu0 }
0x253a   : > { %v6135_v15 = vadd.f32 %v6134_v11, %v6055_v9 }
0x253c   : > { %v11107_v19 = vpack.i.bf16 %v6140_v10, %v6135_v15  ;;  %v10134_v54 = vpack.c.bf16 %v6140_v10, %v6135_v15 }
0x253e   : > { %11108 = vrot.lane.b32.xlu0 %v11107_v19, %s15317_s0 }
0x25b0   : > { %v11109_v20 = vpop.permute.xlu0 %11108 }
0x25b1   : > { %v11111_v21 = vunpack.i.h.bf16 %v11109_v20  ;;  %v11110_v25 = vunpack.i.l.bf16 %v11109_v20 }
0x25b3   : > { %v6152_v26 = vsel %vm4990_vm10, %v11111_v21, %v6140_v10  ;;  %v6149_v27 = vsel %vm4990_vm10, %v11110_v25, %v6135_v15 }
0x25b4   : > { %v11112_v28 = vpack.i.bf16 %v6152_v26, %v6149_v27 }
0x25b6   : > { %11113 = vrot.lane.b32.xlu1 %v11112_v28, %s15317_s0  ;;  %s15324_s0 = sld [smem:[#allocation101_spill]] }
0x25bc   : > { %s15325_s8 = smov %s15324_s0  ;;  %v6568_v45 = vld [vmem:[%s15324_s0 + $0x8] sm:$0xff]  ;;  %s15327_s0 = sld [smem:[#allocation98_spill]] }
0x25c2   : > { %s15328_s2 = smov %s15327_s0 }
0x2628   : > { %v11114_v33 = vpop.permute.xlu1 %11113 }
0x2629   : > { %v11116_v12 = vunpack.i.h.bf16 %v11114_v33  ;;  %v11115_v58 = vunpack.i.l.bf16 %v11114_v33 }
0x262b   : > { %v6158_v59 = vsel %vm4990_vm10, %v11116_v12, %v6140_v10  ;;  %v6157_v34 = vsel %vm4990_vm10, %v11115_v58, %v6135_v15 }
0x262c   : > { %v11122_v17 = vpack.i.bf16 %v6158_v59, %v6157_v34 }
0x262e   : > { %11123 = vrot.lane.b32.xlu1 %v11122_v17, %s15289_s5  ;;  %11118 = vrot.lane.b32.xlu0 %v11122_v17, %s15312_s9  ;;  %s15326_s9 = sld [smem:[#allocation85_spill]] }
0x2632   : > { %6281 = vperm.xlu1 %10866, %v6273_v43   ;;  %6276 = vperm.xlu0 %10845, %v6272_v29   ;;  %v6380_v29 = vld [vmem:[#allocation9 + $0x8] sm:$0xff] }
0x2634   : > { %v6476_v58 = vld [vmem:[%s15326_s9] sm:$0xff]  ;;  %v6477_v59 = vld [vmem:[%s15326_s9 + $0x8] sm:$0xff]  ;;  %v6478_v42 = vld [vmem:[%s15326_s9 + $0x10] sm:$0xff] }
0x2635   : > { %v10164_v35 = vpack.c.bf16 %v6477_v59, %v6476_v58  ;;  %v6479_v43 = vld [vmem:[%s15326_s9 + $0x18] sm:$0xff] }
0x2636   : > { %6184 = vperm.xlu1 %10866, %v6146_v30   ;;  %6179 = vperm.xlu0 %10845, %v6145_v31   ;;  %v10168_v30 = vpack.c.bf16 %v6479_v43, %v6478_v42  ;;  %v6480_v31 = vld [vmem:[%s15326_s9 + $0x20] sm:$0xff] }
0x263a   : > { %6390 = vperm.xlu1 %10866, %v6382_v32   ;;  %6385 = vperm.xlu0 %10845, %v6381_v44   ;;  %v6481_v32 = vld [vmem:[%s15326_s9 + $0x28] sm:$0xff] }
0x263b   : > { %v10172_v44 = vpack.c.bf16 %v6481_v32, %v6480_v31 }
0x263e   : > { %11133 = vrot.lane.b32.xlu1 %v14237_v22, %s15287_s3 }
0x2642   : > { %11143 = vrot.lane.b32.xlu1 %v14237_v22, %s15289_s5 }
0x2646   : > { %6600 = vperm.xlu1 %10866, %v6568_v45   ;;  %v6482_v45 = vld [vmem:[%s15326_s9 + $0x30] sm:$0xff] }
0x26a0   : > { %v11119_v46 = vpop.permute.xlu0 %11118  ;;  %v11124_v50 = vpop.permute.xlu1 %11123 }
0x26a1   : > { %v11121_v47 = vunpack.i.h.bf16 %v11119_v46  ;;  %v11120_v49 = vunpack.i.l.bf16 %v11119_v46  ;;  %v11126_v52 = vunpack.i.h.bf16 %v11124_v50  ;;  %v11125_v53 = vunpack.i.l.bf16 %v11124_v50  ;;  %v6483_v46 = vld [vmem:[%s15326_s9 + $0x38] sm:$0xff] }
0x26a3   : > { %v10128_v51 = vpack.c.bf16 %v11121_v47, %v11120_v49  ;;  %v10138_v22 = vpack.c.bf16 %v11126_v52, %v11125_v53  ;;  %v10176_v47 = vpack.c.bf16 %v6483_v46, %v6482_v45 }
0x26a5   : > { %10130 = vmatprep.subr.msk.bf16.mxu0 %vm13862_vm4, %v10128_v51  ;;  %10146 = vmatprep.subr.msk.bf16.mxu1 %vm13862_vm4, %v10128_v51 }
0x26a6   : > { %10133 = vmatpush3.bf16.msk.msra.mxu0 %vm13862_vm4, %v10128_v51  ;;  %10149 = vmatpush3.bf16.msk.msra.mxu1 %vm13862_vm4, %v10128_v51 }
0x26a7   : > { %10135 = vmatprep.subr.bf16.mxu0 %v10134_v54  ;;  %10151 = vmatprep.subr.bf16.mxu1 %v10134_v54 }
0x26aa   : > { %10137 = vmatpush3.bf16.msra.mxu0 %v10134_v54  ;;  %10153 = vmatpush3.bf16.msra.mxu1 %v10134_v54 }
0x26ab   : > { %10140 = vmatprep.subr.msk.bf16.mxu0 %vm14271_vm12, %v10138_v22  ;;  %10156 = vmatprep.subr.msk.bf16.mxu1 %vm14271_vm12, %v10138_v22 }
0x26ae   : > { %10143 = vmatpush3.bf16.msk.msra.mxu0 %vm14271_vm12, %v10138_v22  ;;  %10159 = vmatpush3.bf16.msk.msra.mxu1 %vm14271_vm12, %v10138_v22 }
0x26b1   : > { %9636 = vmatmul.mubr.msk.f32.vlgmr.msra.gmra.mrb[38].mxu0 %vm3136_vm7, %v6144_v56  ;;  %9651 = vmatmul.mubr.msk.f32.vlgmr.msra.gmra.mrb[36].mxu1 %vm3136_vm7, %v6271_v60  ;;  %v6282_v1 = vpop.permute.xlu1 %6281  ;;  %v6277_v3 = vpop.permute.xlu0 %6276 }
0x26b2   : > { %9657 = vmatprep.mubr.msk.f32.mxu0 %vm4088_vm8, %v6379_v41 }
0x26b5   : > { %v6185_v9 = vpop.permute.xlu1 %6184  ;;  %v6180_v10 = vpop.permute.xlu0 %6179 }
0x26b9   : > { %v6391_v49 = vpop.permute.xlu1 %6390  ;;  %v6386_v51 = vpop.permute.xlu0 %6385 }
0x2784   : > { %v9637_v4 = vpop.f32.mrb[38].mxu0  ;;  %v9652_v18 = vpop.f32.mrb[36].mxu1 }
0x2785   : > { %v6362_v13 = vadd.f32 %v9652_v18, %v6282_v1  ;;  %v6259_v5 = vpop.f32.mrb[39].mxu0  ;;  %v6356_v6 = vpop.f32.mrb[37].mxu1  ;;  %v6265_v11 = vadd.f32 %v9637_v4, %v6185_v9  ;;  %v6567_v4 = vld [vmem:[%s15325_s8] sm:$0xff] }
0x2786   : > { %v6357_v7 = vadd.f32 %v6356_v6, %v6277_v3  ;;  %v6260_v15 = vadd.f32 %v6259_v5, %v6180_v10 }
0x2787   : > { %v9043_v8 = vmul.f32 -1.442695, %v6362_v13 }
0x2788   : > { %v9042_v2 = vmul.f32 -1.442695, %v6357_v7 }
0x2789   : > { %11375 = vpow2.f32 %v9043_v8 }
0x278a   : > { %11377 = vpow2.f32 %v9042_v2 }
0x278b   : > { %11379 = vtanh.f32 %v6265_v11 }
0x278c   : > { %11381 = vtanh.f32 %v6260_v15 }
0x2793   : > { %v11376_v19 = vpop.eup %11375 }
0x2794   : > { %v11378_v20 = vpop.eup %11377  ;;  %v6372_v21 = vadd.f32 1.0, %v11376_v19 }
0x2795   : > { %v6371_v25 = vadd.f32 1.0, %v11378_v20  ;;  %v11380_v26 = vpop.eup %11379 }
0x2796   : > { %11383 = vrcp.f32 %v6372_v21  ;;  %v11382_v27 = vpop.eup %11381 }
0x2797   : > { %11385 = vrcp.f32 %v6371_v25 }
0x27a0   : > { %v11384_v28 = vpop.eup %11383 }
0x27a1   : > { %v11386_v33 = vpop.eup %11385  ;;  %v6378_v12 = vmul.f32 %v11384_v28, %v11380_v26  ;;  %v6566_v26 = vld [vmem:[#allocation18 + $0x8] sm:$0xff] }
0x27a2   : > { %v6377_v34 = vmul.f32 %v11386_v33, %v11382_v27 }
0x27a4   : > { %v10160_v17 = vpack.c.bf16 %v6378_v12, %v6377_v34  ;;  %v6684_v34 = vld [vmem:[#allocation15] sm:$0xff] }
0x27a6   : > { %10161 = vmatprep.subr.bf16.mxu0 %v10160_v17 }
0x27a7   : > { %10163 = vmatpush3.bf16.msra.mxu0 %v10160_v17  ;;  %v6687_v17 = vld [vmem:[%s15327_s0 + $0x8] sm:$0xff]  ;;  %s15329_s0 = sld [smem:[#allocation97_spill]] }
0x27a8   : > { %10165 = vmatprep.subr.bf16.mxu0 %v10164_v35 }
0x27aa   : > { %9658 = vmatmul.mubr.msk.f32.vlgmr.msra.gmra.mrb[40].mxu0 %vm4088_vm8, %v6380_v29 }
0x27ab   : > { %10167 = vmatpush3.bf16.msra.mxu0 %v10164_v35  ;;  %v6686_v35 = vld [vmem:[%s15328_s2] sm:$0xff] }
0x27ac   : > { %10169 = vmatprep.subr.bf16.mxu0 %v10168_v30 }
0x27ad   : > { %s15330_s2 = smov %s15329_s0 }
0x27af   : > { %10171 = vmatpush3.bf16.msra.mxu0 %v10168_v30 }
0x27b0   : > { %10173 = vmatprep.subr.bf16.mxu0 %v10172_v44 }
0x27b3   : > { %10175 = vmatpush3.bf16.msra.mxu0 %v10172_v44 }
0x27b4   : > { %10177 = vmatprep.subr.bf16.mxu0 %v10176_v47 }
0x27b7   : > { %10179 = vmatpush3.bf16.msra.mxu0 %v10176_v47  ;;  %v6685_v47 = vld [vmem:[#allocation15 + $0x8] sm:$0xff] }
0x287d   : > { %v9659_v50 = vpop.f32.mrb[40].mxu0 }
0x287e   : > { %v6471_v52 = vadd.f32 %v9659_v50, %v6391_v49  ;;  %v6465_v53 = vpop.f32.mrb[41].mxu0 }
0x287f   : > { %v6466_v54 = vadd.f32 %v6465_v53, %v6386_v51 }
0x2880   : > { %v14481_v56 = vadd.f32 %v6471_v52, %v14396_v16  ;;  %v11134_v16 = vpop.permute.xlu1 %11133 }
0x2881   : > { %v14478_v22 = vadd.f32 %v6466_v54, %v14398_v36  ;;  %v6565_v36 = vld [vmem:[#allocation18] sm:$0xff]  ;;  %v11136_v13 = vunpack.i.h.bf16 %v11134_v16  ;;  %v11135_v5 = vunpack.i.l.bf16 %v11134_v16  ;;  %v6794_v16 = vld [vmem:[%s15331_s4 + $0x8] sm:$0xff] }
0x2882   : > { %9703 = vmatprep.mubr.msk.f32.mxu1 %vm5936_vm11, %v6565_v36  ;;  %v6902_v36 = vld [vmem:[%s15330_s2] sm:$0xff] }
0x2883   : > { %9676 = vmatprep.mubr.msk.f32.mxu0 %vm5454_vm13, %v14478_v22  ;;  %v10186_v2 = vpack.c.bf16 %v11136_v13, %v11135_v5  ;;  %v7012_v13 = vld [vmem:[%s15332_s6 + $0x8] sm:$0xff]  ;;  %v7011_v5 = vld [vmem:[%s15332_s6] sm:$0xff]  ;;  %s15342_s6 = sld [smem:[#allocation107_spill]] }
0x2884   : > { %9677 = vmatmul.mubr.msk.f32.vlgmr.msra.gmra.mrb[42].mxu0 %vm5454_vm13, %v14481_v56  ;;  %v11144_v15 = vpop.permute.xlu1 %11143 }
0x2885   : > { %v11146_v19 = vunpack.i.h.bf16 %v11144_v15  ;;  %v11145_v20 = vunpack.i.l.bf16 %v11144_v15  ;;  %9718 = vmatprep.mubr.msk.f32.mxu0 %vm3136_vm7, %v6684_v34 }
0x2887   : > { %v10206_v25 = vpack.c.bf16 %v11146_v19, %v11145_v20  ;;  %v6792_v19 = vld [vmem:[#allocation12 + $0x8] sm:$0xff]  ;;  %v6901_v20 = vld [vmem:[#allocation13 + $0x8] sm:$0xff] }
0x2888   : > { %v6601_v27 = vpop.permute.xlu1 %6600 }
0x2957   : > { %v9678_v60 = vpop.f32.mrb[42].mxu0 }
0x2958   : > { %v6556_v41 = vpop.f32.mrb[43].mxu0 }
0x2959   : > { %v11137_v1 = vpack.i.bf16 %v9678_v60, %v6556_v41  ;;  %v10192_v3 = vpack.c.bf16 %v9678_v60, %v6556_v41 }
0x295b   : > { %11128 = vrot.lane.b32.xlu0 %v11137_v1, %s15287_s3 }
0x295f   : > { %11138 = vrot.lane.b32.xlu0 %v11137_v1, %s15289_s5  ;;  %v6791_v1 = vld [vmem:[#allocation12] sm:$0xff] }
0x2963   : > { %6595 = vperm.xlu0 %10845, %v6567_v4   ;;  %v6903_v4 = vld [vmem:[%s15329_s0 + $0x8] sm:$0xff]  ;;  %s15333_s0 = sld [smem:[#allocation86_spill]] }
0x2969   : > { %s15334_s2 = smov %s15333_s0 }
0x29cd   : > { %v11129_v18 = vpop.permute.xlu0 %11128 }
0x29ce   : > { %v11131_v6 = vunpack.i.h.bf16 %v11129_v18  ;;  %v11130_v7 = vunpack.i.l.bf16 %v11129_v18  ;;  %v6793_v18 = vld [vmem:[%s15331_s4] sm:$0xff]  ;;  %s15341_s4 = sld [smem:[#allocation103_spill]] }
0x29d0   : > { %v10180_v8 = vpack.c.bf16 %v11131_v6, %v11130_v7 }
0x29d1   : > { %v11139_v9 = vpop.permute.xlu0 %11138 }
0x29d2   : > { %10182 = vmatprep.subr.msk.bf16.mxu1 %vm13862_vm4, %v10180_v8  ;;  %v11141_v10 = vunpack.i.h.bf16 %v11139_v9  ;;  %v11140_v11 = vunpack.i.l.bf16 %v11139_v9 }
0x29d3   : > { %10185 = vmatpush3.bf16.msk.msra.mxu1 %vm13862_vm4, %v10180_v8 }
0x29d4   : > { %10188 = vmatprep.subr.msk.bf16.mxu1 %vm13862_vm4, %v10186_v2  ;;  %v10200_v21 = vpack.c.bf16 %v11141_v10, %v11140_v11 }
0x29d7   : > { %10191 = vmatpush3.bf16.msk.msra.mxu1 %vm13862_vm4, %v10186_v2 }
0x29d8   : > { %10193 = vmatprep.subr.bf16.mxu1 %v10192_v3 }
0x29db   : > { %10195 = vmatpush3.bf16.msra.mxu1 %v10192_v3  ;;  %v6900_v3 = vld [vmem:[#allocation13] sm:$0xff] }
0x29dc   : > { %10197 = vmatprep.subr.bf16.mxu1 %v14239_v23 }
0x29df   : > { %10199 = vmatpush3.bf16.msra.mxu1 %v14239_v23 }
0x29e0   : > { %10202 = vmatprep.subr.msk.bf16.mxu1 %vm14178_vm9, %v10200_v21 }
0x29e2   : > { %v6596_v28 = vpop.permute.xlu0 %6595 }
0x29e3   : > { %10205 = vmatpush3.bf16.msk.msra.mxu1 %vm14178_vm9, %v10200_v21  ;;  %v7009_v21 = vld [vmem:[#allocation16] sm:$0xff] }
0x29e4   : > { %10208 = vmatprep.subr.msk.bf16.mxu1 %vm14178_vm9, %v10206_v25 }
0x29e7   : > { %10211 = vmatpush3.bf16.msk.msra.mxu1 %vm14178_vm9, %v10206_v25  ;;  %v7107_v25 = vld [vmem:[%s15333_s0 + $0x8] sm:$0xff]  ;;  %s15335_s0 = sld [smem:[#allocation109_spill]] }
0x29ea   : > { %9704 = vmatmul.mubr.msk.f32.vlgmr.msra.gmra.mrb[38].mxu1 %vm5936_vm11, %v6566_v26  ;;  %v7109_v26 = vld [vmem:[%s15334_s2 + $0x18] sm:$0xff] }
0x29eb   : > { %9748 = vmatprep.mubr.msk.f32.mxu1 %vm3136_vm7, %v6900_v3  ;;  %v10264_v14 = vpack.c.bf16 %v7109_v26, %v7107_v25  ;;  %v7129_v3 = vld [vmem:[%s15334_s2 + $0xb8] sm:$0xff] }
0x2abd   : > { %v9705_v23 = vpop.f32.mrb[38].mxu1 }
0x2abe   : > { %v14510_v33 = vadd.f32 %v9705_v23, %v6601_v27  ;;  %v6675_v12 = vpop.f32.mrb[39].mxu1  ;;  %v7106_v27 = vld [vmem:[%s15334_s2] sm:$0xff]  ;;  %v7108_v23 = vld [vmem:[%s15334_s2 + $0x10] sm:$0xff] }
0x2abf   : > { %v14512_v58 = vadd.f32 %v6675_v12, %v6596_v28  ;;  %v7111_v28 = vld [vmem:[%s15334_s2 + $0x28] sm:$0xff]  ;;  %v7113_v12 = vld [vmem:[%s15334_s2 + $0x38] sm:$0xff] }
0x2ac0   : > { %v10268_v34 = vpack.c.bf16 %v7113_v12, %v7111_v28 }
0x2ac1   : > { %v11152_v59 = vpack.i.bf16 %v14510_v33, %v14512_v58  ;;  %v10218_v45 = vpack.c.bf16 %v14510_v33, %v14512_v58 }
0x2ac3   : > { %11153 = vrot.lane.b32.xlu1 %v11152_v59, %s15289_s5  ;;  %11148 = vrot.lane.b32.xlu0 %v11152_v59, %s15287_s3  ;;  %v10266_v59 = vpack.c.bf16 %v7108_v23, %v7106_v27 }
0x2ac7   : > { %6707 = vperm.xlu1 %10866, %v6687_v17   ;;  %6702 = vperm.xlu0 %10845, %v6686_v35   ;;  %v7110_v17 = vld [vmem:[%s15334_s2 + $0x20] sm:$0xff]  ;;  %v7112_v35 = vld [vmem:[%s15334_s2 + $0x30] sm:$0xff] }
0x2b35   : > { %v11149_v42 = vpop.permute.xlu0 %11148  ;;  %v11154_v30 = vpop.permute.xlu1 %11153 }
0x2b36   : > { %v11151_v43 = vunpack.i.h.bf16 %v11149_v42  ;;  %v11150_v29 = vunpack.i.l.bf16 %v11149_v42  ;;  %v11156_v32 = vunpack.i.h.bf16 %v11154_v30  ;;  %v11155_v44 = vunpack.i.l.bf16 %v11154_v30  ;;  %v7115_v42 = vld [vmem:[%s15334_s2 + $0x48] sm:$0xff] }
0x2b38   : > { %v10212_v31 = vpack.c.bf16 %v11151_v43, %v11150_v29  ;;  %v10222_v46 = vpack.c.bf16 %v11156_v32, %v11155_v44  ;;  %v7117_v43 = vld [vmem:[%s15334_s2 + $0x58] sm:$0xff]  ;;  %v10270_v29 = vpack.c.bf16 %v7112_v35, %v7110_v17  ;;  %v7116_v32 = vld [vmem:[%s15334_s2 + $0x50] sm:$0xff]  ;;  %v7119_v44 = vld [vmem:[%s15334_s2 + $0x68] sm:$0xff] }
0x2b39   : > { %v10272_v30 = vpack.c.bf16 %v7117_v43, %v7115_v42 }
0x2b3a   : > { %10214 = vmatprep.subr.msk.bf16.mxu0 %vm13862_vm4, %v10212_v31 }
0x2b3b   : > { %10217 = vmatpush3.bf16.msk.msra.mxu0 %vm13862_vm4, %v10212_v31  ;;  %v7114_v31 = vld [vmem:[%s15334_s2 + $0x40] sm:$0xff] }
0x2b3c   : > { %10219 = vmatprep.subr.bf16.mxu0 %v10218_v45 }
0x2b3f   : > { %10221 = vmatpush3.bf16.msra.mxu0 %v10218_v45  ;;  %v7121_v45 = vld [vmem:[%s15334_s2 + $0x78] sm:$0xff] }
0x2b40   : > { %10224 = vmatprep.subr.msk.bf16.mxu0 %vm14178_vm9, %v10222_v46 }
0x2b43   : > { %10227 = vmatpush3.bf16.msk.msra.mxu0 %vm14178_vm9, %v10222_v46  ;;  %v10274_v46 = vpack.c.bf16 %v7116_v32, %v7114_v31 }
0x2b46   : > { %9719 = vmatmul.mubr.msk.f32.vlgmr.msra.gmra.mrb[44].mxu0 %vm3136_vm7, %v6685_v47  ;;  %v6708_v49 = vpop.permute.xlu1 %6707  ;;  %v6703_v51 = vpop.permute.xlu0 %6702  ;;  %v10276_v47 = vpack.c.bf16 %v7121_v45, %v7119_v44 }
0x2b47   : > { %9733 = vmatprep.mubr.msk.f32.mxu0 %vm3136_vm7, %v6791_v1  ;;  %v7127_v1 = vld [vmem:[%s15334_s2 + $0xa8] sm:$0xff] }
0x2c19   : > { %v9720_v50 = vpop.f32.mrb[44].mxu0 }
0x2c1a   : > { %v6788_v52 = vadd.f32 %v9720_v50, %v6708_v49  ;;  %v6782_v53 = vpop.f32.mrb[45].mxu0  ;;  %v7118_v49 = vld [vmem:[%s15334_s2 + $0x60] sm:$0xff]  ;;  %v7120_v50 = vld [vmem:[%s15334_s2 + $0x70] sm:$0xff] }
0x2c1b   : > { %v6783_v54 = vadd.f32 %v6782_v53, %v6703_v51  ;;  %v7123_v51 = vld [vmem:[%s15334_s2 + $0x88] sm:$0xff]  ;;  %v10278_v53 = vpack.c.bf16 %v7120_v50, %v7118_v49  ;;  %v7137_v49 = vld [vmem:[%s15334_s2 + $0xf8] sm:$0xff] }
0x2c1d   : > { %v11162_v60 = vpack.i.bf16 %v6788_v52, %v6783_v54  ;;  %v10234_v41 = vpack.c.bf16 %v6788_v52, %v6783_v54  ;;  %v7125_v52 = vld [vmem:[%s15334_s2 + $0x98] sm:$0xff] }
0x2c1e   : > { %v10280_v54 = vpack.c.bf16 %v7125_v52, %v7123_v51  ;;  %v7134_v51 = vld [vmem:[%s15334_s2 + $0xe0] sm:$0xff]  ;;  %v7136_v52 = vld [vmem:[%s15334_s2 + $0xf0] sm:$0xff] }
0x2c1f   : > { %11163 = vrot.lane.b32.xlu1 %v11162_v60, %s15289_s5  ;;  %11158 = vrot.lane.b32.xlu0 %v11162_v60, %s15287_s3  ;;  %v7122_v60 = vld [vmem:[%s15334_s2 + $0x80] sm:$0xff] }
0x2c23   : > { %6911 = vperm.xlu1 %10866, %v6903_v4   ;;  %6906 = vperm.xlu0 %10845, %v6902_v36   ;;  %v10284_v36 = vpack.c.bf16 %v7129_v3, %v7127_v1 }
0x2c27   : > { %6814 = vperm.xlu1 %10866, %v6794_v16   ;;  %6809 = vperm.xlu0 %10845, %v6793_v18   ;;  %v7126_v16 = vld [vmem:[%s15334_s2 + $0xa0] sm:$0xff]  ;;  %v7128_v18 = vld [vmem:[%s15334_s2 + $0xb0] sm:$0xff] }
0x2c2b   : > { %7020 = vperm.xlu1 %10866, %v7012_v13   ;;  %7015 = vperm.xlu0 %10845, %v7011_v5   ;;  %v7131_v13 = vld [vmem:[%s15334_s2 + $0xc8] sm:$0xff]  ;;  %v7133_v5 = vld [vmem:[%s15334_s2 + $0xd8] sm:$0xff] }
0x2c91   : > { %v11159_v6 = vpop.permute.xlu0 %11158  ;;  %v11164_v2 = vpop.permute.xlu1 %11163 }
0x2c92   : > { %v11161_v7 = vunpack.i.h.bf16 %v11159_v6  ;;  %v11160_v8 = vunpack.i.l.bf16 %v11159_v6  ;;  %v11166_v10 = vunpack.i.h.bf16 %v11164_v2  ;;  %v11165_v11 = vunpack.i.l.bf16 %v11164_v2  ;;  %v7132_v2 = vld [vmem:[%s15334_s2 + $0xd0] sm:$0xff] }
0x2c93   : > { %v10286_v6 = vpack.c.bf16 %v7128_v18, %v7126_v16 }
0x2c94   : > { %v10228_v9 = vpack.c.bf16 %v11161_v7, %v11160_v8  ;;  %v10238_v15 = vpack.c.bf16 %v11166_v10, %v11165_v11  ;;  %v10288_v7 = vpack.c.bf16 %v7133_v5, %v7131_v13  ;;  %v7130_v8 = vld [vmem:[%s15334_s2 + $0xc0] sm:$0xff] }
0x2c96   : > { %10230 = vmatprep.subr.msk.bf16.mxu0 %vm13862_vm4, %v10228_v9  ;;  %10246 = vmatprep.subr.msk.bf16.mxu1 %vm13862_vm4, %v10228_v9 }
0x2c97   : > { %10233 = vmatpush3.bf16.msk.msra.mxu0 %vm13862_vm4, %v10228_v9  ;;  %10249 = vmatpush3.bf16.msk.msra.mxu1 %vm13862_vm4, %v10228_v9  ;;  %v10290_v9 = vpack.c.bf16 %v7132_v2, %v7130_v8 }
0x2c98   : > { %10235 = vmatprep.subr.bf16.mxu0 %v10234_v41  ;;  %10251 = vmatprep.subr.bf16.mxu1 %v10234_v41 }
0x2c9b   : > { %10237 = vmatpush3.bf16.msra.mxu0 %v10234_v41  ;;  %10253 = vmatpush3.bf16.msra.mxu1 %v10234_v41  ;;  %v7124_v41 = vld [vmem:[%s15334_s2 + $0x90] sm:$0xff] }
0x2c9c   : > { %10240 = vmatprep.subr.msk.bf16.mxu0 %vm14178_vm9, %v10238_v15  ;;  %10256 = vmatprep.subr.msk.bf16.mxu1 %vm14178_vm9, %v10238_v15  ;;  %v10282_v4 = vpack.c.bf16 %v7124_v41, %v7122_v60 }
0x2c9f   : > { %10243 = vmatpush3.bf16.msk.msra.mxu0 %vm14178_vm9, %v10238_v15  ;;  %10259 = vmatpush3.bf16.msk.msra.mxu1 %vm14178_vm9, %v10238_v15 }
0x2ca0   : > { %10265 = vmatprep.subr.bf16.mxu1 %v10264_v14 }
0x2ca2   : > { %9734 = vmatmul.mubr.msk.f32.vlgmr.msra.gmra.mrb[46].mxu0 %vm3136_vm7, %v6792_v19  ;;  %9749 = vmatmul.mubr.msk.f32.vlgmr.msra.gmra.mrb[40].mxu1 %vm3136_vm7, %v6901_v20  ;;  %v6912_v10 = vpop.permute.xlu1 %6911  ;;  %v6907_v11 = vpop.permute.xlu0 %6906 }
0x2ca3   : > { %7202 = vmatprep.mubr.f32.mxu1 %v12624_v0  ;;  %9755 = vmatprep.mubr.msk.f32.mxu0 %vm4088_vm8, %v7009_v21 }
0x2ca4   : > { %10267 = vmatpush1.bf16.msra.mxu1 %v10266_v59 }
0x2ca5   : > { %10269 = vmatprep.subr.bf16.mxu1 %v10268_v34 }
0x2ca6   : > { %v6815_v23 = vpop.permute.xlu1 %6814  ;;  %v6810_v28 = vpop.permute.xlu0 %6809 }
0x2ca8   : > { %10271 = vmatpush1.bf16.msra.mxu1 %v10270_v29 }
0x2ca9   : > { %10273 = vmatprep.subr.bf16.mxu1 %v10272_v30 }
0x2caa   : > { %v7016_v60 = vpop.permute.xlu0 %7015  ;;  %v7021_v3 = vpop.permute.xlu1 %7020 }
0x2cac   : > { %10275 = vmatpush1.bf16.msra.mxu1 %v10274_v46  ;;  %v7010_v46 = vld [vmem:[#allocation16 + $0x8] sm:$0xff] }
0x2cad   : > { %10277 = vmatprep.subr.bf16.mxu1 %v10276_v47  ;;  %v7135_v47 = vld [vmem:[%s15334_s2 + $0xe8] sm:$0xff]  ;;  %s15336_s2 = smov %s15335_s0 }
0x2cae   : > { %v10292_v50 = vpack.c.bf16 %v7137_v49, %v7135_v47 }
0x2cb0   : > { %10279 = vmatpush1.bf16.msra.mxu1 %v10278_v53  ;;  %v10294_v53 = vpack.c.bf16 %v7136_v52, %v7134_v51 }
0x2cb1   : > { %10281 = vmatprep.subr.bf16.mxu1 %v10280_v54 }
0x2cb4   : > { %10283 = vmatpush1.bf16.msra.mxu1 %v10282_v4 }
0x2cb5   : > { %10285 = vmatprep.subr.bf16.mxu1 %v10284_v36 }
0x2cb8   : > { %10287 = vmatpush1.bf16.msra.mxu1 %v10286_v6 }
0x2cb9   : > { %10289 = vmatprep.subr.bf16.mxu1 %v10288_v7 }
0x2cbc   : > { %10291 = vmatpush1.bf16.msra.mxu1 %v10290_v9  ;;  %v7218_v9 = vld [vmem:[%s15336_s2 + $0x8] sm:$0xff] }
0x2cbd   : > { %10293 = vmatprep.subr.bf16.mxu1 %v10292_v50 }
0x2cc0   : > { %10295 = vmatpush1.bf16.msra.mxu1 %v10294_v53 }
0x2d75   : > { %v9735_v15 = vpop.f32.mrb[46].mxu0  ;;  %v9750_v19 = vpop.f32.mrb[40].mxu1 }
0x2d76   : > { %v6992_v20 = vadd.f32 %v9750_v19, %v6912_v10  ;;  %v6889_v21 = vpop.f32.mrb[47].mxu0  ;;  %v6986_v25 = vpop.f32.mrb[41].mxu1  ;;  %v6895_v12 = vadd.f32 %v9735_v15, %v6815_v23 }
0x2d77   : > { %v6987_v26 = vadd.f32 %v6986_v25, %v6907_v11  ;;  %v6890_v59 = vadd.f32 %v6889_v21, %v6810_v28 }
0x2d78   : > { %v9077_v27 = vmul.f32 -1.442695, %v6992_v20 }
0x2d79   : > { %v9076_v14 = vmul.f32 -1.442695, %v6987_v26 }
0x2d7a   : > { %11387 = vpow2.f32 %v9077_v27 }
0x2d7b   : > { %11389 = vpow2.f32 %v9076_v14 }
0x2d7c   : > { %11391 = vtanh.f32 %v6895_v12 }
0x2d7d   : > { %11393 = vtanh.f32 %v6890_v59 }
0x2d84   : > { %v11388_v34 = vpop.eup %11387 }
0x2d85   : > { %v11390_v17 = vpop.eup %11389  ;;  %v7002_v35 = vadd.f32 1.0, %v11388_v34 }
0x2d86   : > { %v7001_v42 = vadd.f32 1.0, %v11390_v17  ;;  %v11392_v43 = vpop.eup %11391 }
0x2d87   : > { %11395 = vrcp.f32 %v7002_v35  ;;  %v11394_v29 = vpop.eup %11393 }
0x2d88   : > { %11397 = vrcp.f32 %v7001_v42 }
0x2d91   : > { %v11396_v30 = vpop.eup %11395 }
0x2d92   : > { %v11398_v31 = vpop.eup %11397  ;;  %v7008_v32 = vmul.f32 %v11396_v30, %v11392_v43 }
0x2d93   : > { %v7007_v44 = vmul.f32 %v11398_v31, %v11394_v29 }
0x2d95   : > { %v10260_v45 = vpack.c.bf16 %v7008_v32, %v7007_v44 }
0x2d97   : > { %10261 = vmatprep.subr.bf16.mxu0 %v10260_v45 }
0x2d98   : > { %10263 = vmatpush3.bf16.msra.mxu0 %v10260_v45 }
0x2d9b   : > { %9756 = vmatmul.mubr.msk.f32.vlgmr.msra.gmra.mrb[48].mxu0 %vm4088_vm8, %v7010_v46 }
0x2d9c   : > { %7363 = vmatprep.mubr.f32.mxu0 %v12624_v0 }
0x2e6e   : > { %v9757_v54 = vpop.f32.mrb[48].mxu0 }
0x2e6f   : > { %v7095_v41 = vpop.f32.mrb[49].mxu0  ;;  %v7101_v4 = vadd.f32 %v9757_v54, %v7021_v3 }
0x2e70   : > { %v7096_v1 = vadd.f32 %v7095_v41, %v7016_v60 }
0x2e71   : > { %v14602_v16 = vadd.f32 %v7101_v4, %v14510_v33  ;;  %v7217_v33 = vld [vmem:[%s15335_s0] sm:$0xff]  ;;  %s15337_s0 = sld [smem:[#allocation106_spill]] }
0x2e72   : > { %v14597_v36 = vadd.f32 %v7096_v1, %v14512_v58 }
0x2e74   : > { %7203 = vmatmul.mubr.f32.vlgmr.msra.gmra.mrb[42].mxu1 %v14597_v36 }
0x2e75   : > { %7208 = vmatprep.mubr.f32.mxu1 %v12624_v0 }
0x2e77   : > { %s15338_s2 = smov %s15337_s0 }
0x2e78   : > { %7209 = vmatmul.mubr.f32.gmra.mrb[44].mxu1 %v14602_v16 }
0x2e79   : > { %7621 = vmatprep.mubr.f32.mxu1 %v12624_v0 }
0x2f47   : > { %v14606_v18 = vpop.f32.mrb[42].mxu1 }
0x2f48   : > { %v7206_v13 = vpop.f32.mrb[43].mxu1 }
0x2f4b   : > { %v7210_v5 = vpop.f32.mrb[44].mxu1 }
0x2f4c   : > { %v11187_v58 = vpack.i.bf16 %v7210_v5, %v14606_v18  ;;  %v10308_v6 = vpack.c.bf16 %v7210_v5, %v14606_v18  ;;  %v7212_v7 = vpop.f32.mrb[45].mxu1 }
0x2f4d   : > { %v11197_v8 = vpack.i.bf16 %v7212_v7, %v7206_v13  ;;  %v10306_v2 = vpack.c.bf16 %v7212_v7, %v7206_v13  ;;  %v7215_v7 = vld [vmem:[#allocation25] sm:$0xff] }
0x2f4e   : > { %11168 = vrot.lane.b32.xlu0 %v11187_v58, %s15287_s3 }
0x2f4f   : > { %11178 = vrot.lane.b32.xlu1 %v11197_v8, %s15287_s3 }
0x2f52   : > { %11173 = vrot.lane.b32.xlu0 %v14144_v40, %s15287_s3 }
0x2f53   : > { %11183 = vrot.lane.b32.xlu1 %v14151_v63, %s15287_s3 }
0x2f56   : > { %11188 = vrot.lane.b32.xlu0 %v11187_v58, %s15289_s5 }
0x2f57   : > { %11198 = vrot.lane.b32.xlu1 %v11197_v8, %s15289_s5 }
0x2f5a   : > { %11193 = vrot.lane.b32.xlu0 %v14144_v40, %s15289_s5 }
0x2f5b   : > { %11203 = vrot.lane.b32.xlu1 %v14151_v63, %s15289_s5 }
0x2f5e   : > { %7285 = vperm.xlu0 %10845, %v7217_v33  }
0x2f5f   : > { %7290 = vperm.xlu1 %10866, %v7218_v9  }
0x2fc0   : > { %v11169_v10 = vpop.permute.xlu0 %11168 }
0x2fc1   : > { %v11171_v11 = vunpack.i.h.bf16 %v11169_v10  ;;  %v11170_v15 = vunpack.i.l.bf16 %v11169_v10  ;;  %v11179_v19 = vpop.permute.xlu1 %11178 }
0x2fc2   : > { %v11181_v20 = vunpack.i.h.bf16 %v11179_v19  ;;  %v11180_v21 = vunpack.i.l.bf16 %v11179_v19 }
0x2fc4   : > { %v7240_v25 = vsel %vm3098_vm1, %v11181_v20, %v11171_v11  ;;  %v7239_v26 = vsel %vm3098_vm1, %v11180_v21, %v11170_v15  ;;  %v11174_v40 = vpop.permute.xlu0 %11173  ;;  %v7235_v63 = vsel %vm3098_vm1, %v11170_v15, %v11180_v21  ;;  %v7236_v27 = vsel %vm3098_vm1, %v11171_v11, %v11181_v20 }
0x2fc5   : > { %v10298_v14 = vpack.c.bf16 %v7240_v25, %v7239_v26  ;;  %v11176_v23 = vunpack.i.h.bf16 %v11174_v40  ;;  %v11175_v28 = vunpack.i.l.bf16 %v11174_v40  ;;  %v11184_v12 = vpop.permute.xlu1 %11183  ;;  %v10296_v59 = vpack.c.bf16 %v7236_v27, %v7235_v63  ;;  %v7378_v25 = vld [vmem:[%s15337_s0] sm:$0xff]  ;;  %v7379_v26 = vld [vmem:[%s15338_s2 + $0x8] sm:$0xff]  ;;  %s15339_s0 = sld [smem:[#allocation104_spill]] }
0x2fc6   : > { %v11186_v34 = vunpack.i.h.bf16 %v11184_v12  ;;  %v11185_v17 = vunpack.i.l.bf16 %v11184_v12 }
0x2fc7   : > { %10297 = vmatprep.subr.bf16.mxu0 %v10296_v59 }
0x2fc8   : > { %v7242_v35 = vsel %vm3098_vm1, %v11186_v34, %v11176_v23  ;;  %v7241_v42 = vsel %vm3098_vm1, %v11185_v17, %v11175_v28  ;;  %v11189_v43 = vpop.permute.xlu0 %11188  ;;  %10300 = vmatpush1.bf16.msk.msra.mxu0 %vm13862_vm4, %v10298_v14  ;;  %v7237_v29 = vsel %vm3098_vm1, %v11175_v28, %v11185_v17  ;;  %v7238_v30 = vsel %vm3098_vm1, %v11176_v23, %v11186_v34 }
0x2fc9   : > { %v10303_v31 = vpack.c.bf16 %v7242_v35, %v7241_v42  ;;  %v11199_v32 = vpop.permute.xlu1 %11198  ;;  %v10301_v44 = vpack.c.bf16 %v7238_v30, %v7237_v29  ;;  %v11191_v45 = vunpack.i.h.bf16 %v11189_v43  ;;  %v11190_v46 = vunpack.i.l.bf16 %v11189_v43 }
0x2fca   : > { %v11201_v47 = vunpack.i.h.bf16 %v11199_v32  ;;  %v11200_v49 = vunpack.i.l.bf16 %v11199_v32 }
0x2fcb   : > { %10302 = vmatprep.subr.bf16.mxu0 %v10301_v44  ;;  %s15340_s2 = smov %s15339_s0 }
0x2fcc   : > { %10305 = vmatpush1.bf16.msk.msra.mxu0 %vm13862_vm4, %v10303_v31  ;;  %v11194_v50 = vpop.permute.xlu0 %11193  ;;  %v7272_v52 = vsel %vm3117_vm3, %v11201_v47, %v11191_v45  ;;  %v7271_v53 = vsel %vm3117_vm3, %v11200_v49, %v11190_v46  ;;  %v7268_v3 = vsel %vm3117_vm3, %v11191_v45, %v11201_v47  ;;  %v7267_v4 = vsel %vm3117_vm3, %v11190_v46, %v11200_v49 }
0x2fcd   : > { %v11204_v51 = vpop.permute.xlu1 %11203  ;;  %10307 = vmatprep.subr.bf16.mxu0 %v10306_v2  ;;  %v11196_v54 = vunpack.i.h.bf16 %v11194_v50  ;;  %v11195_v60 = vunpack.i.l.bf16 %v11194_v50  ;;  %v10314_v18 = vpack.c.bf16 %v7272_v52, %v7271_v53  ;;  %v10317_v55 = vpack.c.bf16 %v7268_v3, %v7267_v4 }
0x2fce   : > { %v11206_v41 = vunpack.i.h.bf16 %v11204_v51  ;;  %v11205_v1 = vunpack.i.l.bf16 %v11204_v51 }
0x2fd0   : > { %10309 = vmatpush1.bf16.msra.mxu0 %v10308_v6  ;;  %v7274_v13 = vsel %vm3117_vm3, %v11206_v41, %v11196_v54  ;;  %v7273_v5 = vsel %vm3117_vm3, %v11205_v1, %v11195_v60  ;;  %v7270_v62 = vsel %vm3117_vm3, %v11196_v54, %v11206_v41  ;;  %v7376_v54 = vld [vmem:[#allocation22] sm:$0xff] }
0x2fd1   : > { %10311 = vmatprep.subr.bf16.mxu0 %v10310_v38  ;;  %v7269_v38 = vsel %vm3117_vm3, %v11195_v60, %v11205_v1  ;;  %v10319_v58 = vpack.c.bf16 %v7274_v13, %v7273_v5  ;;  %v7377_v60 = vld [vmem:[#allocation22 + $0x8] sm:$0xff] }
0x2fd2   : > { %v10322_v6 = vpack.c.bf16 %v7270_v62, %v7269_v38 }
0x2fd4   : > { %10313 = vmatpush1.bf16.msra.mxu0 %v10312_v37 }
0x2fd5   : > { %10316 = vmatprep.subr.msk.bf16.mxu0 %vm13876_vm6, %v10314_v18 }
0x2fd8   : > { %10318 = vmatpush1.bf16.msra.mxu0 %v10317_v55 }
0x2fd9   : > { %10321 = vmatprep.subr.msk.bf16.mxu0 %vm13876_vm6, %v10319_v58 }
0x2fdc   : > { %10323 = vmatpush1.bf16.msra.mxu0 %v10322_v6 }
0x2fdd   : > { %v7286_v8 = vpop.permute.xlu0 %7285 }
0x2fde   : > { %v7291_v2 = vpop.permute.xlu1 %7290 }
0x2fdf   : > { %9088 = vmatmul.mubr.msk.f32.vlgmr.msra.gmra.mrb[50].mxu0 %vm5936_vm11, %v7215_v7 }
0x2fe0   : > { %7369 = vmatprep.mubr.f32.mxu0 %v12624_v0 }
0x2fe3   : > { %9089 = vmatmul.mubr.msk.f32.gmra.mrb[52].mxu0 %vm5936_vm11, %v7216_v57 }
0x2fe4   : > { %7492 = vmatprep.mubr.f32.mxu0 %v12624_v0 }
0x30b2   : > { %v7365_v61 = vpop.f32.mrb[50].mxu0 }
0x30b3   : > { %v7367_v37 = vpop.f32.mrb[51].mxu0  ;;  %v14674_v9 = vadd.f32 %v7365_v61, %v7286_v8  ;;  %v7640_v61 = vld [vmem:[%s15339_s0] sm:$0xff]  ;;  %s15343_s0 = sld [smem:[#allocation78_spill]] }
0x30b4   : > { %v14678_v15 = vadd.f32 %v7367_v37, %v7286_v8  ;;  %v7641_v37 = vld [vmem:[%s15340_s2 + $0x8] sm:$0xff]  ;;  %v7507_v8 = vld [vmem:[%s15341_s4] sm:$0xff] }
0x30b6   : > { %v7371_v33 = vpop.f32.mrb[52].mxu0 }
0x30b7   : > { %v14676_v10 = vadd.f32 %v7371_v33, %v7291_v2  ;;  %v7373_v11 = vpop.f32.mrb[53].mxu0  ;;  %v7765_v33 = vld [vmem:[%s15342_s6] sm:$0xff] }
0x30b8   : > { %v14680_v19 = vadd.f32 %v7373_v11, %v7291_v2  ;;  %v7508_v2 = vld [vmem:[%s15341_s4 + $0x8] sm:$0xff] }
0x30b9   : > { %v11207_v20 = vpack.i.bf16 %v14676_v10, %v14674_v9  ;;  %v10331_v49 = vpack.c.bf16 %v14676_v10, %v14674_v9  ;;  %v7766_v11 = vld [vmem:[%s15342_s6 + $0x8] sm:$0xff]  ;;  %s15344_s2 = smov %s15343_s0 }
0x30ba   : > { %v11212_v21 = vpack.i.bf16 %v14680_v19, %v14678_v15  ;;  %v10329_v45 = vpack.c.bf16 %v14680_v19, %v14678_v15 }
0x30bb   : > { %11208 = vrot.lane.b32.xlu0 %v11207_v20, %s15287_s3 }
0x30bc   : > { %11213 = vrot.lane.b32.xlu1 %v11212_v21, %s15287_s3 }
0x30bf   : > { %11218 = vrot.lane.b32.xlu0 %v11207_v20, %s15289_s5 }
0x30c0   : > { %11223 = vrot.lane.b32.xlu1 %v11212_v21, %s15289_s5 }
0x30c3   : > { %7414 = vperm.xlu0 %10845, %v7378_v25  }
0x30c4   : > { %7419 = vperm.xlu1 %10866, %v7379_v26  }
0x312d   : > { %v11209_v40 = vpop.permute.xlu0 %11208 }
0x312e   : > { %v11211_v63 = vunpack.i.h.bf16 %v11209_v40  ;;  %v11210_v27 = vunpack.i.l.bf16 %v11209_v40  ;;  %v11214_v14 = vpop.permute.xlu1 %11213 }
0x312f   : > { %v11216_v23 = vunpack.i.h.bf16 %v11214_v14  ;;  %v11215_v28 = vunpack.i.l.bf16 %v11214_v14 }
0x3131   : > { %v7390_v12 = vsel %vm3098_vm1, %v11215_v28, %v11210_v27  ;;  %v7391_v59 = vsel %vm3098_vm1, %v11216_v23, %v11211_v63  ;;  %v11219_v34 = vpop.permute.xlu0 %11218  ;;  %v7388_v17 = vsel %vm3098_vm1, %v11210_v27, %v11215_v28  ;;  %v7389_v35 = vsel %vm3098_vm1, %v11211_v63, %v11216_v23 }
0x3132   : > { %v10326_v42 = vpack.c.bf16 %v7391_v59, %v7390_v12  ;;  %v11221_v43 = vunpack.i.h.bf16 %v11219_v34  ;;  %v11220_v29 = vunpack.i.l.bf16 %v11219_v34  ;;  %v11224_v30 = vpop.permute.xlu1 %11223  ;;  %v10324_v31 = vpack.c.bf16 %v7389_v35, %v7388_v17 }
0x3133   : > { %v11226_v32 = vunpack.i.h.bf16 %v11224_v30  ;;  %v11225_v44 = vunpack.i.l.bf16 %v11224_v30 }
0x3134   : > { %10325 = vmatprep.subr.bf16.mxu0 %v10324_v31 }
0x3135   : > { %v7406_v46 = vsel %vm3117_vm3, %v11225_v44, %v11220_v29  ;;  %v7407_v47 = vsel %vm3117_vm3, %v11226_v32, %v11221_v43  ;;  %10328 = vmatpush1.bf16.msk.msra.mxu0 %vm13862_vm4, %v10326_v42  ;;  %v7404_v50 = vsel %vm3117_vm3, %v11220_v29, %v11225_v44  ;;  %v7405_v51 = vsel %vm3117_vm3, %v11221_v43, %v11226_v32 }
0x3136   : > { %10330 = vmatprep.subr.bf16.mxu0 %v10329_v45  ;;  %v10333_v52 = vpack.c.bf16 %v7407_v47, %v7406_v46  ;;  %v10336_v53 = vpack.c.bf16 %v7405_v51, %v7404_v50  ;;  %v7865_v46 = vld [vmem:[%s15343_s0 + $0x8] sm:$0xff]  ;;  %v7867_v47 = vld [vmem:[%s15344_s2 + $0x18] sm:$0xff]  ;;  %v7864_v51 = vld [vmem:[%s15344_s2] sm:$0xff]  ;;  %s15345_s0 = sld [smem:[#allocation79_spill]] }
0x3137   : > { %v10370_v50 = vpack.c.bf16 %v7867_v47, %v7865_v46 }
0x3139   : > { %10332 = vmatpush1.bf16.msra.mxu0 %v10331_v49 }
0x313a   : > { %10335 = vmatprep.subr.msk.bf16.mxu0 %vm13876_vm6, %v10333_v52  ;;  %v7866_v52 = vld [vmem:[%s15344_s2 + $0x10] sm:$0xff] }
0x313d   : > { %10337 = vmatpush1.bf16.msra.mxu0 %v10336_v53  ;;  %v7869_v53 = vld [vmem:[%s15344_s2 + $0x28] sm:$0xff] }
0x3140   : > { %9094 = vmatmul.mubr.msk.f32.vlgmr.msra.gmra.mrb[54].mxu0 %vm3136_vm7, %v7376_v54  ;;  %v7871_v54 = vld [vmem:[%s15344_s2 + $0x38] sm:$0xff] }
0x3141   : > { %7498 = vmatprep.mubr.f32.mxu0 %v12624_v0 }
0x3142   : > { %v7415_v3 = vpop.permute.xlu0 %7414 }
0x3143   : > { %v7420_v4 = vpop.permute.xlu1 %7419 }
0x3144   : > { %9095 = vmatmul.mubr.msk.f32.gmra.mrb[56].mxu0 %vm3136_vm7, %v7377_v60  ;;  %v7505_v60 = vld [vmem:[#allocation19] sm:$0xff] }
0x3145   : > { %7722 = vmatprep.mubr.f32.mxu0 %v12624_v0 }
0x3213   : > { %v7494_v41 = vpop.f32.mrb[54].mxu0 }
0x3214   : > { %v7496_v1 = vpop.f32.mrb[55].mxu0  ;;  %v7495_v13 = vadd.f32 %v7494_v41, %v7415_v3  ;;  %v7638_v41 = vld [vmem:[#allocation21] sm:$0xff] }
0x3215   : > { %v7497_v62 = vadd.f32 %v7496_v1, %v7415_v3  ;;  %v10372_v1 = vpack.c.bf16 %v7866_v52, %v7864_v51  ;;  %v10374_v3 = vpack.c.bf16 %v7871_v54, %v7869_v53 }
0x3217   : > { %v7500_v18 = vpop.f32.mrb[56].mxu0 }
0x3218   : > { %v7501_v5 = vadd.f32 %v7500_v18, %v7420_v4  ;;  %v7502_v55 = vpop.f32.mrb[57].mxu0  ;;  %v7870_v18 = vld [vmem:[%s15344_s2 + $0x30] sm:$0xff] }
0x3219   : > { %v7503_v38 = vadd.f32 %v7502_v55, %v7420_v4  ;;  %v7868_v4 = vld [vmem:[%s15344_s2 + $0x20] sm:$0xff]  ;;  %v7506_v55 = vld [vmem:[#allocation19 + $0x8] sm:$0xff] }
0x321a   : > { %v11237_v58 = vpack.i.bf16 %v7501_v5, %v7495_v13  ;;  %v10345_v6 = vpack.c.bf16 %v7501_v5, %v7495_v13  ;;  %v7873_v13 = vld [vmem:[%s15344_s2 + $0x48] sm:$0xff]  ;;  %v7875_v5 = vld [vmem:[%s15344_s2 + $0x58] sm:$0xff] }
0x321b   : > { %v11242_v7 = vpack.i.bf16 %v7503_v38, %v7497_v62  ;;  %v10343_v57 = vpack.c.bf16 %v7503_v38, %v7497_v62  ;;  %v7639_v62 = vld [vmem:[#allocation21 + $0x8] sm:$0xff]  ;;  %v10376_v38 = vpack.c.bf16 %v7870_v18, %v7868_v4 }
0x321c   : > { %11228 = vrot.lane.b32.xlu0 %v11237_v58, %s15287_s3 }
0x321d   : > { %11233 = vrot.lane.b32.xlu1 %v11242_v7, %s15287_s3 }
0x3220   : > { %11238 = vrot.lane.b32.xlu0 %v11237_v58, %s15289_s5  ;;  %v10378_v58 = vpack.c.bf16 %v7875_v5, %v7873_v13 }
0x3221   : > { %11243 = vrot.lane.b32.xlu1 %v11242_v7, %s15289_s5  ;;  %v7874_v7 = vld [vmem:[%s15344_s2 + $0x50] sm:$0xff] }
0x3224   : > { %7644 = vperm.xlu0 %10845, %v7640_v61   ;;  %v7879_v61 = vld [vmem:[%s15344_s2 + $0x78] sm:$0xff] }
0x3225   : > { %7649 = vperm.xlu1 %10866, %v7641_v37  }
0x3228   : > { %7543 = vperm.xlu0 %10845, %v7507_v8  }
0x3229   : > { %7548 = vperm.xlu1 %10866, %v7508_v2   ;;  %v7876_v2 = vld [vmem:[%s15344_s2 + $0x60] sm:$0xff] }
0x322c   : > { %7769 = vperm.xlu0 %10845, %v7765_v33   ;;  %v7878_v33 = vld [vmem:[%s15344_s2 + $0x70] sm:$0xff] }
0x322d   : > { %7774 = vperm.xlu1 %10866, %v7766_v11   ;;  %v10384_v11 = vpack.c.bf16 %v7878_v33, %v7876_v2  ;;  %v7958_v2 = vld [vmem:[%s15345_s0 + $0x8] sm:$0xff] }
0x328e   : > { %v11229_v20 = vpop.permute.xlu0 %11228 }
0x328f   : > { %v11231_v21 = vunpack.i.h.bf16 %v11229_v20  ;;  %v11230_v25 = vunpack.i.l.bf16 %v11229_v20  ;;  %v11234_v26 = vpop.permute.xlu1 %11233 }
0x3290   : > { %v11236_v40 = vunpack.i.h.bf16 %v11234_v26  ;;  %v11235_v63 = vunpack.i.l.bf16 %v11234_v26 }
0x3292   : > { %v7519_v27 = vsel %vm3098_vm1, %v11235_v63, %v11230_v25  ;;  %v7520_v14 = vsel %vm3098_vm1, %v11236_v40, %v11231_v21  ;;  %v11239_v23 = vpop.permute.xlu0 %11238  ;;  %v7517_v28 = vsel %vm3098_vm1, %v11230_v25, %v11235_v63  ;;  %v7518_v12 = vsel %vm3098_vm1, %v11231_v21, %v11236_v40 }
0x3293   : > { %v10340_v59 = vpack.c.bf16 %v7520_v14, %v7519_v27  ;;  %v11241_v34 = vunpack.i.h.bf16 %v11239_v23  ;;  %v11240_v17 = vunpack.i.l.bf16 %v11239_v23  ;;  %v11244_v35 = vpop.permute.xlu1 %11243  ;;  %v10338_v42 = vpack.c.bf16 %v7518_v12, %v7517_v28 }
0x3294   : > { %v11246_v43 = vunpack.i.h.bf16 %v11244_v35  ;;  %v11245_v29 = vunpack.i.l.bf16 %v11244_v35 }
0x3295   : > { %10339 = vmatprep.subr.bf16.mxu1 %v10338_v42  ;;  %10353 = vmatprep.subr.bf16.mxu0 %v10338_v42 }
0x3296   : > { %v7535_v30 = vsel %vm3117_vm3, %v11245_v29, %v11240_v17  ;;  %v7536_v31 = vsel %vm3117_vm3, %v11246_v43, %v11241_v34  ;;  %10342 = vmatpush1.bf16.msk.msra.mxu1 %vm13862_vm4, %v10340_v59  ;;  %10356 = vmatpush1.bf16.msk.msra.mxu0 %vm13862_vm4, %v10340_v59  ;;  %v7533_v32 = vsel %vm3117_vm3, %v11240_v17, %v11245_v29 }
0x3297   : > { %10344 = vmatprep.subr.bf16.mxu1 %v10343_v57  ;;  %10358 = vmatprep.subr.bf16.mxu0 %v10343_v57  ;;  %v7534_v44 = vsel %vm3117_vm3, %v11241_v34, %v11246_v43  ;;  %v10347_v45 = vpack.c.bf16 %v7536_v31, %v7535_v30  ;;  %v7877_v57 = vld [vmem:[%s15344_s2 + $0x68] sm:$0xff] }
0x3298   : > { %v10350_v49 = vpack.c.bf16 %v7534_v44, %v7533_v32  ;;  %v10382_v8 = vpack.c.bf16 %v7879_v61, %v7877_v57 }
0x329a   : > { %10346 = vmatpush1.bf16.msra.mxu1 %v10345_v6  ;;  %10360 = vmatpush1.bf16.msra.mxu0 %v10345_v6  ;;  %v7872_v6 = vld [vmem:[%s15344_s2 + $0x40] sm:$0xff]  ;;  %s15346_s2 = smov %s15345_s0  ;;  %s15347_s0 = sld [smem:[#allocation145_spill]] }
0x329b   : > { %10349 = vmatprep.subr.msk.bf16.mxu1 %vm13876_vm6, %v10347_v45  ;;  %10363 = vmatprep.subr.msk.bf16.mxu0 %vm13876_vm6, %v10347_v45  ;;  %v10380_v37 = vpack.c.bf16 %v7874_v7, %v7872_v6  ;;  %v7960_v33 = vld [vmem:[%s15346_s2 + $0x18] sm:$0xff] }
0x329e   : > { %10351 = vmatpush1.bf16.msra.mxu1 %v10350_v49  ;;  %10365 = vmatpush1.bf16.msra.mxu0 %v10350_v49 }
0x329f   : > { %10371 = vmatprep.subr.bf16.mxu0 %v10370_v50 }
0x32a1   : > { %9100 = vmatmul.mubr.msk.f32.vlgmr.msra.gmra.mrb[46].mxu1 %vm3136_vm7, %v7505_v60  ;;  %9106 = vmatmul.mubr.msk.f32.vlgmr.msra.gmra.mrb[58].mxu0 %vm3136_vm7, %v7638_v41 }
0x32a2   : > { %7627 = vmatprep.mubr.f32.mxu1 %v12624_v0  ;;  %10373 = vmatpush1.bf16.msra.mxu0 %v10372_v1 }
0x32a3   : > { %7728 = vmatprep.mubr.f32.mxu0 %v12624_v0  ;;  %10375 = vmatprep.subr.bf16.mxu0 %v10374_v3  ;;  %v7645_v20 = vpop.permute.xlu0 %7644 }
0x32a4   : > { %v7650_v14 = vpop.permute.xlu1 %7649 }
0x32a5   : > { %9101 = vmatmul.mubr.msk.f32.gmra.mrb[48].mxu1 %vm3136_vm7, %v7506_v55  ;;  %9107 = vmatmul.mubr.msk.f32.gmra.mrb[60].mxu0 %vm3136_vm7, %v7639_v62 }
0x32a6   : > { %7847 = vmatprep.mubr.f32.mxu1 %v12624_v0  ;;  %10377 = vmatpush1.bf16.msra.mxu0 %v10376_v38 }
0x32a7   : > { %7944 = vmatprep.mubr.f32.mxu0 %v12624_v0  ;;  %10379 = vmatprep.subr.bf16.mxu0 %v10378_v58  ;;  %v7544_v43 = vpop.permute.xlu0 %7543 }
0x32a8   : > { %v7549_v30 = vpop.permute.xlu1 %7548 }
0x32aa   : > { %10381 = vmatpush1.bf16.msra.mxu0 %v10380_v37 }
0x32ab   : > { %10383 = vmatprep.subr.bf16.mxu0 %v10382_v8 }
0x32ae   : > { %10385 = vmatpush1.bf16.msra.mxu0 %v10384_v11 }
0x32b1   : > { %9114 = vmatmul.mubr.msk.f32.vlgmr.msra.gmra.mrb[62].mxu0 %vm5454_vm13, %v14478_v22 }
0x32b2   : > { %7950 = vmatprep.mubr.f32.mxu0 %v12624_v0 }
0x32b5   : > { %9115 = vmatmul.mubr.msk.f32.gmra.mrb[64].mxu0 %vm5454_vm13, %v14481_v56 }
0x3374   : > { %v7623_v21 = vpop.f32.mrb[46].mxu1  ;;  %v7724_v25 = vpop.f32.mrb[58].mxu0 }
0x3375   : > { %v7625_v26 = vpop.f32.mrb[47].mxu1  ;;  %v7725_v40 = vadd.f32 %v7724_v25, %v7645_v20  ;;  %v7726_v63 = vpop.f32.mrb[59].mxu0  ;;  %v7624_v29 = vadd.f32 %v7623_v21, %v7544_v43  ;;  %v10386_v25 = vpack.c.bf16 %v7960_v33, %v7958_v2  ;;  %v7986_v2 = vld [vmem:[%s15346_s2 + $0xe8] sm:$0xff]  ;;  %v7988_v33 = vld [vmem:[%s15346_s2 + $0xf8] sm:$0xff] }
0x3376   : > { %v7727_v27 = vadd.f32 %v7726_v63, %v7645_v20  ;;  %v7626_v31 = vadd.f32 %v7625_v26, %v7544_v43  ;;  %v7957_v26 = vld [vmem:[%s15346_s2] sm:$0xff]  ;;  %v7962_v63 = vld [vmem:[%s15346_s2 + $0x28] sm:$0xff]  ;;  %v7967_v43 = vld [vmem:[%s15346_s2 + $0x50] sm:$0xff] }
0x3377   : > { %v9108_v23 = vmul.f32 -1.442695, %v7725_v40  ;;  %v7959_v40 = vld [vmem:[%s15346_s2 + $0x10] sm:$0xff] }
0x3378   : > { %v7629_v28 = vpop.f32.mrb[48].mxu1  ;;  %v9109_v12 = vmul.f32 -1.442695, %v7727_v27  ;;  %v7730_v59 = vpop.f32.mrb[60].mxu0  ;;  %v7964_v27 = vld [vmem:[%s15346_s2 + $0x38] sm:$0xff] }
0x3379   : > { %v7631_v34 = vpop.f32.mrb[49].mxu1  ;;  %11399 = vpow2.f32 %v9108_v23  ;;  %v7731_v22 = vadd.f32 %v7730_v59, %v7650_v14  ;;  %v7732_v17 = vpop.f32.mrb[61].mxu0  ;;  %v7630_v32 = vadd.f32 %v7629_v28, %v7549_v30  ;;  %v10388_v23 = vpack.c.bf16 %v7959_v40, %v7957_v26  ;;  %v7963_v59 = vld [vmem:[%s15346_s2 + $0x30] sm:$0xff] }
0x337a   : > { %11401 = vpow2.f32 %v9109_v12  ;;  %v7733_v35 = vadd.f32 %v7732_v17, %v7650_v14  ;;  %v7632_v47 = vadd.f32 %v7631_v34, %v7549_v30  ;;  %v7763_v14 = vld [vmem:[#allocation24] sm:$0xff]  ;;  %v10390_v28 = vpack.c.bf16 %v7964_v27, %v7962_v63  ;;  %v7961_v12 = vld [vmem:[%s15346_s2 + $0x20] sm:$0xff]  ;;  %v7966_v34 = vld [vmem:[%s15346_s2 + $0x48] sm:$0xff]  ;;  %v7770_v40 = vpop.permute.xlu0 %7769  ;;  %v7775_v63 = vpop.permute.xlu1 %7774 }
0x337b   : > { %v9110_v42 = vmul.f32 -1.442695, %v7731_v22  ;;  %v7968_v22 = vld [vmem:[%s15346_s2 + $0x58] sm:$0xff] }
0x337c   : > { %v9111_v56 = vmul.f32 -1.442695, %v7733_v35  ;;  %v7764_v17 = vld [vmem:[#allocation24 + $0x8] sm:$0xff]  ;;  %v10392_v35 = vpack.c.bf16 %v7963_v59, %v7961_v12 }
0x337d   : > { %11403 = vpow2.f32 %v9110_v42  ;;  %v10394_v42 = vpack.c.bf16 %v7968_v22, %v7966_v34  ;;  %v7972_v30 = vld [vmem:[%s15346_s2 + $0x78] sm:$0xff] }
0x337e   : > { %11405 = vpow2.f32 %v9111_v56  ;;  %v7965_v56 = vld [vmem:[%s15346_s2 + $0x40] sm:$0xff] }
0x337f   : > { %11407 = vtanh.f32 %v7624_v29  ;;  %v7970_v29 = vld [vmem:[%s15346_s2 + $0x68] sm:$0xff] }
0x3380   : > { %11409 = vtanh.f32 %v7626_v31  ;;  %v10396_v31 = vpack.c.bf16 %v7967_v43, %v7965_v56 }
0x3381   : > { %11411 = vtanh.f32 %v7630_v32  ;;  %v10398_v32 = vpack.c.bf16 %v7972_v30, %v7970_v29 }
0x3383   : > { %v11400_v44 = vpop.eup %11399 }
0x3384   : > { %v11402_v45 = vpop.eup %11401  ;;  %v7747_v46 = vadd.f32 1.0, %v11400_v44  ;;  %v14783_v49 = vpop.f32.mrb[62].mxu0  ;;  %v7969_v44 = vld [vmem:[%s15346_s2 + $0x60] sm:$0xff] }
0x3385   : > { %v7748_v50 = vadd.f32 1.0, %v11402_v45  ;;  %v14785_v51 = vpop.f32.mrb[63].mxu0  ;;  %v7971_v45 = vld [vmem:[%s15346_s2 + $0x70] sm:$0xff] }
0x3386   : > { %11413 = vrcp.f32 %v7747_v46  ;;  %v7974_v46 = vld [vmem:[%s15346_s2 + $0x88] sm:$0xff] }
0x3387   : > { %v11404_v52 = vpop.eup %11403  ;;  %11415 = vrcp.f32 %v7748_v50  ;;  %v10400_v50 = vpack.c.bf16 %v7971_v45, %v7969_v44 }
0x3388   : > { %v11406_v53 = vpop.eup %11405  ;;  %v7749_v54 = vadd.f32 1.0, %v11404_v52  ;;  %11417 = vtanh.f32 %v7632_v47  ;;  %v14787_v60 = vpop.f32.mrb[64].mxu0  ;;  %v7976_v47 = vld [vmem:[%s15346_s2 + $0x98] sm:$0xff] }
0x3389   : > { %v7750_v41 = vadd.f32 1.0, %v11406_v53  ;;  %v14791_v1 = vpack.i.bf16 %v14787_v60, %v14783_v49  ;;  %v10435_v3 = vpack.c.bf16 %v14787_v60, %v14783_v49  ;;  %v14795_v4 = vpop.f32.mrb[65].mxu0  ;;  %v11408_v5 = vpop.eup %11407  ;;  %v10402_v52 = vpack.c.bf16 %v7976_v47, %v7974_v46  ;;  %v7973_v53 = vld [vmem:[%s15346_s2 + $0x80] sm:$0xff] }
0x338a   : > { %11419 = vrcp.f32 %v7749_v54  ;;  %v14799_v18 = vpack.i.bf16 %v14795_v4, %v14785_v51  ;;  %v10433_v13 = vpack.c.bf16 %v14795_v4, %v14785_v51  ;;  %v11410_v55 = vpop.eup %11409  ;;  %v7975_v54 = vld [vmem:[%s15346_s2 + $0x90] sm:$0xff] }
0x338b   : > { %11421 = vrcp.f32 %v7750_v41  ;;  %11248 = vrot.lane.b32.xlu0 %v14791_v1, %s15287_s3  ;;  %v11412_v62 = vpop.eup %11411  ;;  %v7978_v41 = vld [vmem:[%s15346_s2 + $0xa8] sm:$0xff] }
0x338c   : > { %11253 = vrot.lane.b32.xlu1 %v14799_v18, %s15287_s3 }
0x3390   : > { %v11414_v38 = vpop.eup %11413 }
0x3391   : > { %v11416_v58 = vpop.eup %11415  ;;  %v7759_v6 = vmul.f32 %v11414_v38, %v11408_v5  ;;  %v7980_v5 = vld [vmem:[%s15346_s2 + $0xb8] sm:$0xff]  ;;  %v7977_v38 = vld [vmem:[%s15346_s2 + $0xa0] sm:$0xff] }
0x3392   : > { %v11418_v7 = vpop.eup %11417  ;;  %v7760_v57 = vmul.f32 %v11416_v58, %v11410_v55  ;;  %v10404_v55 = vpack.c.bf16 %v7975_v54, %v7973_v53  ;;  %v7979_v58 = vld [vmem:[%s15346_s2 + $0xb0] sm:$0xff] }
0x3394   : > { %v11420_v61 = vpop.eup %11419 }
0x3395   : > { %v11422_v37 = vpop.eup %11421  ;;  %v7761_v8 = vmul.f32 %v11420_v61, %v11412_v62  ;;  %v10406_v62 = vpack.c.bf16 %v7980_v5, %v7978_v41 }
0x3396   : > { %v7762_v11 = vmul.f32 %v11422_v37, %v11418_v7  ;;  %v7984_v7 = vld [vmem:[%s15346_s2 + $0xd8] sm:$0xff]  ;;  %v7981_v37 = vld [vmem:[%s15346_s2 + $0xc0] sm:$0xff] }
0x3397   : > { %v10368_v20 = vpack.c.bf16 %v7761_v8, %v7759_v6  ;;  %v7982_v6 = vld [vmem:[%s15346_s2 + $0xc8] sm:$0xff]  ;;  %v7983_v8 = vld [vmem:[%s15346_s2 + $0xd0] sm:$0xff] }
0x3398   : > { %v10366_v21 = vpack.c.bf16 %v7762_v11, %v7760_v57  ;;  %v10408_v57 = vpack.c.bf16 %v7979_v58, %v7977_v38  ;;  %v10410_v61 = vpack.c.bf16 %v7984_v7, %v7982_v6  ;;  %v10412_v11 = vpack.c.bf16 %v7983_v8, %v7981_v37  ;;  %v8068_v38 = vld [vmem:[%s15347_s0] sm:$0xff]  ;;  %v8067_v58 = vld [vmem:[#allocation55 + $0x8] sm:$0xff]  ;;  %s9133_s0 = sshll.u32 %s15357_s7, 4 }
0x3399   : > { %9128 = vmatprep.mubr.msk.f32.mxu0 %vm4088_vm8, %v8067_v58 }
0x339a   : > { %10367 = vmatprep.subr.bf16.mxu1 %v10366_v21  ;;  %v7985_v21 = vld [vmem:[%s15346_s2 + $0xe0] sm:$0xff] }
0x339b   : > { %10369 = vmatpush1.bf16.msra.mxu1 %v10368_v20  ;;  %v10414_v20 = vpack.c.bf16 %v7988_v33, %v7986_v2 }
0x339c   : > { %10387 = vmatprep.subr.bf16.mxu1 %v10386_v25  ;;  %v7987_v25 = vld [vmem:[%s15346_s2 + $0xf0] sm:$0xff] }
0x339d   : > { %v10416_v26 = vpack.c.bf16 %v7987_v25, %v7985_v21 }
0x339e   : > { %9112 = vmatmul.mubr.msk.f32.vlgmr.msra.gmra.mrb[50].mxu1 %vm4088_vm8, %v7763_v14 }
0x339f   : > { %10389 = vmatpush1.bf16.msra.mxu1 %v10388_v23  ;;  %7853 = vmatprep.mubr.f32.mxu1 %v12624_v0 }
0x33a0   : > { %10391 = vmatprep.subr.bf16.mxu1 %v10390_v28 }
0x33a2   : > { %9113 = vmatmul.mubr.msk.f32.gmra.mrb[52].mxu1 %vm4088_vm8, %v7764_v17 }
0x33a3   : > { %10393 = vmatpush1.bf16.msra.mxu1 %v10392_v35  ;;  %8053 = vmatprep.mubr.f32.mxu1 %v12624_v0 }
0x33a4   : > { %10395 = vmatprep.subr.bf16.mxu1 %v10394_v42 }
0x33a7   : > { %10397 = vmatpush1.bf16.msra.mxu1 %v10396_v31 }
0x33a8   : > { %10399 = vmatprep.subr.bf16.mxu1 %v10398_v32 }
0x33ab   : > { %10401 = vmatpush1.bf16.msra.mxu1 %v10400_v50 }
0x33ac   : > { %10403 = vmatprep.subr.bf16.mxu1 %v10402_v52 }
0x33af   : > { %10405 = vmatpush1.bf16.msra.mxu1 %v10404_v55 }
0x33b0   : > { %10407 = vmatprep.subr.bf16.mxu1 %v10406_v62 }
0x33b3   : > { %10409 = vmatpush1.bf16.msra.mxu1 %v10408_v57 }
0x33b4   : > { %10411 = vmatprep.subr.bf16.mxu1 %v10410_v61 }
0x33b7   : > { %10413 = vmatpush1.bf16.msra.mxu1 %v10412_v11 }
0x33b8   : > { %10415 = vmatprep.subr.bf16.mxu1 %v10414_v20 }
0x33bb   : > { %10417 = vmatpush1.bf16.msra.mxu1 %v10416_v26 }
0x33be   : > { %8054 = vmatmul.mubr.f32.vlgmr.msra.gmra.mrb[54].mxu1 %v14597_v36 }
0x33bf   : > { %8059 = vmatprep.mubr.f32.mxu1 %v12624_v0 }
0x33c2   : > { %8060 = vmatmul.mubr.f32.gmra.mrb[56].mxu1 %v14602_v16 }
0x33c3   : > { %8314 = vmatprep.mubr.f32.mxu1 %v12624_v0 }
0x33fd   : > { %v11249_v27 = vpop.permute.xlu0 %11248 }
0x33fe   : > { %v11251_v14 = vunpack.i.h.bf16 %v11249_v27  ;;  %v11250_v23 = vunpack.i.l.bf16 %v11249_v27  ;;  %v11254_v28 = vpop.permute.xlu1 %11253 }
0x33ff   : > { %v11256_v12 = vunpack.i.h.bf16 %v11254_v28  ;;  %v11255_v59 = vunpack.i.l.bf16 %v11254_v28 }
0x3401   : > { %v8100_v34 = vsel %vm3098_vm1, %v11256_v12, %v11251_v14  ;;  %v8099_v36 = vsel %vm3098_vm1, %v11255_v59, %v11250_v23  ;;  %v8093_v22 = vsel %vm3098_vm1, %v11250_v23, %v11255_v59  ;;  %v8094_v0 = vsel %vm3098_vm1, %v11251_v14, %v11256_v12 }
0x3402   : > { %v10420_v16 = vpack.c.bf16 %v8100_v34, %v8099_v36  ;;  %v10418_v17 = vpack.c.bf16 %v8094_v0, %v8093_v22 }
0x3404   : > { %10419 = vmatprep.subr.bf16.mxu0 %v10418_v17 }
0x3405   : > { %10422 = vmatpush1.bf16.msk.msra.mxu0 %vm13862_vm4, %v10420_v16 }
0x3471   : > { %v7849_v35 = vpop.f32.mrb[50].mxu1 }
0x3472   : > { %v7851_v42 = vpop.f32.mrb[51].mxu1  ;;  %v7850_v56 = vadd.f32 %v7849_v35, %v7770_v40 }
0x3473   : > { %v7852_v43 = vadd.f32 %v7851_v42, %v7770_v40 }
0x3474   : > { %v14858_v44 = vadd.f32 %v7850_v56, %v14674_v9 }
0x3475   : > { %v7855_v29 = vpop.f32.mrb[52].mxu1  ;;  %v14864_v46 = vadd.f32 %v7852_v43, %v14678_v15 }
0x3476   : > { %v7856_v30 = vadd.f32 %v7855_v29, %v7775_v63  ;;  %v7857_v31 = vpop.f32.mrb[53].mxu1 }
0x3477   : > { %v7858_v32 = vadd.f32 %v7857_v31, %v7775_v63 }
0x3478   : > { %v14861_v45 = vadd.f32 %v7856_v30, %v14676_v10 }
0x3479   : > { %v14867_v47 = vadd.f32 %v7858_v32, %v14680_v19 }
0x347a   : > { %v11292_v50 = vpack.i.bf16 %v14861_v45, %v14858_v44  ;;  %v10443_v52 = vpack.c.bf16 %v14861_v45, %v14858_v44 }
0x347b   : > { %v11302_v53 = vpack.i.bf16 %v14867_v47, %v14864_v46  ;;  %v10441_v9 = vpack.c.bf16 %v14867_v47, %v14864_v46 }
0x3491   : > { %v14877_v10 = vpop.f32.mrb[54].mxu1 }
0x3492   : > { %v8057_v54 = vpop.f32.mrb[55].mxu1 }
0x3495   : > { %v14879_v15 = vpop.f32.mrb[56].mxu1 }
0x3496   : > { %v11287_v19 = vpack.i.bf16 %v14879_v15, %v14877_v10  ;;  %v10439_v41 = vpack.c.bf16 %v14879_v15, %v14877_v10  ;;  %v8063_v5 = vpop.f32.mrb[57].mxu1 }
0x3497   : > { %v11297_v55 = vpack.i.bf16 %v8063_v5, %v8057_v54  ;;  %v10437_v62 = vpack.c.bf16 %v8063_v5, %v8057_v54 }
0x3498   : > { %11258 = vrot.lane.b32.xlu0 %v11287_v19, %s15287_s3 }
0x3499   : > { %11268 = vrot.lane.b32.xlu1 %v11297_v55, %s15287_s3 }
0x349c   : > { %11263 = vrot.lane.b32.xlu0 %v11292_v50, %s15287_s3 }
0x349d   : > { %11273 = vrot.lane.b32.xlu1 %v11302_v53, %s15287_s3  ;;  %s15349_s3 = sld [smem:[#allocation151_spill]] }
0x34a0   : > { %11278 = vrot.lane.b32.xlu0 %v14791_v1, %s15289_s5 }
0x34a1   : > { %11283 = vrot.lane.b32.xlu1 %v14799_v18, %s15289_s5 }
0x34a3   : > { %s2980_s2 = scalar_lea.vmem %s15349_s3, %s9133_s0 }
0x34a4   : > { %11288 = vrot.lane.b32.xlu0 %v11287_v19, %s15289_s5 }
0x34a5   : > { %11298 = vrot.lane.b32.xlu1 %v11297_v55, %s15289_s5 }
0x34a8   : > { %11293 = vrot.lane.b32.xlu0 %v11292_v50, %s15289_s5 }
0x34a9   : > { %11303 = vrot.lane.b32.xlu1 %v11302_v53, %s15289_s5  ;;  %s15348_s5 = sld [smem:[#allocation83_spill]] }
0x34ac   : > { %8167 = vperm.xlu0 %10845, %v8068_v38   ;;  %v8066_v38 = vld [vmem:[#allocation55] sm:$0xff] }
0x350a   : > { %v11259_v6 = vpop.permute.xlu0 %11258 }
0x350b   : > { %v11261_v7 = vunpack.i.h.bf16 %v11259_v6  ;;  %v11260_v57 = vunpack.i.l.bf16 %v11259_v6  ;;  %v11269_v1 = vpop.permute.xlu1 %11268 }
0x350c   : > { %v11271_v61 = vunpack.i.h.bf16 %v11269_v1  ;;  %v11270_v37 = vunpack.i.l.bf16 %v11269_v1 }
0x350e   : > { %v8102_v18 = vsel %vm3098_vm1, %v11271_v61, %v11261_v7  ;;  %v8101_v8 = vsel %vm3098_vm1, %v11270_v37, %v11260_v57  ;;  %v11264_v2 = vpop.permute.xlu0 %11263  ;;  %v8095_v33 = vsel %vm3098_vm1, %v11260_v57, %v11270_v37  ;;  %v8096_v11 = vsel %vm3098_vm1, %v11261_v7, %v11271_v61  ;;  %v8244_v37 = vld [vmem:[%s15348_s5] sm:$0xff] }
0x350f   : > { %v10425_v20 = vpack.c.bf16 %v8102_v18, %v8101_v8  ;;  %v11266_v21 = vunpack.i.h.bf16 %v11264_v2  ;;  %v11265_v25 = vunpack.i.l.bf16 %v11264_v2  ;;  %v11274_v26 = vpop.permute.xlu1 %11273  ;;  %v10423_v40 = vpack.c.bf16 %v8096_v11, %v8095_v33 }
0x3510   : > { %v11276_v63 = vunpack.i.h.bf16 %v11274_v26  ;;  %v11275_v27 = vunpack.i.l.bf16 %v11274_v26 }
0x3511   : > { %10424 = vmatprep.subr.bf16.mxu0 %v10423_v40 }
0x3512   : > { %v8103_v14 = vsel %vm3098_vm1, %v11275_v27, %v11265_v25  ;;  %v8104_v23 = vsel %vm3098_vm1, %v11276_v63, %v11266_v21  ;;  %10427 = vmatpush1.bf16.msk.msra.mxu0 %vm13862_vm4, %v10425_v20  ;;  %v8097_v28 = vsel %vm3098_vm1, %v11265_v25, %v11275_v27  ;;  %v8098_v12 = vsel %vm3098_vm1, %v11266_v21, %v11276_v63  ;;  %v11279_v34 = vpop.permute.xlu0 %11278 }
0x3513   : > { %v10430_v59 = vpack.c.bf16 %v8104_v23, %v8103_v14  ;;  %v11284_v36 = vpop.permute.xlu1 %11283  ;;  %v10428_v22 = vpack.c.bf16 %v8098_v12, %v8097_v28  ;;  %v11281_v17 = vunpack.i.h.bf16 %v11279_v34  ;;  %v11280_v35 = vunpack.i.l.bf16 %v11279_v34 }
0x3514   : > { %v11286_v42 = vunpack.i.h.bf16 %v11284_v36  ;;  %v11285_v56 = vunpack.i.l.bf16 %v11284_v36 }
0x3515   : > { %10429 = vmatprep.subr.bf16.mxu0 %v10428_v22 }
0x3516   : > { %10432 = vmatpush1.bf16.msk.msra.mxu0 %vm13862_vm4, %v10430_v59  ;;  %v11289_v0 = vpop.permute.xlu0 %11288  ;;  %v8147_v31 = vsel %vm3117_vm3, %v11285_v56, %v11280_v35  ;;  %v8148_v51 = vsel %vm3117_vm3, %v11286_v42, %v11281_v17  ;;  %v8141_v49 = vsel %vm3117_vm3, %v11280_v35, %v11285_v56  ;;  %v8142_v60 = vsel %vm3117_vm3, %v11281_v17, %v11286_v42 }
0x3517   : > { %10434 = vmatprep.subr.bf16.mxu0 %v10433_v13  ;;  %v11299_v16 = vpop.permute.xlu1 %11298  ;;  %v11291_v43 = vunpack.i.h.bf16 %v11289_v0  ;;  %v11290_v29 = vunpack.i.l.bf16 %v11289_v0  ;;  %v10448_v46 = vpack.c.bf16 %v8142_v60, %v8141_v49 }
0x3518   : > { %v11301_v30 = vunpack.i.h.bf16 %v11299_v16  ;;  %v11300_v39 = vunpack.i.l.bf16 %v11299_v16 }
0x351a   : > { %10436 = vmatpush1.bf16.msra.mxu0 %v10435_v3  ;;  %v11294_v4 = vpop.permute.xlu0 %11293  ;;  %v10445_v3 = vpack.c.bf16 %v8148_v51, %v8147_v31  ;;  %v8149_v32 = vsel %vm3117_vm3, %v11300_v39, %v11290_v29  ;;  %v8150_v50 = vsel %vm3117_vm3, %v11301_v30, %v11291_v43  ;;  %v8143_v47 = vsel %vm3117_vm3, %v11290_v29, %v11300_v39 }
0x351b   : > { %10438 = vmatprep.subr.bf16.mxu0 %v10437_v62  ;;  %v11304_v13 = vpop.permute.xlu1 %11303  ;;  %v11296_v53 = vunpack.i.h.bf16 %v11294_v4  ;;  %v11295_v10 = vunpack.i.l.bf16 %v11294_v4  ;;  %v10450_v19 = vpack.c.bf16 %v8150_v50, %v8149_v32 }
0x351c   : > { %v11306_v54 = vunpack.i.h.bf16 %v11304_v13  ;;  %v11305_v15 = vunpack.i.l.bf16 %v11304_v13 }
0x351e   : > { %10440 = vmatpush1.bf16.msra.mxu0 %v10439_v41  ;;  %v8151_v41 = vsel %vm3117_vm3, %v11305_v15, %v11295_v10  ;;  %v8152_v5 = vsel %vm3117_vm3, %v11306_v54, %v11296_v53  ;;  %v8145_v45 = vsel %vm3117_vm3, %v11295_v10, %v11305_v15 }
0x351f   : > { %10442 = vmatprep.subr.bf16.mxu0 %v10441_v9  ;;  %v8144_v9 = vsel %vm3117_vm3, %v11291_v43, %v11301_v30  ;;  %v10455_v55 = vpack.c.bf16 %v8152_v5, %v8151_v41 }
0x3520   : > { %v10453_v44 = vpack.c.bf16 %v8144_v9, %v8143_v47 }
0x3522   : > { %10444 = vmatpush1.bf16.msra.mxu0 %v10443_v52  ;;  %v8146_v52 = vsel %vm3117_vm3, %v11296_v53, %v11306_v54 }
0x3523   : > { %10447 = vmatprep.subr.msk.bf16.mxu0 %vm13876_vm6, %v10445_v3  ;;  %v10458_v62 = vpack.c.bf16 %v8146_v52, %v8145_v45 }
0x3526   : > { %10449 = vmatpush1.bf16.msra.mxu0 %v10448_v46 }
0x3527   : > { %10452 = vmatprep.subr.msk.bf16.mxu0 %vm13876_vm6, %v10450_v19 }
0x352a   : > { %10454 = vmatpush1.bf16.msra.mxu0 %v10453_v44 }
0x352b   : > { %10457 = vmatprep.subr.msk.bf16.mxu0 %vm13876_vm6, %v10455_v55  ;;  %v8168_v58 = vpop.permute.xlu0 %8167 }
0x352e   : > { %10459 = vmatpush1.bf16.msra.mxu0 %v10458_v62 }
0x3531   : > { %8238 = vmatmul.mubr.f32.vlgmr.msra.gmra.mrb[66].mxu0 %v8066_v38 }
0x3604   : > { %v8239_v6 = vpop.f32.mrb[66].mxu0 }
0x3605   : > { %v8240_v7 = vadd.f32 %v8239_v6, %v8168_v58  ;;  %v8241_v57 = vpop.f32.mrb[67].mxu0 }
0x3606   : > { %v8242_v1 = vadd.f32 %v8241_v57, %v8168_v58 }
0x3607   : > { %v8245_v24 = vmul.f32 %v8240_v7, %v8240_v7 }
0x3608   : > { %v8246_v61 = vmul.f32 %v8242_v1, %v8242_v1 }
0x360a   : > { %8250 = vmatprep.subr.mxu1 %v8246_v61 }
0x360b   : > { %8251 = vmatpush1.msra.mxu1 %v8245_v24 }
0x360c   : > { %9129 = vmatmul.mubr.msk.f32.vlgmr.msra.gmra.mrb[58].mxu1 %vm2997_vm0, %v8244_v37 }
0x36df   : > { %v8316_v48 = vpop.f32.mrb[58].mxu1 }
0x36e0   : > { %v8321_v18 = vmax.f32 %v8316_v48, 1e-24  ;;  %v8318_v8 = vpop.f32.mrb[59].mxu1 }
0x36e1   : > { %v8322_v2 = vmax.f32 %v8318_v8, 1e-24 }
0x36e2   : > { %11423 = vrsqrt.f32 %v8321_v18 }
0x36e3   : > { %11425 = vrsqrt.f32 %v8322_v2 }
0x36ec   : > { %v11424_v33 = vpop.eup %11423 }
0x36ed   : > { %v11426_v11 = vpop.eup %11425  ;;  %v8325_v20 = vmul.f32 %v11424_v33, %v8240_v7 }
0x36ee   : > { %v8326_v21 = vmul.f32 %v11426_v11, %v8242_v1 }
0x36ef   : > { %8327 = vst [vmem:[%s2980_s2] sm:$0xff] %v8325_v20 }
0x36f0   : > { %8328 = vst [vmem:[%s2980_s2 + $0x8] sm:$0xff] %v8326_v21 }
0x36f1 PF: > { %s15350_s2 = sld [smem:[#allocation152_spill]]  ;;  %s15351_s5 = sld [smem:[#allocation153_spill]] }
0x36f2   : > { %s15352_s0 = smov %s12491_s28  ;;  %s15353_s28 = smov %s12495_s1 }
0x36f7   : > { %p197_p12 = scmp.ge.s32.totalorder %s15350_s2, 4   ;;  %s15354_s1 = smov %s15351_s5 }
0x36f8   : > { %15355 = sst [smem:[#allocation152_spill]] %s15350_s2 }
0x36f9   :  { %199 = sbr.rel (!%p197_p12) target bundleno = 186 (0xba), region = 624 }
0x3700   :  { %8350 = vsyncpa [#allocation3], 1 }
0x3701   :  { %8352 = vsyncpa [#allocation3 + $0x1], 1 }
0x3702   :  { %8353 = vsyncpa [#allocation5], 1 }
0x3703   :  { %8354 = vsyncpa [#allocation8], 1 }
0x3704   :  { %8355 = vsyncpa [#allocation11], 1 }
0x3705   :  { %8356 = vsyncpa [#allocation14], 1 }
0x3706   :  { %8357 = vsyncpa [#allocation17], 1 }
0x3707   :  { %8358 = vsyncpa [#allocation20], 1 }
0x3708   :  { %8359 = vsyncpa [#allocation23], 1 }
0x3709   :  { %8360 = vsyncpa [#allocation26], 1 }
0x370a   :  { %8361 = vsyncpa [#allocation29], 1 }
0x370b   :  { %8362 = vsyncpa [#allocation32], 1 }
0x370c   :  { %8363 = vsyncpa [#allocation35], 1 }
0x370d   :  { %8364 = vsyncpa [#allocation38], 1 }
0x370e   :  { %8365 = vsyncpa [#allocation41], 1 }
0x370f   :  { %8366 = vsyncpa [#allocation44], 1 }
0x3710   :  { %8367 = vsyncpa [#allocation47], 1 }
0x3711   :  { %8368 = vsyncpa [#allocation50], 1 }
0x3712   :  { %8369 = vsyncpa [#allocation53], 1 }
0x3713   :  { %8370 = vsyncpa [#allocation56], 1 }

</bundles_post_ra>
